<compile_context>
chip_gen: v6e
topology: v6e:2x2x1
jax: 0.10.0
libtpu: 0.0.40
codegen_flags: <defaults>
</compile_context>

<pallas_src>
import functools

import jax
import jax.numpy as jnp
from jax.experimental import pallas as pl
from jax.experimental.pallas import tpu as pltpu


def _encoder_layer_kernel(
    hs_ref, mask_ref,
    g1_ref, be1_ref,
    wqkv_ref, bqkv_ref,
    wo_ref, bo_ref,
    g2_ref, be2_ref,
    wfc1_ref, bfc1_ref, wfc2_ref, bfc2_ref,
    out_ref,
    qkv_scr, ctx_scr,
    *, num_heads: int, eps: float,
):
    f32 = jnp.float32
    bf16 = jnp.bfloat16

    x = hs_ref[0]                       # (S, D) f32
    S, D = x.shape
    H = num_heads
    hd = D // H

    def layernorm(v, gamma, beta):
        # One-pass stats: mean and E[x^2] are independent reductions,
        # var = E[x^2] - mean^2 (matches nn.LayerNorm's biased variance).
        mu = jnp.mean(v, axis=-1, keepdims=True)
        ex2 = jnp.mean(v * v, axis=-1, keepdims=True)
        var = ex2 - mu * mu
        return (v - mu) * jax.lax.rsqrt(var + eps) * gamma + beta

    # ---- self-attention ----------------------------------------------------
    residual = x
    h16 = layernorm(x, g1_ref[0], be1_ref[0]).astype(bf16)

    # Fused QKV projection: 1/sqrt(head_dim) already folded into the Q columns
    # of wqkv / bqkv on the host.  One (S,D)x(D,3D) MXU pass, f32 accumulation.
    qkv_scr[...] = (jnp.dot(h16, wqkv_ref[...], preferred_element_type=f32)
                    + bqkv_ref[0]).astype(bf16)                 # (S, 3D) bf16

    mask = mask_ref[0, 0]               # (S, S) combined additive mask, f32

    # Per-head attention.  H is a small static int; per-head slices are window
    # loads from the QKV scratch ref, and each head's context is stored into
    # the (S, D) f32 ctx scratch -> no concatenate, per-head score/exp tiles
    # die at the end of each iteration.
    for head in range(H):
        lo = head * hd
        qh = qkv_scr[:, lo:lo + hd]                 # (S, hd) bf16
        kh = qkv_scr[:, D + lo:D + lo + hd]
        vh = qkv_scr[:, 2 * D + lo:2 * D + lo + hd]
        # scores_h = qh @ kh^T (contract head_dim), f32 accumulation.
        s_h = jax.lax.dot_general(qh, kh, (((1,), (1,)), ((), ())),
                                  preferred_element_type=f32)   # (S, S)
        s_h = s_h + mask
        m_h = jnp.max(s_h, axis=-1, keepdims=True)
        e_h = jnp.exp(s_h - m_h)
        den = jnp.sum(e_h, axis=-1, keepdims=True)
        p_h = (e_h * pl.reciprocal(den, approx=True)).astype(bf16)   # EUP recip
        ctx_scr[:, lo:lo + hd] = jnp.dot(p_h, vh,
                                         preferred_element_type=f32)

    ctx16 = ctx_scr[...].astype(bf16)                                # (S, D)
    attn_out = jnp.dot(ctx16, wo_ref[...],
                       preferred_element_type=f32) + bo_ref[0]
    h = residual + attn_out

    # ---- MLP -----------------------------------------------------------------
    residual = h
    h2 = layernorm(h, g2_ref[0], be2_ref[0]).astype(bf16)
    f = jnp.dot(h2, wfc1_ref[...], preferred_element_type=f32) + bfc1_ref[0]
    f = f * jax.nn.sigmoid(1.702 * f)          # quick_gelu (CLIP hidden_act)
    f = jnp.dot(f.astype(bf16), wfc2_ref[...],
                preferred_element_type=f32) + bfc2_ref[0]

    out_ref[0] = residual + f


def _vmem_limit_bytes(requested: int) -> int:
    """Generation-aware VMEM request: ~78% of physical per-core VMEM, <=100 MiB."""
    phys = 64 * 1024 * 1024                      # tightest generation (v7x per-TC)
    if hasattr(pltpu, "get_tpu_info"):
        try:
            # Info query only -- never changes the kernel configuration logic.
            phys = int(getattr(pltpu.get_tpu_info(), "vmem_capacity_bytes", phys)) or phys
        except Exception:
            pass
    ceiling = min((phys * 25) // 32, 100 * 1024 * 1024)
    return max(32 * 1024 * 1024, min(requested, ceiling))


def clip_encoder_layer(hidden_states, attention_mask, causal_attention_mask,
                       params, *, num_heads, eps=1e-5):
    """hidden_states: (B, S, D) f32; masks: (B, 1, S, S) additive f32."""
    B, S, D = hidden_states.shape
    I = params["wfc1"].shape[1]
    H = num_heads
    hd = D // H
    scale = hd ** (-0.5)

    f32, bf16 = jnp.float32, jnp.bfloat16

    # Combine the two additive masks once on the host (one DMA + one add per step).
    mask = (attention_mask + causal_attention_mask).astype(f32)

    # Fused QKV weight/bias in bf16, with the attention scale folded into Q:
    # (xWq + bq) * s == x(Wq*s) + (bq*s).
    wqkv = jnp.concatenate(
        [params["wq"] * scale, params["wk"], params["wv"]], axis=1).astype(bf16)
    bqkv = jnp.concatenate(
        [params["bq"] * scale, params["bk"], params["bv"]], axis=1).astype(f32)

    wo = params["wo"].astype(bf16)
    wfc1 = params["wfc1"].astype(bf16)
    wfc2 = params["wfc2"].astype(bf16)

    kernel = functools.partial(_encoder_layer_kernel, num_heads=H, eps=eps)

    # Advisory cost estimate for XLA scheduling around the custom call.
    flops = B * (8 * S * D * D + 4 * S * S * D + 4 * S * D * I)
    transcendentals = B * (H * S * S + S * I + H * S + 2 * S)
    bytes_accessed = (2 * B * S * D * 4 + B * S * S * 4
                      + (4 * D * D + 2 * D * I) * 2 + (8 * D + I) * 4)
    cost = pl.CostEstimate(flops=flops, transcendentals=transcendentals,
                           bytes_accessed=bytes_accessed)

    # VMEM budget estimate (~40% headroom), clamped generation-aware.
    vmem_needed = (
        2 * (4 * D * D + 2 * D * I) * 2          # double-buffered bf16 weights
        + 2 * (8 * D + I) * 4                    # double-buffered biases / LN params
        + 4 * S * D * 4 + 2 * S * S * 4          # hidden in/out + mask pipeline blocks
        + S * 3 * D * 2 + S * D * 4              # qkv / ctx scratch
        + (3 * S * D + 4 * S * S + 6 * S * D + 2 * S * I) * 4   # transient activations
    )
    vmem_limit = _vmem_limit_bytes(int(1.4 * vmem_needed))

    const2 = lambda shape: pl.BlockSpec(shape, lambda b: (0, 0))  # grid-constant operands

    in_specs = [
        pl.BlockSpec((1, S, D), lambda b: (b, 0, 0)),        # hidden_states
        pl.BlockSpec((1, 1, S, S), lambda b: (b, 0, 0, 0)),  # combined mask
        const2((1, D)), const2((1, D)),                      # ln1 gamma / beta
        const2((D, 3 * D)), const2((1, 3 * D)),              # fused Wqkv (scaled Q), bqkv
        const2((D, D)), const2((1, D)),                      # Wo, bo
        const2((1, D)), const2((1, D)),                      # ln2 gamma / beta
        const2((D, I)), const2((1, I)),                      # fc1
        const2((I, D)), const2((1, D)),                      # fc2
    ]

    return pl.pallas_call(
        kernel,
        out_shape=jax.ShapeDtypeStruct((B, S, D), f32),
        grid_spec=pltpu.PrefetchScalarGridSpec(
            num_scalar_prefetch=0,
            grid=(B,),
            in_specs=in_specs,
            out_specs=pl.BlockSpec((1, S, D), lambda b: (b, 0, 0)),
            scratch_shapes=[pltpu.VMEM((S, 3 * D), bf16),    # fused QKV (bf16)
                            pltpu.VMEM((S, D), f32)],        # attention context
        ),
        compiler_params=pltpu.CompilerParams(
            dimension_semantics=("parallel",),
            vmem_limit_bytes=vmem_limit),
        cost_estimate=cost,
    )(hidden_states, mask,
      params["g1"], params["b1"],
      wqkv, bqkv,
      wo, params["bo"],
      params["g2"], params["b2"],
      wfc1, params["bfc1"],
      wfc2, params["bfc2"])


def _reference(hidden_states, attention_mask, causal_attention_mask, params,
               *, num_heads, eps):
    """Pure-JAX f32 replica of the PyTorch CLIPEncoderLayer forward (eval mode)."""
    B, S, D = hidden_states.shape
    H = num_heads
    hd = D // H

    def ln(v, g, b):
        mu = jnp.mean(v, -1, keepdims=True)
        var = jnp.mean((v - mu) ** 2, -1, keepdims=True)
        return (v - mu) / jnp.sqrt(var + eps) * g + b

    res = hidden_states
    h = ln(hidden_states, params["g1"], params["b1"])
    q = (h @ params["wq"] + params["bq"]) * (hd ** -0.5)
    k = h @ params["wk"] + params["bk"]
    v = h @ params["wv"] + params["bv"]
    split = lambda t: t.reshape(B, S, H, hd).transpose(0, 2, 1, 3)
    q, k, v = split(q), split(k), split(v)
    s = jnp.einsum("bhqd,bhkd->bhqk", q, k) + causal_attention_mask + attention_mask
    p = jax.nn.softmax(s, axis=-1)
    ctx = jnp.einsum("bhqk,bhkd->bhqd", p, v).transpose(0, 2, 1, 3).reshape(B, S, D)
    h = res + (ctx @ params["wo"] + params["bo"])
    res = h
    h2 = ln(h, params["g2"], params["b2"])
    f = h2 @ params["wfc1"] + params["bfc1"]
    f = f * jax.nn.sigmoid(1.702 * f)
    return res + (f @ params["wfc2"] + params["bfc2"])


def _init_params(key, D, I):
    ks = jax.random.split(key, 12)
    s = 0.05
    return {
        "g1": jnp.ones((1, D), jnp.float32),
        "b1": jnp.zeros((1, D), jnp.float32),
        "wq": s * jax.random.normal(ks[0], (D, D), jnp.float32),
        "bq": s * jax.random.normal(ks[1], (1, D), jnp.float32),
        "wk": s * jax.random.normal(ks[2], (D, D), jnp.float32),
        "bk": s * jax.random.normal(ks[3], (1, D), jnp.float32),
        "wv": s * jax.random.normal(ks[4], (D, D), jnp.float32),
        "bv": s * jax.random.normal(ks[5], (1, D), jnp.float32),
        "wo": s * jax.random.normal(ks[6], (D, D), jnp.float32),
        "bo": s * jax.random.normal(ks[7], (1, D), jnp.float32),
        "g2": jnp.ones((1, D), jnp.float32),
        "b2": jnp.zeros((1, D), jnp.float32),
        "wfc1": s * jax.random.normal(ks[8], (D, I), jnp.float32),
        "bfc1": s * jax.random.normal(ks[9], (1, I), jnp.float32),
        "wfc2": s * jax.random.normal(ks[10], (I, D), jnp.float32),
        "bfc2": s * jax.random.normal(ks[11], (1, D), jnp.float32),
    }


if __name__ == "__main__":
    # Small but non-degenerate, lane-dense config: D=256, 4 heads (head_dim=64,
    # CLIP-like), intermediate=4*D, seq_len=128 (full lane tile), batch=2.
    B, S, D, H, I = 2, 128, 256, 4, 1024
    eps = 1e-5

    key = jax.random.PRNGKey(0)
    k_x, k_p = jax.random.split(key)

    hidden_states = jax.random.normal(k_x, (B, S, D), jnp.float32)
    attention_mask = jnp.zeros((B, 1, S, S), jnp.float32)
    causal = jnp.where(jnp.arange(S)[None, :] > jnp.arange(S)[:, None],
                       -1e9, 0.0).astype(jnp.float32)
    causal_attention_mask = jnp.broadcast_to(causal, (B, 1, S, S))

    params = _init_params(k_p, D, I)

    out = clip_encoder_layer(hidden_states, attention_mask,
                             causal_attention_mask, params,
                             num_heads=H, eps=eps)
    out = jax.block_until_ready(out)

    assert out.shape == (B, S, D) and out.dtype == jnp.float32
    assert bool(jnp.all(jnp.isfinite(out)))

    # Loose tolerance: bf16 MXU inputs + approx EUP reciprocal vs f32 reference.
    ref = _reference(hidden_states, attention_mask, causal_attention_mask,
                     params, num_heads=H, eps=eps)
    max_err = float(jnp.max(jnp.abs(out - ref)))
    assert max_err < 1e-1, f"max abs error vs reference: {max_err}"

    print("KERNEL_OK")
</pallas_src>

<mosaic_0001>
module attributes {stable_mosaic.version = 11 : i64} {
  func.func @_encoder_layer_kernel(%arg0: i32, %arg1: memref<1x128x256xf32, #tpu.memory_space<vmem>>, %arg2: memref<1x1x128x128xf32, #tpu.memory_space<vmem>>, %arg3: memref<1x256xf32, #tpu.memory_space<vmem>>, %arg4: memref<1x256xf32, #tpu.memory_space<vmem>>, %arg5: memref<256x768xbf16, #tpu.memory_space<vmem>>, %arg6: memref<1x768xf32, #tpu.memory_space<vmem>>, %arg7: memref<256x256xbf16, #tpu.memory_space<vmem>>, %arg8: memref<1x256xf32, #tpu.memory_space<vmem>>, %arg9: memref<1x256xf32, #tpu.memory_space<vmem>>, %arg10: memref<1x256xf32, #tpu.memory_space<vmem>>, %arg11: memref<256x1024xbf16, #tpu.memory_space<vmem>>, %arg12: memref<1x1024xf32, #tpu.memory_space<vmem>>, %arg13: memref<1024x256xbf16, #tpu.memory_space<vmem>>, %arg14: memref<1x256xf32, #tpu.memory_space<vmem>>, %arg15: memref<1x128x256xf32, #tpu.memory_space<vmem>>, %arg16: memref<128x768xbf16, #tpu.memory_space<vmem>>, %arg17: memref<128x256xf32, #tpu.memory_space<vmem>>) attributes {dimension_semantics = [#tpu.dimension_semantics<parallel>], iteration_bounds = array<i64: 2>, scalar_prefetch = 0 : i64, scratch_operands = 2 : i64, tpu.core_type = #tpu.core_type<tc>, window_params = [{transform_indices = @transform_0, window_bounds = array<i64: 1, 128, 256>}, {transform_indices = @transform_1, window_bounds = array<i64: 1, 1, 128, 128>}, {pipeline_mode = #tpu.pipeline_mode<synchronous>, transform_indices = @transform_2, window_bounds = array<i64: 1, 256>}, {pipeline_mode = #tpu.pipeline_mode<synchronous>, transform_indices = @transform_3, window_bounds = array<i64: 1, 256>}, {pipeline_mode = #tpu.pipeline_mode<synchronous>, transform_indices = @transform_4, window_bounds = array<i64: 256, 768>}, {pipeline_mode = #tpu.pipeline_mode<synchronous>, transform_indices = @transform_5, window_bounds = array<i64: 1, 768>}, {pipeline_mode = #tpu.pipeline_mode<synchronous>, transform_indices = @transform_6, window_bounds = array<i64: 256, 256>}, {pipeline_mode = #tpu.pipeline_mode<synchronous>, transform_indices = @transform_7, window_bounds = array<i64: 1, 256>}, {pipeline_mode = #tpu.pipeline_mode<synchronous>, transform_indices = @transform_8, window_bounds = array<i64: 1, 256>}, {pipeline_mode = #tpu.pipeline_mode<synchronous>, transform_indices = @transform_9, window_bounds = array<i64: 1, 256>}, {pipeline_mode = #tpu.pipeline_mode<synchronous>, transform_indices = @transform_10, window_bounds = array<i64: 256, 1024>}, {pipeline_mode = #tpu.pipeline_mode<synchronous>, transform_indices = @transform_11, window_bounds = array<i64: 1, 1024>}, {pipeline_mode = #tpu.pipeline_mode<synchronous>, transform_indices = @transform_12, window_bounds = array<i64: 1024, 256>}, {pipeline_mode = #tpu.pipeline_mode<synchronous>, transform_indices = @transform_13, window_bounds = array<i64: 1, 256>}, {transform_indices = @transform_14, window_bounds = array<i64: 1, 128, 256>}]} {
    %c0 = arith.constant 0 : index
    %c0_0 = arith.constant 0 : index
    %c0_1 = arith.constant 0 : index
    %0 = vector.load %arg1[%c0, %c0_0, %c0_1] : memref<1x128x256xf32, #tpu.memory_space<vmem>>, vector<1x128x256xf32>
    %1 = vector.shape_cast %0 : vector<1x128x256xf32> to vector<128x256xf32>
    %c0_2 = arith.constant 0 : index
    %c0_3 = arith.constant 0 : index
    %2 = vector.load %arg3[%c0_2, %c0_3] : memref<1x256xf32, #tpu.memory_space<vmem>>, vector<1x256xf32>
    %3 = vector.shape_cast %2 : vector<1x256xf32> to vector<256xf32>
    %c0_4 = arith.constant 0 : index
    %c0_5 = arith.constant 0 : index
    %4 = vector.load %arg4[%c0_4, %c0_5] : memref<1x256xf32, #tpu.memory_space<vmem>>, vector<1x256xf32>
    %5 = vector.shape_cast %4 : vector<1x256xf32> to vector<256xf32>
    %cst = arith.constant dense<0.000000e+00> : vector<128xf32>
    %6 = vector.multi_reduction <add>, %1, %cst [1] : vector<128x256xf32> to vector<128xf32>
    %7 = vector.shape_cast %6 : vector<128xf32> to vector<128x1xf32>
    %cst_6 = arith.constant 2.560000e+02 : f32
    %8 = vector.broadcast %cst_6 : f32 to vector<128x1xf32>
    %9 = arith.divf %7, %8 : vector<128x1xf32>
    %10 = arith.mulf %1, %1 : vector<128x256xf32>
    %cst_7 = arith.constant dense<0.000000e+00> : vector<128xf32>
    %11 = vector.multi_reduction <add>, %10, %cst_7 [1] : vector<128x256xf32> to vector<128xf32>
    %12 = vector.shape_cast %11 : vector<128xf32> to vector<128x1xf32>
    %cst_8 = arith.constant 2.560000e+02 : f32
    %13 = vector.broadcast %cst_8 : f32 to vector<128x1xf32>
    %14 = arith.divf %12, %13 : vector<128x1xf32>
    %15 = arith.mulf %9, %9 : vector<128x1xf32>
    %16 = arith.subf %14, %15 : vector<128x1xf32>
    %17 = vector.broadcast %9 : vector<128x1xf32> to vector<128x256xf32>
    %18 = arith.subf %1, %17 : vector<128x256xf32>
    %cst_9 = arith.constant 9.99999974E-6 : f32
    %19 = vector.broadcast %cst_9 : f32 to vector<128x1xf32>
    %20 = arith.addf %16, %19 : vector<128x1xf32>
    %21 = math.rsqrt %20 : vector<128x1xf32>
    %22 = vector.broadcast %21 : vector<128x1xf32> to vector<128x256xf32>
    %23 = arith.mulf %18, %22 : vector<128x256xf32>
    %24 = vector.shape_cast %3 : vector<256xf32> to vector<1x256xf32>
    %25 = vector.broadcast %24 : vector<1x256xf32> to vector<128x256xf32>
    %26 = arith.mulf %23, %25 : vector<128x256xf32>
    %27 = vector.shape_cast %5 : vector<256xf32> to vector<1x256xf32>
    %28 = vector.broadcast %27 : vector<1x256xf32> to vector<128x256xf32>
    %29 = arith.addf %26, %28 : vector<128x256xf32>
    %30 = arith.truncf %29 : vector<128x256xf32> to vector<128x256xbf16>
    %c0_10 = arith.constant 0 : index
    %c0_11 = arith.constant 0 : index
    %31 = vector.load %arg5[%c0_10, %c0_11] : memref<256x768xbf16, #tpu.memory_space<vmem>>, vector<256x768xbf16>
    %cst_12 = arith.constant dense<0.000000e+00> : vector<128x768xf32>
    %32 = tpu.matmul %30, %31, %cst_12 {dimension_numbers = #tpu.dot_dimension_numbers<[1], [0], [0], [1], [0, 0, 1, 1], [], []>} : vector<128x256xbf16>, vector<256x768xbf16>, vector<128x768xf32> -> vector<128x768xf32>
    %c0_13 = arith.constant 0 : index
    %c0_14 = arith.constant 0 : index
    %33 = vector.load %arg6[%c0_13, %c0_14] : memref<1x768xf32, #tpu.memory_space<vmem>>, vector<1x768xf32>
    %34 = vector.shape_cast %33 : vector<1x768xf32> to vector<768xf32>
    %35 = vector.shape_cast %34 : vector<768xf32> to vector<1x768xf32>
    %36 = vector.broadcast %35 : vector<1x768xf32> to vector<128x768xf32>
    %37 = arith.addf %32, %36 : vector<128x768xf32>
    %38 = arith.truncf %37 : vector<128x768xf32> to vector<128x768xbf16>
    %c0_15 = arith.constant 0 : index
    %c0_16 = arith.constant 0 : index
    %39 = vector.load %arg16[%c0_15, %c0_16] : memref<128x768xbf16, #tpu.memory_space<vmem>>, vector<128x768xbf16>
    tpu.vector_store %arg16[%c0_15, %c0_16], %38 {strides = array<i32>} : memref<128x768xbf16, #tpu.memory_space<vmem>>, vector<128x768xbf16>,
    %c0_17 = arith.constant 0 : index
    %c0_18 = arith.constant 0 : index
    %c0_19 = arith.constant 0 : index
    %c0_20 = arith.constant 0 : index
    %40 = vector.load %arg2[%c0_17, %c0_18, %c0_19, %c0_20] : memref<1x1x128x128xf32, #tpu.memory_space<vmem>>, vector<1x1x128x128xf32>
    %41 = vector.shape_cast %40 : vector<1x1x128x128xf32> to vector<128x128xf32>
    %c0_21 = arith.constant 0 : index
    %c0_22 = arith.constant 0 : index
    %42 = vector.load %arg16[%c0_21, %c0_22] : memref<128x768xbf16, #tpu.memory_space<vmem>>, vector<128x64xbf16>
    %c0_23 = arith.constant 0 : index
    %c256 = arith.constant 256 : index
    %43 = vector.load %arg16[%c0_23, %c256] : memref<128x768xbf16, #tpu.memory_space<vmem>>, vector<128x64xbf16>
    %c0_24 = arith.constant 0 : index
    %c512 = arith.constant 512 : index
    %44 = vector.load %arg16[%c0_24, %c512] : memref<128x768xbf16, #tpu.memory_space<vmem>>, vector<128x64xbf16>
    %cst_25 = arith.constant dense<0.000000e+00> : vector<128x128xf32>
    %45 = tpu.matmul %42, %43, %cst_25 {dimension_numbers = #tpu.dot_dimension_numbers<[1], [1], [0], [0], [0, 0, 1, 0], [], []>} : vector<128x64xbf16>, vector<128x64xbf16>, vector<128x128xf32> -> vector<128x128xf32>
    %46 = arith.addf %45, %41 : vector<128x128xf32>
    %cst_26 = arith.constant dense<0xFF800000> : vector<128xf32>
    %47 = vector.multi_reduction <maximumf>, %46, %cst_26 [1] : vector<128x128xf32> to vector<128xf32>
    %48 = vector.shape_cast %47 : vector<128xf32> to vector<128x1xf32>
    %49 = vector.broadcast %48 : vector<128x1xf32> to vector<128x128xf32>
    %50 = arith.subf %46, %49 : vector<128x128xf32>
    %51 = math.exp %50 : vector<128x128xf32>
    %cst_27 = arith.constant dense<0.000000e+00> : vector<128xf32>
    %52 = vector.multi_reduction <add>, %51, %cst_27 [1] : vector<128x128xf32> to vector<128xf32>
    %53 = vector.shape_cast %52 : vector<128xf32> to vector<128x1xf32>
    %54 = tpu.reciprocal %53 {approx = true} : vector<128x1xf32> -> vector<128x1xf32>
    %55 = vector.broadcast %54 : vector<128x1xf32> to vector<128x128xf32>
    %56 = arith.mulf %51, %55 : vector<128x128xf32>
    %57 = arith.truncf %56 : vector<128x128xf32> to vector<128x128xbf16>
    %cst_28 = arith.constant dense<0.000000e+00> : vector<128x64xf32>
    %58 = tpu.matmul %57, %44, %cst_28 {dimension_numbers = #tpu.dot_dimension_numbers<[1], [0], [0], [1], [0, 0, 1, 1], [], []>} : vector<128x128xbf16>, vector<128x64xbf16>, vector<128x64xf32> -> vector<128x64xf32>
    %c0_29 = arith.constant 0 : index
    %c0_30 = arith.constant 0 : index
    %59 = vector.load %arg17[%c0_29, %c0_30] : memref<128x256xf32, #tpu.memory_space<vmem>>, vector<128x64xf32>
    tpu.vector_store %arg17[%c0_29, %c0_30], %58 {strides = array<i32>} : memref<128x256xf32, #tpu.memory_space<vmem>>, vector<128x64xf32>,
    %c0_31 = arith.constant 0 : index
    %c64 = arith.constant 64 : index
    %60 = vector.load %arg16[%c0_31, %c64] : memref<128x768xbf16, #tpu.memory_space<vmem>>, vector<128x64xbf16>
    %c0_32 = arith.constant 0 : index
    %c320 = arith.constant 320 : index
    %61 = vector.load %arg16[%c0_32, %c320] : memref<128x768xbf16, #tpu.memory_space<vmem>>, vector<128x64xbf16>
    %c0_33 = arith.constant 0 : index
    %c576 = arith.constant 576 : index
    %62 = vector.load %arg16[%c0_33, %c576] : memref<128x768xbf16, #tpu.memory_space<vmem>>, vector<128x64xbf16>
    %cst_34 = arith.constant dense<0.000000e+00> : vector<128x128xf32>
    %63 = tpu.matmul %60, %61, %cst_34 {dimension_numbers = #tpu.dot_dimension_numbers<[1], [1], [0], [0], [0, 0, 1, 0], [], []>} : vector<128x64xbf16>, vector<128x64xbf16>, vector<128x128xf32> -> vector<128x128xf32>
    %64 = arith.addf %63, %41 : vector<128x128xf32>
    %cst_35 = arith.constant dense<0xFF800000> : vector<128xf32>
    %65 = vector.multi_reduction <maximumf>, %64, %cst_35 [1] : vector<128x128xf32> to vector<128xf32>
    %66 = vector.shape_cast %65 : vector<128xf32> to vector<128x1xf32>
    %67 = vector.broadcast %66 : vector<128x1xf32> to vector<128x128xf32>
    %68 = arith.subf %64, %67 : vector<128x128xf32>
    %69 = math.exp %68 : vector<128x128xf32>
    %cst_36 = arith.constant dense<0.000000e+00> : vector<128xf32>
    %70 = vector.multi_reduction <add>, %69, %cst_36 [1] : vector<128x128xf32> to vector<128xf32>
    %71 = vector.shape_cast %70 : vector<128xf32> to vector<128x1xf32>
    %72 = tpu.reciprocal %71 {approx = true} : vector<128x1xf32> -> vector<128x1xf32>
    %73 = vector.broadcast %72 : vector<128x1xf32> to vector<128x128xf32>
    %74 = arith.mulf %69, %73 : vector<128x128xf32>
    %75 = arith.truncf %74 : vector<128x128xf32> to vector<128x128xbf16>
    %cst_37 = arith.constant dense<0.000000e+00> : vector<128x64xf32>
    %76 = tpu.matmul %75, %62, %cst_37 {dimension_numbers = #tpu.dot_dimension_numbers<[1], [0], [0], [1], [0, 0, 1, 1], [], []>} : vector<128x128xbf16>, vector<128x64xbf16>, vector<128x64xf32> -> vector<128x64xf32>
    %c0_38 = arith.constant 0 : index
    %c64_39 = arith.constant 64 : index
    %77 = vector.load %arg17[%c0_38, %c64_39] : memref<128x256xf32, #tpu.memory_space<vmem>>, vector<128x64xf32>
    tpu.vector_store %arg17[%c0_38, %c64_39], %76 {strides = array<i32>} : memref<128x256xf32, #tpu.memory_space<vmem>>, vector<128x64xf32>,
    %c0_40 = arith.constant 0 : index
    %c128 = arith.constant 128 : index
    %78 = vector.load %arg16[%c0_40, %c128] : memref<128x768xbf16, #tpu.memory_space<vmem>>, vector<128x64xbf16>
    %c0_41 = arith.constant 0 : index
    %c384 = arith.constant 384 : index
    %79 = vector.load %arg16[%c0_41, %c384] : memref<128x768xbf16, #tpu.memory_space<vmem>>, vector<128x64xbf16>
    %c0_42 = arith.constant 0 : index
    %c640 = arith.constant 640 : index
    %80 = vector.load %arg16[%c0_42, %c640] : memref<128x768xbf16, #tpu.memory_space<vmem>>, vector<128x64xbf16>
    %cst_43 = arith.constant dense<0.000000e+00> : vector<128x128xf32>
    %81 = tpu.matmul %78, %79, %cst_43 {dimension_numbers = #tpu.dot_dimension_numbers<[1], [1], [0], [0], [0, 0, 1, 0], [], []>} : vector<128x64xbf16>, vector<128x64xbf16>, vector<128x128xf32> -> vector<128x128xf32>
    %82 = arith.addf %81, %41 : vector<128x128xf32>
    %cst_44 = arith.constant dense<0xFF800000> : vector<128xf32>
    %83 = vector.multi_reduction <maximumf>, %82, %cst_44 [1] : vector<128x128xf32> to vector<128xf32>
    %84 = vector.shape_cast %83 : vector<128xf32> to vector<128x1xf32>
    %85 = vector.broadcast %84 : vector<128x1xf32> to vector<128x128xf32>
    %86 = arith.subf %82, %85 : vector<128x128xf32>
    %87 = math.exp %86 : vector<128x128xf32>
    %cst_45 = arith.constant dense<0.000000e+00> : vector<128xf32>
    %88 = vector.multi_reduction <add>, %87, %cst_45 [1] : vector<128x128xf32> to vector<128xf32>
    %89 = vector.shape_cast %88 : vector<128xf32> to vector<128x1xf32>
    %90 = tpu.reciprocal %89 {approx = true} : vector<128x1xf32> -> vector<128x1xf32>
    %91 = vector.broadcast %90 : vector<128x1xf32> to vector<128x128xf32>
    %92 = arith.mulf %87, %91 : vector<128x128xf32>
    %93 = arith.truncf %92 : vector<128x128xf32> to vector<128x128xbf16>
    %cst_46 = arith.constant dense<0.000000e+00> : vector<128x64xf32>
    %94 = tpu.matmul %93, %80, %cst_46 {dimension_numbers = #tpu.dot_dimension_numbers<[1], [0], [0], [1], [0, 0, 1, 1], [], []>} : vector<128x128xbf16>, vector<128x64xbf16>, vector<128x64xf32> -> vector<128x64xf32>
    %c0_47 = arith.constant 0 : index
    %c128_48 = arith.constant 128 : index
    %95 = vector.load %arg17[%c0_47, %c128_48] : memref<128x256xf32, #tpu.memory_space<vmem>>, vector<128x64xf32>
    tpu.vector_store %arg17[%c0_47, %c128_48], %94 {strides = array<i32>} : memref<128x256xf32, #tpu.memory_space<vmem>>, vector<128x64xf32>,
    %c0_49 = arith.constant 0 : index
    %c192 = arith.constant 192 : index
    %96 = vector.load %arg16[%c0_49, %c192] : memref<128x768xbf16, #tpu.memory_space<vmem>>, vector<128x64xbf16>
    %c0_50 = arith.constant 0 : index
    %c448 = arith.constant 448 : index
    %97 = vector.load %arg16[%c0_50, %c448] : memref<128x768xbf16, #tpu.memory_space<vmem>>, vector<128x64xbf16>
    %c0_51 = arith.constant 0 : index
    %c704 = arith.constant 704 : index
    %98 = vector.load %arg16[%c0_51, %c704] : memref<128x768xbf16, #tpu.memory_space<vmem>>, vector<128x64xbf16>
    %cst_52 = arith.constant dense<0.000000e+00> : vector<128x128xf32>
    %99 = tpu.matmul %96, %97, %cst_52 {dimension_numbers = #tpu.dot_dimension_numbers<[1], [1], [0], [0], [0, 0, 1, 0], [], []>} : vector<128x64xbf16>, vector<128x64xbf16>, vector<128x128xf32> -> vector<128x128xf32>
    %100 = arith.addf %99, %41 : vector<128x128xf32>
    %cst_53 = arith.constant dense<0xFF800000> : vector<128xf32>
    %101 = vector.multi_reduction <maximumf>, %100, %cst_53 [1] : vector<128x128xf32> to vector<128xf32>
    %102 = vector.shape_cast %101 : vector<128xf32> to vector<128x1xf32>
    %103 = vector.broadcast %102 : vector<128x1xf32> to vector<128x128xf32>
    %104 = arith.subf %100, %103 : vector<128x128xf32>
    %105 = math.exp %104 : vector<128x128xf32>
    %cst_54 = arith.constant dense<0.000000e+00> : vector<128xf32>
    %106 = vector.multi_reduction <add>, %105, %cst_54 [1] : vector<128x128xf32> to vector<128xf32>
    %107 = vector.shape_cast %106 : vector<128xf32> to vector<128x1xf32>
    %108 = tpu.reciprocal %107 {approx = true} : vector<128x1xf32> -> vector<128x1xf32>
    %109 = vector.broadcast %108 : vector<128x1xf32> to vector<128x128xf32>
    %110 = arith.mulf %105, %109 : vector<128x128xf32>
    %111 = arith.truncf %110 : vector<128x128xf32> to vector<128x128xbf16>
    %cst_55 = arith.constant dense<0.000000e+00> : vector<128x64xf32>
    %112 = tpu.matmul %111, %98, %cst_55 {dimension_numbers = #tpu.dot_dimension_numbers<[1], [0], [0], [1], [0, 0, 1, 1], [], []>} : vector<128x128xbf16>, vector<128x64xbf16>, vector<128x64xf32> -> vector<128x64xf32>
    %c0_56 = arith.constant 0 : index
    %c192_57 = arith.constant 192 : index
    %113 = vector.load %arg17[%c0_56, %c192_57] : memref<128x256xf32, #tpu.memory_space<vmem>>, vector<128x64xf32>
    tpu.vector_store %arg17[%c0_56, %c192_57], %112 {strides = array<i32>} : memref<128x256xf32, #tpu.memory_space<vmem>>, vector<128x64xf32>,
    %c0_58 = arith.constant 0 : index
    %c0_59 = arith.constant 0 : index
    %114 = vector.load %arg17[%c0_58, %c0_59] : memref<128x256xf32, #tpu.memory_space<vmem>>, vector<128x256xf32>
    %115 = arith.truncf %114 : vector<128x256xf32> to vector<128x256xbf16>
    %c0_60 = arith.constant 0 : index
    %c0_61 = arith.constant 0 : index
    %116 = vector.load %arg7[%c0_60, %c0_61] : memref<256x256xbf16, #tpu.memory_space<vmem>>, vector<256x256xbf16>
    %cst_62 = arith.constant dense<0.000000e+00> : vector<128x256xf32>
    %117 = tpu.matmul %115, %116, %cst_62 {dimension_numbers = #tpu.dot_dimension_numbers<[1], [0], [0], [1], [0, 0, 1, 1], [], []>} : vector<128x256xbf16>, vector<256x256xbf16>, vector<128x256xf32> -> vector<128x256xf32>
    %c0_63 = arith.constant 0 : index
    %c0_64 = arith.constant 0 : index
    %118 = vector.load %arg8[%c0_63, %c0_64] : memref<1x256xf32, #tpu.memory_space<vmem>>, vector<1x256xf32>
    %119 = vector.shape_cast %118 : vector<1x256xf32> to vector<256xf32>
    %120 = vector.shape_cast %119 : vector<256xf32> to vector<1x256xf32>
    %121 = vector.broadcast %120 : vector<1x256xf32> to vector<128x256xf32>
    %122 = arith.addf %117, %121 : vector<128x256xf32>
    %123 = arith.addf %1, %122 : vector<128x256xf32>
    %c0_65 = arith.constant 0 : index
    %c0_66 = arith.constant 0 : index
    %124 = vector.load %arg9[%c0_65, %c0_66] : memref<1x256xf32, #tpu.memory_space<vmem>>, vector<1x256xf32>
    %125 = vector.shape_cast %124 : vector<1x256xf32> to vector<256xf32>
    %c0_67 = arith.constant 0 : index
    %c0_68 = arith.constant 0 : index
    %126 = vector.load %arg10[%c0_67, %c0_68] : memref<1x256xf32, #tpu.memory_space<vmem>>, vector<1x256xf32>
    %127 = vector.shape_cast %126 : vector<1x256xf32> to vector<256xf32>
    %cst_69 = arith.constant dense<0.000000e+00> : vector<128xf32>
    %128 = vector.multi_reduction <add>, %123, %cst_69 [1] : vector<128x256xf32> to vector<128xf32>
    %129 = vector.shape_cast %128 : vector<128xf32> to vector<128x1xf32>
    %cst_70 = arith.constant 2.560000e+02 : f32
    %130 = vector.broadcast %cst_70 : f32 to vector<128x1xf32>
    %131 = arith.divf %129, %130 : vector<128x1xf32>
    %132 = arith.mulf %123, %123 : vector<128x256xf32>
    %cst_71 = arith.constant dense<0.000000e+00> : vector<128xf32>
    %133 = vector.multi_reduction <add>, %132, %cst_71 [1] : vector<128x256xf32> to vector<128xf32>
    %134 = vector.shape_cast %133 : vector<128xf32> to vector<128x1xf32>
    %cst_72 = arith.constant 2.560000e+02 : f32
    %135 = vector.broadcast %cst_72 : f32 to vector<128x1xf32>
    %136 = arith.divf %134, %135 : vector<128x1xf32>
    %137 = arith.mulf %131, %131 : vector<128x1xf32>
    %138 = arith.subf %136, %137 : vector<128x1xf32>
    %139 = vector.broadcast %131 : vector<128x1xf32> to vector<128x256xf32>
    %140 = arith.subf %123, %139 : vector<128x256xf32>
    %cst_73 = arith.constant 9.99999974E-6 : f32
    %141 = vector.broadcast %cst_73 : f32 to vector<128x1xf32>
    %142 = arith.addf %138, %141 : vector<128x1xf32>
    %143 = math.rsqrt %142 : vector<128x1xf32>
    %144 = vector.broadcast %143 : vector<128x1xf32> to vector<128x256xf32>
    %145 = arith.mulf %140, %144 : vector<128x256xf32>
    %146 = vector.shape_cast %125 : vector<256xf32> to vector<1x256xf32>
    %147 = vector.broadcast %146 : vector<1x256xf32> to vector<128x256xf32>
    %148 = arith.mulf %145, %147 : vector<128x256xf32>
    %149 = vector.shape_cast %127 : vector<256xf32> to vector<1x256xf32>
    %150 = vector.broadcast %149 : vector<1x256xf32> to vector<128x256xf32>
    %151 = arith.addf %148, %150 : vector<128x256xf32>
    %152 = arith.truncf %151 : vector<128x256xf32> to vector<128x256xbf16>
    %c0_74 = arith.constant 0 : index
    %c0_75 = arith.constant 0 : index
    %153 = vector.load %arg11[%c0_74, %c0_75] : memref<256x1024xbf16, #tpu.memory_space<vmem>>, vector<256x1024xbf16>
    %cst_76 = arith.constant dense<0.000000e+00> : vector<128x1024xf32>
    %154 = tpu.matmul %152, %153, %cst_76 {dimension_numbers = #tpu.dot_dimension_numbers<[1], [0], [0], [1], [0, 0, 1, 1], [], []>} : vector<128x256xbf16>, vector<256x1024xbf16>, vector<128x1024xf32> -> vector<128x1024xf32>
    %c0_77 = arith.constant 0 : index
    %c0_78 = arith.constant 0 : index
    %155 = vector.load %arg12[%c0_77, %c0_78] : memref<1x1024xf32, #tpu.memory_space<vmem>>, vector<1x1024xf32>
    %156 = vector.shape_cast %155 : vector<1x1024xf32> to vector<1024xf32>
    %157 = vector.shape_cast %156 : vector<1024xf32> to vector<1x1024xf32>
    %158 = vector.broadcast %157 : vector<1x1024xf32> to vector<128x1024xf32>
    %159 = arith.addf %154, %158 : vector<128x1024xf32>
    %cst_79 = arith.constant 1.702000e+00 : f32
    %160 = vector.broadcast %cst_79 : f32 to vector<128x1024xf32>
    %161 = arith.mulf %160, %159 : vector<128x1024xf32>
    %162 = arith.negf %161 : vector<128x1024xf32>
    %163 = math.exp %162 : vector<128x1024xf32>
    %cst_80 = arith.constant 1.000000e+00 : f32
    %164 = vector.broadcast %cst_80 : f32 to vector<128x1024xf32>
    %165 = arith.addf %164, %163 : vector<128x1024xf32>
    %166 = arith.divf %164, %165 : vector<128x1024xf32>
    %167 = arith.mulf %159, %166 : vector<128x1024xf32>
    %168 = arith.truncf %167 : vector<128x1024xf32> to vector<128x1024xbf16>
    %c0_81 = arith.constant 0 : index
    %c0_82 = arith.constant 0 : index
    %169 = vector.load %arg13[%c0_81, %c0_82] : memref<1024x256xbf16, #tpu.memory_space<vmem>>, vector<1024x256xbf16>
    %cst_83 = arith.constant dense<0.000000e+00> : vector<128x256xf32>
    %170 = tpu.matmul %168, %169, %cst_83 {dimension_numbers = #tpu.dot_dimension_numbers<[1], [0], [0], [1], [0, 0, 1, 1], [], []>} : vector<128x1024xbf16>, vector<1024x256xbf16>, vector<128x256xf32> -> vector<128x256xf32>
    %c0_84 = arith.constant 0 : index
    %c0_85 = arith.constant 0 : index
    %171 = vector.load %arg14[%c0_84, %c0_85] : memref<1x256xf32, #tpu.memory_space<vmem>>, vector<1x256xf32>
    %172 = vector.shape_cast %171 : vector<1x256xf32> to vector<256xf32>
    %173 = vector.shape_cast %172 : vector<256xf32> to vector<1x256xf32>
    %174 = vector.broadcast %173 : vector<1x256xf32> to vector<128x256xf32>
    %175 = arith.addf %170, %174 : vector<128x256xf32>
    %176 = arith.addf %123, %175 : vector<128x256xf32>
    %c0_86 = arith.constant 0 : index
    %c0_87 = arith.constant 0 : index
    %c0_88 = arith.constant 0 : index
    %177 = vector.load %arg15[%c0_86, %c0_87, %c0_88] : memref<1x128x256xf32, #tpu.memory_space<vmem>>, vector<1x128x256xf32>
    %178 = vector.shape_cast %177 : vector<1x128x256xf32> to vector<128x256xf32>
    %179 = vector.shape_cast %176 : vector<128x256xf32> to vector<1x128x256xf32>
    tpu.vector_store %arg15[%c0_86, %c0_87, %c0_88], %179 {strides = array<i32>} : memref<1x128x256xf32, #tpu.memory_space<vmem>>, vector<1x128x256xf32>,
    return
  }
  func.func @transform_0(%arg0: i32) -> (i32, i32, i32) {
    %c0_i32 = arith.constant 0 : i32
    %c0_i32_0 = arith.constant 0 : i32
    %c0_i32_1 = arith.constant 0 : i32
    return %arg0, %c0_i32, %c0_i32_0 : i32, i32, i32
  }
  func.func @transform_1(%arg0: i32) -> (i32, i32, i32, i32) {
    %c0_i32 = arith.constant 0 : i32
    %c0_i32_0 = arith.constant 0 : i32
    %c0_i32_1 = arith.constant 0 : i32
    %c0_i32_2 = arith.constant 0 : i32
    return %arg0, %c0_i32, %c0_i32_0, %c0_i32_1 : i32, i32, i32, i32
  }
  func.func @transform_2(%arg0: i32) -> (i32, i32) {
    %c0_i32 = arith.constant 0 : i32
    %c0_i32_0 = arith.constant 0 : i32
    %c0_i32_1 = arith.constant 0 : i32
    return %c0_i32, %c0_i32_0 : i32, i32
  }
  func.func @transform_3(%arg0: i32) -> (i32, i32) {
    %c0_i32 = arith.constant 0 : i32
    %c0_i32_0 = arith.constant 0 : i32
    %c0_i32_1 = arith.constant 0 : i32
    return %c0_i32, %c0_i32_0 : i32, i32
  }
  func.func @transform_4(%arg0: i32) -> (i32, i32) {
    %c0_i32 = arith.constant 0 : i32
    %c0_i32_0 = arith.constant 0 : i32
    %c0_i32_1 = arith.constant 0 : i32
    return %c0_i32, %c0_i32_0 : i32, i32
  }
  func.func @transform_5(%arg0: i32) -> (i32, i32) {
    %c0_i32 = arith.constant 0 : i32
    %c0_i32_0 = arith.constant 0 : i32
    %c0_i32_1 = arith.constant 0 : i32
    return %c0_i32, %c0_i32_0 : i32, i32
  }
  func.func @transform_6(%arg0: i32) -> (i32, i32) {
    %c0_i32 = arith.constant 0 : i32
    %c0_i32_0 = arith.constant 0 : i32
    %c0_i32_1 = arith.constant 0 : i32
    return %c0_i32, %c0_i32_0 : i32, i32
  }
  func.func @transform_7(%arg0: i32) -> (i32, i32) {
    %c0_i32 = arith.constant 0 : i32
    %c0_i32_0 = arith.constant 0 : i32
    %c0_i32_1 = arith.constant 0 : i32
    return %c0_i32, %c0_i32_0 : i32, i32
  }
  func.func @transform_8(%arg0: i32) -> (i32, i32) {
    %c0_i32 = arith.constant 0 : i32
    %c0_i32_0 = arith.constant 0 : i32
    %c0_i32_1 = arith.constant 0 : i32
    return %c0_i32, %c0_i32_0 : i32, i32
  }
  func.func @transform_9(%arg0: i32) -> (i32, i32) {
    %c0_i32 = arith.constant 0 : i32
    %c0_i32_0 = arith.constant 0 : i32
    %c0_i32_1 = arith.constant 0 : i32
    return %c0_i32, %c0_i32_0 : i32, i32
  }
  func.func @transform_10(%arg0: i32) -> (i32, i32) {
    %c0_i32 = arith.constant 0 : i32
    %c0_i32_0 = arith.constant 0 : i32
    %c0_i32_1 = arith.constant 0 : i32
    return %c0_i32, %c0_i32_0 : i32, i32
  }
  func.func @transform_11(%arg0: i32) -> (i32, i32) {
    %c0_i32 = arith.constant 0 : i32
    %c0_i32_0 = arith.constant 0 : i32
    %c0_i32_1 = arith.constant 0 : i32
    return %c0_i32, %c0_i32_0 : i32, i32
  }
  func.func @transform_12(%arg0: i32) -> (i32, i32) {
    %c0_i32 = arith.constant 0 : i32
    %c0_i32_0 = arith.constant 0 : i32
    %c0_i32_1 = arith.constant 0 : i32
    return %c0_i32, %c0_i32_0 : i32, i32
  }
  func.func @transform_13(%arg0: i32) -> (i32, i32) {
    %c0_i32 = arith.constant 0 : i32
    %c0_i32_0 = arith.constant 0 : i32
    %c0_i32_1 = arith.constant 0 : i32
    return %c0_i32, %c0_i32_0 : i32, i32
  }
  func.func @transform_14(%arg0: i32) -> (i32, i32, i32) {
    %c0_i32 = arith.constant 0 : i32
    %c0_i32_0 = arith.constant 0 : i32
    %c0_i32_1 = arith.constant 0 : i32
    return %arg0, %c0_i32, %c0_i32_0 : i32, i32, i32
  }
}

</mosaic_0001>

<bundles_post_ra>
// kernel: tpu_custom_call.1
= control target key start
LH: loop header
LB: loop body
LE: loop exit
PB: predicated region body
PF: predicated region fallthrough
CT: control target
= control target key end

     0   :  { %s16391_s0 = inlined_call_operand.hbm [shape: f32[2,128,256], index: 0, kind: input, shape index: {}]   ;;  %s16392_s1 = inlined_call_operand.hbm [shape: f32[2,1,128,128], index: 1, kind: input, shape index: {}]   ;;  %s16393_s2 = inlined_call_operand.vmem [shape: f32[1,256], index: 2, kind: input, shape index: {}]   ;;  %s16394_s3 = inlined_call_operand.hbm [shape: f32[1,256], index: 3, kind: input, shape index: {}]   ;;  %s16395_s4 = inlined_call_operand.hbm [shape: bf16[256,768], index: 4, kind: input, shape index: {}]   ;;  %s16396_s5 = inlined_call_operand.vmem [shape: f32[1,768], index: 5, kind: input, shape index: {}]   ;;  %s16397_s6 = inlined_call_operand.hbm [shape: bf16[256,256], index: 6, kind: input, shape index: {}]   ;;  %s16398_s7 = inlined_call_operand.hbm [shape: f32[1,256], index: 7, kind: input, shape index: {}]   ;;  %s16399_s8 = inlined_call_operand.hbm [shape: f32[1,256], index: 8, kind: input, shape index: {}]   ;;  %s16400_s9 = inlined_call_operand.hbm [shape: f32[1,256], index: 9, kind: input, shape index: {}]   ;;  %s16401_s10 = inlined_call_operand.hbm [shape: bf16[256,1024], index: 10, kind: input, shape index: {}]   ;;  %s16402_s11 = inlined_call_operand.vmem [shape: f32[1,1024], index: 11, kind: input, shape index: {}]   ;;  %s16403_s12 = inlined_call_operand.hbm [shape: bf16[1024,256], index: 12, kind: input, shape index: {}]   ;;  %s16404_s13 = inlined_call_operand.vmem [shape: f32[1,256], index: 13, kind: input, shape index: {}]   ;;  %s16405_s14 = inlined_call_operand.hbm [shape: f32[2,128,256], index: 14, kind: output, shape index: {}]  }
   0x1   :  { %16500 = sst [smem:[#allocation87_spill]] %s16391_s0 }
   0x2   :  { %16501 = sst [smem:[#allocation88_spill]] %s16394_s3 }
   0x3   :  { %16502 = sst [smem:[#allocation89_spill]] %s16395_s4 }
   0x4   :  { %16503 = sst [smem:[#allocation90_spill]] %s16397_s6 }
   0x5   :  { %16504 = sst [smem:[#allocation91_spill]] %s16398_s7 }
   0x6   :  { %16505 = sst [smem:[#allocation92_spill]] %s16399_s8 }
   0x7   :  { %16506 = sst [smem:[#allocation93_spill]] %s16400_s9 }
   0x8   :  { %16507 = sst [smem:[#allocation94_spill]] %s16401_s10 }
   0x9   :  { %16508 = sst [smem:[#allocation95_spill]] %s16403_s12 }
   0xa   :  { %19 = vsyncpa [#allocation5], 0 }
   0xb   :  { %21 = vsyncpa [#allocation5 + $0x1], 0 }
   0xc   :  { %22 = vsyncpa [#allocation8], 0 }
   0xd   :  { %24 = vsyncpa [#allocation8 + $0x1], 0 }
   0xe   :  { %25 = vsyncpa [#allocation11], 0 }
   0xf   :  { %26 = vsyncpa [#allocation14], 0 }
  0x10   :  { %27 = vsyncpa [#allocation17], 0 }
  0x11   :  { %28 = vsyncpa [#allocation20], 0 }
  0x12   :  { %29 = vsyncpa [#allocation6], 0 }
  0x13   :  { %31 = vsyncpa [#allocation6 + $0x1], 0  ;;  %s12726_s29 = smov 0   ;;  %s12728_s30 = smov 0  }
  0x14   :  { %s12730_s15 = smov 0   ;;  %s12732_s16 = smov 0  }
  0x15 LB: > { %16509 = sst [smem:[#allocation30_spill]] %s12623_s15  ;;  %s12629_s17 = smov [#allocation9]   ;;  %s12627_s16 = sphi %s12732_s16, %s16712_s16   ;;  %s12623_s15 = sphi %s12730_s15, %s16714_s15   ;;  %s12619_s30 = sphi %s12728_s30, %s16716_s30   ;;  %s12615_s29 = sphi %s12726_s29, %s16715_s29  }
  0x16   : > { %s388_s18 = sshll.u32 %s12629_s17, 4  ;;  %s12747_s19 = sadd.s32 4294967295, %s12627_s16   ;;  %s389_s18 = int_to_ptr.vmem [resolvable:$true] %s388_s18 }
  0x17   : > { %p9551_p0 = scmp.ge.s32.totalorder %s12627_s16, 1  ;;  %p16406_p1 = scmp.eq.s32.totalorder %s12747_s19, 0 }
  0x18   : > { %p372_p2 = scmp.lt.s32.totalorder %s12627_s16, 3  ;;  %s12630_s21 = smov [#allocation10]  }
  0x19   : > { %s398_s22 = sshll.u32 %s12630_s21, 4  ;;  %s12631_s24 = smov [#allocation13]   ;;  %s12759_s22 = int_to_ptr.vmem [resolvable:$true] %s398_s22 }
  0x1a   : > { %p12752_p3 = pnand %p9551_p0, %p372_p2  ;;  %s428_s25 = sshll.u32 %s12631_s24, 4  ;;  %s12767_s25 = int_to_ptr.vmem [resolvable:$true] %s428_s25 }
  0x1b   : > { %s12286_s27 = scalar_lea.vmem %s389_s18, 32  ;;  %p12294_p11 = scmp.lt.s32.totalorder %s389_s18, %s389_s18 }
  0x1c   : > { %s16510_s20 = scalar_select %p12752_p3, 1, 0 }
  0x1d   : > { %p10777_p5 = pneg %p12752_p3  ;;  %p12287_p8 = scmp.ne.s32.totalorder %s389_s18, %s12286_s27 }
  0x1e   : > { %p12295_p12 = scmp.lt.s32.totalorder %s12286_s27, %s12286_s27 }
  0x1f   : > { %p12763_p6 = pnand %p10777_p5, %p16406_p1 }
  0x20   : > { %p12296_p13 = por %p12295_p12, %p12294_p11 }
  0x21   : > { %p12771_p7 = pneg %p12763_p6 }
  0x23   : > { %p12289_p9 = pnand %p12287_p8, %p12771_p7 }
  0x25   : > { %p12290_p10 = pneg %p12289_p9 }
  0x27   : > { %p12297_p0 = pnand %p12296_p13, %p12290_p10 }
  0x29   : > { %12300 = shalt.err (!%p12297_p0)
}
  0x2a   : > { %s16513_s3 = sld [smem:[#allocation88_spill]]  ;;  %s12312_s21 = scalar_lea.vmem %s12759_s22, 12288 }
  0x2b   : > { %p12313_p2 = scmp.ne.s32.totalorder %s12759_s22, %s12312_s21  ;;  %p12320_p9 = scmp.lt.s32.totalorder %s12759_s22, %s12759_s22 }
  0x2c   : > { %p12321_p11 = scmp.lt.s32.totalorder %s12312_s21, %s12312_s21 }
  0x2d   : > { %p12315_p5 = pnand %p12313_p2, %p12771_p7 }
  0x2e   : > { %p12322_p10 = por %p12321_p11, %p12320_p9 }
  0x2f   : > { %p12316_p8 = pneg %p12315_p5 }
  0x30   : > { %10780 = dma.hbm_to_vmem [thread:$0]  (!%p12763_p6), %s16513_s3, 32, %s389_s18, [#allocation8]  }
  0x31   : > { %p12323_p12 = pnand %p12322_p10, %p12316_p8 }
  0x33   : > { %12326 = shalt.err (!%p12323_p12)
}
  0x34   : > { %s12632_s24 = smov 384   ;;  %s12633_s27 = smov 24  }
  0x35   : > { %s16514_s4 = sld [smem:[#allocation89_spill]]  ;;  %s12338_s17 = scalar_lea.vmem %s12767_s25, 32 }
  0x36   : > { %p12339_p13 = scmp.ne.s32.totalorder %s12767_s25, %s12338_s17  ;;  %p12346_p5 = scmp.lt.s32.totalorder %s12767_s25, %s12767_s25 }
  0x37   : > { %p12347_p8 = scmp.lt.s32.totalorder %s12338_s17, %s12338_s17 }
  0x38   : > { %p12341_p0 = pnand %p12339_p13, %p12771_p7 }
  0x39   : > { %p12348_p9 = por %p12347_p8, %p12346_p5 }
  0x3a   : > { %p12342_p2 = pneg %p12341_p0 }
  0x3b   : > { %10783 = dma.hbm_to_vmem [thread:$0]  (!%p12763_p6), %s16514_s4, 12288, %s12759_s22, [#allocation11], %s12632_s24, %s12632_s24, %s12633_s27  }
  0x3c   : > { %p12349_p11 = pnand %p12348_p9, %p12342_p2 }
  0x3e   : > { %12352 = shalt.err (!%p12349_p11)
}
  0x3f   : > { %s16515_s7 = sld [smem:[#allocation91_spill]]  ;;  %s12634_s22 = smov [#allocation16]  }
  0x40   : > { %s450_s24 = sshll.u32 %s12634_s22, 4  ;;  %s12635_s27 = smov [#allocation12]   ;;  %s451_s24 = int_to_ptr.vmem [resolvable:$true] %s450_s24 }
  0x41   : > { %s414_s18 = sshll.u32 %s12635_s27, 4  ;;  %s12364_s28 = scalar_lea.vmem %s451_s24, 32  ;;  %s415_s18 = int_to_ptr.vmem [resolvable:$true] %s414_s18 }
  0x42   : > { %p12365_p10 = scmp.ne.s32.totalorder %s451_s24, %s12364_s28  ;;  %p12372_p0 = scmp.lt.s32.totalorder %s451_s24, %s451_s24 }
  0x43   : > { %p12373_p2 = scmp.lt.s32.totalorder %s12364_s28, %s12364_s28 }
  0x44   : > { %p12367_p12 = pnand %p12365_p10, %p12771_p7 }
  0x45   : > { %10789 = dma.hbm_to_vmem [thread:$0]  (!%p12763_p6), %s16515_s7, 32, %s12767_s25, [#allocation14]  }
  0x46   : > { %p12368_p13 = pneg %p12367_p12  ;;  %p12374_p5 = por %p12373_p2, %p12372_p0 }
  0x48   : > { %p12375_p8 = pnand %p12374_p5, %p12368_p13 }
  0x4a   : > { %12378 = shalt.err (!%p12375_p8)
}
  0x4b   : > { %s16516_s9 = sld [smem:[#allocation93_spill]]  ;;  %s12390_s25 = scalar_lea.vmem %s415_s18, 4096 }
  0x4c   : > { %p12391_p9 = scmp.ne.s32.totalorder %s415_s18, %s12390_s25  ;;  %p12398_p10 = scmp.lt.s32.totalorder %s415_s18, %s415_s18 }
  0x4d   : > { %p12399_p12 = scmp.lt.s32.totalorder %s12390_s25, %s12390_s25 }
  0x4e   : > { %p12393_p11 = pnand %p12391_p9, %p12771_p7 }
  0x4f   : > { %p12400_p1 = por %p12399_p12, %p12398_p10 }
  0x50   : > { %p12394_p4 = pneg %p12393_p11 }
  0x51   : > { %10795 = dma.hbm_to_vmem [thread:$0]  (!%p12763_p6), %s16516_s9, 32, %s451_s24, [#allocation17]  }
  0x52   : > { %p12401_p3 = pnand %p12400_p1, %p12394_p4 }
  0x54   : > { %12404 = shalt.err (!%p12401_p3)
}
  0x55   : > { %s16408_s21 = smov 128   ;;  %s16409_s22 = smov 8  }
  0x56   : > { %s16517_s6 = sld [smem:[#allocation90_spill]]  ;;  %s12638_s28 = smov [#allocation15]  }
  0x57   : > { %s439_s3 = sshll.u32 %s12638_s28, 4  ;;  %s12639_s17 = smov [#allocation18]   ;;  %s440_s3 = int_to_ptr.vmem [resolvable:$true] %s439_s3 }
  0x58   : > { %s460_s25 = sshll.u32 %s12639_s17, 4  ;;  %s12416_s4 = scalar_lea.vmem %s440_s3, 32  ;;  %s461_s25 = int_to_ptr.vmem [resolvable:$true] %s460_s25 }
  0x59   : > { %p12417_p1 = scmp.ne.s32.totalorder %s440_s3, %s12416_s4  ;;  %p12424_p13 = scmp.lt.s32.totalorder %s440_s3, %s440_s3 }
  0x5a   : > { %p12425_p0 = scmp.lt.s32.totalorder %s12416_s4, %s12416_s4 }
  0x5b   : > { %p12419_p3 = pnand %p12417_p1, %p12771_p7 }
  0x5c   : > { %10786 = dma.hbm_to_vmem [thread:$0]  (!%p12763_p6), %s16517_s6, 4096, %s415_s18, [#allocation11], %s16408_s21, %s16408_s21, %s16409_s22  }
  0x5d   : > { %p12420_p4 = pneg %p12419_p3  ;;  %p12426_p2 = por %p12425_p0, %p12424_p13 }
  0x5f   : > { %p12427_p5 = pnand %p12426_p2, %p12420_p4 }
  0x61   : > { %12430 = shalt.err (!%p12427_p5)
}
  0x62   : > { %s16518_s8 = sld [smem:[#allocation92_spill]]  ;;  %s12442_s18 = scalar_lea.vmem %s461_s25, 16384 }
  0x63   : > { %p12443_p8 = scmp.ne.s32.totalorder %s461_s25, %s12442_s18  ;;  %p12450_p10 = scmp.lt.s32.totalorder %s461_s25, %s461_s25 }
  0x64   : > { %p12451_p12 = scmp.lt.s32.totalorder %s12442_s18, %s12442_s18 }
  0x65   : > { %p12445_p9 = pnand %p12443_p8, %p12771_p7 }
  0x66   : > { %p12452_p1 = por %p12451_p12, %p12450_p10 }
  0x67   : > { %p12446_p11 = pneg %p12445_p9 }
  0x68   : > { %10792 = dma.hbm_to_vmem [thread:$0]  (!%p12763_p6), %s16518_s8, 32, %s440_s3, [#allocation14]  }
  0x69   : > { %p12453_p3 = pnand %p12452_p1, %p12446_p11 }
  0x6b   : > { %12456 = shalt.err (!%p12453_p3)
}
  0x6c   : > { %s12640_s4 = smov 512   ;;  %s12641_s27 = smov 32  }
  0x6d   : > { %s16519_s10 = sld [smem:[#allocation94_spill]]  ;;  %s12642_s3 = smov [#allocation19]  }
  0x6e   : > { %s476_s17 = sshll.u32 %s12642_s3, 4  ;;  %s477_s17 = int_to_ptr.vmem [resolvable:$true] %s476_s17 }
  0x6f   : > { %s12468_s24 = scalar_lea.vmem %s477_s17, 16384  ;;  %p12476_p2 = scmp.lt.s32.totalorder %s477_s17, %s477_s17 }
  0x70   : > { %p12469_p4 = scmp.ne.s32.totalorder %s477_s17, %s12468_s24  ;;  %p12477_p5 = scmp.lt.s32.totalorder %s12468_s24, %s12468_s24 }
  0x72   : > { %p12471_p13 = pnand %p12469_p4, %p12771_p7  ;;  %p12478_p8 = por %p12477_p5, %p12476_p2 }
  0x73   : > { %10798 = dma.hbm_to_vmem [thread:$0]  (!%p12763_p6), %s16519_s10, 16384, %s461_s25, [#allocation17], %s12640_s4, %s12640_s4, %s12641_s27  }
  0x74   : > { %p12472_p0 = pneg %p12471_p13 }
  0x76   : > { %p12479_p9 = pnand %p12478_p8, %p12472_p0 }
  0x78   : > { %12482 = shalt.err (!%p12479_p9)
}
  0x79   : > { %s16520_s12 = sld [smem:[#allocation95_spill]]  ;;  %s9550_s23 = sadd.s32 4294967294, %s12627_s16  }
  0x7a   : > { %s12849_s26 = sadd.s32 1, %s12627_s16   ;;  %s44_s27 = sadd.s32 1, %s12623_s15 }
  0x7b   : > { %16521 = sst [smem:[#allocation31_spill]] %s12849_s26  ;;  %s41_s4 = ssub.s32 %s12627_s16, %s12849_s26 }
  0x7c   : > { %p42_p7 = scmp.eq.s32.totalorder %s41_s4, 0  ;;  %p51_p11 = scmp.ne.s32.totalorder %s12623_s15, %s12619_s30 }
  0x7d   : > { %p52_p10 = scmp.eq.s32.totalorder %s12627_s16, 0  ;;  %p57_p12 = scmp.ne.s32.totalorder %s12619_s30, %s12615_s29 }
  0x7e   : > { %s12860_s28 = scalar_select %p42_p7, %s12623_s15, %s44_s27  }
  0x7f   : > { %10801 = dma.hbm_to_vmem [thread:$0]  (!%p12763_p6), %s16520_s12, 16384, %s477_s17, [#allocation20], %s16408_s21, %s16408_s21, %s16409_s22  }
  0x80   : > { %16522 = sst [smem:[#allocation32_spill]] %s12860_s28  ;;  %p12862_p1 = por %p52_p10, %p51_p11 }
  0x81   : > { %p16524_p3 = scmp.eq.s32.totalorder %s12747_s19, 0  ;;  %p359_p4 = scmp.eq.s32.totalorder %s12747_s19, 1 }
  0x82   : > { %p365_p13 = scmp.eq.s32.totalorder %s9550_s23, 1  ;;  %p10821_p0 = scmp.lt.s32.totalorder %s12627_s16, 2 }
  0x83   : > { %p12868_p6 = por %p16524_p3, %p57_p12  ;;  %s12875_s17 = sand.u32 1, %s12623_s15  }
  0x84   : > { %p12877_p2 = por %p359_p4, %p51_p11  ;;  %p12881_p5 = por %p365_p13, %p57_p12 }
  0x85   : > { %s9561_s25 = sshll.u32 %s12875_s17, 8  ;;  %s10272_s4 = sshll.u32 %s12627_s16, 12 }
  0x86   : > { %s16526_s24 = scalar_select %p12877_p2, 1, 0 }
  0x87   : > { %s16527_s18 = scalar_select %p12881_p5, 1, 0 }
  0x88   : > { %s16528_s0 = sld [smem:[#allocation87_spill]]  ;;  %s497_s23 = scalar_lea.vmem [#allocation4], %s9561_s25 }
  0x89   : > { %s504_s6 = sshll.u32 %s497_s23, 4  ;;  %p12896_p8 = pnand %p10821_p0, %p12862_p1  ;;  %s12892_s6 = int_to_ptr.vmem [resolvable:$true] %s504_s6 }
  0x8a   : > { %s494_s10 = scalar_lea.sflag [#allocation5], %s12875_s17 }
  0x8b   : > { %p12485_p7 = pneg %p12896_p8 }
  0x8e   : > { %s12890_s22 = scalar_lea.hbm %s16528_s0, %s10272_s4  ;;  %s12488_s7 = scalar_lea.hbm %s16528_s0, 8192 }
  0x8f   : > { %s12483_s12 = scalar_lea.hbm %s12890_s22, 4096  ;;  %p12489_p12 = scmp.lt.s32.totalorder %s12890_s22, %s16528_s0 }
  0x90   : > { %p12484_p9 = scmp.ne.s32.totalorder %s12890_s22, %s12483_s12  ;;  %p12490_p1 = scmp.lt.s32.totalorder %s12488_s7, %s12483_s12 }
  0x92   : > { %p12486_p11 = pnand %p12485_p7, %p12484_p9  ;;  %p12491_p3 = por %p12490_p1, %p12489_p12 }
  0x94   : > { %p12487_p10 = pneg %p12486_p11 }
  0x96   : > { %p12492_p4 = pnand %p12491_p3, %p12487_p10 }
  0x98   : > { %12495 = shalt.err (!%p12492_p4)
}
  0x99   : > { %s12496_s23 = scalar_lea.vmem %s12892_s6, 4096  ;;  %s12643_s21 = smov [#allocation4]  }
  0x9a   : > { %p12497_p13 = scmp.ne.s32.totalorder %s12892_s6, %s12496_s23  ;;  %s12501_s25 = sshll.u32 %s12643_s21, 4  ;;  %s12502_s25 = int_to_ptr.vmem [resolvable:$false] %s12501_s25 }
  0x9b   : > { %s12503_s9 = scalar_lea.vmem %s12502_s25, 8192  ;;  %p12504_p11 = scmp.lt.s32.totalorder %s12892_s6, %s12502_s25 }
  0x9c   : > { %p12499_p0 = pnand %p12497_p13, %p12485_p7  ;;  %p12505_p5 = scmp.lt.s32.totalorder %s12503_s9, %s12496_s23 }
  0x9e   : > { %p12500_p9 = pneg %p12499_p0  ;;  %p12506_p2 = por %p12505_p5, %p12504_p11 }
  0xa0   : > { %p12507_p12 = pnand %p12506_p2, %p12500_p9 }
  0xa2   : > { %12510 = shalt.err (!%p12507_p12)
}
  0xa3   : > { %s12644_s12 = smov 256   ;;  %s12645_s7 = smov 16  }
  0xa4   : > { %10805 = dma.hbm_to_vmem [thread:$0]  (!%p12896_p8), %s12890_s22, 4096, %s12892_s6, %s494_s10, %s12644_s12, %s12644_s12, %s12645_s7  }
  0xa5   : > { %s9564_s4 = sshll.u32 %s12875_s17, 7  ;;  %s10273_s27 = sshll.u32 %s12627_s16, 11 }
  0xa6   : > { %s12933_s23 = scalar_lea.hbm %s16392_s1, %s10273_s27  ;;  %s518_s25 = scalar_lea.vmem [#allocation7], %s9564_s4 }
  0xa7   : > { %s525_s0 = sshll.u32 %s518_s25, 4  ;;  %s16530_s28 = sand.u32 1, %s12627_s16   ;;  %s12935_s0 = int_to_ptr.vmem [resolvable:$true] %s525_s0 }
  0xa8   : > { %s515_s15 = scalar_lea.sflag [#allocation8], %s16530_s28  ;;  %s12511_s26 = scalar_lea.hbm %s12933_s23, 2048 }
  0xa9   : > { %p12512_p2 = scmp.ne.s32.totalorder %s12933_s23, %s12511_s26  ;;  %s12516_s22 = scalar_lea.hbm %s16392_s1, 4096 }
  0xaa   : > { %p12517_p1 = scmp.lt.s32.totalorder %s12933_s23, %s16392_s1  ;;  %p12518_p3 = scmp.lt.s32.totalorder %s12516_s22, %s12511_s26 }
  0xab   : > { %p12514_p5 = pnand %p12512_p2, %p12485_p7 }
  0xac   : > { %p12519_p4 = por %p12518_p3, %p12517_p1 }
  0xad   : > { %p12515_p10 = pneg %p12514_p5 }
  0xaf   : > { %p12520_p13 = pnand %p12519_p4, %p12515_p10 }
  0xb1   : > { %12523 = shalt.err (!%p12520_p13)
}
  0xb2   : > { %s12524_s28 = scalar_lea.vmem %s12935_s0, 2048  ;;  %s12646_s7 = smov [#allocation7]  }
  0xb3   : > { %p12525_p0 = scmp.ne.s32.totalorder %s12935_s0, %s12524_s28  ;;  %s12529_s4 = sshll.u32 %s12646_s7, 4  ;;  %s12530_s4 = int_to_ptr.vmem [resolvable:$false] %s12529_s4 }
  0xb4   : > { %s12531_s27 = scalar_lea.vmem %s12530_s4, 4096  ;;  %p12532_p12 = scmp.lt.s32.totalorder %s12935_s0, %s12530_s4 }
  0xb5   : > { %p12527_p9 = pnand %p12525_p0, %p12485_p7  ;;  %p12533_p2 = scmp.lt.s32.totalorder %s12531_s27, %s12524_s28 }
  0xb7   : > { %p12528_p11 = pneg %p12527_p9  ;;  %p12534_p5 = por %p12533_p2, %p12532_p12 }
  0xb9   : > { %p12535_p1 = pnand %p12534_p5, %p12528_p11 }
  0xbb   : > { %12538 = shalt.err (!%p12535_p1)
}
  0xbc   : > { %s16531_s26 = smov 8   ;;  %s16532_s21 = smov 128  }
  0xbd   : > { %10808 = dma.hbm_to_vmem [thread:$0]  (!%p12896_p8), %s12933_s23, 2048, %s12935_s0, %s515_s15, %s16532_s21, %s16532_s21, %s16531_s26  }
  0xbe   : > { %p16533_p7 = scmp.ne.s32.totalorder %s16510_s20, 0 }
  0xc0   : > { %537 = sbr.rel (%p16533_p7) target bundleno = 3486 (0xd9e), region = 76 }
  0xc5   : > { %s12967_s9 = sand.u32 1, %s12619_s30  }
  0xc6   : > { %s9568_s25 = sshll.u32 %s12967_s9, 8  ;;  %s540_s6 = scalar_lea.sflag [#allocation5], %s12967_s9 }
  0xc7   : > { %s12973_s8 = scalar_lea.vmem [#allocation4], %s9568_s25 }
  0xc8   : > { %12582 = dma.done.wait (%p12868_p6), %s540_s6, 4096  }
  0xc9   : > { %12584 = vsyncadd (%p12868_p6), %s540_s6, 4294963200  ;;  %s548_s0 = sand.u32 1, %s12747_s19   ;;  %s9569_s15 = sshll.u32 %s12967_s9, 7 }
  0xca   : > { %s549_s20 = scalar_lea.sflag [#allocation8], %s548_s0  ;;  %s12981_s23 = scalar_lea.vmem [#allocation7], %s9569_s15 }
  0xcb   : > { %12586 = dma.done.wait (%p12868_p6), %s549_s20, 2048  }
  0xcc   : > { %12588 = vsyncadd (%p12868_p6), %s549_s20, 4294965248  ;;  %p16534_p8 = scmp.eq.s32.totalorder %s12747_s19, 0 }
  0xce   : > { %12590 = dma.done.wait (%p16534_p8), [#allocation8], 32   ;;  %p16535_p10 = pmov %p16534_p8 }
  0xcf   : > { %p16536_p3 = pmov %p16534_p8 }
  0xd0   : > { %12592 = vsyncadd (%p16535_p10), [#allocation8], 4294967264 }
  0xd1   : > { %12594 = dma.done.wait (%p16536_p3), [#allocation11], 16384   ;;  %p16537_p4 = pmov %p16536_p3 }
  0xd2   : > { %p16538_p13 = pmov %p16536_p3 }
  0xd3   : > { %12596 = vsyncadd (%p16537_p4), [#allocation11], 4294950912 }
  0xd4   : > { %12598 = dma.done.wait (%p16538_p13), [#allocation14], 64   ;;  %p16539_p0 = pmov %p16536_p3 }
  0xd6   : > { %12600 = vsyncadd (%p16539_p0), [#allocation14], 4294967232  ;;  %p16540_p6 = pmov %p16539_p0 }
  0xd7   : > { %p16541_p9 = pmov %p16539_p0 }
  0xd8   : > { %12602 = dma.done.wait (%p16540_p6), [#allocation17], 16416  }
  0xd9   : > { %12604 = vsyncadd (%p16541_p9), [#allocation17], 4294950880  ;;  %p16542_p11 = pmov %p16539_p0 }
  0xda   : > { %p16543_p12 = pmov %p16539_p0 }
  0xdb   : > { %12606 = dma.done.wait (%p16542_p11), [#allocation20], 16384  }
  0xdc   : > { %12608 = vsyncadd (%p16543_p12), [#allocation20], 4294950912  ;;  %v635_v0 = vld [vmem:[%s12973_s8] sm:$0xff]  ;;  %v636_v1 = vld [vmem:[%s12973_s8 + $0x8] sm:$0xff]  ;;  %vm2487_vm0 = vcmask 523264   ;;  %s12647_s12 = smov 64  }
  0xdd   : > { %v637_v2 = vld [vmem:[%s12973_s8 + $0x10] sm:$0xff]  ;;  %v669_v3 = vadd.f32 %v636_v1, %v635_v0  ;;  %v734_v4 = vmul.f32 %v635_v0, %v635_v0  ;;  %v735_v5 = vmul.f32 %v636_v1, %v636_v1  ;;  %v638_v6 = vld [vmem:[%s12973_s8 + $0x18] sm:$0xff]  ;;  %v639_v11 = vld [vmem:[%s12973_s8 + $0x20] sm:$0xff]  ;;  %vm3628_vm1 = vcmask 1048064   ;;  %s16248_s6 = scalar_lea.vmem [#allocation21], %s9568_s25  ;;  %s10322_s25 = sshll.u32 %s12747_s19, 12 }
  0xde   : > { %v736_v7 = vmul.f32 %v637_v2, %v637_v2  ;;  %v737_v8 = vmul.f32 %v638_v6, %v638_v6  ;;  %v672_v10 = vadd.f32 %v638_v6, %v637_v2  ;;  %v640_v12 = vld [vmem:[%s12973_s8 + $0x28] sm:$0xff]  ;;  %v641_v14 = vld [vmem:[%s12973_s8 + $0x30] sm:$0xff]  ;;  %v642_v15 = vld [vmem:[%s12973_s8 + $0x38] sm:$0xff]  ;;  %v738_v17 = vmul.f32 %v639_v11, %v639_v11  ;;  %s16343_s20 = scalar_lea.hbm %s16405_s14, %s10322_s25  ;;  %s9365_s19 = scalar_lea.sflag [#allocation6], %s12967_s9 }
  0xdf   : > { %670 = vadd.xlane.f32.xlu0 %v669_v3  ;;  %v766_v9 = vadd.f32 %v735_v5, %v734_v4  ;;  %v675_v16 = vadd.f32 %v640_v12, %v639_v11  ;;  %v739_v18 = vmul.f32 %v640_v12, %v640_v12  ;;  %v678_v19 = vadd.f32 %v642_v15, %v641_v14  ;;  %v643_v22 = vld [vmem:[%s12973_s8 + $0x40] sm:$0xff]  ;;  %v644_v23 = vld [vmem:[%s12973_s8 + $0x48] sm:$0xff]  ;;  %v645_v26 = vld [vmem:[%s12973_s8 + $0x50] sm:$0xff]  ;;  %p16709_p5 = scmp.ne.s32.totalorder %s16526_s24, 0  ;;  %s12648_s3 = smov [#allocation21]  }
  0xe0   : > { %v769_v13 = vadd.f32 %v737_v8, %v736_v7  ;;  %v740_v20 = vmul.f32 %v641_v14, %v641_v14  ;;  %v741_v21 = vmul.f32 %v642_v15, %v642_v15  ;;  %v10882_v25 = vld [vmem:[#allocation10 + $0x154] ss:$24 sps:$4 sm:$0xff]   ;;  %v10886_v29 = vld [vmem:[#allocation10 + $0x150] ss:$24 sps:$4 sm:$0xff]   ;;  %v10888_v32 = vld [vmem:[#allocation10 + $0x124] ss:$24 sps:$4 sm:$0xff]   ;;  %v681_v33 = vadd.f32 %v644_v23, %v643_v22 }
  0xe1   : > { %767 = vadd.xlane.f32.xlu1 %v766_v9  ;;  %v772_v24 = vadd.f32 %v739_v18, %v738_v17  ;;  %v646_v27 = vld [vmem:[%s12973_s8 + $0x58] sm:$0xff]  ;;  %1668 = vmatprep.subr.bf16.mxu0 %v10882_v25  ;;  %v742_v34 = vmul.f32 %v643_v22, %v643_v22  ;;  %v743_v35 = vmul.f32 %v644_v23, %v644_v23  ;;  %v10890_v36 = vld [vmem:[#allocation10 + $0x12c] ss:$24 sps:$4 sm:$0xff]   ;;  %v10893_v41 = vld [vmem:[#allocation10 + $0x128] ss:$24 sps:$4 sm:$0xff]   ;;  %s12543_s10 = sshll.u32 %s12648_s3, 4  ;;  %s12544_s10 = int_to_ptr.vmem [resolvable:$false] %s12543_s10 }
  0xe2   : > { %v10884_v28 = vld [vmem:[#allocation10 + $0x15c] ss:$24 sps:$4 sm:$0xff]   ;;  %v775_v30 = vadd.f32 %v741_v21, %v740_v20  ;;  %v10887_v31 = vld [vmem:[#allocation10 + $0x158] ss:$24 sps:$4 sm:$0xff]   ;;  %1669 = vmatpush1.bf16.msra.mxu0 %v10886_v29  ;;  %v684_v38 = vadd.f32 %v646_v27, %v645_v26  ;;  %v744_v39 = vmul.f32 %v645_v26, %v645_v26  ;;  %v745_v40 = vmul.f32 %v646_v27, %v646_v27  ;;  %v648_v46 = vld [vmem:[%s12973_s8 + $0x68] sm:$0xff]  ;;  %s12545_s22 = scalar_lea.vmem %s12544_s10, 8192 }
  0xe3   : > { %673 = vadd.xlane.f32.xlu0 %v672_v10  ;;  %1781 = vmatprep.subr.bf16.mxu1 %v10884_v28  ;;  %v10892_v37 = vld [vmem:[#allocation10 + $0x120] ss:$24 sps:$4 sm:$0xff]   ;;  %v10894_v43 = vld [vmem:[#allocation10 + $0xf4] ss:$24 sps:$4 sm:$0xff]   ;;  %v778_v45 = vadd.f32 %v743_v35, %v742_v34  ;;  %v10898_v49 = vld [vmem:[#allocation10 + $0xf0] ss:$24 sps:$4 sm:$0xff]   ;;  %v747_v56 = vmul.f32 %v648_v46, %v648_v46 }
  0xe4   : > { %1782 = vmatpush1.bf16.msra.mxu1 %v10887_v31  ;;  %v647_v42 = vld [vmem:[%s12973_s8 + $0x60] sm:$0xff]  ;;  %1670 = vmatprep.subr.bf16.mxu0 %v10888_v32  ;;  %v649_v47 = vld [vmem:[%s12973_s8 + $0x70] sm:$0xff]  ;;  %v650_v48 = vld [vmem:[%s12973_s8 + $0x78] sm:$0xff]  ;;  %v781_v51 = vadd.f32 %v745_v40, %v744_v39 }
  0xe5   : > { %770 = vadd.xlane.f32.xlu1 %v769_v13  ;;  %1783 = vmatprep.subr.bf16.mxu1 %v10890_v36  ;;  %v10896_v44 = vld [vmem:[#allocation10 + $0xfc] ss:$24 sps:$4 sm:$0xff]   ;;  %v10899_v50 = vld [vmem:[#allocation10 + $0xf8] ss:$24 sps:$4 sm:$0xff]   ;;  %v10902_v53 = vld [vmem:[#allocation10 + $0xcc] ss:$24 sps:$4 sm:$0xff]   ;;  %v687_v54 = vadd.f32 %v648_v46, %v647_v42  ;;  %v746_v55 = vmul.f32 %v647_v42, %v647_v42  ;;  %v690_v58 = vadd.f32 %v650_v48, %v649_v47 }
  0xe6   : > { %1671 = vmatpush1.bf16.msra.mxu0 %v10892_v37  ;;  %v10900_v52 = vld [vmem:[#allocation10 + $0xc4] ss:$24 sps:$4 sm:$0xff]   ;;  %v10904_v57 = vld [vmem:[#allocation10 + $0xc0] ss:$24 sps:$4 sm:$0xff]   ;;  %v748_v59 = vmul.f32 %v649_v47, %v649_v47  ;;  %v749_v60 = vmul.f32 %v650_v48, %v650_v48  ;;  %v10906_v63 = vld [vmem:[#allocation10 + $0x94] ss:$24 sps:$4 sm:$0xff]  }
  0xe7   : > { %676 = vadd.xlane.f32.xlu0 %v675_v16  ;;  %1672 = vmatprep.subr.bf16.mxu0 %v10894_v43  ;;  %v10905_v61 = vld [vmem:[#allocation10 + $0xc8] ss:$24 sps:$4 sm:$0xff]   ;;  %v10908_v0 = vld [vmem:[#allocation10 + $0x9c] ss:$24 sps:$4 sm:$0xff]   ;;  %v784_v1 = vadd.f32 %v747_v56, %v746_v55  ;;  %v10911_v6 = vld [vmem:[#allocation10 + $0x98] ss:$24 sps:$4 sm:$0xff]  }
  0xe8   : > { %1784 = vmatpush1.bf16.msra.mxu1 %v10893_v41  ;;  %v651_v62 = vld [vmem:[%s12973_s8 + $0x80] sm:$0xff]  ;;  %v652_v2 = vld [vmem:[%s12973_s8 + $0x88] sm:$0xff]  ;;  %v653_v3 = vld [vmem:[%s12973_s8 + $0x90] sm:$0xff]  ;;  %v787_v7 = vadd.f32 %v749_v60, %v748_v59 }
  0xe9   : > { %679 = vadd.xlane.f32.xlu1 %v678_v19  ;;  %1785 = vmatprep.subr.bf16.mxu1 %v10896_v44  ;;  %v654_v4 = vld [vmem:[%s12973_s8 + $0x98] sm:$0xff]  ;;  %v10910_v5 = vld [vmem:[#allocation10 + $0x90] ss:$24 sps:$4 sm:$0xff]   ;;  %v10914_v9 = vld [vmem:[#allocation10 + $0x6c] ss:$24 sps:$4 sm:$0xff]   ;;  %v693_v10 = vadd.f32 %v652_v2, %v651_v62  ;;  %v750_v11 = vmul.f32 %v651_v62, %v651_v62  ;;  %v751_v12 = vmul.f32 %v652_v2, %v652_v2 }
  0xea   : > { %1673 = vmatpush1.bf16.msra.mxu0 %v10898_v49  ;;  %v10912_v8 = vld [vmem:[#allocation10 + $0x64] ss:$24 sps:$4 sm:$0xff]   ;;  %v10916_v13 = vld [vmem:[#allocation10 + $0x60] ss:$24 sps:$4 sm:$0xff]   ;;  %v696_v14 = vadd.f32 %v654_v4, %v653_v3  ;;  %v752_v15 = vmul.f32 %v653_v3, %v653_v3  ;;  %v753_v16 = vmul.f32 %v654_v4, %v654_v4  ;;  %v10918_v19 = vld [vmem:[#allocation10 + $0x34] ss:$24 sps:$4 sm:$0xff]  }
  0xeb   : > { %773 = vadd.xlane.f32.xlu0 %v772_v24  ;;  %1674 = vmatprep.subr.bf16.mxu0 %v10900_v52  ;;  %v10917_v17 = vld [vmem:[#allocation10 + $0x68] ss:$24 sps:$4 sm:$0xff]   ;;  %v10920_v20 = vld [vmem:[#allocation10 + $0x3c] ss:$24 sps:$4 sm:$0xff]   ;;  %v790_v21 = vadd.f32 %v751_v12, %v750_v11  ;;  %v10923_v26 = vld [vmem:[#allocation10 + $0x38] ss:$24 sps:$4 sm:$0xff]  }
  0xec   : > { %1786 = vmatpush1.bf16.msra.mxu1 %v10899_v50  ;;  %v655_v18 = vld [vmem:[%s12973_s8 + $0xa0] sm:$0xff]  ;;  %v656_v22 = vld [vmem:[%s12973_s8 + $0xa8] sm:$0xff]  ;;  %v657_v23 = vld [vmem:[%s12973_s8 + $0xb0] sm:$0xff]  ;;  %v793_v27 = vadd.f32 %v753_v16, %v752_v15 }
  0xed   : > { %776 = vadd.xlane.f32.xlu1 %v775_v30  ;;  %1787 = vmatprep.subr.bf16.mxu1 %v10902_v53  ;;  %v658_v24 = vld [vmem:[%s12973_s8 + $0xb8] sm:$0xff]  ;;  %v10922_v25 = vld [vmem:[#allocation10 + $0x30] ss:$24 sps:$4 sm:$0xff]   ;;  %v10926_v29 = vld [vmem:[#allocation10 + $0xc] ss:$24 sps:$4 sm:$0xff]   ;;  %v699_v30 = vadd.f32 %v656_v22, %v655_v18  ;;  %v754_v31 = vmul.f32 %v655_v18, %v655_v18  ;;  %v755_v32 = vmul.f32 %v656_v22, %v656_v22 }
  0xee   : > { %1675 = vmatpush1.bf16.msra.mxu0 %v10904_v57  ;;  %v10924_v28 = vld [vmem:[#allocation10 + $0x4] ss:$24 sps:$4 sm:$0xff]   ;;  %v702_v34 = vadd.f32 %v658_v24, %v657_v23  ;;  %v756_v35 = vmul.f32 %v657_v23, %v657_v23  ;;  %v757_v36 = vmul.f32 %v658_v24, %v658_v24  ;;  %v10929_v37 = vld [vmem:[#allocation10 + $0x8] ss:$24 sps:$4 sm:$0xff]   ;;  %v10930_v39 = vld [vmem:[#allocation10 + $0x2d4] ss:$24 sps:$4 sm:$0xff]  }
  0xef   : > { %682 = vadd.xlane.f32.xlu0 %v681_v33  ;;  %1676 = vmatprep.subr.bf16.mxu0 %v10906_v63  ;;  %v10928_v33 = vld [vmem:[#allocation10] ss:$24 sps:$4 sm:$0xff]   ;;  %v10932_v40 = vld [vmem:[#allocation10 + $0x2dc] ss:$24 sps:$4 sm:$0xff]   ;;  %v796_v41 = vadd.f32 %v755_v32, %v754_v31  ;;  %v660_v42 = vld [vmem:[%s12973_s8 + $0xc8] sm:$0xff] }
  0xf0   : > { %1788 = vmatpush1.bf16.msra.mxu1 %v10905_v61  ;;  %v661_v43 = vld [vmem:[%s12973_s8 + $0xd0] sm:$0xff]  ;;  %v662_v44 = vld [vmem:[%s12973_s8 + $0xd8] sm:$0xff]  ;;  %v799_v47 = vadd.f32 %v757_v36, %v756_v35  ;;  %v759_v52 = vmul.f32 %v660_v42, %v660_v42  ;;  %v10941_v57 = vld [vmem:[#allocation10 + $0x2a8] ss:$24 sps:$4 sm:$0xff]  }
  0xf1   : > { %685 = vadd.xlane.f32.xlu1 %v684_v38  ;;  %1789 = vmatprep.subr.bf16.mxu1 %v10908_v0  ;;  %v659_v38 = vld [vmem:[%s12973_s8 + $0xc0] sm:$0xff]  ;;  %v10935_v46 = vld [vmem:[#allocation10 + $0x2d8] ss:$24 sps:$4 sm:$0xff]   ;;  %v760_v55 = vmul.f32 %v661_v43, %v661_v43  ;;  %v761_v56 = vmul.f32 %v662_v44, %v662_v44  ;;  %v10942_v59 = vld [vmem:[#allocation10 + $0x274] ss:$24 sps:$4 sm:$0xff]  }
  0xf2   : > { %1677 = vmatpush1.bf16.msra.mxu0 %v10910_v5  ;;  %v10936_v48 = vld [vmem:[#allocation10 + $0x2a4] ss:$24 sps:$4 sm:$0xff]   ;;  %v705_v50 = vadd.f32 %v660_v42, %v659_v38  ;;  %v10940_v53 = vld [vmem:[#allocation10 + $0x2a0] ss:$24 sps:$4 sm:$0xff]   ;;  %v665_v63 = vld [vmem:[%s12973_s8 + $0xf0] sm:$0xff] }
  0xf3   : > { %779 = vadd.xlane.f32.xlu0 %v778_v45  ;;  %1678 = vmatprep.subr.bf16.mxu0 %v10912_v8  ;;  %v10934_v45 = vld [vmem:[#allocation10 + $0x2d0] ss:$24 sps:$4 sm:$0xff]   ;;  %v10938_v49 = vld [vmem:[#allocation10 + $0x2ac] ss:$24 sps:$4 sm:$0xff]   ;;  %v10944_v60 = vld [vmem:[#allocation10 + $0x27c] ss:$24 sps:$4 sm:$0xff]   ;;  %v805_v2 = vadd.f32 %v761_v56, %v760_v55 }
  0xf4   : > { %1790 = vmatpush1.bf16.msra.mxu1 %v10911_v6  ;;  %v664_v62 = vld [vmem:[%s12973_s8 + $0xe8] sm:$0xff]  ;;  %v666_v0 = vld [vmem:[%s12973_s8 + $0xf8] sm:$0xff] }
  0xf5   : > { %782 = vadd.xlane.f32.xlu1 %v781_v51  ;;  %1791 = vmatprep.subr.bf16.mxu1 %v10914_v9  ;;  %v758_v51 = vmul.f32 %v659_v38, %v659_v38  ;;  %v10947_v3 = vld [vmem:[#allocation10 + $0x278] ss:$24 sps:$4 sm:$0xff]   ;;  %v10948_v4 = vld [vmem:[#allocation10 + $0x244] ss:$24 sps:$4 sm:$0xff]   ;;  %v763_v9 = vmul.f32 %v664_v62, %v664_v62  ;;  %v10954_v11 = vld [vmem:[#allocation10 + $0x214] ss:$24 sps:$4 sm:$0xff]   ;;  %v765_v15 = vmul.f32 %v666_v0, %v666_v0 }
  0xf6   : > { %1679 = vmatpush1.bf16.msra.mxu0 %v10916_v13  ;;  %v10950_v5 = vld [vmem:[#allocation10 + $0x24c] ss:$24 sps:$4 sm:$0xff]   ;;  %v10952_v6 = vld [vmem:[#allocation10 + $0x240] ss:$24 sps:$4 sm:$0xff]   ;;  %v10956_v12 = vld [vmem:[#allocation10 + $0x21c] ss:$24 sps:$4 sm:$0xff]   ;;  %v714_v13 = vadd.f32 %v666_v0, %v665_v63 }
  0xf7   : > { %688 = vadd.xlane.f32.xlu0 %v687_v54  ;;  %1680 = vmatprep.subr.bf16.mxu0 %v10918_v19  ;;  %v708_v54 = vadd.f32 %v662_v44, %v661_v43  ;;  %v802_v61 = vadd.f32 %v759_v52, %v758_v51  ;;  %v10959_v18 = vld [vmem:[#allocation10 + $0x218] ss:$24 sps:$4 sm:$0xff]   ;;  %v10960_v19 = vld [vmem:[#allocation10 + $0x1e4] ss:$24 sps:$4 sm:$0xff]   ;;  %v10965_v23 = vld [vmem:[#allocation10 + $0x1e8] ss:$24 sps:$4 sm:$0xff]  }
  0xf8   : > { %1792 = vmatpush1.bf16.msra.mxu1 %v10917_v17  ;;  %v10958_v17 = vld [vmem:[#allocation10 + $0x210] ss:$24 sps:$4 sm:$0xff]   ;;  %v10964_v22 = vld [vmem:[#allocation10 + $0x1e0] ss:$24 sps:$4 sm:$0xff]   ;;  %v10966_v24 = vld [vmem:[#allocation10 + $0x1b4] ss:$24 sps:$4 sm:$0xff]  }
  0xf9   : > { %691 = vadd.xlane.f32.xlu1 %v690_v58  ;;  %1793 = vmatprep.subr.bf16.mxu1 %v10920_v20  ;;  %v663_v58 = vld [vmem:[%s12973_s8 + $0xe0] sm:$0xff] }
  0xfa   : > { %1681 = vmatpush1.bf16.msra.mxu0 %v10922_v25  ;;  %v762_v8 = vmul.f32 %v663_v58, %v663_v58  ;;  %v10962_v20 = vld [vmem:[#allocation10 + $0x1ec] ss:$24 sps:$4 sm:$0xff]   ;;  %v10968_v25 = vld [vmem:[#allocation10 + $0x1bc] ss:$24 sps:$4 sm:$0xff]   ;;  %v10977_v31 = vld [vmem:[#allocation10 + $0x188] ss:$24 sps:$4 sm:$0xff]  }
  0xfb   : > { %785 = vadd.xlane.f32.xlu0 %v784_v1  ;;  %1682 = vmatprep.subr.bf16.mxu0 %v10924_v28  ;;  %v10946_v1 = vld [vmem:[#allocation10 + $0x270] ss:$24 sps:$4 sm:$0xff]   ;;  %v10972_v28 = vld [vmem:[#allocation10 + $0x184] ss:$24 sps:$4 sm:$0xff]  }
  0xfc   : > { %1794 = vmatpush1.bf16.msra.mxu1 %v10923_v26  ;;  %v808_v16 = vadd.f32 %v763_v9, %v762_v8  ;;  %v10970_v26 = vld [vmem:[#allocation10 + $0x1b0] ss:$24 sps:$4 sm:$0xff]   ;;  %v10980_v32 = vld [vmem:[#allocation10 + $0x164] ss:$24 sps:$4 sm:$0xff]  }
  0xfd   : > { %788 = vadd.xlane.f32.xlu1 %v787_v7  ;;  %1795 = vmatprep.subr.bf16.mxu1 %v10926_v29  ;;  %v711_v7 = vadd.f32 %v664_v62, %v663_v58  ;;  %v10974_v29 = vld [vmem:[#allocation10 + $0x18c] ss:$24 sps:$4 sm:$0xff]  }
  0xfe   : > { %1683 = vmatpush1.bf16.msra.mxu0 %v10928_v33  ;;  %v12194_v9 = vld [vmem:[%s12973_s8 + $0x8] sm:$0xff] }
  0xff   : > { %694 = vadd.xlane.f32.xlu0 %v693_v10  ;;  %1684 = vmatprep.subr.bf16.mxu0 %v10930_v39  ;;  %v10953_v10 = vld [vmem:[#allocation10 + $0x248] ss:$24 sps:$4 sm:$0xff]  }
 0x100   : > { %1796 = vmatpush1.bf16.msra.mxu1 %v10929_v37 }
 0x101   : > { %697 = vadd.xlane.f32.xlu1 %v696_v14  ;;  %1797 = vmatprep.subr.bf16.mxu1 %v10932_v40  ;;  %v764_v14 = vmul.f32 %v665_v63, %v665_v63 }
 0x102   : > { %1685 = vmatpush2.bf16.msra.mxu0 %v10934_v45 }
 0x103   : > { %791 = vadd.xlane.f32.xlu0 %v790_v21  ;;  %1686 = vmatprep.subr.bf16.mxu0 %v10936_v48  ;;  %v811_v21 = vadd.f32 %v765_v15, %v764_v14 }
 0x104   : > { %1798 = vmatpush2.bf16.msra.mxu1 %v10935_v46 }
 0x105   : > { %794 = vadd.xlane.f32.xlu1 %v793_v27  ;;  %1799 = vmatprep.subr.bf16.mxu1 %v10938_v49  ;;  %v10971_v27 = vld [vmem:[#allocation10 + $0x1b8] ss:$24 sps:$4 sm:$0xff]  }
 0x106   : > { %1687 = vmatpush2.bf16.msra.mxu0 %v10940_v53  ;;  %v959_v53 = vlaneseq }
 0x107   : > { %700 = vadd.xlane.f32.xlu0 %v699_v30  ;;  %1688 = vmatprep.subr.bf16.mxu0 %v10942_v59  ;;  %v10976_v30 = vld [vmem:[#allocation10 + $0x180] ss:$24 sps:$4 sm:$0xff]  }
 0x108   : > { %1800 = vmatpush2.bf16.msra.mxu1 %v10941_v57 }
 0x109   : > { %703 = vadd.xlane.f32.xlu1 %v702_v34  ;;  %1801 = vmatprep.subr.bf16.mxu1 %v10944_v60  ;;  %v13055_v60 = vshrl.u32 %v959_v53, 7  ;;  %v12198_v53 = vld [vmem:[%s12973_s8 + $0x20] sm:$0xff] }
 0x10a   : > { %1689 = vmatpush2.bf16.msra.mxu0 %v10946_v1 }
 0x10b   : > { %797 = vadd.xlane.f32.xlu0 %v796_v41  ;;  %1690 = vmatprep.subr.bf16.mxu0 %v10948_v4  ;;  %16544 = vst [vmem:[#allocation33_spill] sm:$0xff] %v13055_v60 }
 0x10c   : > { %1802 = vmatpush2.bf16.msra.mxu1 %v10947_v3 }
 0x10d   : > { %800 = vadd.xlane.f32.xlu1 %v799_v47  ;;  %1803 = vmatprep.subr.bf16.mxu1 %v10950_v5  ;;  %v13064_v5 = vsub.s32 1, %v13055_v60 }
 0x10e   : > { %1691 = vmatpush2.bf16.msra.mxu0 %v10952_v6 }
 0x10f   : > { %706 = vadd.xlane.f32.xlu0 %v705_v50  ;;  %1692 = vmatprep.subr.bf16.mxu0 %v10954_v11  ;;  %16545 = vst [vmem:[#allocation34_spill] sm:$0xff] %v13064_v5 }
 0x110   : > { %1804 = vmatpush2.bf16.msra.mxu1 %v10953_v10 }
 0x111   : > { %709 = vadd.xlane.f32.xlu1 %v708_v54  ;;  %1805 = vmatprep.subr.bf16.mxu1 %v10956_v12  ;;  %v13072_v12 = vsub.s32 0, %v13055_v60 }
 0x112   : > { %1693 = vmatpush2.bf16.msra.mxu0 %v10958_v17 }
 0x113   : > { %803 = vadd.xlane.f32.xlu0 %v802_v61  ;;  %1694 = vmatprep.subr.bf16.mxu0 %v10960_v19  ;;  %16546 = vst [vmem:[#allocation35_spill] sm:$0xff] %v13072_v12  ;;  %v668_v19 = vld [vmem:[#allocation9] sm:$0x3] }
 0x114   : > { %1806 = vmatpush2.bf16.msra.mxu1 %v10959_v18 }
 0x115   : > { %806 = vadd.xlane.f32.xlu1 %v805_v2  ;;  %1807 = vmatprep.subr.bf16.mxu1 %v10962_v20 }
 0x116   : > { %1695 = vmatpush2.bf16.msra.mxu0 %v10964_v22 }
 0x117   : > { %712 = vadd.xlane.f32.xlu0 %v711_v7  ;;  %1696 = vmatprep.subr.bf16.mxu0 %v10966_v24  ;;  %v667_v7 = vld [vmem:[%s16393_s2] sm:$0x3] }
 0x118   : > { %1808 = vmatpush2.bf16.msra.mxu1 %v10965_v23 }
 0x119   : > { %715 = vadd.xlane.f32.xlu1 %v714_v13  ;;  %1809 = vmatprep.subr.bf16.mxu1 %v10968_v25  ;;  %v12196_v25 = vld [vmem:[%s12973_s8 + $0x18] sm:$0xff] }
 0x11a   : > { %1697 = vmatpush2.bf16.msra.mxu0 %v10970_v26 }
 0x11b   : > { %809 = vadd.xlane.f32.xlu0 %v808_v16  ;;  %1698 = vmatprep.subr.bf16.mxu0 %v10972_v28  ;;  %v12195_v16 = vld [vmem:[%s12973_s8] sm:$0xff] }
 0x11c   : > { %1810 = vmatpush2.bf16.msra.mxu1 %v10971_v27 }
 0x11d   : > { %812 = vadd.xlane.f32.xlu1 %v811_v21  ;;  %1811 = vmatprep.subr.bf16.mxu1 %v10974_v29  ;;  %v13079_v21 = vrot.slane %v667_v7, %v13064_v5  ;;  %v13086_v29 = vrot.slane %v667_v7, %v13072_v12 }
 0x11e   : > { %1699 = vmatpush2.bf16.msra.mxu0 %v10976_v30 }
 0x11f   : > { %1894 = vmatprep.subr.bf16.mxu0 %v10980_v32 }
 0x120   : > { %1812 = vmatpush2.bf16.msra.mxu1 %v10977_v31  ;;  %v12197_v31 = vld [vmem:[%s12973_s8 + $0x10] sm:$0xff] }
 0x168   : > { %v671_v33 = vpop.xlane.xlu0 %670 }
 0x169   : > { %v13039_v34 = vmul.f32 0.00390625, %v671_v33 }
 0x16a   : > { %v768_v35 = vpop.xlane.xlu1 %767 }
 0x16b   : > { %v814_v36 = vmul.f32 0.00390625, %v768_v35  ;;  %v830_v37 = vmul.f32 %v13039_v34, %v13039_v34  ;;  %v863_v10 = vsub.f32 %v12194_v9, %v13039_v34  ;;  %v862_v17 = vsub.f32 %v12195_v16, %v13039_v34 }
 0x16c   : > { %v674_v38 = vpop.xlane.xlu0 %673  ;;  %v13091_v34 = vrot.slane %v668_v19, %v13064_v5 }
 0x16d   : > { %v846_v39 = vsub.f32 %v814_v36, %v830_v37  ;;  %v13043_v40 = vmul.f32 0.00390625, %v674_v38 }
 0x16e   : > { %v771_v41 = vpop.xlane.xlu1 %770 }
 0x16f   : > { %v894_v42 = vadd.f32 1e-05, %v846_v39  ;;  %v815_v43 = vmul.f32 0.00390625, %v771_v41  ;;  %v831_v44 = vmul.f32 %v13043_v40, %v13043_v40  ;;  %v865_v26 = vsub.f32 %v12196_v25, %v13043_v40 }
 0x170   : > { %v677_v45 = vpop.xlane.xlu0 %676  ;;  %v864_v32 = vsub.f32 %v12197_v31, %v13043_v40  ;;  %v10981_v31 = vld [vmem:[#allocation10 + $0x130] ss:$24 sps:$4 sm:$0xff]  }
 0x171   : > { %11362 = vrsqrt.f32 %v894_v42  ;;  %v13047_v46 = vmul.f32 0.00390625, %v677_v45  ;;  %v847_v47 = vsub.f32 %v815_v43, %v831_v44  ;;  %v13101_v45 = vrot.slane %v668_v19, %v13072_v12 }
 0x172   : > { %v680_v48 = vpop.xlane.xlu1 %679 }
 0x173   : > { %v13049_v49 = vmul.f32 0.00390625, %v680_v48  ;;  %v832_v50 = vmul.f32 %v13047_v46, %v13047_v46  ;;  %v895_v51 = vadd.f32 1e-05, %v847_v47 }
 0x174   : > { %v774_v52 = vpop.xlane.xlu0 %773 }
 0x175   : > { %v816_v54 = vmul.f32 0.00390625, %v774_v52  ;;  %11364 = vrsqrt.f32 %v895_v51  ;;  %v833_v57 = vmul.f32 %v13049_v49, %v13049_v49 }
 0x176   : > { %v777_v55 = vpop.xlane.xlu1 %776 }
 0x177   : > { %v848_v56 = vsub.f32 %v816_v54, %v832_v50  ;;  %v817_v58 = vmul.f32 0.00390625, %v777_v55  ;;  %v866_v54 = vsub.f32 %v12198_v53, %v13047_v46  ;;  %v12199_v55 = vld [vmem:[%s12973_s8 + $0x28] sm:$0xff] }
 0x178   : > { %v683_v59 = vpop.xlane.xlu0 %682 }
 0x179   : > { %v896_v61 = vadd.f32 1e-05, %v848_v56  ;;  %v849_v62 = vsub.f32 %v817_v58, %v833_v57  ;;  %v13057_v63 = vmul.f32 0.00390625, %v683_v59  ;;  %v867_v56 = vsub.f32 %v12199_v55, %v13047_v46 }
 0x17a   : > { %v686_v0 = vpop.xlane.xlu1 %685 }
 0x17b   : > { %11366 = vrsqrt.f32 %v896_v61  ;;  %v897_v1 = vadd.f32 1e-05, %v849_v62  ;;  %v13059_v2 = vmul.f32 0.00390625, %v686_v0  ;;  %v834_v3 = vmul.f32 %v13057_v63, %v13057_v63 }
 0x17c   : > { %v780_v4 = vpop.xlane.xlu0 %779 }
 0x17d   : > { %11368 = vrsqrt.f32 %v897_v1  ;;  %v818_v6 = vmul.f32 0.00390625, %v780_v4  ;;  %v835_v14 = vmul.f32 %v13059_v2, %v13059_v2  ;;  %v12200_v4 = vld [vmem:[%s12973_s8 + $0x38] sm:$0xff] }
 0x17e   : > { %v11363_v8 = vpop.eup %11362  ;;  %v783_v11 = vpop.xlane.xlu1 %782 }
 0x17f   : > { %v850_v13 = vsub.f32 %v818_v6, %v834_v3  ;;  %v819_v15 = vmul.f32 0.00390625, %v783_v11  ;;  %v927_v20 = vmul.f32 %v11363_v8, %v863_v10  ;;  %v926_v28 = vmul.f32 %v11363_v8, %v862_v17  ;;  %v12201_v10 = vld [vmem:[%s12973_s8 + $0x30] sm:$0xff] }
 0x180   : > { %v689_v18 = vpop.xlane.xlu0 %688  ;;  %v869_v6 = vsub.f32 %v12200_v4, %v13049_v49  ;;  %v868_v11 = vsub.f32 %v12201_v10, %v13049_v49  ;;  %v10989_v10 = vld [vmem:[#allocation10 + $0xd4] ss:$24 sps:$4 sm:$0xff]  }
 0x181   : > { %v898_v22 = vadd.f32 1e-05, %v850_v13  ;;  %v851_v23 = vsub.f32 %v819_v15, %v835_v14  ;;  %v13081_v24 = vmul.f32 0.00390625, %v689_v18  ;;  %v970_v39 = vmul.f32 %v13079_v21, %v927_v20  ;;  %v10978_v14 = vld [vmem:[#allocation10 + $0x160] ss:$24 sps:$4 sm:$0xff]  }
 0x182   : > { %v692_v27 = vpop.xlane.xlu1 %691  ;;  %v11365_v30 = vpop.eup %11364  ;;  %v969_v44 = vmul.f32 %v13086_v29, %v926_v28  ;;  %v10983_v20 = vld [vmem:[#allocation10 + $0x134] ss:$24 sps:$4 sm:$0xff]  }
 0x183   : > { %11370 = vrsqrt.f32 %v898_v22  ;;  %v899_v33 = vadd.f32 1e-05, %v851_v23  ;;  %v13093_v35 = vmul.f32 0.00390625, %v692_v27  ;;  %v836_v36 = vmul.f32 %v13081_v24, %v13081_v24 }
 0x184   : > { %v786_v37 = vpop.xlane.xlu0 %785  ;;  %v929_v38 = vmul.f32 %v11365_v30, %v865_v26  ;;  %v928_v42 = vmul.f32 %v11365_v30, %v864_v32  ;;  %v1013_v58 = vadd.f32 %v13091_v34, %v970_v39  ;;  %v1012_v46 = vadd.f32 %v13101_v45, %v969_v44 }
 0x185   : > { %11372 = vrsqrt.f32 %v899_v33  ;;  %v820_v41 = vmul.f32 0.00390625, %v786_v37  ;;  %v837_v48 = vmul.f32 %v13093_v35, %v13093_v35 }
 0x186   : > { %v789_v40 = vpop.xlane.xlu1 %788  ;;  %v972_v43 = vmul.f32 %v13079_v21, %v929_v38  ;;  %v971_v51 = vmul.f32 %v13086_v29, %v928_v42  ;;  %v12203_v38 = vld [vmem:[%s12973_s8 + $0x48] sm:$0xff] }
 0x187   : > { %v852_v47 = vsub.f32 %v820_v41, %v836_v36  ;;  %v821_v50 = vmul.f32 0.00390625, %v789_v40  ;;  %v12202_v36 = vld [vmem:[%s12973_s8 + $0x40] sm:$0xff]  ;;  %v871_v39 = vsub.f32 %v12203_v38, %v13057_v63 }
 0x188   : > { %v11367_v52 = vpop.eup %11366  ;;  %v695_v57 = vpop.xlane.xlu0 %694  ;;  %v1015_v59 = vadd.f32 %v13091_v34, %v972_v43  ;;  %v1014_v1 = vadd.f32 %v13101_v45, %v971_v51  ;;  %v870_v37 = vsub.f32 %v12202_v36, %v13057_v63  ;;  %v10986_v43 = vld [vmem:[#allocation10 + $0x104] ss:$24 sps:$4 sm:$0xff]  }
 0x189   : > { %v900_v61 = vadd.f32 1e-05, %v852_v47  ;;  %v853_v62 = vsub.f32 %v821_v50, %v837_v48  ;;  %v13112_v0 = vmul.f32 0.00390625, %v695_v57  ;;  %v931_v9 = vmul.f32 %v11367_v52, %v867_v56  ;;  %v12204_v56 = vld [vmem:[%s12973_s8 + $0x58] sm:$0xff] }
 0x18a   : > { %v11369_v3 = vpop.eup %11368  ;;  %v698_v7 = vpop.xlane.xlu1 %697  ;;  %v13117_v8 = vpack.c.bf16 %v1015_v59, %v1013_v58  ;;  %v930_v15 = vmul.f32 %v11367_v52, %v866_v54  ;;  %v13126_v17 = vpack.c.bf16 %v1014_v1, %v1012_v46  ;;  %v873_v57 = vsub.f32 %v12204_v56, %v13059_v2 }
 0x18b   : > { %11374 = vrsqrt.f32 %v900_v61  ;;  %v901_v13 = vadd.f32 1e-05, %v853_v62  ;;  %v13122_v16 = vmul.f32 0.00390625, %v698_v7  ;;  %v838_v18 = vmul.f32 %v13112_v0, %v13112_v0  ;;  %v12205_v7 = vld [vmem:[%s12973_s8 + $0x50] sm:$0xff] }
 0x18c   : > { %1700 = vmatprep.mubr.bf16.mxu0 %v13117_v8  ;;  %1813 = vmatprep.mubr.bf16.mxu1 %v13117_v8  ;;  %v792_v19 = vpop.xlane.xlu0 %791  ;;  %v933_v22 = vmul.f32 %v11369_v3, %v869_v6  ;;  %v932_v23 = vmul.f32 %v11369_v3, %v868_v11  ;;  %v974_v26 = vmul.f32 %v13079_v21, %v931_v9  ;;  %v10984_v3 = vld [vmem:[#allocation10 + $0x100] ss:$24 sps:$4 sm:$0xff]  }
 0x18d   : > { %11376 = vrsqrt.f32 %v901_v13  ;;  %v822_v49 = vmul.f32 0.00390625, %v792_v19  ;;  %1701 = vmatmul.mubr.bf16.vlgmr.msra.gmra.mxu0 %v13126_v17  ;;  %1814 = vmatmul.mubr.bf16.vlgmr.msra.gmra.mxu1 %v13126_v17  ;;  %v839_v28 = vmul.f32 %v13122_v16, %v13122_v16  ;;  %v973_v42 = vmul.f32 %v13086_v29, %v930_v15  ;;  %v12206_v13 = vld [vmem:[%s12973_s8 + $0x60] sm:$0xff]  ;;  %v12207_v15 = vld [vmem:[%s12973_s8 + $0x68] sm:$0xff] }
 0x18e   : > { %v795_v25 = vpop.xlane.xlu1 %794  ;;  %1895 = vmatpush1.bf16.msra.mxu0 %v10978_v14  ;;  %v976_v32 = vmul.f32 %v13079_v21, %v933_v22  ;;  %v975_v40 = vmul.f32 %v13086_v29, %v932_v23  ;;  %v1017_v53 = vadd.f32 %v13091_v34, %v974_v26  ;;  %v872_v46 = vsub.f32 %v12205_v7, %v13059_v2  ;;  %v13195_v7 = vld [vmem:[%s12973_s8 + $0x90] sm:$0xff] }
 0x18f   : > { %v854_v27 = vsub.f32 %v822_v49, %v838_v18  ;;  %v823_v30 = vmul.f32 0.00390625, %v795_v25  ;;  %1896 = vmatprep.subr.bf16.mxu0 %v10983_v20  ;;  %v1016_v63 = vadd.f32 %v13101_v45, %v973_v42  ;;  %v874_v14 = vsub.f32 %v12206_v13, %v13081_v24 }
 0x190   : > { %v11371_v33 = vpop.eup %11370  ;;  %v701_v41 = vpop.xlane.xlu0 %700  ;;  %v1019_v50 = vadd.f32 %v13091_v34, %v976_v32  ;;  %v1018_v54 = vadd.f32 %v13101_v45, %v975_v40  ;;  %v875_v18 = vsub.f32 %v12207_v15, %v13081_v24  ;;  %v12208_v24 = vld [vmem:[%s12973_s8 + $0x70] sm:$0xff]  ;;  %v12210_v40 = vld [vmem:[%s12973_s8 + $0x80] sm:$0xff] }
 0x191   : > { %v902_v44 = vadd.f32 1e-05, %v854_v27  ;;  %v855_v47 = vsub.f32 %v823_v30, %v839_v28  ;;  %v13142_v48 = vmul.f32 0.00390625, %v701_v41  ;;  %v935_v55 = vmul.f32 %v11371_v33, %v871_v39  ;;  %v12209_v27 = vld [vmem:[%s12973_s8 + $0x78] sm:$0xff]  ;;  %v10987_v30 = vld [vmem:[#allocation10 + $0xd0] ss:$24 sps:$4 sm:$0xff]  }
 0x192   : > { %v11373_v51 = vpop.eup %11372  ;;  %v704_v52 = vpop.xlane.xlu1 %703  ;;  %1897 = vmatpush1.bf16.msra.mxu0 %v10981_v31  ;;  %v934_v59 = vmul.f32 %v11371_v33, %v870_v37  ;;  %v13152_v62 = vpack.c.bf16 %v1019_v50, %v1017_v53  ;;  %v13154_v1 = vpack.c.bf16 %v1018_v54, %v1016_v63  ;;  %v876_v26 = vsub.f32 %v12208_v24, %v13093_v35  ;;  %v10992_v41 = vld [vmem:[#allocation10 + $0xa4] ss:$24 sps:$4 sm:$0xff]  }
 0x193   : > { %11378 = vrsqrt.f32 %v902_v44  ;;  %v903_v58 = vadd.f32 1e-05, %v855_v47  ;;  %v13150_v61 = vmul.f32 0.00390625, %v704_v52  ;;  %1898 = vmatprep.subr.bf16.mxu0 %v10986_v43  ;;  %v840_v4 = vmul.f32 %v13142_v48, %v13142_v48 }
 0x194   : > { %v798_v6 = vpop.xlane.xlu0 %797  ;;  %v937_v11 = vmul.f32 %v11373_v51, %v873_v57  ;;  %1710 = vmatprep.mubr.bf16.mxu0 %v13152_v62  ;;  %1823 = vmatprep.mubr.bf16.mxu1 %v13152_v62  ;;  %v978_v20 = vmul.f32 %v13079_v21, %v935_v55  ;;  %v877_v28 = vsub.f32 %v12209_v27, %v13093_v35  ;;  %v10993_v27 = vld [vmem:[#allocation10 + $0x70] ss:$24 sps:$4 sm:$0xff]  }
 0x195   : > { %11380 = vrsqrt.f32 %v903_v58  ;;  %v824_v9 = vmul.f32 0.00390625, %v798_v6  ;;  %1711 = vmatmul.mubr.bf16.gmra.mxu0 %v13154_v1  ;;  %1824 = vmatmul.mubr.bf16.gmra.mxu1 %v13154_v1  ;;  %v841_v22 = vmul.f32 %v13150_v61, %v13150_v61  ;;  %v936_v32 = vmul.f32 %v11373_v51, %v872_v46  ;;  %v12211_v58 = vld [vmem:[%s12973_s8 + $0x88] sm:$0xff] }
 0x196   : > { %v801_v19 = vpop.xlane.xlu1 %800  ;;  %v980_v23 = vmul.f32 %v13079_v21, %v937_v11  ;;  %1899 = vmatpush1.bf16.msra.mxu0 %v10984_v3  ;;  %v977_v33 = vmul.f32 %v13086_v29, %v934_v59  ;;  %v878_v43 = vsub.f32 %v12210_v40, %v13112_v0  ;;  %v1021_v44 = vadd.f32 %v13091_v34, %v978_v20  ;;  %v10990_v3 = vld [vmem:[#allocation10 + $0xa0] ss:$24 sps:$4 sm:$0xff]   ;;  %v10995_v11 = vld [vmem:[#allocation10 + $0x74] ss:$24 sps:$4 sm:$0xff]   ;;  %v10998_v40 = vld [vmem:[#allocation10 + $0x44] ss:$24 sps:$4 sm:$0xff]  }
 0x197   : > { %v856_v2 = vsub.f32 %v824_v9, %v840_v4  ;;  %v825_v49 = vmul.f32 0.00390625, %v801_v19  ;;  %1900 = vmatprep.subr.bf16.mxu0 %v10989_v10  ;;  %v979_v47 = vmul.f32 %v13086_v29, %v936_v32  ;;  %v879_v59 = vsub.f32 %v12211_v58, %v13112_v0  ;;  %v12213_v20 = vld [vmem:[%s12973_s8 + $0x98] sm:$0xff]  ;;  %v12214_v32 = vld [vmem:[%s12973_s8 + $0xa0] sm:$0xff]  ;;  %v12215_v58 = vld [vmem:[%s12973_s8 + $0xa8] sm:$0xff] }
 0x198   : > { %v11375_v25 = vpop.eup %11374  ;;  %v707_v31 = vpop.xlane.xlu0 %706  ;;  %v1023_v39 = vadd.f32 %v13091_v34, %v980_v23  ;;  %v1020_v52 = vadd.f32 %v13101_v45, %v977_v33  ;;  %v880_v46 = vsub.f32 %v13195_v7, %v13122_v16  ;;  %v882_v33 = vsub.f32 %v12214_v32, %v13142_v48  ;;  %v11004_v32 = vld [vmem:[#allocation10 + $0x2e4] ss:$24 sps:$4 sm:$0xff]  }
 0x199   : > { %v904_v36 = vadd.f32 1e-05, %v856_v2  ;;  %v857_v37 = vsub.f32 %v825_v49, %v841_v22  ;;  %v13177_v38 = vmul.f32 0.00390625, %v707_v31  ;;  %v939_v50 = vmul.f32 %v11375_v25, %v875_v18 }
 0x19a   : > { %v11377_v42 = vpop.eup %11376  ;;  %v710_v35 = vpop.xlane.xlu1 %709  ;;  %v938_v53 = vmul.f32 %v11375_v25, %v874_v14  ;;  %1901 = vmatpush1.bf16.msra.mxu0 %v10987_v30  ;;  %v13187_v54 = vpack.c.bf16 %v1023_v39, %v1021_v44  ;;  %v1022_v55 = vadd.f32 %v13101_v45, %v979_v47  ;;  %v881_v2 = vsub.f32 %v12213_v20, %v13122_v16 }
 0x19b   : > { %11382 = vrsqrt.f32 %v904_v36  ;;  %v905_v51 = vadd.f32 1e-05, %v857_v37  ;;  %v13185_v63 = vmul.f32 0.00390625, %v710_v35  ;;  %v842_v56 = vmul.f32 %v13177_v38, %v13177_v38  ;;  %1902 = vmatprep.subr.bf16.mxu0 %v10992_v41 }
 0x19c   : > { %v804_v57 = vpop.xlane.xlu0 %803  ;;  %v941_v6 = vmul.f32 %v11377_v42, %v877_v28  ;;  %1720 = vmatprep.mubr.bf16.mxu0 %v13187_v54  ;;  %1833 = vmatprep.mubr.bf16.mxu1 %v13187_v54  ;;  %v13201_v9 = vpack.c.bf16 %v1022_v55, %v1020_v52  ;;  %v982_v0 = vmul.f32 %v13079_v21, %v939_v50 }
 0x19d   : > { %11384 = vrsqrt.f32 %v905_v51  ;;  %v826_v4 = vmul.f32 0.00390625, %v804_v57  ;;  %v843_v14 = vmul.f32 %v13185_v63, %v13185_v63  ;;  %v940_v49 = vmul.f32 %v11377_v42, %v876_v26 }
 0x19e   : > { %v807_v10 = vpop.xlane.xlu1 %806  ;;  %v984_v18 = vmul.f32 %v13079_v21, %v941_v6  ;;  %1721 = vmatmul.mubr.bf16.gmra.mxu0 %v13201_v9  ;;  %1834 = vmatmul.mubr.bf16.gmra.mxu1 %v13201_v9  ;;  %v981_v23 = vmul.f32 %v13086_v29, %v938_v53  ;;  %v1025_v37 = vadd.f32 %v13091_v34, %v982_v0  ;;  %v10996_v53 = vld [vmem:[#allocation10 + $0x40] ss:$24 sps:$4 sm:$0xff]  }
 0x19f   : > { %v858_v13 = vsub.f32 %v826_v4, %v842_v56  ;;  %v827_v15 = vmul.f32 0.00390625, %v807_v10  ;;  %1903 = vmatpush1.bf16.msra.mxu0 %v10990_v3  ;;  %v983_v26 = vmul.f32 %v13086_v29, %v940_v49  ;;  %v11001_v10 = vld [vmem:[#allocation10 + $0x14] ss:$24 sps:$4 sm:$0xff]  }
 0x1a0   : > { %v11379_v19 = vpop.eup %11378  ;;  %v713_v22 = vpop.xlane.xlu0 %712  ;;  %v1027_v30 = vadd.f32 %v13091_v34, %v984_v18  ;;  %1904 = vmatprep.subr.bf16.mxu0 %v10995_v11  ;;  %v1024_v42 = vadd.f32 %v13101_v45, %v981_v23 }
 0x1a1   : > { %v906_v25 = vadd.f32 1e-05, %v858_v13  ;;  %v859_v24 = vsub.f32 %v827_v15, %v843_v14  ;;  %v13212_v28 = vmul.f32 0.00390625, %v713_v22  ;;  %v943_v39 = vmul.f32 %v11379_v19, %v879_v59  ;;  %v12216_v59 = vld [vmem:[%s12973_s8 + $0xb8] sm:$0xff]  ;;  %v10999_v22 = vld [vmem:[#allocation10 + $0x10] ss:$24 sps:$4 sm:$0xff]  }
 0x1a2   : > { %v11381_v31 = vpop.eup %11380  ;;  %v716_v36 = vpop.xlane.xlu1 %715  ;;  %v942_v35 = vmul.f32 %v11379_v19, %v878_v43  ;;  %v13222_v47 = vpack.c.bf16 %v1027_v30, %v1025_v37  ;;  %v1026_v50 = vadd.f32 %v13101_v45, %v983_v26  ;;  %v883_v43 = vsub.f32 %v12215_v58, %v13142_v48 }
 0x1a3   : > { %11386 = vrsqrt.f32 %v906_v25  ;;  %v907_v41 = vadd.f32 1e-05, %v859_v24  ;;  %v13220_v44 = vmul.f32 0.00390625, %v716_v36  ;;  %v844_v51 = vmul.f32 %v13212_v28, %v13212_v28  ;;  %1905 = vmatpush1.bf16.msra.mxu0 %v10993_v27  ;;  %v12217_v24 = vld [vmem:[%s12973_s8 + $0xb0] sm:$0xff] }
 0x1a4   : > { %v810_v52 = vpop.xlane.xlu0 %809  ;;  %v945_v56 = vmul.f32 %v11381_v31, %v881_v2  ;;  %v986_v57 = vmul.f32 %v13079_v21, %v943_v39  ;;  %v885_v3 = vsub.f32 %v12216_v59, %v13150_v61  ;;  %1730 = vmatprep.mubr.bf16.mxu0 %v13222_v47  ;;  %1843 = vmatprep.mubr.bf16.mxu1 %v13222_v47 }
 0x1a5   : > { %11388 = vrsqrt.f32 %v907_v41  ;;  %v828_v55 = vmul.f32 0.00390625, %v810_v52  ;;  %v13234_v4 = vpack.c.bf16 %v1026_v50, %v1024_v42  ;;  %1906 = vmatprep.subr.bf16.mxu0 %v10998_v40  ;;  %v845_v0 = vmul.f32 %v13220_v44, %v13220_v44  ;;  %v11007_v42 = vld [vmem:[#allocation10 + $0x2b4] ss:$24 sps:$4 sm:$0xff]  }
 0x1a6   : > { %v813_v6 = vpop.xlane.xlu1 %812  ;;  %v988_v48 = vmul.f32 %v13079_v21, %v945_v56  ;;  %v1029_v15 = vadd.f32 %v13091_v34, %v986_v57  ;;  %v944_v18 = vmul.f32 %v11381_v31, %v880_v46  ;;  %v985_v19 = vmul.f32 %v13086_v29, %v942_v35  ;;  %v12218_v50 = vld [vmem:[%s12973_s8 + $0xc8] sm:$0xff]  ;;  %v12219_v56 = vld [vmem:[%s12973_s8 + $0xc0] sm:$0xff] }
 0x1a7   : > { %v860_v11 = vsub.f32 %v828_v55, %v844_v51  ;;  %v829_v13 = vmul.f32 0.00390625, %v813_v6  ;;  %1731 = vmatmul.mubr.bf16.gmra.mxu0 %v13234_v4  ;;  %1844 = vmatmul.mubr.bf16.gmra.mxu1 %v13234_v4  ;;  %v884_v27 = vsub.f32 %v12217_v24, %v13150_v61  ;;  %v11002_v61 = vld [vmem:[#allocation10 + $0x2e0] ss:$24 sps:$4 sm:$0xff]   ;;  %v887_v51 = vsub.f32 %v12218_v50, %v13177_v38 }
 0x1a8   : > { %v11383_v14 = vpop.eup %11382  ;;  %1907 = vmatpush1.bf16.msra.mxu0 %v10996_v53  ;;  %v1031_v49 = vadd.f32 %v13091_v34, %v988_v48  ;;  %v987_v30 = vmul.f32 %v13086_v29, %v944_v18  ;;  %v1028_v31 = vadd.f32 %v13101_v45, %v985_v19  ;;  %v886_v57 = vsub.f32 %v12219_v56, %v13177_v38  ;;  %v11010_v48 = vld [vmem:[#allocation10 + $0x284] ss:$24 sps:$4 sm:$0xff]   ;;  %v11014_v56 = vld [vmem:[#allocation10 + $0x220] ss:$24 sps:$4 sm:$0xff]  }
 0x1a9   : > { %v908_v20 = vadd.f32 1e-05, %v860_v11  ;;  %v861_v2 = vsub.f32 %v829_v13, %v845_v0  ;;  %v947_v23 = vmul.f32 %v11383_v14, %v883_v43  ;;  %1908 = vmatprep.subr.bf16.mxu0 %v11001_v10  ;;  %v946_v36 = vmul.f32 %v11383_v14, %v882_v33  ;;  %v12220_v43 = vld [vmem:[%s12973_s8 + $0xd0] sm:$0xff] }
 0x1aa   : > { %v11385_v25 = vpop.eup %11384  ;;  %v13250_v7 = vpack.c.bf16 %v1031_v49, %v1029_v15  ;;  %v1030_v37 = vadd.f32 %v13101_v45, %v987_v30  ;;  %v888_v59 = vsub.f32 %v12220_v43, %v13185_v63  ;;  %v11005_v10 = vld [vmem:[#allocation10 + $0x2b0] ss:$24 sps:$4 sm:$0xff]   ;;  %v11013_v49 = vld [vmem:[#allocation10 + $0x254] ss:$24 sps:$4 sm:$0xff]  }
 0x1ab   : > { %11390 = vrsqrt.f32 %v908_v20  ;;  %v909_v16 = vadd.f32 1e-05, %v861_v2  ;;  %v949_v46 = vmul.f32 %v11385_v25, %v885_v3  ;;  %v990_v26 = vmul.f32 %v13079_v21, %v947_v23  ;;  %v12221_v3 = vld [vmem:[%s12973_s8 + $0xd8] sm:$0xff] }
 0x1ac   : > { %v948_v39 = vmul.f32 %v11385_v25, %v884_v27  ;;  %1909 = vmatpush1.bf16.msra.mxu0 %v10999_v22  ;;  %1740 = vmatprep.mubr.bf16.mxu0 %v13250_v7  ;;  %v13258_v41 = vpack.c.bf16 %v1030_v37, %v1028_v31  ;;  %v989_v40 = vmul.f32 %v13086_v29, %v946_v36  ;;  %v11008_v20 = vld [vmem:[#allocation10 + $0x280] ss:$24 sps:$4 sm:$0xff]   ;;  %v12222_v25 = vld [vmem:[%s12973_s8 + $0xe8] sm:$0xff]  ;;  %v12224_v31 = vld [vmem:[%s12973_s8 + $0xf0] sm:$0xff] }
 0x1ad   : > { %11392 = vrsqrt.f32 %v909_v16  ;;  %v992_v33 = vmul.f32 %v13079_v21, %v949_v46  ;;  %1853 = vmatprep.mubr.bf16.mxu1 %v13250_v7  ;;  %1910 = vmatprep.subr.bf16.mxu0 %v11004_v32  ;;  %v1033_v52 = vadd.f32 %v13091_v34, %v990_v26  ;;  %v889_v6 = vsub.f32 %v12221_v3, %v13185_v63  ;;  %v12223_v36 = vld [vmem:[%s12973_s8 + $0xe0] sm:$0xff]  ;;  %v12225_v26 = vld [vmem:[%s12973_s8 + $0xf8] sm:$0xff] }
 0x1ae   : > { %v991_v35 = vmul.f32 %v13086_v29, %v948_v39  ;;  %v1032_v38 = vadd.f32 %v13101_v45, %v989_v40  ;;  %v891_v24 = vsub.f32 %v12222_v25, %v13212_v28  ;;  %v890_v16 = vsub.f32 %v12223_v36, %v13212_v28 }
 0x1af   : > { %v1035_v53 = vadd.f32 %v13091_v34, %v992_v33  ;;  %1741 = vmatmul.mubr.bf16.gmra.mxu0 %v13258_v41  ;;  %1854 = vmatmul.mubr.bf16.gmra.mxu1 %v13258_v41  ;;  %v892_v37 = vsub.f32 %v12224_v31, %v13220_v44  ;;  %v893_v39 = vsub.f32 %v12225_v26, %v13220_v44 }
 0x1b0   : > { %v11387_v55 = vpop.eup %11386  ;;  %v1034_v58 = vadd.f32 %v13101_v45, %v991_v35  ;;  %1911 = vmatpush2.bf16.msra.mxu0 %v11002_v61  ;;  %v11011_v61 = vld [vmem:[#allocation10 + $0x250] ss:$24 sps:$4 sm:$0xff]   ;;  %v11016_v35 = vld [vmem:[#allocation10 + $0x224] ss:$24 sps:$4 sm:$0xff]  }
 0x1b1   : > { %v13275_v11 = vpack.c.bf16 %v1035_v53, %v1033_v52  ;;  %v951_v0 = vmul.f32 %v11387_v55, %v887_v51  ;;  %1912 = vmatprep.subr.bf16.mxu0 %v11007_v42  ;;  %v950_v14 = vmul.f32 %v11387_v55, %v886_v57 }
 0x1b2   : > { %v11389_v13 = vpop.eup %11388  ;;  %v13281_v19 = vpack.c.bf16 %v1034_v58, %v1032_v38  ;;  %v11019_v58 = vld [vmem:[#allocation10 + $0x1f4] ss:$24 sps:$4 sm:$0xff]  }
 0x1b3   : > { %1750 = vmatprep.mubr.bf16.mxu0 %v13275_v11  ;;  %1863 = vmatprep.mubr.bf16.mxu1 %v13275_v11  ;;  %v953_v15 = vmul.f32 %v11389_v13, %v889_v6  ;;  %v994_v63 = vmul.f32 %v13079_v21, %v951_v0  ;;  %v952_v18 = vmul.f32 %v11389_v13, %v888_v59  ;;  %v11022_v13 = vld [vmem:[#allocation10 + $0x1c4] ss:$24 sps:$4 sm:$0xff]  }
 0x1b4   : > { %1913 = vmatpush2.bf16.msra.mxu0 %v11005_v10  ;;  %v993_v23 = vmul.f32 %v13086_v29, %v950_v14  ;;  %v11017_v10 = vld [vmem:[#allocation10 + $0x1f0] ss:$24 sps:$4 sm:$0xff]  }
 0x1b5   : > { %v996_v2 = vmul.f32 %v13079_v21, %v953_v15  ;;  %v995_v22 = vmul.f32 %v13086_v29, %v952_v18  ;;  %1914 = vmatprep.subr.bf16.mxu0 %v11010_v48  ;;  %v1037_v27 = vadd.f32 %v13091_v34, %v994_v63  ;;  %v11025_v48 = vld [vmem:[#allocation10 + $0x194] ss:$24 sps:$4 sm:$0xff]  }
 0x1b6   : > { %v1036_v28 = vadd.f32 %v13101_v45, %v993_v23 }
 0x1b7   : > { %v1039_v30 = vadd.f32 %v13091_v34, %v996_v2  ;;  %1751 = vmatmul.mubr.bf16.gmra.mxu0 %v13281_v19  ;;  %1864 = vmatmul.mubr.bf16.gmra.mxu1 %v13281_v19  ;;  %v1038_v46 = vadd.f32 %v13101_v45, %v995_v22 }
 0x1b8   : > { %v11391_v32 = vpop.eup %11390  ;;  %1915 = vmatpush2.bf16.msra.mxu0 %v11008_v20 }
 0x1b9   : > { %v1057_v33 = vpack.c.bf16 %v1039_v30, %v1037_v27  ;;  %v955_v42 = vmul.f32 %v11391_v32, %v891_v24  ;;  %1916 = vmatprep.subr.bf16.mxu0 %v11013_v49  ;;  %v954_v50 = vmul.f32 %v11391_v32, %v890_v16  ;;  %v1056_v55 = vpack.c.bf16 %v1038_v46, %v1036_v28 }
 0x1ba   : > { %v11393_v40 = vpop.eup %11392 }
 0x1bb   : > { %1760 = vmatprep.mubr.bf16.mxu0 %v1057_v33  ;;  %1873 = vmatprep.mubr.bf16.mxu1 %v1057_v33  ;;  %v957_v51 = vmul.f32 %v11393_v40, %v893_v39  ;;  %v998_v52 = vmul.f32 %v13079_v21, %v955_v42  ;;  %v956_v53 = vmul.f32 %v11393_v40, %v892_v37 }
 0x1bc   : > { %1917 = vmatpush2.bf16.msra.mxu0 %v11011_v61  ;;  %v997_v43 = vmul.f32 %v13086_v29, %v954_v50 }
 0x1bd   : > { %v1000_v44 = vmul.f32 %v13079_v21, %v957_v51  ;;  %v999_v57 = vmul.f32 %v13086_v29, %v956_v53  ;;  %1918 = vmatprep.subr.bf16.mxu0 %v11016_v35  ;;  %v1041_v59 = vadd.f32 %v13091_v34, %v998_v52  ;;  %v11020_v29 = vld [vmem:[#allocation10 + $0x1c0] ss:$24 sps:$4 sm:$0xff]  }
 0x1be   : > { %v1040_v21 = vadd.f32 %v13101_v45, %v997_v43 }
 0x1bf   : > { %v1043_v3 = vadd.f32 %v13091_v34, %v1000_v44  ;;  %1761 = vmatmul.mubr.bf16.gmra.mxu0 %v1056_v55  ;;  %1874 = vmatmul.mubr.bf16.gmra.mxu1 %v1056_v55  ;;  %v1042_v6 = vadd.f32 %v13101_v45, %v999_v57  ;;  %v11023_v34 = vld [vmem:[#allocation10 + $0x190] ss:$24 sps:$4 sm:$0xff]   ;;  %v16417_v45 = vsub.s32 2, %v13055_v60 }
 0x1c0   : > { %1919 = vmatpush2.bf16.msra.mxu0 %v11014_v56 }
 0x1c1   : > { %v1059_v0 = vpack.c.bf16 %v1043_v3, %v1041_v59  ;;  %1920 = vmatprep.subr.bf16.mxu0 %v11019_v58  ;;  %v1058_v38 = vpack.c.bf16 %v1042_v6, %v1040_v21 }
 0x1c3   : > { %1770 = vmatprep.mubr.bf16.mxu0 %v1059_v0  ;;  %1883 = vmatprep.mubr.bf16.mxu1 %v1059_v0 }
 0x1c4   : > { %1921 = vmatpush2.bf16.msra.mxu0 %v11017_v10 }
 0x1c5   : > { %1922 = vmatprep.subr.bf16.mxu0 %v11022_v13 }
 0x1c7   : > { %1771 = vmatmul.mubr.bf16.gmra.mxu0 %v1058_v38  ;;  %1884 = vmatmul.mubr.bf16.gmra.mxu1 %v1058_v38 }
 0x1c8   : > { %1923 = vmatpush2.bf16.msra.mxu0 %v11020_v29  ;;  %1926 = vmatprep.mubr.bf16.mxu0 %v13117_v8  ;;  %v16416_v8 = vsub.s32 3, %v13055_v60 }
 0x1c9   : > { %1924 = vmatprep.subr.bf16.mxu0 %v11025_v48 }
 0x1cc   : > { %1925 = vmatpush2.bf16.msra.mxu0 %v11023_v34 }
 0x1cf   : > { %1927 = vmatmul.mubr.bf16.vlgmr.msra.gmra.mxu0 %v13126_v17  ;;  %v13325_v17 = vld [vmem:[%s16396_s5] sm:$0x3f] }
 0x1d0   : > { %1936 = vmatprep.mubr.bf16.mxu0 %v13152_v62  ;;  %v13329_v62 = vrot.slane %v13325_v17, %v13072_v12 }
 0x1d7   : > { %1937 = vmatmul.mubr.bf16.gmra.mxu0 %v13154_v1  ;;  %v13334_v1 = vrot.slane %v13325_v17, %v16417_v45 }
 0x1d8   : > { %1946 = vmatprep.mubr.bf16.mxu0 %v13187_v54  ;;  %v13338_v54 = vrot.slane %v13325_v17, %v13064_v5 }
 0x1df   : > { %1947 = vmatmul.mubr.bf16.gmra.mxu0 %v13201_v9  ;;  %v13343_v9 = vrot.slane %v13325_v17, %v16416_v8 }
 0x1e0   : > { %1956 = vmatprep.mubr.bf16.mxu0 %v13222_v47 }
 0x1e7   : > { %1957 = vmatmul.mubr.bf16.gmra.mxu0 %v13234_v4 }
 0x1e8   : > { %1966 = vmatprep.mubr.bf16.mxu0 %v13250_v7 }
 0x1ef   : > { %1967 = vmatmul.mubr.bf16.gmra.mxu0 %v13258_v41 }
 0x1f0   : > { %1976 = vmatprep.mubr.bf16.mxu0 %v13275_v11 }
 0x1f7   : > { %1977 = vmatmul.mubr.bf16.gmra.mxu0 %v13281_v19 }
 0x1f8   : > { %1986 = vmatprep.mubr.bf16.mxu0 %v1057_v33 }
 0x1ff   : > { %1987 = vmatmul.mubr.bf16.gmra.mxu0 %v1056_v55 }
 0x200   : > { %1996 = vmatprep.mubr.bf16.mxu0 %v1059_v0 }
 0x207   : > { %1997 = vmatmul.mubr.bf16.gmra.mxu0 %v1058_v38 }
 0x24d   : > { %v1702_v47 = vpop.f32.mrf.mxu0  ;;  %v1815_v4 = vpop.f32.mrf.mxu1 }
 0x24e   : > { %v1703_v11 = vadd.f32 %v1702_v47, %v13329_v62  ;;  %v1816_v14 = vadd.f32 %v1815_v4, %v13334_v1 }
 0x24f   : > { %v1704_v7 = vpop.f32.mrf.mxu0  ;;  %v1817_v41 = vpop.f32.mrf.mxu1 }
 0x250   : > { %v1705_v15 = vadd.f32 %v1704_v7, %v13338_v54  ;;  %v1818_v63 = vadd.f32 %v1817_v41, %v13343_v9 }
 0x251   : > { %v1706_v18 = vpop.f32.mrf.mxu0  ;;  %v1819_v19 = vpop.f32.mrf.mxu1 }
 0x252   : > { %v10274_v20 = vpack.c.bf16 %v1705_v15, %v1703_v11  ;;  %v10275_v2 = vpack.c.bf16 %v1818_v63, %v1816_v14  ;;  %v1707_v23 = vadd.f32 %v1706_v18, %v13329_v62  ;;  %v1820_v25 = vadd.f32 %v1819_v19, %v13334_v1 }
 0x253   : > { %v1708_v22 = vpop.f32.mrf.mxu0  ;;  %v1821_v49 = vpop.f32.mrf.mxu1 }
 0x254   : > { %2295 = vst [vmem:[#allocation2] sm:$0xff] %v10274_v20  ;;  %2296 = vst [vmem:[#allocation2 + $0x8] sm:$0xff] %v10275_v2  ;;  %v1709_v24 = vadd.f32 %v1708_v22, %v13338_v54  ;;  %v1822_v27 = vadd.f32 %v1821_v49, %v13343_v9 }
 0x255   : > { %v1712_v36 = vpop.f32.mrf.mxu0  ;;  %v1825_v16 = vpop.f32.mrf.mxu1 }
 0x256   : > { %v10277_v30 = vpack.c.bf16 %v1709_v24, %v1707_v23  ;;  %v10278_v32 = vpack.c.bf16 %v1822_v27, %v1820_v25  ;;  %v1713_v37 = vadd.f32 %v1712_v36, %v13329_v62  ;;  %v1826_v26 = vadd.f32 %v1825_v16, %v13334_v1 }
 0x257   : > { %v1714_v46 = vpop.f32.mrf.mxu0  ;;  %v1827_v31 = vpop.f32.mrf.mxu1 }
 0x258   : > { %2298 = vst [vmem:[#allocation2 + $0x18] sm:$0xff] %v10277_v30  ;;  %2299 = vst [vmem:[#allocation2 + $0x20] sm:$0xff] %v10278_v32  ;;  %v1715_v39 = vadd.f32 %v1714_v46, %v13338_v54  ;;  %v1828_v61 = vadd.f32 %v1827_v31, %v13343_v9 }
 0x259   : > { %v1716_v33 = vpop.f32.mrf.mxu0  ;;  %v1829_v42 = vpop.f32.mrf.mxu1 }
 0x25a   : > { %v10280_v40 = vpack.c.bf16 %v1715_v39, %v1713_v37  ;;  %v10281_v28 = vpack.c.bf16 %v1828_v61, %v1826_v26  ;;  %v1717_v51 = vadd.f32 %v1716_v33, %v13329_v62  ;;  %v1830_v52 = vadd.f32 %v1829_v42, %v13334_v1 }
 0x25b   : > { %v1718_v35 = vpop.f32.mrf.mxu0  ;;  %v1831_v50 = vpop.f32.mrf.mxu1 }
 0x25c   : > { %2301 = vst [vmem:[#allocation2 + $0x30] sm:$0xff] %v10280_v40  ;;  %2302 = vst [vmem:[#allocation2 + $0x38] sm:$0xff] %v10281_v28  ;;  %v1719_v53 = vadd.f32 %v1718_v35, %v13338_v54  ;;  %v1832_v55 = vadd.f32 %v1831_v50, %v13343_v9 }
 0x25e   : > { %v10283_v56 = vpack.c.bf16 %v1719_v53, %v1717_v51  ;;  %v10284_v44 = vpack.c.bf16 %v1832_v55, %v1830_v52  ;;  %v1722_v57 = vpop.f32.mrf.mxu0  ;;  %v1835_v58 = vpop.f32.mrf.mxu1 }
 0x25f   : > { %v11026_v43 = vld [vmem:[#allocation2] ss:$24 sps:$4 sm:$0xff]   ;;  %v1723_v6 = vadd.f32 %v1722_v57, %v13329_v62  ;;  %v1836_v10 = vadd.f32 %v1835_v58, %v13334_v1 }
 0x260   : > { %2304 = vst [vmem:[#allocation2 + $0x48] sm:$0xff] %v10283_v56  ;;  %2305 = vst [vmem:[#allocation2 + $0x50] sm:$0xff] %v10284_v44  ;;  %v1724_v59 = vpop.f32.mrf.mxu0  ;;  %v1837_v3 = vpop.f32.mrf.mxu1  ;;  %10467 = vmatprep.mubr.msk.bf16.mxu1 %vm2487_vm0, %v11026_v43 }
 0x261   : > { %v1725_v0 = vadd.f32 %v1724_v59, %v13338_v54  ;;  %v1838_v21 = vadd.f32 %v1837_v3, %v13343_v9 }
 0x262   : > { %v1726_v13 = vpop.f32.mrf.mxu0  ;;  %v1839_v38 = vpop.f32.mrf.mxu1 }
 0x263   : > { %v10286_v29 = vpack.c.bf16 %v1725_v0, %v1723_v6  ;;  %v10287_v48 = vpack.c.bf16 %v1838_v21, %v1836_v10  ;;  %v1727_v4 = vadd.f32 %v1726_v13, %v13329_v62  ;;  %v1840_v7 = vadd.f32 %v1839_v38, %v13334_v1 }
 0x264   : > { %v1728_v34 = vpop.f32.mrf.mxu0  ;;  %v1841_v47 = vpop.f32.mrf.mxu1 }
 0x265   : > { %2307 = vst [vmem:[#allocation2 + $0x60] sm:$0xff] %v10286_v29  ;;  %2308 = vst [vmem:[#allocation2 + $0x68] sm:$0xff] %v10287_v48  ;;  %v1729_v41 = vadd.f32 %v1728_v34, %v13338_v54  ;;  %v1842_v11 = vadd.f32 %v1841_v47, %v13343_v9 }
 0x267   : > { %v1732_v14 = vpop.f32.mrf.mxu0  ;;  %v1845_v15 = vpop.f32.mrf.mxu1  ;;  %v10289_v63 = vpack.c.bf16 %v1729_v41, %v1727_v4  ;;  %v10290_v18 = vpack.c.bf16 %v1842_v11, %v1840_v7 }
 0x268   : > { %v1733_v2 = vadd.f32 %v1732_v14, %v13329_v62  ;;  %v1846_v22 = vadd.f32 %v1845_v15, %v13334_v1 }
 0x269   : > { %v1734_v19 = vpop.f32.mrf.mxu0  ;;  %v1847_v20 = vpop.f32.mrf.mxu1  ;;  %2310 = vst [vmem:[#allocation2 + $0x78] sm:$0xff] %v10289_v63  ;;  %2311 = vst [vmem:[#allocation2 + $0x80] sm:$0xff] %v10290_v18 }
 0x26a   : > { %v1735_v49 = vadd.f32 %v1734_v19, %v13338_v54  ;;  %v1848_v23 = vadd.f32 %v1847_v20, %v13343_v9 }
 0x26b   : > { %v1736_v25 = vpop.f32.mrf.mxu0  ;;  %v1849_v24 = vpop.f32.mrf.mxu1 }
 0x26c   : > { %v10292_v27 = vpack.c.bf16 %v1735_v49, %v1733_v2  ;;  %v10293_v30 = vpack.c.bf16 %v1848_v23, %v1846_v22  ;;  %v1737_v16 = vadd.f32 %v1736_v25, %v13329_v62  ;;  %v1850_v46 = vadd.f32 %v1849_v24, %v13334_v1 }
 0x26d   : > { %v1738_v32 = vpop.f32.mrf.mxu0  ;;  %v1851_v36 = vpop.f32.mrf.mxu1 }
 0x26e   : > { %2313 = vst [vmem:[#allocation2 + $0x90] sm:$0xff] %v10292_v27  ;;  %2314 = vst [vmem:[#allocation2 + $0x98] sm:$0xff] %v10293_v30  ;;  %v1739_v31 = vadd.f32 %v1738_v32, %v13338_v54  ;;  %v1852_v37 = vadd.f32 %v1851_v36, %v13343_v9 }
 0x26f   : > { %v1742_v26 = vpop.f32.mrf.mxu0  ;;  %v1855_v39 = vpop.f32.mrf.mxu1 }
 0x270   : > { %v10295_v61 = vpack.c.bf16 %v1739_v31, %v1737_v16  ;;  %v10296_v33 = vpack.c.bf16 %v1852_v37, %v1850_v46  ;;  %v1743_v28 = vadd.f32 %v1742_v26, %v13329_v62  ;;  %v1856_v35 = vadd.f32 %v1855_v39, %v13334_v1 }
 0x271   : > { %v1744_v42 = vpop.f32.mrf.mxu0  ;;  %v1857_v40 = vpop.f32.mrf.mxu1 }
 0x272   : > { %2316 = vst [vmem:[#allocation2 + $0xa8] sm:$0xff] %v10295_v61  ;;  %2317 = vst [vmem:[#allocation2 + $0xb0] sm:$0xff] %v10296_v33  ;;  %v1745_v50 = vadd.f32 %v1744_v42, %v13338_v54  ;;  %v1858_v51 = vadd.f32 %v1857_v40, %v13343_v9 }
 0x273   : > { %v1746_v52 = vpop.f32.mrf.mxu0  ;;  %v1859_v53 = vpop.f32.mrf.mxu1 }
 0x274   : > { %v10298_v55 = vpack.c.bf16 %v1745_v50, %v1743_v28  ;;  %v10299_v56 = vpack.c.bf16 %v1858_v51, %v1856_v35  ;;  %v1747_v58 = vadd.f32 %v1746_v52, %v13329_v62  ;;  %v1860_v43 = vadd.f32 %v1859_v53, %v13334_v1 }
 0x275   : > { %v1748_v44 = vpop.f32.mrf.mxu0  ;;  %v1861_v57 = vpop.f32.mrf.mxu1 }
 0x276   : > { %2319 = vst [vmem:[#allocation2 + $0xc0] sm:$0xff] %v10298_v55  ;;  %2320 = vst [vmem:[#allocation2 + $0xc8] sm:$0xff] %v10299_v56  ;;  %v1749_v59 = vadd.f32 %v1748_v44, %v13338_v54  ;;  %v1862_v3 = vadd.f32 %v1861_v57, %v13343_v9  ;;  %v16415_v55 = vsub.s32 4, %v13055_v60  ;;  %v16414_v56 = vsub.s32 5, %v13055_v60 }
 0x277   : > { %v1752_v6 = vpop.f32.mrf.mxu0  ;;  %v1865_v10 = vpop.f32.mrf.mxu1 }
 0x278   : > { %v10301_v0 = vpack.c.bf16 %v1749_v59, %v1747_v58  ;;  %v10302_v21 = vpack.c.bf16 %v1862_v3, %v1860_v43  ;;  %v1753_v29 = vadd.f32 %v1752_v6, %v13329_v62  ;;  %v1866_v48 = vadd.f32 %v1865_v10, %v13334_v1 }
 0x279   : > { %v1754_v13 = vpop.f32.mrf.mxu0  ;;  %v1867_v38 = vpop.f32.mrf.mxu1 }
 0x27a   : > { %2322 = vst [vmem:[#allocation2 + $0xd8] sm:$0xff] %v10301_v0  ;;  %2323 = vst [vmem:[#allocation2 + $0xe0] sm:$0xff] %v10302_v21  ;;  %v1755_v34 = vadd.f32 %v1754_v13, %v13338_v54  ;;  %v1868_v47 = vadd.f32 %v1867_v38, %v13343_v9  ;;  %v13411_v13 = vrot.slane %v13325_v17, %v16415_v55 }
 0x27b   : > { %v1756_v4 = vpop.f32.mrf.mxu0  ;;  %v1869_v7 = vpop.f32.mrf.mxu1  ;;  %v13416_v38 = vrot.slane %v13325_v17, %v16414_v56 }
 0x27c   : > { %v10304_v41 = vpack.c.bf16 %v1755_v34, %v1753_v29  ;;  %v10305_v11 = vpack.c.bf16 %v1868_v47, %v1866_v48  ;;  %v1757_v63 = vadd.f32 %v1756_v4, %v13329_v62  ;;  %v1870_v18 = vadd.f32 %v1869_v7, %v13334_v1 }
 0x27d   : > { %v1758_v14 = vpop.f32.mrf.mxu0  ;;  %v1871_v15 = vpop.f32.mrf.mxu1 }
 0x27e   : > { %2325 = vst [vmem:[#allocation2 + $0xf0] sm:$0xff] %v10304_v41  ;;  %2326 = vst [vmem:[#allocation2 + $0xf8] sm:$0xff] %v10305_v11  ;;  %v1759_v19 = vadd.f32 %v1758_v14, %v13338_v54  ;;  %v1872_v20 = vadd.f32 %v1871_v15, %v13343_v9 }
 0x27f   : > { %v1762_v2 = vpop.f32.mrf.mxu0  ;;  %v1875_v22 = vpop.f32.mrf.mxu1 }
 0x280   : > { %v10307_v49 = vpack.c.bf16 %v1759_v19, %v1757_v63  ;;  %v10308_v23 = vpack.c.bf16 %v1872_v20, %v1870_v18  ;;  %v1763_v27 = vadd.f32 %v1762_v2, %v13329_v62  ;;  %v1876_v30 = vadd.f32 %v1875_v22, %v13334_v1 }
 0x281   : > { %v1764_v25 = vpop.f32.mrf.mxu0  ;;  %v1877_v24 = vpop.f32.mrf.mxu1  ;;  %v11029_v2 = vld [vmem:[#allocation2 + $0xc8] ss:$24 sps:$4 sm:$0xff]  }
 0x282   : > { %2328 = vst [vmem:[#allocation2 + $0x108] sm:$0xff] %v10307_v49  ;;  %2329 = vst [vmem:[#allocation2 + $0x110] sm:$0xff] %v10308_v23  ;;  %v1765_v32 = vadd.f32 %v1764_v25, %v13338_v54  ;;  %v1878_v36 = vadd.f32 %v1877_v24, %v13343_v9 }
 0x283   : > { %v1766_v16 = vpop.f32.mrf.mxu0  ;;  %v1879_v46 = vpop.f32.mrf.mxu1 }
 0x284   : > { %v10310_v31 = vpack.c.bf16 %v1765_v32, %v1763_v27  ;;  %v10311_v37 = vpack.c.bf16 %v1878_v36, %v1876_v30  ;;  %v1767_v61 = vadd.f32 %v1766_v16, %v13329_v62  ;;  %v1880_v33 = vadd.f32 %v1879_v46, %v13334_v1  ;;  %v11033_v30 = vld [vmem:[#allocation2 + $0x68] ss:$24 sps:$4 sm:$0xff]  }
 0x285   : > { %v1768_v26 = vpop.f32.mrf.mxu0  ;;  %v1881_v39 = vpop.f32.mrf.mxu1 }
 0x286   : > { %2331 = vst [vmem:[#allocation2 + $0x120] sm:$0xff] %v10310_v31  ;;  %2332 = vst [vmem:[#allocation2 + $0x128] sm:$0xff] %v10311_v37  ;;  %v1769_v42 = vadd.f32 %v1768_v26, %v13338_v54  ;;  %v1882_v40 = vadd.f32 %v1881_v39, %v13343_v9  ;;  %v11034_v31 = vld [vmem:[#allocation2 + $0x98] ss:$24 sps:$4 sm:$0xff]  }
 0x287   : > { %v1772_v28 = vpop.f32.mrf.mxu0  ;;  %v1885_v35 = vpop.f32.mrf.mxu1 }
 0x288   : > { %v10313_v50 = vpack.c.bf16 %v1769_v42, %v1767_v61  ;;  %v10314_v51 = vpack.c.bf16 %v1882_v40, %v1880_v33  ;;  %v1773_v44 = vadd.f32 %v1772_v28, %v13329_v62  ;;  %v1886_v57 = vadd.f32 %v1885_v35, %v13334_v1  ;;  %v11035_v33 = vld [vmem:[#allocation2 + $0x8] ss:$24 sps:$4 sm:$0xff]   ;;  %v11036_v40 = vld [vmem:[#allocation2 + $0x38] ss:$24 sps:$4 sm:$0xff]  }
 0x289   : > { %v1774_v52 = vpop.f32.mrf.mxu0  ;;  %v1887_v53 = vpop.f32.mrf.mxu1 }
 0x28a   : > { %2334 = vst [vmem:[#allocation2 + $0x138] sm:$0xff] %v10313_v50  ;;  %2335 = vst [vmem:[#allocation2 + $0x140] sm:$0xff] %v10314_v51  ;;  %v1775_v58 = vadd.f32 %v1774_v52, %v13338_v54  ;;  %v1888_v43 = vadd.f32 %v1887_v53, %v13343_v9  ;;  %v11037_v51 = vld [vmem:[#allocation2 + $0xf8] ss:$24 sps:$4 sm:$0xff]  }
 0x28b   : > { %v1776_v59 = vpop.f32.mrf.mxu0  ;;  %v1889_v3 = vpop.f32.mrf.mxu1  ;;  %v11038_v52 = vld [vmem:[#allocation2 + $0x30] ss:$24 sps:$4 sm:$0xff]   ;;  %v11039_v53 = vld [vmem:[#allocation2] ss:$24 sps:$4 sm:$0xff]  }
 0x28c   : > { %v10316_v6 = vpack.c.bf16 %v1775_v58, %v1773_v44  ;;  %v10317_v10 = vpack.c.bf16 %v1888_v43, %v1886_v57  ;;  %v1777_v29 = vadd.f32 %v1776_v59, %v13329_v62  ;;  %v1890_v48 = vadd.f32 %v1889_v3, %v13334_v1  ;;  %v11028_v1 = vld [vmem:[#allocation2 + $0xf8] ss:$24 sps:$4 sm:$0xff]  }
 0x28d   : > { %v1778_v0 = vpop.f32.mrf.mxu0  ;;  %v1891_v21 = vpop.f32.mrf.mxu1 }
 0x28e   : > { %2337 = vst [vmem:[#allocation2 + $0x150] sm:$0xff] %v10316_v6  ;;  %2338 = vst [vmem:[#allocation2 + $0x158] sm:$0xff] %v10317_v10  ;;  %v1779_v34 = vadd.f32 %v1778_v0, %v13338_v54  ;;  %v1892_v47 = vadd.f32 %v1891_v21, %v13343_v9  ;;  %v11041_v10 = vld [vmem:[#allocation2 + $0x60] ss:$24 sps:$4 sm:$0xff]   ;;  %v11040_v21 = vld [vmem:[#allocation2 + $0x90] ss:$24 sps:$4 sm:$0xff]  }
 0x28f   : > { %v1928_v4 = vpop.f32.mrf.mxu0 }
 0x290   : > { %v10319_v7 = vpack.c.bf16 %v1779_v34, %v1777_v29  ;;  %v10320_v41 = vpack.c.bf16 %v1892_v47, %v1890_v48  ;;  %v1929_v17 = vadd.f32 %v1928_v4, %v13411_v13  ;;  %v11042_v47 = vld [vmem:[#allocation2 + $0xc8] ss:$24 sps:$4 sm:$0xff]  }
 0x291   : > { %v1930_v11 = vpop.f32.mrf.mxu0  ;;  %v11027_v14 = vld [vmem:[#allocation2 + $0x128] ss:$24 sps:$4 sm:$0xff]  }
 0x292   : > { %2340 = vst [vmem:[#allocation2 + $0x168] sm:$0xff] %v10319_v7  ;;  %2341 = vst [vmem:[#allocation2 + $0x170] sm:$0xff] %v10320_v41  ;;  %v1931_v15 = vadd.f32 %v1930_v11, %v13416_v38  ;;  %3102 = vrot.lane.b32.xlu1 %v11027_v14, %s12647_s12  ;;  %v11032_v16 = vld [vmem:[#allocation2 + $0x128] ss:$24 sps:$4 sm:$0xff]   ;;  %v2528_v7 = vsel %vm2487_vm0, %v11037_v51, 0 }
 0x293   : > { %v1932_v63 = vpop.f32.mrf.mxu0  ;;  %v2531_v57 = vsel %vm2487_vm0, %v11032_v16, 0  ;;  %v11043_v41 = vld [vmem:[#allocation2 + $0xf0] ss:$24 sps:$4 sm:$0xff]   ;;  %v11044_v11 = vld [vmem:[#allocation2 + $0xc0] ss:$24 sps:$4 sm:$0xff]  }
 0x294   : > { %v10276_v62 = vpack.c.bf16 %v1931_v15, %v1929_v17  ;;  %v1933_v9 = vadd.f32 %v1932_v63, %v13411_v13 }
 0x295   : > { %v1934_v54 = vpop.f32.mrf.mxu0 }
 0x296   : > { %2297 = vst [vmem:[#allocation2 + $0x10] sm:$0xff] %v10276_v62  ;;  %v1935_v18 = vadd.f32 %v1934_v54, %v13416_v38  ;;  %3100 = vrot.lane.b32.xlu1 %v11028_v1, %s12647_s12  ;;  %v11045_v1 = vld [vmem:[#allocation2 + $0x120] ss:$24 sps:$4 sm:$0xff]  }
 0x297   : > { %v1938_v19 = vpop.f32.mrf.mxu0 }
 0x298   : > { %v10279_v20 = vpack.c.bf16 %v1935_v18, %v1933_v9  ;;  %v1939_v23 = vadd.f32 %v1938_v19, %v13411_v13 }
 0x299   : > { %v1940_v22 = vpop.f32.mrf.mxu0  ;;  %v11030_v49 = vld [vmem:[#allocation2 + $0x158] ss:$24 sps:$4 sm:$0xff]  }
 0x29a   : > { %2300 = vst [vmem:[#allocation2 + $0x28] sm:$0xff] %v10279_v20  ;;  %v1941_v25 = vadd.f32 %v1940_v22, %v13416_v38  ;;  %v11031_v24 = vld [vmem:[#allocation2 + $0x158] ss:$24 sps:$4 sm:$0xff]   ;;  %3098 = vrot.lane.b32.xlu1 %v11029_v2, %s12647_s12  ;;  %3104 = vrot.lane.b32.xlu0 %v11030_v49, %s12647_s12  ;;  %v2525_v49 = vsel %vm2487_vm0, %v11042_v47, 0 }
 0x29b   : > { %v1942_v27 = vpop.f32.mrf.mxu0  ;;  %10707 = vmatprep.subr.msk.bf16.mxu1 %vm2487_vm0, %v11031_v24  ;;  %v2534_v36 = vsel %vm2487_vm0, %v11031_v24, 0  ;;  %v11046_v9 = vld [vmem:[#allocation2 + $0x150] ss:$24 sps:$4 sm:$0xff]  }
 0x29c   : > { %v10282_v32 = vpack.c.bf16 %v1941_v25, %v1939_v23  ;;  %10452 = vmatpush3.bf16.xpose.msra.mxu1 %v2534_v36  ;;  %v1943_v37 = vadd.f32 %v1942_v27, %v13411_v13  ;;  %v11047_v2 = vld [vmem:[#allocation2 + $0x98] ss:$24 sps:$4 sm:$0xff]   ;;  %v11048_v23 = vld [vmem:[#allocation2 + $0x12c] ss:$24 sps:$4 sm:$0xff]   ;;  %v11049_v25 = vld [vmem:[#allocation2 + $0x15c] ss:$24 sps:$4 sm:$0xff]  }
 0x29d   : > { %v1944_v46 = vpop.f32.mrf.mxu0  ;;  %10708 = vmatprep.subr.msk.bf16.mxu1 %vm2487_vm0, %v11032_v16 }
 0x29e   : > { %2303 = vst [vmem:[#allocation2 + $0x40] sm:$0xff] %v10282_v32  ;;  %v1945_v26 = vadd.f32 %v1944_v46, %v13416_v38  ;;  %3094 = vrot.lane.b32.xlu1 %v11033_v30, %s12647_s12  ;;  %3096 = vrot.lane.b32.xlu0 %v11034_v31, %s12647_s12 }
 0x29f   : > { %v1948_v39 = vpop.f32.mrf.mxu0 }
 0x2a0   : > { %v10285_v61 = vpack.c.bf16 %v1945_v26, %v1943_v37  ;;  %v1949_v28 = vadd.f32 %v1948_v39, %v13411_v13 }
 0x2a1   : > { %v1950_v42 = vpop.f32.mrf.mxu0  ;;  %v11050_v16 = vld [vmem:[#allocation2 + $0x10] ss:$24 sps:$4 sm:$0xff]  }
 0x2a2   : > { %2306 = vst [vmem:[#allocation2 + $0x58] sm:$0xff] %v10285_v61  ;;  %v1951_v35 = vadd.f32 %v1950_v42, %v13416_v38  ;;  %3090 = vrot.lane.b32.xlu1 %v11035_v33, %s12647_s12  ;;  %3092 = vrot.lane.b32.xlu0 %v11036_v40, %s12647_s12  ;;  %v11052_v61 = vld [vmem:[#allocation2 + $0x68] ss:$24 sps:$4 sm:$0xff]   ;;  %v2522_v42 = vsel %vm2487_vm0, %v11047_v2, 0 }
 0x2a3   : > { %v1952_v50 = vpop.f32.mrf.mxu0 }
 0x2a4   : > { %v10288_v44 = vpack.c.bf16 %v1951_v35, %v1949_v28  ;;  %10454 = vmatpush3.bf16.xpose.msra.mxu1 %v2531_v57  ;;  %v1953_v43 = vadd.f32 %v1952_v50, %v13411_v13 }
 0x2a5   : > { %v1954_v58 = vpop.f32.mrf.mxu0  ;;  %10709 = vmatprep.subr.msk.bf16.mxu1 %vm2487_vm0, %v11037_v51 }
 0x2a6   : > { %2309 = vst [vmem:[#allocation2 + $0x70] sm:$0xff] %v10288_v44  ;;  %v1955_v59 = vadd.f32 %v1954_v58, %v13416_v38  ;;  %3036 = vrot.lane.b32.xlu1 %v11038_v52, %s12647_s12  ;;  %3034 = vrot.lane.b32.xlu0 %v11039_v53, %s12647_s12 }
 0x2a7   : > { %v1958_v3 = vpop.f32.mrf.mxu0 }
 0x2a8   : > { %v10291_v6 = vpack.c.bf16 %v1955_v59, %v1953_v43  ;;  %v1959_v29 = vadd.f32 %v1958_v3, %v13411_v13 }
 0x2a9   : > { %v1960_v0 = vpop.f32.mrf.mxu0  ;;  %v11051_v31 = vld [vmem:[#allocation2 + $0x40] ss:$24 sps:$4 sm:$0xff]  }
 0x2aa   : > { %2312 = vst [vmem:[#allocation2 + $0x88] sm:$0xff] %v10291_v6  ;;  %v1961_v48 = vadd.f32 %v1960_v0, %v13416_v38  ;;  %3040 = vrot.lane.b32.xlu1 %v11040_v21, %s12647_s12  ;;  %3038 = vrot.lane.b32.xlu0 %v11041_v10, %s12647_s12  ;;  %v2519_v6 = vsel %vm2487_vm0, %v11052_v61, 0  ;;  %v11056_v10 = vld [vmem:[#allocation2 + $0x38] ss:$24 sps:$4 sm:$0xff]  }
 0x2ab   : > { %v1962_v34 = vpop.f32.mrf.mxu0 }
 0x2ac   : > { %v10294_v4 = vpack.c.bf16 %v1961_v48, %v1959_v29  ;;  %10456 = vmatpush3.bf16.xpose.msra.mxu1 %v2528_v7  ;;  %v1963_v17 = vadd.f32 %v1962_v34, %v13411_v13 }
 0x2ad   : > { %v1964_v14 = vpop.f32.mrf.mxu0  ;;  %10710 = vmatprep.subr.msk.bf16.mxu1 %vm2487_vm0, %v11042_v47 }
 0x2ae   : > { %2315 = vst [vmem:[#allocation2 + $0xa0] sm:$0xff] %v10294_v4  ;;  %v1965_v15 = vadd.f32 %v1964_v14, %v13416_v38  ;;  %3044 = vrot.lane.b32.xlu1 %v11043_v41, %s12647_s12  ;;  %3042 = vrot.lane.b32.xlu0 %v11044_v11, %s12647_s12 }
 0x2af   : > { %v1968_v63 = vpop.f32.mrf.mxu0 }
 0x2b0   : > { %v10297_v62 = vpack.c.bf16 %v1965_v15, %v1963_v17  ;;  %v1969_v18 = vadd.f32 %v1968_v63, %v13411_v13  ;;  %v2516_v17 = vsel %vm2487_vm0, %v11056_v10, 0  ;;  %v11058_v15 = vld [vmem:[#allocation2 + $0x8] ss:$24 sps:$4 sm:$0xff]  }
 0x2b1   : > { %v1970_v54 = vpop.f32.mrf.mxu0  ;;  %v11053_v40 = vld [vmem:[#allocation2 + $0x70] ss:$24 sps:$4 sm:$0xff]  }
 0x2b2   : > { %2318 = vst [vmem:[#allocation2 + $0xb8] sm:$0xff] %v10297_v62  ;;  %v1971_v19 = vadd.f32 %v1970_v54, %v13416_v38  ;;  %3046 = vrot.lane.b32.xlu0 %v11045_v1, %s12647_s12  ;;  %3048 = vrot.lane.b32.xlu1 %v11046_v9, %s12647_s12 }
 0x2b3   : > { %v1972_v20 = vpop.f32.mrf.mxu0 }
 0x2b4   : > { %v10300_v22 = vpack.c.bf16 %v1971_v19, %v1969_v18  ;;  %10458 = vmatpush3.bf16.xpose.msra.mxu1 %v2525_v49  ;;  %v1973_v27 = vadd.f32 %v1972_v20, %v13411_v13  ;;  %v2513_v18 = vsel %vm2487_vm0, %v11058_v15, 0  ;;  %v11060_v20 = vld [vmem:[#allocation2 + $0x30] ss:$24 sps:$4 sm:$0xff]  }
 0x2b5   : > { %v1974_v24 = vpop.f32.mrf.mxu0  ;;  %10711 = vmatprep.subr.msk.bf16.mxu1 %vm2487_vm0, %v11047_v2  ;;  %v11066_v49 = vld [vmem:[#allocation2 + $0x90] ss:$24 sps:$4 sm:$0xff]  }
 0x2b6   : > { %2321 = vst [vmem:[#allocation2 + $0xd0] sm:$0xff] %v10300_v22  ;;  %v1975_v30 = vadd.f32 %v1974_v24, %v13416_v38  ;;  %4387 = vrot.lane.b32.xlu0 %v11048_v23, %s12647_s12  ;;  %4389 = vrot.lane.b32.xlu1 %v11049_v25, %s12647_s12  ;;  %v11063_v22 = vld [vmem:[#allocation2 + $0x60] ss:$24 sps:$4 sm:$0xff]  }
 0x2b7   : > { %v1978_v32 = vpop.f32.mrf.mxu0  ;;  %v11067_v23 = vld [vmem:[#allocation2 + $0xc0] ss:$24 sps:$4 sm:$0xff]  }
 0x2b8   : > { %v10303_v36 = vpack.c.bf16 %v1975_v30, %v1973_v27  ;;  %v1979_v37 = vadd.f32 %v1978_v32, %v13411_v13  ;;  %v11070_v27 = vld [vmem:[#allocation2 + $0xf0] ss:$24 sps:$4 sm:$0xff]   ;;  %v11071_v30 = vld [vmem:[#allocation2 + $0x120] ss:$24 sps:$4 sm:$0xff]  }
 0x2b9   : > { %v1980_v46 = vpop.f32.mrf.mxu0  ;;  %v11054_v28 = vld [vmem:[#allocation2 + $0xa0] ss:$24 sps:$4 sm:$0xff]   ;;  %v11072_v32 = vld [vmem:[#allocation2 + $0x70] ss:$24 sps:$4 sm:$0xff]  }
 0x2ba   : > { %2324 = vst [vmem:[#allocation2 + $0xe8] sm:$0xff] %v10303_v36  ;;  %v1981_v26 = vadd.f32 %v1980_v46, %v13416_v38  ;;  %3443 = vrot.lane.b32.xlu0 %v11050_v16, %s12647_s12  ;;  %3445 = vrot.lane.b32.xlu1 %v11051_v31, %s12647_s12  ;;  %v11069_v24 = vld [vmem:[#allocation2 + $0xa0] ss:$24 sps:$4 sm:$0xff]   ;;  %v11074_v16 = vld [vmem:[#allocation2 + $0x150] ss:$24 sps:$4 sm:$0xff]  }
 0x2bb   : > { %v1982_v39 = vpop.f32.mrf.mxu0  ;;  %v11073_v36 = vld [vmem:[#allocation2 + $0x40] ss:$24 sps:$4 sm:$0xff]   ;;  %v11075_v46 = vld [vmem:[#allocation2 + $0x10] ss:$24 sps:$4 sm:$0xff]  }
 0x2bc   : > { %v10306_v33 = vpack.c.bf16 %v1981_v26, %v1979_v37  ;;  %10460 = vmatpush3.bf16.xpose.msra.mxu1 %v2522_v42  ;;  %v1983_v50 = vadd.f32 %v1982_v39, %v13411_v13 }
 0x2bd   : > { %v1984_v35 = vpop.f32.mrf.mxu0  ;;  %10712 = vmatprep.subr.msk.bf16.mxu1 %vm2487_vm0, %v11052_v61 }
 0x2be   : > { %2327 = vst [vmem:[#allocation2 + $0x100] sm:$0xff] %v10306_v33  ;;  %v1985_v51 = vadd.f32 %v1984_v35, %v13416_v38  ;;  %3447 = vrot.lane.b32.xlu0 %v11053_v40, %s12647_s12  ;;  %3449 = vrot.lane.b32.xlu1 %v11054_v28, %s12647_s12 }
 0x2bf   : > { %v1988_v52 = vpop.f32.mrf.mxu0 }
 0x2c0   : > { %v10309_v53 = vpack.c.bf16 %v1985_v51, %v1983_v50  ;;  %v1989_v58 = vadd.f32 %v1988_v52, %v13411_v13 }
 0x2c1   : > { %v1990_v44 = vpop.f32.mrf.mxu0  ;;  %v11055_v57 = vld [vmem:[#allocation2 + $0xd0] ss:$24 sps:$4 sm:$0xff]  }
 0x2c2   : > { %2330 = vst [vmem:[#allocation2 + $0x118] sm:$0xff] %v10309_v53  ;;  %v1991_v43 = vadd.f32 %v1990_v44, %v13416_v38  ;;  %3451 = vrot.lane.b32.xlu0 %v11055_v57, %s12647_s12  ;;  %v11068_v25 = vld [vmem:[#allocation2 + $0xd0] ss:$24 sps:$4 sm:$0xff]  }
 0x2c3   : > { %v1992_v59 = vpop.f32.mrf.mxu0 }
 0x2c4   : > { %v10312_v3 = vpack.c.bf16 %v1991_v43, %v1989_v58  ;;  %10462 = vmatpush3.bf16.xpose.msra.mxu1 %v2519_v6  ;;  %v1993_v21 = vadd.f32 %v1992_v59, %v13411_v13 }
 0x2c5   : > { %v1994_v0 = vpop.f32.mrf.mxu0  ;;  %10713 = vmatprep.subr.msk.bf16.mxu1 %vm2487_vm0, %v11056_v10 }
 0x2c6   : > { %2333 = vst [vmem:[#allocation2 + $0x130] sm:$0xff] %v10312_v3  ;;  %v1995_v29 = vadd.f32 %v1994_v0, %v13416_v38 }
 0x2c7   : > { %v1998_v48 = vpop.f32.mrf.mxu0 }
 0x2c8   : > { %v10315_v34 = vpack.c.bf16 %v1995_v29, %v1993_v21  ;;  %v1999_v7 = vadd.f32 %v1998_v48, %v13411_v13  ;;  %v11076_v21 = vld [vmem:[#allocation2 + $0x15c] ss:$24 sps:$4 sm:$0xff]  }
 0x2c9   : > { %v2000_v47 = vpop.f32.mrf.mxu0  ;;  %v11057_v4 = vld [vmem:[#allocation2 + $0x100] ss:$24 sps:$4 sm:$0xff]  }
 0x2ca   : > { %2336 = vst [vmem:[#allocation2 + $0x148] sm:$0xff] %v10315_v34  ;;  %v2001_v41 = vadd.f32 %v2000_v47, %v13416_v38  ;;  %3453 = vrot.lane.b32.xlu1 %v11057_v4, %s12647_s12  ;;  %v3819_v47 = vsel %vm2487_vm0, %v11076_v21, 0  ;;  %v11077_v4 = vld [vmem:[#allocation2 + $0x12c] ss:$24 sps:$4 sm:$0xff]  }
 0x2cb   : > { %v2002_v11 = vpop.f32.mrf.mxu0 }
 0x2cc   : > { %v10318_v14 = vpack.c.bf16 %v2001_v41, %v1999_v7  ;;  %10464 = vmatpush3.bf16.xpose.msra.mxu1 %v2516_v17  ;;  %v2003_v62 = vadd.f32 %v2002_v11, %v13411_v13  ;;  %v3816_v41 = vsel %vm2487_vm0, %v11077_v4, 0  ;;  %v11078_v11 = vld [vmem:[#allocation2 + $0xfc] ss:$24 sps:$4 sm:$0xff]  }
 0x2cd   : > { %v2004_v63 = vpop.f32.mrf.mxu0  ;;  %10714 = vmatprep.subr.msk.bf16.mxu1 %vm2487_vm0, %v11058_v15  ;;  %v3813_v17 = vsel %vm2487_vm0, %v11078_v11, 0  ;;  %v11079_v15 = vld [vmem:[#allocation2 + $0xcc] ss:$24 sps:$4 sm:$0xff]  }
 0x2ce   : > { %2339 = vst [vmem:[#allocation2 + $0x160] sm:$0xff] %v10318_v14  ;;  %v2005_v1 = vadd.f32 %v2004_v63, %v13416_v38  ;;  %v11065_v38 = vld [vmem:[#allocation2 + $0x100] ss:$24 sps:$4 sm:$0xff]  }
 0x2d0   : > { %v10321_v54 = vpack.c.bf16 %v2005_v1, %v2003_v62  ;;  %v11080_v62 = vld [vmem:[#allocation2 + $0x4] ss:$24 sps:$4 sm:$0xff]   ;;  %v3810_v1 = vsel %vm2487_vm0, %v11079_v15, 0 }
 0x2d1   : > { %v11059_v9 = vld [vmem:[#allocation2 + $0x130] ss:$24 sps:$4 sm:$0xff]  }
 0x2d2   : > { %2342 = vst [vmem:[#allocation2 + $0x178] sm:$0xff] %v10321_v54  ;;  %3455 = vrot.lane.b32.xlu1 %v11059_v9, %s12647_s12  ;;  %v11064_v13 = vld [vmem:[#allocation2 + $0x130] ss:$24 sps:$4 sm:$0xff]   ;;  %v11081_v54 = vld [vmem:[#allocation2 + $0x9c] ss:$24 sps:$4 sm:$0xff]  }
 0x2d3   : > { %v3807_v9 = vsel %vm2487_vm0, %v11081_v54, 0 }
 0x2d4   : > { %10466 = vmatpush3.bf16.xpose.msra.mxu1 %v2513_v18  ;;  %v11082_v18 = vld [vmem:[#allocation2 + $0x6c] ss:$24 sps:$4 sm:$0xff]  }
 0x2d9   : > { %v11061_v19 = vld [vmem:[#allocation2 + $0x160] ss:$24 sps:$4 sm:$0xff]  }
 0x2da   : > { %v11062_v2 = vld [vmem:[#allocation2 + $0x160] ss:$24 sps:$4 sm:$0xff]   ;;  %10483 = vmatprep.subr.bf16.mxu1 %v11061_v19 }
 0x2db   : > { %10468 = vmatmul.mubr.msk.bf16.vlgmr.msra.gmra.mxu1 %vm2487_vm0, %v11060_v20  ;;  %3457 = vrot.lane.b32.xlu0 %v11062_v2, %s12647_s12  ;;  %v11083_v20 = vld [vmem:[#allocation2 + $0x3c] ss:$24 sps:$4 sm:$0xff]  }
 0x2dc   : > { %10471 = vmatprep.mubr.msk.bf16.mxu1 %vm2487_vm0, %v11063_v22  ;;  %10484 = vmatpush3.bf16.msra.mxu1 %v11061_v19  ;;  %v3804_v19 = vsel %vm2487_vm0, %v11082_v18, 0  ;;  %v3801_v2 = vsel %vm2487_vm0, %v11083_v20, 0  ;;  %v11084_v22 = vld [vmem:[#allocation2 + $0xc] ss:$24 sps:$4 sm:$0xff]  }
 0x2dd   : > { %10485 = vmatprep.subr.bf16.mxu1 %v11064_v13 }
 0x2e0   : > { %10486 = vmatpush3.bf16.msra.mxu1 %v11064_v13  ;;  %v3798_v13 = vsel %vm2487_vm0, %v11084_v22, 0 }
 0x2e1   : > { %10487 = vmatprep.subr.bf16.mxu1 %v11065_v38 }
 0x2e3   : > { %10472 = vmatmul.mubr.msk.bf16.gmra.mxu1 %vm2487_vm0, %v11066_v49  ;;  %v11086_v49 = vld [vmem:[#allocation2 + $0x64] ss:$24 sps:$4 sm:$0xff]  }
 0x2e4   : > { %10475 = vmatprep.mubr.msk.bf16.mxu1 %vm2487_vm0, %v11067_v23  ;;  %10488 = vmatpush3.bf16.msra.mxu1 %v11065_v38  ;;  %v11085_v38 = vld [vmem:[#allocation2 + $0x34] ss:$24 sps:$4 sm:$0xff]  }
 0x2e5   : > { %10489 = vmatprep.subr.bf16.mxu1 %v11068_v25  ;;  %v11087_v23 = vld [vmem:[#allocation2 + $0x94] ss:$24 sps:$4 sm:$0xff]  }
 0x2e8   : > { %10490 = vmatpush3.bf16.msra.mxu1 %v11068_v25  ;;  %v11088_v25 = vld [vmem:[#allocation2 + $0xc4] ss:$24 sps:$4 sm:$0xff]  }
 0x2e9   : > { %10491 = vmatprep.subr.bf16.mxu1 %v11069_v24 }
 0x2eb   : > { %10476 = vmatmul.mubr.msk.bf16.gmra.mxu1 %vm2487_vm0, %v11070_v27 }
 0x2ec   : > { %10479 = vmatprep.mubr.msk.bf16.mxu1 %vm2487_vm0, %v11071_v30  ;;  %10492 = vmatpush3.bf16.msra.mxu1 %v11069_v24  ;;  %v13560_v24 = vld [vmem:[%s12981_s23 + $0x10] sm:$0xff] }
 0x2ed   : > { %10493 = vmatprep.subr.bf16.mxu1 %v11072_v32 }
 0x2f0   : > { %10494 = vmatpush3.bf16.msra.mxu1 %v11072_v32  ;;  %v11089_v32 = vld [vmem:[#allocation2 + $0xf4] ss:$24 sps:$4 sm:$0xff]  }
 0x2f1   : > { %10495 = vmatprep.subr.bf16.mxu1 %v11073_v36 }
 0x2f3   : > { %10480 = vmatmul.mubr.msk.bf16.gmra.mxu1 %vm2487_vm0, %v11074_v16  ;;  %v13566_v16 = vld [vmem:[%s12981_s23] sm:$0xff] }
 0x2f4   : > { %10496 = vmatpush3.bf16.msra.mxu1 %v11073_v36 }
 0x2f5   : > { %10497 = vmatprep.subr.bf16.mxu1 %v11075_v46 }
 0x2f8   : > { %10498 = vmatpush3.bf16.msra.mxu1 %v11075_v46  ;;  %v11090_v46 = vld [vmem:[#allocation2 + $0x124] ss:$24 sps:$4 sm:$0xff]  }
 0x304   : > { %v3103_v26 = vpop.permute.xlu1 %3102 }
 0x305   : > { %v3149_v33 = vsel %vm2487_vm0, %v3103_v26, 0 }
 0x308   : > { %v3101_v42 = vpop.permute.xlu1 %3100 }
 0x309   : > { %v3146_v28 = vsel %vm2487_vm0, %v3101_v42, 0 }
 0x30c   : > { %v3105_v31 = vpop.permute.xlu0 %3104  ;;  %v3099_v35 = vpop.permute.xlu1 %3098 }
 0x30d   : > { %10715 = vmatprep.subr.msk.bf16.mxu0 %vm2487_vm0, %v3105_v31  ;;  %v3152_v37 = vsel %vm2487_vm0, %v3105_v31, 0  ;;  %v3143_v51 = vsel %vm2487_vm0, %v3099_v35, 0 }
 0x30e   : > { %10516 = vmatpush3.bf16.xpose.msra.mxu0 %v3152_v37  ;;  %v13572_v37 = vld [vmem:[%s12981_s23 + $0x8] sm:$0xff] }
 0x30f   : > { %10716 = vmatprep.subr.msk.bf16.mxu0 %vm2487_vm0, %v3103_v26 }
 0x310   : > { %v3097_v39 = vpop.permute.xlu0 %3096  ;;  %v3095_v44 = vpop.permute.xlu1 %3094 }
 0x311   : > { %v3140_v53 = vsel %vm2487_vm0, %v3097_v39, 0  ;;  %v3137_v58 = vsel %vm2487_vm0, %v3095_v44, 0 }
 0x314   : > { %v3093_v61 = vpop.permute.xlu0 %3092  ;;  %v3091_v6 = vpop.permute.xlu1 %3090 }
 0x315   : > { %v3134_v3 = vsel %vm2487_vm0, %v3093_v61, 0  ;;  %v3131_v0 = vsel %vm2487_vm0, %v3091_v6, 0 }
 0x316   : > { %10518 = vmatpush3.bf16.xpose.msra.mxu0 %v3149_v33 }
 0x317   : > { %10717 = vmatprep.subr.msk.bf16.mxu0 %vm2487_vm0, %v3101_v42 }
 0x318   : > { %v3035_v40 = vpop.permute.xlu0 %3034  ;;  %v3037_v48 = vpop.permute.xlu1 %3036 }
 0x319   : > { %10531 = vmatprep.mubr.msk.bf16.mxu0 %vm2487_vm0, %v3035_v40 }
 0x31c   : > { %v3039_v50 = vpop.permute.xlu0 %3038  ;;  %v3041_v7 = vpop.permute.xlu1 %3040 }
 0x31e   : > { %10520 = vmatpush3.bf16.xpose.msra.mxu0 %v3146_v28  ;;  %v11091_v28 = vld [vmem:[#allocation2 + $0x154] ss:$24 sps:$4 sm:$0xff]  }
 0x31f   : > { %10718 = vmatprep.subr.msk.bf16.mxu0 %vm2487_vm0, %v3099_v35  ;;  %v13589_v35 = vld [vmem:[%s12981_s23 + $0x30] sm:$0xff] }
 0x320   : > { %v3043_v52 = vpop.permute.xlu0 %3042  ;;  %v3045_v14 = vpop.permute.xlu1 %3044 }
 0x324   : > { %v3047_v57 = vpop.permute.xlu0 %3046  ;;  %v3049_v63 = vpop.permute.xlu1 %3048 }
 0x326   : > { %10522 = vmatpush3.bf16.xpose.msra.mxu0 %v3143_v51  ;;  %v13592_v51 = vld [vmem:[%s12981_s23 + $0x38] sm:$0xff] }
 0x327   : > { %10719 = vmatprep.subr.msk.bf16.mxu0 %vm2487_vm0, %v3097_v39  ;;  %v13578_v39 = vld [vmem:[%s12981_s23 + $0x18] sm:$0xff] }
 0x328   : > { %v13516_v43 = vpop.permute.xlu0 %4387 }
 0x329   : > { %16547 = vst [vmem:[#allocation36_spill] sm:$0xff] %v13516_v43 }
 0x32c   : > { %v13519_v59 = vpop.permute.xlu0 %3443 }
 0x32d   : > { %16548 = vst [vmem:[#allocation37_spill] sm:$0xff] %v13519_v59 }
 0x32e   : > { %10524 = vmatpush3.bf16.xpose.msra.mxu0 %v3140_v53 }
 0x32f   : > { %10720 = vmatprep.subr.msk.bf16.mxu0 %vm2487_vm0, %v3095_v44 }
 0x330   : > { %v13523_v10 = vpop.permute.xlu0 %3447 }
 0x331   : > { %16549 = vst [vmem:[#allocation38_spill] sm:$0xff] %v13523_v10 }
 0x334   : > { %v13527_v29 = vpop.permute.xlu0 %3451 }
 0x336   : > { %10526 = vmatpush3.bf16.xpose.msra.mxu0 %v3137_v58 }
 0x337   : > { %10721 = vmatprep.subr.msk.bf16.mxu0 %vm2487_vm0, %v3093_v61 }
 0x33e   : > { %10528 = vmatpush3.bf16.xpose.msra.mxu0 %v3134_v3  ;;  %v13606_v3 = vld [vmem:[%s12981_s23 + $0x28] sm:$0xff] }
 0x33f   : > { %10722 = vmatprep.subr.msk.bf16.mxu0 %vm2487_vm0, %v3091_v6 }
 0x346   : > { %10530 = vmatpush3.bf16.xpose.msra.mxu0 %v3131_v0 }
 0x347   : > { %10723 = vmatprep.subr.msk.bf16.mxu0 %vm2487_vm0, %v11076_v21 }
 0x34d   : > { %v13529_v34 = vpop.permute.xlu0 %3457  ;;  %10532 = vmatmul.mubr.msk.bf16.vlgmr.msra.gmra.mxu0 %vm2487_vm0, %v3037_v48  ;;  %v13617_v48 = vld [vmem:[%s12981_s23 + $0x50] sm:$0xff] }
 0x34e   : > { %10547 = vmatprep.subr.bf16.mxu1 %v13529_v34  ;;  %10535 = vmatprep.mubr.msk.bf16.mxu0 %vm2487_vm0, %v3039_v50 }
 0x34f   : > { %10580 = vmatpush3.bf16.xpose.msra.mxu0 %v3819_v47 }
 0x350   : > { %10724 = vmatprep.subr.msk.bf16.mxu0 %vm2487_vm0, %v11077_v4  ;;  %v13620_v4 = vld [vmem:[%s12981_s23 + $0x58] sm:$0xff] }
 0x355   : > { %10536 = vmatmul.mubr.msk.bf16.gmra.mxu0 %vm2487_vm0, %v3041_v7 }
 0x356   : > { %10539 = vmatprep.mubr.msk.bf16.mxu0 %vm2487_vm0, %v3043_v52 }
 0x357   : > { %10582 = vmatpush3.bf16.xpose.msra.mxu0 %v3816_v41 }
 0x358   : > { %10725 = vmatprep.subr.msk.bf16.mxu0 %vm2487_vm0, %v11078_v11 }
 0x35d   : > { %10540 = vmatmul.mubr.msk.bf16.gmra.mxu0 %vm2487_vm0, %v3045_v14  ;;  %v13631_v14 = vld [vmem:[%s12981_s23 + $0x40] sm:$0xff] }
 0x35e   : > { %10543 = vmatprep.mubr.msk.bf16.mxu0 %vm2487_vm0, %v3047_v57  ;;  %v13603_v57 = vld [vmem:[%s12981_s23 + $0x20] sm:$0xff] }
 0x35f   : > { %10584 = vmatpush3.bf16.xpose.msra.mxu0 %v3813_v17 }
 0x360   : > { %10726 = vmatprep.subr.msk.bf16.mxu0 %vm2487_vm0, %v11079_v15  ;;  %v13634_v15 = vld [vmem:[%s12981_s23 + $0x48] sm:$0xff] }
 0x365   : > { %10544 = vmatmul.mubr.msk.bf16.gmra.mxu0 %vm2487_vm0, %v3049_v63 }
 0x366   : > { %10595 = vmatprep.mubr.msk.bf16.mxu0 %vm2487_vm0, %v11080_v62 }
 0x367   : > { %10586 = vmatpush3.bf16.xpose.msra.mxu0 %v3810_v1 }
 0x368   : > { %10727 = vmatprep.subr.msk.bf16.mxu0 %vm2487_vm0, %v11081_v54  ;;  %v13645_v54 = vld [vmem:[%s12981_s23 + $0x70] sm:$0xff] }
 0x36f   : > { %10588 = vmatpush3.bf16.xpose.msra.mxu0 %v3807_v9 }
 0x370   : > { %10728 = vmatprep.subr.msk.bf16.mxu0 %vm2487_vm0, %v11082_v18  ;;  %v13648_v18 = vld [vmem:[%s12981_s23 + $0x78] sm:$0xff] }
 0x377   : > { %10590 = vmatpush3.bf16.xpose.msra.mxu0 %v3804_v19 }
 0x378   : > { %10729 = vmatprep.subr.msk.bf16.mxu0 %vm2487_vm0, %v11083_v20 }
 0x37f   : > { %10592 = vmatpush3.bf16.xpose.msra.mxu0 %v3801_v2 }
 0x380   : > { %10730 = vmatprep.subr.msk.bf16.mxu0 %vm2487_vm0, %v11084_v22  ;;  %v13659_v22 = vld [vmem:[%s12981_s23 + $0x60] sm:$0xff] }
 0x387   : > { %10594 = vmatpush3.bf16.xpose.msra.mxu0 %v3798_v13 }
 0x38e   : > { %10596 = vmatmul.mubr.msk.bf16.vlgmr.msra.gmra.mxu0 %vm2487_vm0, %v11085_v38  ;;  %v13662_v38 = vld [vmem:[%s12981_s23 + $0x68] sm:$0xff] }
 0x38f   : > { %10599 = vmatprep.mubr.msk.bf16.mxu0 %vm2487_vm0, %v11086_v49 }
 0x396   : > { %10600 = vmatmul.mubr.msk.bf16.gmra.mxu0 %vm2487_vm0, %v11087_v23 }
 0x397   : > { %10603 = vmatprep.mubr.msk.bf16.mxu0 %vm2487_vm0, %v11088_v25 }
 0x39b   : > { %v10469_v27 = vpop.f32.mrf.mxu1 }
 0x39c   : > { %v13563_v30 = vadd.f32 %v10469_v27, %v13560_v24 }
 0x39d   : > { %v2570_v36 = vpop.f32.mrf.mxu1 }
 0x39e   : > { %2637 = vmax.xlane.f32.xlu0 %v13563_v30  ;;  %10604 = vmatmul.mubr.msk.bf16.gmra.mxu0 %vm2487_vm0, %v11089_v32  ;;  %v13575_v26 = vadd.f32 %v2570_v36, %v13566_v16 }
 0x39f   : > { %v10470_v31 = vpop.f32.mrf.mxu1  ;;  %10607 = vmatprep.mubr.msk.bf16.mxu0 %vm2487_vm0, %v11090_v46 }
 0x3a0   : > { %v13585_v40 = vadd.f32 %v10470_v31, %v13578_v39 }
 0x3a1   : > { %v2573_v61 = vpop.f32.mrf.mxu1 }
 0x3a2   : > { %2633 = vmax.xlane.f32.xlu0 %v13575_v26  ;;  %v13582_v33 = vadd.f32 %v2573_v61, %v13572_v37 }
 0x3a3   : > { %v10473_v42 = vpop.f32.mrf.mxu1 }
 0x3a4   : > { %2635 = vmax.xlane.f32.xlu1 %v13582_v33  ;;  %v13597_v53 = vadd.f32 %v10473_v42, %v13589_v35  ;;  %v13686_v42 = vpop.permute.xlu1 %4389 }
 0x3a5   : > { %v2586_v50 = vpop.f32.mrf.mxu1  ;;  %16550 = vst [vmem:[#allocation39_spill] sm:$0xff] %v13686_v42 }
 0x3a6   : > { %2639 = vmax.xlane.f32.xlu0 %v13585_v40  ;;  %10608 = vmatmul.mubr.msk.bf16.gmra.mxu0 %vm2487_vm0, %v11091_v28  ;;  %v13611_v0 = vadd.f32 %v2586_v50, %v13603_v57 }
 0x3a7   : > { %v10474_v52 = vpop.f32.mrf.mxu1 }
 0x3a8   : > { %v13600_v44 = vadd.f32 %v10474_v52, %v13592_v51 }
 0x3a9   : > { %v2589_v58 = vpop.f32.mrf.mxu1 }
 0x3aa   : > { %2645 = vmax.xlane.f32.xlu0 %v13597_v53  ;;  %2647 = vmax.xlane.f32.xlu1 %v13600_v44  ;;  %v13614_v21 = vadd.f32 %v2589_v58, %v13606_v3 }
 0x3ab   : > { %v10477_v6 = vpop.f32.mrf.mxu1 }
 0x3ac   : > { %v13625_v41 = vadd.f32 %v10477_v6, %v13617_v48 }
 0x3ad   : > { %v2602_v47 = vpop.f32.mrf.mxu1 }
 0x3ae   : > { %2641 = vmax.xlane.f32.xlu0 %v13611_v0  ;;  %2643 = vmax.xlane.f32.xlu1 %v13614_v21  ;;  %v13639_v62 = vadd.f32 %v2602_v47, %v13631_v14 }
 0x3af   : > { %v10478_v7 = vpop.f32.mrf.mxu1 }
 0x3b0   : > { %v13628_v11 = vadd.f32 %v10478_v7, %v13620_v4 }
 0x3b1   : > { %v2605_v17 = vpop.f32.mrf.mxu1 }
 0x3b2   : > { %2653 = vmax.xlane.f32.xlu0 %v13625_v41  ;;  %2655 = vmax.xlane.f32.xlu1 %v13628_v11  ;;  %v13642_v1 = vadd.f32 %v2605_v17, %v13634_v15  ;;  %v13702_v17 = vpop.permute.xlu1 %3445 }
 0x3b3   : > { %v10481_v63 = vpop.f32.mrf.mxu1  ;;  %16551 = vst [vmem:[#allocation40_spill] sm:$0xff] %v13702_v17 }
 0x3b4   : > { %v13653_v20 = vadd.f32 %v10481_v63, %v13645_v54 }
 0x3b5   : > { %v2618_v9 = vpop.f32.mrf.mxu1 }
 0x3b6   : > { %2649 = vmax.xlane.f32.xlu0 %v13639_v62  ;;  %2651 = vmax.xlane.f32.xlu1 %v13642_v1  ;;  %v13667_v49 = vadd.f32 %v2618_v9, %v13659_v22 }
 0x3b7   : > { %v10482_v19 = vpop.f32.mrf.mxu1 }
 0x3b8   : > { %v13656_v2 = vadd.f32 %v10482_v19, %v13648_v18 }
 0x3b9   : > { %v2621_v13 = vpop.f32.mrf.mxu1 }
 0x3ba   : > { %2661 = vmax.xlane.f32.xlu0 %v13653_v20  ;;  %2663 = vmax.xlane.f32.xlu1 %v13656_v2  ;;  %v13670_v23 = vadd.f32 %v2621_v13, %v13662_v38 }
 0x3be   : > { %2659 = vmax.xlane.f32.xlu1 %v13670_v23  ;;  %2657 = vmax.xlane.f32.xlu0 %v13667_v49 }
 0x40d   : > { %v10533_v25 = vpop.f32.mrf.mxu0 }
 0x40e   : > { %v13675_v27 = vadd.f32 %v10533_v25, %v13560_v24 }
 0x40f   : > { %v3188_v32 = vpop.f32.mrf.mxu0 }
 0x410   : > { %3255 = vmax.xlane.f32.xlu0 %v13675_v27  ;;  %v13679_v46 = vadd.f32 %v3188_v32, %v13566_v16  ;;  %v13714_v32 = vpop.permute.xlu1 %3449 }
 0x411   : > { %v10534_v36 = vpop.f32.mrf.mxu0  ;;  %16552 = vst [vmem:[#allocation41_spill] sm:$0xff] %v13714_v32 }
 0x412   : > { %v13682_v31 = vadd.f32 %v10534_v36, %v13578_v39 }
 0x413   : > { %v3191_v61 = vpop.f32.mrf.mxu0 }
 0x414   : > { %3257 = vmax.xlane.f32.xlu1 %v13682_v31  ;;  %3251 = vmax.xlane.f32.xlu0 %v13679_v46  ;;  %v13692_v52 = vadd.f32 %v3191_v61, %v13572_v37 }
 0x415   : > { %v10537_v28 = vpop.f32.mrf.mxu0 }
 0x416   : > { %v13689_v50 = vadd.f32 %v10537_v28, %v13589_v35 }
 0x417   : > { %v3204_v58 = vpop.f32.mrf.mxu0 }
 0x418   : > { %3253 = vmax.xlane.f32.xlu1 %v13692_v52  ;;  %3263 = vmax.xlane.f32.xlu0 %v13689_v50  ;;  %v13697_v47 = vadd.f32 %v3204_v58, %v13603_v57 }
 0x419   : > { %v10538_v6 = vpop.f32.mrf.mxu0 }
 0x41a   : > { %v13700_v7 = vadd.f32 %v10538_v6, %v13592_v51  ;;  %v13724_v6 = vpop.permute.xlu1 %3453 }
 0x41b   : > { %v3207_v63 = vpop.f32.mrf.mxu0 }
 0x41c   : > { %3265 = vmax.xlane.f32.xlu1 %v13700_v7  ;;  %3259 = vmax.xlane.f32.xlu0 %v13697_v47  ;;  %v13710_v13 = vadd.f32 %v3207_v63, %v13606_v3 }
 0x41d   : > { %v10541_v9 = vpop.f32.mrf.mxu0 }
 0x41e   : > { %v13707_v19 = vadd.f32 %v10541_v9, %v13617_v48 }
 0x41f   : > { %v3220_v25 = vpop.f32.mrf.mxu0 }
 0x420   : > { %3261 = vmax.xlane.f32.xlu1 %v13710_v13  ;;  %3271 = vmax.xlane.f32.xlu0 %v13707_v19  ;;  %v13717_v61 = vadd.f32 %v3220_v25, %v13631_v14 }
 0x421   : > { %v10542_v36 = vpop.f32.mrf.mxu0 }
 0x422   : > { %v13720_v28 = vadd.f32 %v10542_v36, %v13620_v4  ;;  %v13735_v36 = vpop.permute.xlu1 %3455 }
 0x423   : > { %v3223_v58 = vpop.f32.mrf.mxu0 }
 0x424   : > { %3273 = vmax.xlane.f32.xlu1 %v13720_v28  ;;  %3267 = vmax.xlane.f32.xlu0 %v13717_v61  ;;  %v13730_v56 = vadd.f32 %v3223_v58, %v13634_v15 }
 0x425   : > { %v10545_v63 = vpop.f32.mrf.mxu0 }
 0x426   : > { %v13727_v9 = vadd.f32 %v10545_v63, %v13645_v54 }
 0x427   : > { %v2638_v55 = vpop.xlane.xlu0 %2637  ;;  %v3236_v25 = vpop.f32.mrf.mxu0 }
 0x428   : > { %v2667_v8 = vsub.f32 %v13563_v30, %v2638_v55  ;;  %3269 = vmax.xlane.f32.xlu1 %v13730_v56  ;;  %3279 = vmax.xlane.f32.xlu0 %v13727_v9  ;;  %v13738_v5 = vadd.f32 %v3236_v25, %v13659_v22 }
 0x429   : > { %v10546_v45 = vpop.f32.mrf.mxu0 }
 0x42a   : > { %v2685_v60 = vmul.f32 1.442695, %v2667_v8  ;;  %v13741_v63 = vadd.f32 %v10546_v45, %v13648_v18 }
 0x42b   : > { %v2634_v58 = vpop.xlane.xlu0 %2633  ;;  %v3239_v12 = vpop.f32.mrf.mxu0 }
 0x42c   : > { %11394 = vpow2.f32 %v2685_v60  ;;  %v2665_v43 = vsub.f32 %v13575_v26, %v2634_v58  ;;  %3281 = vmax.xlane.f32.xlu1 %v13741_v63  ;;  %3275 = vmax.xlane.f32.xlu0 %v13738_v5  ;;  %v13747_v42 = vadd.f32 %v3239_v12, %v13662_v38 }
 0x42d   : > { %v2636_v55 = vpop.xlane.xlu1 %2635 }
 0x42e   : > { %v2681_v30 = vmul.f32 1.442695, %v2665_v43  ;;  %v2666_v8 = vsub.f32 %v13582_v33, %v2636_v55 }
 0x42f   : > { %v2640_v25 = vpop.xlane.xlu0 %2639 }
 0x430   : > { %11396 = vpow2.f32 %v2681_v30  ;;  %v2668_v45 = vsub.f32 %v13585_v40, %v2640_v25  ;;  %3277 = vmax.xlane.f32.xlu1 %v13747_v42  ;;  %v2683_v59 = vmul.f32 1.442695, %v2666_v8 }
 0x432   : > { %v2687_v60 = vmul.f32 1.442695, %v2668_v45 }
 0x433   : > { %v2646_v26 = vpop.xlane.xlu0 %2645  ;;  %v2648_v58 = vpop.xlane.xlu1 %2647 }
 0x434   : > { %11398 = vpow2.f32 %v2687_v60  ;;  %v2671_v17 = vsub.f32 %v13597_v53, %v2646_v26  ;;  %v2672_v43 = vsub.f32 %v13600_v44, %v2648_v58 }
 0x435   : > { %11400 = vpow2.f32 %v2683_v59 }
 0x436   : > { %v2693_v10 = vmul.f32 1.442695, %v2671_v17  ;;  %v2695_v12 = vmul.f32 1.442695, %v2672_v43 }
 0x437   : > { %v2642_v32 = vpop.xlane.xlu0 %2641  ;;  %v2644_v33 = vpop.xlane.xlu1 %2643 }
 0x438   : > { %11402 = vpow2.f32 %v2693_v10  ;;  %v2669_v55 = vsub.f32 %v13611_v0, %v2642_v32  ;;  %v2670_v40 = vsub.f32 %v13614_v21, %v2644_v33 }
 0x439   : > { %v13756_v30 = vpop.eup %11394  ;;  %11404 = vpow2.f32 %v2695_v12 }
 0x43a   : > { %v2689_v8 = vmul.f32 1.442695, %v2669_v55  ;;  %2717 = vadd.xlane.f32.xlu0 %v13756_v30  ;;  %v2691_v25 = vmul.f32 1.442695, %v2670_v40 }
 0x43b   : > { %v2654_v53 = vpop.xlane.xlu0 %2653  ;;  %v2656_v45 = vpop.xlane.xlu1 %2655 }
 0x43c   : > { %11406 = vpow2.f32 %v2689_v8  ;;  %v2675_v59 = vsub.f32 %v13625_v41, %v2654_v53  ;;  %v2676_v44 = vsub.f32 %v13628_v11, %v2656_v45 }
 0x43d   : > { %v13761_v17 = vpop.eup %11396  ;;  %11408 = vpow2.f32 %v2691_v25 }
 0x43e   : > { %v2701_v10 = vmul.f32 1.442695, %v2675_v59  ;;  %2713 = vadd.xlane.f32.xlu0 %v13761_v17  ;;  %v2703_v0 = vmul.f32 1.442695, %v2676_v44 }
 0x43f   : > { %v2650_v21 = vpop.xlane.xlu0 %2649  ;;  %v2652_v32 = vpop.xlane.xlu1 %2651 }
 0x440   : > { %11410 = vpow2.f32 %v2701_v10  ;;  %v2673_v60 = vsub.f32 %v13639_v62, %v2650_v21  ;;  %v2674_v26 = vsub.f32 %v13642_v1, %v2652_v32 }
 0x441   : > { %v13766_v58 = vpop.eup %11398  ;;  %11412 = vpow2.f32 %v2703_v0 }
 0x442   : > { %v2697_v43 = vmul.f32 1.442695, %v2673_v60  ;;  %2719 = vadd.xlane.f32.xlu1 %v13766_v58  ;;  %v13769_v11 = vpop.eup %11400  ;;  %v2699_v12 = vmul.f32 1.442695, %v2674_v26 }
 0x443   : > { %v2662_v41 = vpop.xlane.xlu0 %2661  ;;  %v2664_v40 = vpop.xlane.xlu1 %2663 }
 0x444   : > { %11414 = vpow2.f32 %v2697_v43  ;;  %v2679_v33 = vsub.f32 %v13653_v20, %v2662_v41  ;;  %v2680_v8 = vsub.f32 %v13656_v2, %v2664_v40 }
 0x445   : > { %v13772_v55 = vpop.eup %11402  ;;  %11416 = vpow2.f32 %v2699_v12 }
 0x446   : > { %2715 = vadd.xlane.f32.xlu1 %v13769_v11  ;;  %2725 = vadd.xlane.f32.xlu0 %v13772_v55  ;;  %v13776_v62 = vpop.eup %11404  ;;  %v2709_v1 = vmul.f32 1.442695, %v2679_v33  ;;  %v2711_v53 = vmul.f32 1.442695, %v2680_v8 }
 0x447   : > { %v2660_v59 = vpop.xlane.xlu1 %2659 }
 0x448   : > { %11418 = vpow2.f32 %v2709_v1  ;;  %v2678_v2 = vsub.f32 %v13670_v23, %v2660_v59 }
 0x449   : > { %v13779_v25 = vpop.eup %11406  ;;  %11420 = vpow2.f32 %v2711_v53 }
 0x44a   : > { %2727 = vadd.xlane.f32.xlu1 %v13776_v62  ;;  %2721 = vadd.xlane.f32.xlu0 %v13779_v25  ;;  %v13783_v20 = vpop.eup %11408  ;;  %v2707_v60 = vmul.f32 1.442695, %v2678_v2 }
 0x44c   : > { %11422 = vpow2.f32 %v2707_v60 }
 0x44d   : > { %v13785_v45 = vpop.eup %11410 }
 0x44e   : > { %v10597_v44 = vpop.f32.mrf.mxu0  ;;  %2723 = vadd.xlane.f32.xlu1 %v13783_v20  ;;  %2733 = vadd.xlane.f32.xlu0 %v13785_v45  ;;  %v13789_v10 = vpop.eup %11412 }
 0x44f   : > { %v13797_v26 = vadd.f32 %v10597_v44, %v13560_v24 }
 0x450   : > { %v3855_v0 = vpop.f32.mrf.mxu0 }
 0x451   : > { %v13792_v21 = vpop.eup %11414  ;;  %v13811_v24 = vadd.f32 %v3855_v0, %v13566_v16 }
 0x452   : > { %v10598_v32 = vpop.f32.mrf.mxu0  ;;  %2735 = vadd.xlane.f32.xlu1 %v13789_v10  ;;  %2729 = vadd.xlane.f32.xlu0 %v13792_v21  ;;  %v13799_v41 = vpop.eup %11416 }
 0x453   : > { %v13804_v23 = vadd.f32 %v10598_v32, %v13578_v39 }
 0x454   : > { %v3858_v43 = vpop.f32.mrf.mxu0 }
 0x455   : > { %v13806_v33 = vpop.eup %11418  ;;  %v13818_v39 = vadd.f32 %v3858_v43, %v13572_v37  ;;  %v11092_v43 = vld [vmem:[#allocation2 + $0xfc] ss:$24 sps:$4 sm:$0xff]  }
 0x456   : > { %v10601_v12 = vpop.f32.mrf.mxu0  ;;  %2731 = vadd.xlane.f32.xlu1 %v13799_v41  ;;  %3922 = vmax.xlane.f32.xlu0 %v13797_v26  ;;  %16553 = vst [vmem:[#allocation42_spill] sm:$0xff] %v13806_v33  ;;  %v13813_v1 = vpop.eup %11420 }
 0x458   : > { %v3871_v40 = vpop.f32.mrf.mxu0 }
 0x459   : > { %v13821_v59 = vpop.eup %11422 }
 0x45a   : > { %3924 = vmax.xlane.f32.xlu1 %v13804_v23  ;;  %2741 = vadd.xlane.f32.xlu0 %v13806_v33  ;;  %v10602_v8 = vpop.f32.mrf.mxu0 }
 0x45b   : > { %v13825_v16 = vadd.f32 %v10602_v8, %v13592_v51 }
 0x45c   : > { %v3874_v53 = vpop.f32.mrf.mxu0 }
 0x45d   : > { %v13829_v0 = vadd.f32 %v3874_v53, %v13606_v3  ;;  %v2658_v53 = vpop.xlane.xlu0 %2657 }
 0x45e   : > { %2743 = vadd.xlane.f32.xlu1 %v13813_v1  ;;  %3918 = vmax.xlane.f32.xlu0 %v13811_v24  ;;  %v10605_v44 = vpop.f32.mrf.mxu0 }
 0x460   : > { %v3887_v2 = vpop.f32.mrf.mxu0 }
 0x462   : > { %3920 = vmax.xlane.f32.xlu1 %v13818_v39  ;;  %v10606_v32 = vpop.f32.mrf.mxu0 }
 0x463   : > { %v13833_v37 = vadd.f32 %v10606_v32, %v13620_v4  ;;  %v2677_v32 = vsub.f32 %v13667_v49, %v2658_v53  ;;  %v13862_v49 = vadd.f32 %v10601_v12, %v13589_v35 }
 0x464   : > { %v3890_v60 = vpop.f32.mrf.mxu0 }
 0x465   : > { %16554 = vst [vmem:[#allocation43_spill] sm:$0xff] %v13833_v37  ;;  %v13837_v33 = vadd.f32 %v3890_v60, %v13634_v15  ;;  %v2705_v60 = vmul.f32 1.442695, %v2677_v32 }
 0x466   : > { %2739 = vadd.xlane.f32.xlu1 %v13821_v59  ;;  %v10609_v51 = vpop.f32.mrf.mxu0 }
 0x467   : > { %v13842_v3 = vadd.f32 %v10609_v51, %v13645_v54  ;;  %11424 = vpow2.f32 %v2705_v60 }
 0x468   : > { %v3903_v8 = vpop.f32.mrf.mxu0 }
 0x469   : > { %v13846_v4 = vadd.f32 %v3903_v8, %v13659_v22  ;;  %v13871_v8 = vadd.f32 %v10605_v44, %v13617_v48 }
 0x46a   : > { %3932 = vmax.xlane.f32.xlu1 %v13825_v16 }
 0x46e   : > { %3928 = vmax.xlane.f32.xlu1 %v13829_v0 }
 0x472   : > { %3940 = vmax.xlane.f32.xlu1 %v13833_v37  ;;  %v10610_v37 = vpop.f32.mrf.mxu0 }
 0x473   : > { %v13851_v15 = vadd.f32 %v10610_v37, %v13648_v18  ;;  %v13866_v18 = vadd.f32 %v3871_v40, %v13603_v57  ;;  %v13877_v40 = vadd.f32 %v3887_v2, %v13631_v14 }
 0x474   : > { %4385 = vrot.lane.b32.xlu0 %v11092_v43, %s12647_s12  ;;  %v3906_v43 = vpop.f32.mrf.mxu0  ;;  %v13858_v22 = vpop.eup %11424 }
 0x475   : > { %v13855_v54 = vadd.f32 %v3906_v43, %v13662_v38 }
 0x476   : > { %3936 = vmax.xlane.f32.xlu1 %v13837_v33 }
 0x47a   : > { %3946 = vmax.xlane.f32.xlu1 %v13842_v3 }
 0x47e   : > { %3942 = vmax.xlane.f32.xlu1 %v13846_v4 }
 0x482   : > { %3948 = vmax.xlane.f32.xlu1 %v13851_v15 }
 0x486   : > { %3944 = vmax.xlane.f32.xlu1 %v13855_v54 }
 0x493   : > { %2737 = vadd.xlane.f32.xlu0 %v13858_v22 }
 0x497   : > { %3930 = vmax.xlane.f32.xlu0 %v13862_v49 }
 0x499   : > { %v3256_v37 = vpop.xlane.xlu0 %3255 }
 0x49a   : > { %v3285_v51 = vsub.f32 %v13675_v27, %v3256_v37 }
 0x49b   : > { %3926 = vmax.xlane.f32.xlu0 %v13866_v18 }
 0x49c   : > { %v3303_v38 = vmul.f32 1.442695, %v3285_v51 }
 0x49d   : > { %v3258_v53 = vpop.xlane.xlu1 %3257  ;;  %v3252_v32 = vpop.xlane.xlu0 %3251 }
 0x49e   : > { %11426 = vpow2.f32 %v3303_v38  ;;  %v3286_v35 = vsub.f32 %v13682_v31, %v3258_v53  ;;  %v3283_v12 = vsub.f32 %v13679_v46, %v3252_v32 }
 0x49f   : > { %3938 = vmax.xlane.f32.xlu0 %v13871_v8 }
 0x4a0   : > { %v3299_v57 = vmul.f32 1.442695, %v3283_v12  ;;  %v3305_v43 = vmul.f32 1.442695, %v3286_v35 }
 0x4a1   : > { %v3254_v27 = vpop.xlane.xlu1 %3253  ;;  %v3264_v60 = vpop.xlane.xlu0 %3263 }
 0x4a2   : > { %v3289_v37 = vsub.f32 %v13689_v50, %v3264_v60  ;;  %11428 = vpow2.f32 %v3299_v57  ;;  %v3284_v48 = vsub.f32 %v13692_v52, %v3254_v27 }
 0x4a3   : > { %3934 = vmax.xlane.f32.xlu0 %v13877_v40  ;;  %11430 = vpow2.f32 %v3305_v43 }
 0x4a4   : > { %v3311_v44 = vmul.f32 1.442695, %v3289_v37  ;;  %v3301_v38 = vmul.f32 1.442695, %v3284_v48 }
 0x4a5   : > { %v3266_v31 = vpop.xlane.xlu1 %3265  ;;  %v3260_v51 = vpop.xlane.xlu0 %3259 }
 0x4a6   : > { %v3290_v46 = vsub.f32 %v13700_v7, %v3266_v31  ;;  %11432 = vpow2.f32 %v3311_v44  ;;  %v3287_v14 = vsub.f32 %v13697_v47, %v3260_v51 }
 0x4a8   : > { %v3313_v2 = vmul.f32 1.442695, %v3290_v46  ;;  %v3307_v52 = vmul.f32 1.442695, %v3287_v14 }
 0x4a9   : > { %v3262_v53 = vpop.xlane.xlu1 %3261  ;;  %v3272_v32 = vpop.xlane.xlu0 %3271 }
 0x4aa   : > { %11434 = vpow2.f32 %v3313_v2  ;;  %v3288_v50 = vsub.f32 %v13710_v13, %v3262_v53  ;;  %v3293_v12 = vsub.f32 %v13707_v19, %v3272_v32 }
 0x4ab   : > { %v13885_v35 = vpop.eup %11426  ;;  %11436 = vpow2.f32 %v3301_v38 }
 0x4ac   : > { %v3309_v57 = vmul.f32 1.442695, %v3288_v50  ;;  %3335 = vadd.xlane.f32.xlu0 %v13885_v35  ;;  %v3319_v47 = vmul.f32 1.442695, %v3293_v12 }
 0x4ad   : > { %v3274_v7 = vpop.xlane.xlu1 %3273  ;;  %v3268_v27 = vpop.xlane.xlu0 %3267 }
 0x4ae   : > { %11438 = vpow2.f32 %v3309_v57  ;;  %v3291_v60 = vsub.f32 %v13717_v61, %v3268_v27  ;;  %v3294_v19 = vsub.f32 %v13720_v28, %v3274_v7 }
 0x4af   : > { %11440 = vpow2.f32 %v3307_v52  ;;  %v13890_v43 = vpop.eup %11428 }
 0x4b0   : > { %3331 = vadd.xlane.f32.xlu1 %v13890_v43  ;;  %v13894_v44 = vpop.eup %11430  ;;  %11442 = vpow2.f32 %v3319_v47  ;;  %v3315_v31 = vmul.f32 1.442695, %v3291_v60  ;;  %v3321_v14 = vmul.f32 1.442695, %v3294_v19 }
 0x4b1   : > { %v3270_v13 = vpop.xlane.xlu1 %3269  ;;  %v3280_v48 = vpop.xlane.xlu0 %3279 }
 0x4b2   : > { %v3292_v37 = vsub.f32 %v13730_v56, %v3270_v13  ;;  %v3297_v56 = vsub.f32 %v13727_v9, %v3280_v48 }
 0x4b3   : > { %v13897_v51 = vpop.eup %11432 }
 0x4b4   : > { %v3317_v46 = vmul.f32 1.442695, %v3292_v37  ;;  %3337 = vadd.xlane.f32.xlu1 %v13894_v44  ;;  %3343 = vadd.xlane.f32.xlu0 %v13897_v51  ;;  %v3327_v52 = vmul.f32 1.442695, %v3297_v56 }
 0x4b5   : > { %v3282_v61 = vpop.xlane.xlu1 %3281  ;;  %v3276_v53 = vpop.xlane.xlu0 %3275 }
 0x4b6   : > { %11444 = vpow2.f32 %v3317_v46  ;;  %v3295_v12 = vsub.f32 %v13738_v5, %v3276_v53  ;;  %v3298_v9 = vsub.f32 %v13741_v63, %v3282_v61 }
 0x4b7   : > { %v13901_v38 = vpop.eup %11434  ;;  %11446 = vpow2.f32 %v3315_v31 }
 0x4b8   : > { %v13904_v2 = vpop.eup %11436  ;;  %3345 = vadd.xlane.f32.xlu0 %v13901_v38  ;;  %11448 = vpow2.f32 %v3321_v14  ;;  %v3323_v27 = vmul.f32 1.442695, %v3295_v12  ;;  %v3329_v60 = vmul.f32 1.442695, %v3298_v9 }
 0x4b9   : > { %3333 = vadd.xlane.f32.xlu1 %v13904_v2  ;;  %v3278_v28 = vpop.xlane.xlu1 %3277 }
 0x4ba   : > { %v3296_v32 = vsub.f32 %v13747_v42, %v3278_v28 }
 0x4bb   : > { %v13909_v50 = vpop.eup %11438 }
 0x4bc   : > { %v13912_v57 = vpop.eup %11440  ;;  %v3325_v7 = vmul.f32 1.442695, %v3296_v32  ;;  %3341 = vadd.xlane.f32.xlu0 %v13909_v50 }
 0x4bd   : > { %3339 = vadd.xlane.f32.xlu1 %v13912_v57  ;;  %v13917_v47 = vpop.eup %11442 }
 0x4be   : > { %11450 = vpow2.f32 %v3325_v7 }
 0x4bf   : > { %11452 = vpow2.f32 %v3327_v52 }
 0x4c0   : > { %3351 = vadd.xlane.f32.xlu0 %v13917_v47  ;;  %11454 = vpow2.f32 %v3323_v27 }
 0x4c1   : > { %11456 = vpow2.f32 %v3329_v60 }
 0x4c3   : > { %v13920_v42 = vpop.eup %11444  ;;  %v2718_v13 = vpop.xlane.xlu0 %2717 }
 0x4c4   : > { %v13922_v5 = vpop.eup %11446  ;;  %3349 = vadd.xlane.f32.xlu1 %v13920_v42 }
 0x4c5   : > { %3347 = vadd.xlane.f32.xlu0 %v13922_v5  ;;  %v13926_v37 = vpop.eup %11448 }
 0x4c7   : > { %v2714_v48 = vpop.xlane.xlu0 %2713 }
 0x4c9   : > { %3353 = vadd.xlane.f32.xlu0 %v13926_v37 }
 0x4cb   : > { %v13929_v63 = vpop.eup %11450  ;;  %v2720_v19 = vpop.xlane.xlu1 %2719 }
 0x4cc   : > { %16555 = vst [vmem:[#allocation44_spill] sm:$0xff] %v13929_v63  ;;  %v13931_v31 = vpop.eup %11452  ;;  %3357 = vadd.xlane.f32.xlu1 %v13929_v63  ;;  %11458 = vrcp.f32 %v2720_v19 }
 0x4cd   : > { %16556 = vst [vmem:[#allocation45_spill] sm:$0xff] %v13931_v31  ;;  %3359 = vadd.xlane.f32.xlu0 %v13931_v31  ;;  %11460 = vrcp.f32 %v2714_v48  ;;  %v13935_v14 = vpop.eup %11454 }
 0x4ce   : > { %11462 = vrcp.f32 %v2718_v13  ;;  %16557 = vst [vmem:[#allocation46_spill] sm:$0xff] %v13935_v14  ;;  %v13938_v28 = vpop.eup %11456 }
 0x4cf   : > { %v2716_v46 = vpop.xlane.xlu1 %2715  ;;  %v2726_v61 = vpop.xlane.xlu0 %2725  ;;  %16558 = vst [vmem:[#allocation47_spill] sm:$0xff] %v13938_v28 }
 0x4d0   : > { %11464 = vrcp.f32 %v2716_v46 }
 0x4d1   : > { %3355 = vadd.xlane.f32.xlu0 %v13935_v14 }
 0x4d3   : > { %v2728_v56 = vpop.xlane.xlu1 %2727  ;;  %v2722_v53 = vpop.xlane.xlu0 %2721 }
 0x4d4   : > { %11466 = vrcp.f32 %v2728_v56 }
 0x4d5   : > { %3361 = vadd.xlane.f32.xlu0 %v13938_v28  ;;  %11468 = vrcp.f32 %v2722_v53 }
 0x4d6   : > { %11470 = vrcp.f32 %v2726_v61 }
 0x4d7   : > { %v2724_v32 = vpop.xlane.xlu1 %2723  ;;  %v2734_v52 = vpop.xlane.xlu0 %2733 }
 0x4d8   : > { %11472 = vrcp.f32 %v2724_v32 }
 0x4d9   : > { %v11459_v12 = vpop.eup %11458 }
 0x4da   : > { %v11461_v7 = vpop.eup %11460  ;;  %v2764_v48 = vmul.f32 %v11459_v12, %v13766_v58 }
 0x4db   : > { %v2736_v9 = vpop.xlane.xlu1 %2735  ;;  %v2730_v27 = vpop.xlane.xlu0 %2729  ;;  %v2761_v19 = vmul.f32 %v11461_v7, %v13761_v17 }
 0x4dc   : > { %v11463_v60 = vpop.eup %11462  ;;  %11474 = vrcp.f32 %v2736_v9 }
 0x4dd   : > { %v11465_v13 = vpop.eup %11464  ;;  %11476 = vrcp.f32 %v2730_v27  ;;  %v2763_v53 = vmul.f32 %v11463_v60, %v13756_v30 }
 0x4de   : > { %v2762_v46 = vmul.f32 %v11465_v13, %v13769_v11  ;;  %11478 = vrcp.f32 %v2734_v52 }
 0x4df   : > { %v2732_v56 = vpop.xlane.xlu1 %2731  ;;  %v3923_v61 = vpop.xlane.xlu0 %3922  ;;  %v2778_v31 = vpack.c.bf16 %v2764_v48, %v2763_v53 }
 0x4e0   : > { %11480 = vrcp.f32 %v2732_v56  ;;  %v3952_v32 = vsub.f32 %v13797_v26, %v3923_v61  ;;  %v2777_v28 = vpack.c.bf16 %v2762_v46, %v2761_v19 }
 0x4e1   : > { %v11467_v63 = vpop.eup %11466 }
 0x4e2   : > { %v3970_v14 = vmul.f32 1.442695, %v3952_v32  ;;  %10499 = vmatprep.mubr.bf16.mxu1 %v2777_v28  ;;  %v11469_v9 = vpop.eup %11468  ;;  %v2768_v30 = vmul.f32 %v11467_v63, %v13776_v62  ;;  %v13982_v32 = vld [vmem:[#allocation2 + $0x164] ss:$24 sps:$4 sm:$0xff]  }
 0x4e3   : > { %v3925_v58 = vpop.xlane.xlu1 %3924  ;;  %10500 = vmatmul.mubr.bf16.vlgmr.msra.gmra.mxu1 %v2778_v31  ;;  %v13946_v12 = vpop.xlane.xlu0 %2741  ;;  %v2765_v26 = vmul.f32 %v11469_v9, %v13779_v25 }
 0x4e4   : > { %v11471_v17 = vpop.eup %11470  ;;  %11482 = vpow2.f32 %v3970_v14  ;;  %10548 = vmatpush3.bf16.msra.mxu1 %v13529_v34  ;;  %v3953_v31 = vsub.f32 %v13804_v23, %v3925_v58 }
 0x4e5   : > { %v11473_v11 = vpop.eup %11472  ;;  %10549 = vmatprep.subr.bf16.mxu1 %v13735_v36  ;;  %v2767_v27 = vmul.f32 %v11471_v17, %v13772_v55 }
 0x4e6   : > { %v2766_v52 = vmul.f32 %v11473_v11, %v13783_v20  ;;  %v3972_v48 = vmul.f32 1.442695, %v3953_v31  ;;  %v11094_v11 = vld [vmem:[#allocation2 + $0x9c] ss:$24 sps:$4 sm:$0xff]  }
 0x4e7   : > { %v2744_v7 = vpop.xlane.xlu1 %2743  ;;  %v3919_v28 = vpop.xlane.xlu0 %3918  ;;  %v2780_v60 = vpack.c.bf16 %v2768_v30, %v2767_v27 }
 0x4e8   : > { %10550 = vmatpush3.bf16.msra.mxu1 %v13735_v36  ;;  %v3950_v14 = vsub.f32 %v13811_v24, %v3919_v28  ;;  %v2779_v34 = vpack.c.bf16 %v2766_v52, %v2765_v26  ;;  %v11095_v26 = vld [vmem:[#allocation2 + $0x6c] ss:$24 sps:$4 sm:$0xff]  }
 0x4e9   : > { %10551 = vmatprep.subr.bf16.mxu1 %v13724_v6  ;;  %v11475_v13 = vpop.eup %11474 }
 0x4ea   : > { %v3966_v62 = vmul.f32 1.442695, %v3950_v14  ;;  %10503 = vmatprep.mubr.bf16.mxu1 %v2779_v34  ;;  %v11477_v25 = vpop.eup %11476  ;;  %v2772_v23 = vmul.f32 %v11475_v13, %v13789_v10  ;;  %v16560_v10 = vld [vmem:[#allocation38_spill] sm:$0xff] }
 0x4eb   : > { %v3921_v63 = vpop.xlane.xlu1 %3920  ;;  %10504 = vmatmul.mubr.bf16.gmra.mxu1 %v2780_v60  ;;  %v11479_v20 = vpop.eup %11478  ;;  %v2769_v24 = vmul.f32 %v11477_v25, %v13792_v21 }
 0x4ec   : > { %11484 = vpow2.f32 %v3966_v62  ;;  %v3951_v55 = vsub.f32 %v13818_v39, %v3921_v63  ;;  %10552 = vmatpush3.bf16.msra.mxu1 %v13724_v6  ;;  %v2771_v46 = vmul.f32 %v11479_v20, %v13785_v45  ;;  %v16559_v39 = vld [vmem:[#allocation41_spill] sm:$0xff]  ;;  %v13991_v52 = vpop.permute.xlu0 %4385 }
 0x4ed   : > { %v11481_v36 = vpop.eup %11480  ;;  %10553 = vmatprep.subr.bf16.mxu1 %v13527_v29  ;;  %11486 = vpow2.f32 %v3972_v48 }
 0x4ee   : > { %v2770_v19 = vmul.f32 %v11481_v36, %v13799_v41  ;;  %v3968_v56 = vmul.f32 1.442695, %v3951_v55  ;;  %v2782_v6 = vpack.c.bf16 %v2772_v23, %v2771_v46  ;;  %v16562_v41 = vld [vmem:[#allocation37_spill] sm:$0xff] }
 0x4ef   : > { %v2740_v58 = vpop.xlane.xlu1 %2739 }
 0x4f0   : > { %10554 = vmatpush3.bf16.msra.mxu1 %v13527_v29  ;;  %v2781_v61 = vpack.c.bf16 %v2770_v19, %v2769_v24  ;;  %11488 = vpow2.f32 %v3968_v56  ;;  %v16561_v29 = vld [vmem:[#allocation40_spill] sm:$0xff] }
 0x4f1   : > { %v13966_v53 = vpop.eup %11482  ;;  %10555 = vmatprep.subr.bf16.mxu1 %v16559_v39  ;;  %11490 = vrcp.f32 %v2744_v7 }
 0x4f2   : > { %10507 = vmatprep.mubr.bf16.mxu1 %v2781_v61  ;;  %4002 = vadd.xlane.f32.xlu1 %v13966_v53  ;;  %11492 = vrcp.f32 %v2740_v58  ;;  %v16563_v61 = vld [vmem:[#allocation42_spill] sm:$0xff]  ;;  %v16564_v58 = vld [vmem:[#allocation43_spill] sm:$0xff] }
 0x4f3   : > { %10508 = vmatmul.mubr.bf16.gmra.mxu1 %v2782_v6  ;;  %v3933_v17 = vpop.xlane.xlu1 %3932  ;;  %11494 = vrcp.f32 %v13946_v12 }
 0x4f4   : > { %10556 = vmatpush3.bf16.msra.mxu1 %v16559_v39  ;;  %v3957_v13 = vsub.f32 %v13825_v16, %v3933_v17 }
 0x4f5   : > { %10557 = vmatprep.subr.bf16.mxu1 %v16560_v10 }
 0x4f6   : > { %v3980_v12 = vmul.f32 1.442695, %v3957_v13 }
 0x4f7   : > { %v3929_v30 = vpop.xlane.xlu1 %3928 }
 0x4f8   : > { %10558 = vmatpush3.bf16.msra.mxu1 %v16560_v10  ;;  %v3955_v63 = vsub.f32 %v13829_v0, %v3929_v30 }
 0x4f9   : > { %v13973_v45 = vpop.eup %11484  ;;  %10559 = vmatprep.subr.bf16.mxu1 %v16561_v29 }
 0x4fa   : > { %3998 = vadd.xlane.f32.xlu1 %v13973_v45  ;;  %v13978_v21 = vpop.eup %11486  ;;  %v3976_v24 = vmul.f32 1.442695, %v3955_v63 }
 0x4fb   : > { %v3941_v28 = vpop.xlane.xlu1 %3940 }
 0x4fc   : > { %10560 = vmatpush3.bf16.msra.mxu1 %v16561_v29  ;;  %v3961_v17 = vsub.f32 %v16564_v58, %v3941_v28 }
 0x4fd   : > { %10561 = vmatprep.subr.bf16.mxu1 %v16562_v41  ;;  %v13985_v9 = vpop.eup %11488 }
 0x4fe   : > { %4004 = vadd.xlane.f32.xlu1 %v13978_v21  ;;  %v11491_v7 = vpop.eup %11490 }
 0x4ff   : > { %v3937_v31 = vpop.xlane.xlu1 %3936  ;;  %v11493_v55 = vpop.eup %11492  ;;  %v2776_v16 = vmul.f32 %v11491_v7, %v13813_v1 }
 0x500   : > { %10562 = vmatpush3.bf16.msra.mxu1 %v16562_v41  ;;  %v11495_v23 = vpop.eup %11494  ;;  %v2774_v0 = vmul.f32 %v11493_v55, %v13821_v59  ;;  %v3988_v59 = vmul.f32 1.442695, %v3961_v17 }
 0x501   : > { %10611 = vmatprep.subr.bf16.mxu1 %v13982_v32  ;;  %v2775_v39 = vmul.f32 %v11495_v23, %v16563_v61 }
 0x502   : > { %4000 = vadd.xlane.f32.xlu1 %v13985_v9 }
 0x503   : > { %v3947_v62 = vpop.xlane.xlu1 %3946  ;;  %v2784_v41 = vpack.c.bf16 %v2776_v16, %v2775_v39 }
 0x507   : > { %v3943_v46 = vpop.xlane.xlu1 %3942 }
 0x513   : > { %4381 = vrot.lane.b32.xlu1 %v11094_v11, %s12647_s12  ;;  %v3959_v11 = vsub.f32 %v13837_v33, %v3937_v31  ;;  %v3962_v33 = vsub.f32 %v13846_v4, %v3943_v46 }
 0x515   : > { %v3984_v28 = vmul.f32 1.442695, %v3959_v11 }
 0x517   : > { %4379 = vrot.lane.b32.xlu1 %v11095_v26, %s12647_s12  ;;  %v3964_v26 = vsub.f32 %v13842_v3, %v3947_v62 }
 0x519   : > { %v3994_v13 = vmul.f32 1.442695, %v3964_v26  ;;  %v11097_v26 = vld [vmem:[#allocation2 + $0x134] ss:$24 sps:$4 sm:$0xff]  }
 0x51c   : > { %v2738_v27 = vpop.xlane.xlu0 %2737 }
 0x51d   : > { %11496 = vrcp.f32 %v2738_v27 }
 0x520   : > { %v3931_v14 = vpop.xlane.xlu0 %3930 }
 0x521   : > { %v3956_v34 = vsub.f32 %v13862_v49, %v3931_v14 }
 0x523   : > { %v3978_v60 = vmul.f32 1.442695, %v3956_v34 }
 0x524   : > { %v3927_v25 = vpop.xlane.xlu0 %3926 }
 0x525   : > { %11498 = vpow2.f32 %v3978_v60  ;;  %v3954_v20 = vsub.f32 %v13866_v18, %v3927_v25  ;;  %v3990_v25 = vmul.f32 1.442695, %v3962_v33  ;;  %v11098_v33 = vld [vmem:[#allocation2 + $0x104] ss:$24 sps:$4 sm:$0xff]  }
 0x527   : > { %v3974_v48 = vmul.f32 1.442695, %v3954_v20 }
 0x528   : > { %v3939_v36 = vpop.xlane.xlu0 %3938 }
 0x529   : > { %11500 = vpow2.f32 %v3974_v48  ;;  %v3960_v49 = vsub.f32 %v13871_v8, %v3939_v36  ;;  %v3949_v8 = vpop.xlane.xlu1 %3948 }
 0x52a   : > { %v11497_v19 = vpop.eup %11496  ;;  %11502 = vpow2.f32 %v3980_v12  ;;  %v3965_v63 = vsub.f32 %v13851_v15, %v3949_v8 }
 0x52b   : > { %v2773_v56 = vmul.f32 %v11497_v19, %v13858_v22  ;;  %11504 = vpow2.f32 %v3976_v24  ;;  %v3986_v6 = vmul.f32 1.442695, %v3960_v49 }
 0x52c   : > { %v3935_v18 = vpop.xlane.xlu0 %3934  ;;  %v3996_v4 = vmul.f32 1.442695, %v3965_v63 }
 0x52d   : > { %v3958_v10 = vsub.f32 %v13877_v40, %v3935_v18  ;;  %v2783_v29 = vpack.c.bf16 %v2774_v0, %v2773_v56  ;;  %11506 = vpow2.f32 %v3986_v6  ;;  %v14011_v40 = vpop.xlane.xlu1 %3944  ;;  %v11096_v0 = vld [vmem:[#allocation2 + $0xcc] ss:$24 sps:$4 sm:$0xff]  }
 0x52f   : > { %10511 = vmatprep.mubr.bf16.mxu1 %v2783_v29  ;;  %v3982_v1 = vmul.f32 1.442695, %v3958_v10 }
 0x530   : > { %10512 = vmatmul.mubr.bf16.gmra.mxu1 %v2784_v41 }
 0x531   : > { %11508 = vpow2.f32 %v3982_v1 }
 0x532   : > { %v14005_v22 = vpop.eup %11498  ;;  %11510 = vpow2.f32 %v3988_v59 }
 0x533   : > { %4010 = vadd.xlane.f32.xlu0 %v14005_v22  ;;  %11512 = vpow2.f32 %v3984_v28 }
 0x534   : > { %11514 = vpow2.f32 %v3994_v13 }
 0x535   : > { %v3336_v34 = vpop.xlane.xlu0 %3335 }
 0x536   : > { %v14009_v30 = vpop.eup %11500 }
 0x537   : > { %4006 = vadd.xlane.f32.xlu0 %v14009_v30  ;;  %v14015_v27 = vpop.eup %11502 }
 0x538   : > { %v14017_v14 = vpop.eup %11504 }
 0x539   : > { %v3332_v60 = vpop.xlane.xlu1 %3331 }
 0x53a   : > { %v14022_v31 = vpop.eup %11506 }
 0x53b   : > { %4008 = vadd.xlane.f32.xlu1 %v14017_v14  ;;  %4012 = vadd.xlane.f32.xlu0 %v14015_v27 }
 0x53d   : > { %v3338_v3 = vpop.xlane.xlu1 %3337  ;;  %v3344_v62 = vpop.xlane.xlu0 %3343 }
 0x53e   : > { %11516 = vrcp.f32 %v3338_v3  ;;  %v14026_v20 = vpop.eup %11508 }
 0x53f   : > { %4018 = vadd.xlane.f32.xlu1 %v14022_v31  ;;  %11518 = vrcp.f32 %v3332_v60  ;;  %v14029_v55 = vpop.eup %11510 }
 0x540   : > { %11520 = vrcp.f32 %v3336_v34  ;;  %v14032_v15 = vpop.eup %11512 }
 0x541   : > { %v3346_v48 = vpop.xlane.xlu0 %3345  ;;  %v14035_v24 = vpop.eup %11514 }
 0x542   : > { %v3334_v7 = vpop.xlane.xlu1 %3333 }
 0x543   : > { %11522 = vrcp.f32 %v3334_v7  ;;  %4014 = vadd.xlane.f32.xlu1 %v14026_v20 }
 0x544   : > { %11524 = vpow2.f32 %v3990_v25 }
 0x545   : > { %11526 = vrcp.f32 %v3346_v48  ;;  %v3342_v36 = vpop.xlane.xlu0 %3341 }
 0x546   : > { %v3340_v12 = vpop.xlane.xlu1 %3339 }
 0x547   : > { %11528 = vrcp.f32 %v3340_v12  ;;  %4020 = vadd.xlane.f32.xlu1 %v14029_v55 }
 0x548   : > { %11530 = vrcp.f32 %v3342_v36 }
 0x549   : > { %11532 = vpow2.f32 %v3996_v4  ;;  %v3352_v23 = vpop.xlane.xlu0 %3351 }
 0x54a   : > { %11534 = vrcp.f32 %v3344_v62 }
 0x54b   : > { %4016 = vadd.xlane.f32.xlu1 %v14032_v15  ;;  %v11517_v49 = vpop.eup %11516 }
 0x54c   : > { %v11519_v46 = vpop.eup %11518  ;;  %v3382_v61 = vmul.f32 %v11517_v49, %v13894_v44  ;;  %v11102_v49 = vld [vmem:[#allocation2 + $0xc] ss:$24 sps:$4 sm:$0xff]  }
 0x54d   : > { %v3350_v19 = vpop.xlane.xlu1 %3349  ;;  %v11521_v56 = vpop.eup %11520  ;;  %v3379_v39 = vmul.f32 %v11519_v46, %v13890_v43  ;;  %v16565_v46 = vld [vmem:[#allocation46_spill] sm:$0xff] }
 0x54e   : > { %11536 = vrcp.f32 %v3350_v19  ;;  %v3348_v16 = vpop.xlane.xlu0 %3347  ;;  %v3381_v41 = vmul.f32 %v11521_v56, %v13885_v35  ;;  %v16566_v56 = vld [vmem:[#allocation44_spill] sm:$0xff] }
 0x54f   : > { %11538 = vrcp.f32 %v3348_v16  ;;  %4026 = vadd.xlane.f32.xlu1 %v14035_v24 }
 0x550   : > { %v11523_v18 = vpop.eup %11522  ;;  %11540 = vrcp.f32 %v3352_v23  ;;  %v3396_v1 = vpack.c.bf16 %v3382_v61, %v3381_v41  ;;  %v11101_v23 = vld [vmem:[#allocation2 + $0x74] ss:$24 sps:$4 sm:$0xff]   ;;  %v16568_v41 = vld [vmem:[#allocation47_spill] sm:$0xff] }
 0x551   : > { %4383 = vrot.lane.b32.xlu0 %v11096_v0, %s12647_s12  ;;  %v3380_v6 = vmul.f32 %v11523_v18, %v13904_v2  ;;  %v14042_v10 = vpop.eup %11524  ;;  %v11104_v18 = vld [vmem:[#allocation2 + $0x4] ss:$24 sps:$4 sm:$0xff]  }
 0x552   : > { %v3354_v29 = vpop.xlane.xlu0 %3353  ;;  %v11527_v8 = vpop.eup %11526 }
 0x553   : > { %11542 = vrcp.f32 %v3354_v29  ;;  %4022 = vadd.xlane.f32.xlu1 %v14042_v10  ;;  %v3395_v58 = vpack.c.bf16 %v3380_v6, %v3379_v39  ;;  %v3386_v60 = vmul.f32 %v11527_v8, %v13901_v38  ;;  %v16567_v6 = vld [vmem:[#allocation45_spill] sm:$0xff] }
 0x554   : > { %v11529_v17 = vpop.eup %11528 }
 0x555   : > { %v11531_v44 = vpop.eup %11530  ;;  %10563 = vmatprep.mubr.bf16.mxu1 %v3395_v58  ;;  %v3383_v59 = vmul.f32 %v11529_v17, %v13912_v57  ;;  %v3358_v43 = vpop.xlane.xlu1 %3357  ;;  %v3963_v57 = vsub.f32 %v13855_v54, %v14011_v40  ;;  %v11099_v40 = vld [vmem:[#allocation2 + $0xd4] ss:$24 sps:$4 sm:$0xff]  }
 0x556   : > { %v14047_v11 = vpop.eup %11532  ;;  %10564 = vmatmul.mubr.bf16.vlgmr.msra.gmra.mxu1 %v3396_v1  ;;  %v3360_v2 = vpop.xlane.xlu0 %3359  ;;  %v3384_v28 = vmul.f32 %v11531_v44, %v13909_v50  ;;  %11544 = vrcp.f32 %v3358_v43  ;;  %v11105_v58 = vld [vmem:[#allocation2 + $0x14] ss:$24 sps:$4 sm:$0xff]   ;;  %v16569_v43 = vld [vmem:[#allocation39_spill] sm:$0xff] }
 0x557   : > { %v11535_v35 = vpop.eup %11534  ;;  %10612 = vmatpush3.bf16.msra.mxu1 %v13982_v32  ;;  %4028 = vadd.xlane.f32.xlu1 %v14047_v11  ;;  %v3992_v7 = vmul.f32 1.442695, %v3963_v57  ;;  %v11106_v1 = vld [vmem:[#allocation2 + $0x34] ss:$24 sps:$4 sm:$0xff]  }
 0x558   : > { %10613 = vmatprep.subr.bf16.mxu1 %v11097_v26  ;;  %v3397_v34 = vpack.c.bf16 %v3384_v28, %v3383_v59  ;;  %v3385_v3 = vmul.f32 %v11535_v35, %v13897_v51  ;;  %v11107_v59 = vld [vmem:[#allocation2 + $0x64] ss:$24 sps:$4 sm:$0xff]  }
 0x559   : > { %v11110_v35 = vld [vmem:[#allocation2 + $0x124] ss:$24 sps:$4 sm:$0xff]  }
 0x55a   : > { %10567 = vmatprep.mubr.bf16.mxu1 %v3397_v34  ;;  %v3356_v13 = vpop.xlane.xlu0 %3355  ;;  %v3398_v32 = vpack.c.bf16 %v3386_v60, %v3385_v3  ;;  %v11111_v60 = vld [vmem:[#allocation2 + $0x134] ss:$24 sps:$4 sm:$0xff]  }
 0x55b   : > { %v11537_v62 = vpop.eup %11536  ;;  %10614 = vmatpush3.bf16.msra.mxu1 %v11097_v26  ;;  %11546 = vrcp.f32 %v3356_v13  ;;  %v11109_v26 = vld [vmem:[#allocation2 + $0xc4] ss:$24 sps:$4 sm:$0xff]  }
 0x55c   : > { %v11539_v50 = vpop.eup %11538  ;;  %10615 = vmatprep.subr.bf16.mxu1 %v11098_v33  ;;  %v3388_v25 = vmul.f32 %v11537_v62, %v13920_v42  ;;  %11548 = vrcp.f32 %v3360_v2  ;;  %v11100_v42 = vld [vmem:[#allocation2 + $0xa4] ss:$24 sps:$4 sm:$0xff]   ;;  %v11108_v2 = vld [vmem:[#allocation2 + $0x94] ss:$24 sps:$4 sm:$0xff]  }
 0x55d   : > { %v3387_v38 = vmul.f32 %v11539_v50, %v13922_v5  ;;  %v11541_v63 = vpop.eup %11540  ;;  %v11112_v57 = vld [vmem:[#allocation2 + $0x3c] ss:$24 sps:$4 sm:$0xff]  }
 0x55e   : > { %10568 = vmatmul.mubr.bf16.gmra.mxu1 %v3398_v32  ;;  %v3362_v54 = vpop.xlane.xlu0 %3361  ;;  %v3389_v4 = vmul.f32 %v11541_v63, %v13917_v47  ;;  %v11114_v62 = vld [vmem:[#allocation2 + $0x154] ss:$24 sps:$4 sm:$0xff]   ;;  %v11115_v50 = vld [vmem:[#allocation2 + $0x164] ss:$24 sps:$4 sm:$0xff]  }
 0x55f   : > { %10616 = vmatpush3.bf16.msra.mxu1 %v11098_v33  ;;  %11550 = vrcp.f32 %v3362_v54  ;;  %v3399_v48 = vpack.c.bf16 %v3388_v25, %v3387_v38  ;;  %v11113_v33 = vld [vmem:[#allocation2 + $0xf4] ss:$24 sps:$4 sm:$0xff]   ;;  %v11116_v32 = vld [vmem:[#allocation2 + $0x104] ss:$24 sps:$4 sm:$0xff]  }
 0x560   : > { %v11543_v51 = vpop.eup %11542  ;;  %10617 = vmatprep.subr.bf16.mxu1 %v11099_v40  ;;  %11552 = vpow2.f32 %v3992_v7  ;;  %v11117_v7 = vld [vmem:[#allocation2 + $0xd4] ss:$24 sps:$4 sm:$0xff]  }
 0x561   : > { %10571 = vmatprep.mubr.bf16.mxu1 %v3399_v48  ;;  %v3390_v12 = vmul.f32 %v11543_v51, %v13926_v37  ;;  %v11103_v37 = vld [vmem:[#allocation2 + $0x44] ss:$24 sps:$4 sm:$0xff]  }
 0x563   : > { %10618 = vmatpush3.bf16.msra.mxu1 %v11099_v40  ;;  %v3400_v36 = vpack.c.bf16 %v3390_v12, %v3389_v4  ;;  %v11545_v5 = vpop.eup %11544 }
 0x564   : > { %10619 = vmatprep.subr.bf16.mxu1 %v11100_v42  ;;  %v3392_v47 = vmul.f32 %v11545_v5, %v16566_v56  ;;  %v16570_v5 = vld [vmem:[#allocation36_spill] sm:$0xff] }
 0x566   : > { %10572 = vmatmul.mubr.bf16.gmra.mxu1 %v3400_v36  ;;  %v4437_v36 = vsel %vm2487_vm0, %v16569_v43, 0 }
 0x567   : > { %10620 = vmatpush3.bf16.msra.mxu1 %v11100_v42 }
 0x568   : > { %v11547_v19 = vpop.eup %11546  ;;  %10621 = vmatprep.subr.bf16.mxu1 %v11101_v23  ;;  %4375 = vrot.lane.b32.xlu1 %v11102_v49, %s12647_s12 }
 0x569   : > { %v3391_v16 = vmul.f32 %v11547_v19, %v16565_v46  ;;  %v11549_v0 = vpop.eup %11548 }
 0x56a   : > { %v3393_v29 = vmul.f32 %v11549_v0, %v16567_v6 }
 0x56b   : > { %10622 = vmatpush3.bf16.msra.mxu1 %v11101_v23  ;;  %v3401_v61 = vpack.c.bf16 %v3392_v47, %v3391_v16  ;;  %v4431_v16 = vsel %vm2487_vm0, %v13991_v52, 0 }
 0x56c   : > { %v11551_v39 = vpop.eup %11550  ;;  %10623 = vmatprep.subr.bf16.mxu1 %v11103_v37  ;;  %4319 = vrot.lane.b32.xlu1 %v11104_v18, %s12647_s12 }
 0x56d   : > { %10575 = vmatprep.mubr.bf16.mxu1 %v3401_v61  ;;  %v3394_v8 = vmul.f32 %v11551_v39, %v16568_v41  ;;  %v14066_v17 = vpop.eup %11552 }
 0x56f   : > { %10624 = vmatpush3.bf16.msra.mxu1 %v11103_v37  ;;  %v3402_v44 = vpack.c.bf16 %v3394_v8, %v3393_v29 }
 0x570   : > { %10625 = vmatprep.subr.bf16.mxu1 %v11105_v58  ;;  %4024 = vadd.xlane.f32.xlu0 %v14066_v17 }
 0x571   : > { %4321 = vrot.lane.b32.xlu1 %v11106_v1, %s12647_s12  ;;  %10576 = vmatmul.mubr.bf16.gmra.mxu1 %v3402_v44 }
 0x573   : > { %10626 = vmatpush3.bf16.msra.mxu1 %v11105_v58 }
 0x574   : > { %10731 = vmatprep.subr.msk.bf16.mxu1 %vm2487_vm0, %v16569_v43 }
 0x575   : > { %4323 = vrot.lane.b32.xlu1 %v11107_v59, %s12647_s12 }
 0x579   : > { %4325 = vrot.lane.b32.xlu1 %v11108_v2, %s12647_s12 }
 0x57b   : > { %v4003_v28 = vpop.xlane.xlu1 %4002 }
 0x57d   : > { %4327 = vrot.lane.b32.xlu1 %v11109_v26, %s12647_s12 }
 0x581   : > { %4331 = vrot.lane.b32.xlu1 %v11110_v35, %s12647_s12 }
 0x583   : > { %v3999_v34 = vpop.xlane.xlu1 %3998 }
 0x585   : > { %4740 = vrot.lane.b32.xlu1 %v11111_v60, %s12647_s12 }
 0x586   : > { %4377 = vrot.lane.b32.xlu0 %v11112_v57, %s12647_s12 }
 0x587   : > { %v4005_v13 = vpop.xlane.xlu1 %4004 }
 0x588   : > { %11554 = vrcp.f32 %v4005_v13 }
 0x589   : > { %11556 = vrcp.f32 %v3999_v34 }
 0x58a   : > { %4329 = vrot.lane.b32.xlu0 %v11113_v33, %s12647_s12  ;;  %11558 = vrcp.f32 %v4003_v28 }
 0x58b   : > { %v4001_v3 = vpop.xlane.xlu1 %4000 }
 0x58c   : > { %11560 = vrcp.f32 %v4001_v3 }
 0x58e   : > { %4333 = vrot.lane.b32.xlu0 %v11114_v62, %s12647_s12 }
 0x58f   : > { %v4382_v61 = vpop.permute.xlu1 %4381 }
 0x590   : > { %v4425_v26 = vsel %vm2487_vm0, %v4382_v61, 0 }
 0x592   : > { %4742 = vrot.lane.b32.xlu0 %v11115_v50, %s12647_s12 }
 0x593   : > { %v4380_v39 = vpop.permute.xlu1 %4379 }
 0x594   : > { %v4422_v50 = vsel %vm2487_vm0, %v4380_v39, 0 }
 0x595   : > { %v11555_v25 = vpop.eup %11554 }
 0x596   : > { %4738 = vrot.lane.b32.xlu0 %v11116_v32, %s12647_s12  ;;  %v11557_v38 = vpop.eup %11556  ;;  %v4049_v40 = vmul.f32 %v11555_v25, %v13978_v21 }
 0x597   : > { %v11559_v63 = vpop.eup %11558  ;;  %v4046_v48 = vmul.f32 %v11557_v38, %v13973_v45 }
 0x598   : > { %v4048_v4 = vmul.f32 %v11559_v63, %v13966_v53  ;;  %v4434_v53 = vsel %vm2487_vm0, %v16570_v5, 0 }
 0x599   : > { %v11561_v54 = vpop.eup %11560 }
 0x59a   : > { %4736 = vrot.lane.b32.xlu0 %v11117_v7, %s12647_s12  ;;  %v4047_v51 = vmul.f32 %v11561_v54, %v13985_v9  ;;  %v4063_v42 = vpack.c.bf16 %v4049_v40, %v4048_v4 }
 0x59c   : > { %v4062_v12 = vpack.c.bf16 %v4047_v51, %v4046_v48 }
 0x59e   : > { %10627 = vmatprep.mubr.bf16.mxu1 %v4062_v12 }
 0x59f   : > { %10628 = vmatmul.mubr.bf16.vlgmr.msra.gmra.mxu1 %v4063_v42 }
 0x5a0   : > { %10644 = vmatpush3.bf16.xpose.msra.mxu1 %v4437_v36 }
 0x5a1   : > { %10732 = vmatprep.subr.msk.bf16.mxu1 %vm2487_vm0, %v16570_v5 }
 0x5a3   : > { %v10501_v21 = vpop.f32.mrf.mxu1 }
 0x5a4   : > { %2932 = vst.msk [vmem:[#allocation3 + $0x20] sm:$0xff] %vm2487_vm0, %v10501_v21 }
 0x5a5   : > { %v2867_v23 = vpop.f32.mrf.mxu1 }
 0x5a6   : > { %2930 = vst.msk [vmem:[#allocation3] sm:$0xff] %vm2487_vm0, %v2867_v23 }
 0x5a7   : > { %v10502_v45 = vpop.f32.mrf.mxu1 }
 0x5a8   : > { %2933 = vst.msk [vmem:[#allocation3 + $0x30] sm:$0xff] %vm2487_vm0, %v10502_v45  ;;  %10646 = vmatpush3.bf16.xpose.msra.mxu1 %v4434_v53 }
 0x5a9   : > { %10733 = vmatprep.subr.msk.bf16.mxu1 %vm2487_vm0, %v13991_v52  ;;  %v2870_v9 = vpop.f32.mrf.mxu1 }
 0x5aa   : > { %2931 = vst.msk [vmem:[#allocation3 + $0x10] sm:$0xff] %vm2487_vm0, %v2870_v9 }
 0x5ab   : > { %v10505_v49 = vpop.f32.mrf.mxu1 }
 0x5ac   : > { %2936 = vst.msk [vmem:[#allocation3 + $0x60] sm:$0xff] %vm2487_vm0, %v10505_v49 }
 0x5ad   : > { %v2883_v19 = vpop.f32.mrf.mxu1 }
 0x5ae   : > { %2934 = vst.msk [vmem:[#allocation3 + $0x40] sm:$0xff] %vm2487_vm0, %v2883_v19 }
 0x5af   : > { %v10506_v46 = vpop.f32.mrf.mxu1 }
 0x5b0   : > { %2937 = vst.msk [vmem:[#allocation3 + $0x70] sm:$0xff] %vm2487_vm0, %v10506_v46  ;;  %10648 = vmatpush3.bf16.xpose.msra.mxu1 %v4431_v16 }
 0x5b1   : > { %v2886_v56 = vpop.f32.mrf.mxu1 }
 0x5b2   : > { %2935 = vst.msk [vmem:[#allocation3 + $0x50] sm:$0xff] %vm2487_vm0, %v2886_v56 }
 0x5b3   : > { %v10509_v47 = vpop.f32.mrf.mxu1 }
 0x5b4   : > { %2940 = vst.msk [vmem:[#allocation3 + $0xa0] sm:$0xff] %vm2487_vm0, %v10509_v47 }
 0x5b5   : > { %v2899_v0 = vpop.f32.mrf.mxu1 }
 0x5b6   : > { %2938 = vst.msk [vmem:[#allocation3 + $0x80] sm:$0xff] %vm2487_vm0, %v2899_v0 }
 0x5b7   : > { %v10510_v37 = vpop.f32.mrf.mxu1 }
 0x5b8   : > { %2941 = vst.msk [vmem:[#allocation3 + $0xb0] sm:$0xff] %vm2487_vm0, %v10510_v37 }
 0x5b9   : > { %v2902_v18 = vpop.f32.mrf.mxu1 }
 0x5ba   : > { %2939 = vst.msk [vmem:[#allocation3 + $0x90] sm:$0xff] %vm2487_vm0, %v2902_v18 }
 0x5bc   : > { %v4011_v52 = vpop.xlane.xlu0 %4010 }
 0x5c0   : > { %v4007_v6 = vpop.xlane.xlu0 %4006 }
 0x5c1   : > { %11562 = vrcp.f32 %v4007_v6 }
 0x5c2   : > { %11564 = vrcp.f32 %v4011_v52 }
 0x5c4   : > { %v4009_v29 = vpop.xlane.xlu1 %4008  ;;  %v4013_v41 = vpop.xlane.xlu0 %4012 }
 0x5c5   : > { %11566 = vrcp.f32 %v4009_v29 }
 0x5c6   : > { %11568 = vrcp.f32 %v4013_v41 }
 0x5c8   : > { %v4019_v8 = vpop.xlane.xlu1 %4018  ;;  %v4384_v58 = vpop.permute.xlu0 %4383 }
 0x5c9   : > { %10734 = vmatprep.subr.msk.bf16.mxu1 %vm2487_vm0, %v4384_v58  ;;  %v4428_v1 = vsel %vm2487_vm0, %v4384_v58, 0 }
 0x5ca   : > { %10650 = vmatpush3.bf16.xpose.msra.mxu1 %v4428_v1 }
 0x5cb   : > { %10735 = vmatprep.subr.msk.bf16.mxu1 %vm2487_vm0, %v4382_v61 }
 0x5cc   : > { %v4015_v44 = vpop.xlane.xlu1 %4014 }
 0x5ce   : > { %v11563_v59 = vpop.eup %11562 }
 0x5cf   : > { %v11565_v2 = vpop.eup %11564  ;;  %v4050_v34 = vmul.f32 %v11563_v59, %v14009_v30 }
 0x5d0   : > { %v4021_v43 = vpop.xlane.xlu1 %4020  ;;  %v4052_v13 = vmul.f32 %v11565_v2, %v14005_v22 }
 0x5d1   : > { %11570 = vrcp.f32 %v4021_v43 }
 0x5d2   : > { %v11567_v28 = vpop.eup %11566  ;;  %10652 = vmatpush3.bf16.xpose.msra.mxu1 %v4425_v26  ;;  %11572 = vrcp.f32 %v4015_v44 }
 0x5d3   : > { %v11569_v35 = vpop.eup %11568  ;;  %10736 = vmatprep.subr.msk.bf16.mxu1 %vm2487_vm0, %v4380_v39  ;;  %v4051_v60 = vmul.f32 %v11567_v28, %v14017_v14  ;;  %11574 = vrcp.f32 %v4019_v8 }
 0x5d4   : > { %v4017_v57 = vpop.xlane.xlu1 %4016  ;;  %v4053_v33 = vmul.f32 %v11569_v35, %v14015_v27 }
 0x5d5   : > { %11576 = vrcp.f32 %v4017_v57  ;;  %v4064_v3 = vpack.c.bf16 %v4051_v60, %v4050_v34 }
 0x5d6   : > { %v4065_v62 = vpack.c.bf16 %v4053_v33, %v4052_v13 }
 0x5d7   : > { %10631 = vmatprep.mubr.bf16.mxu1 %v4064_v3 }
 0x5d8   : > { %10632 = vmatmul.mubr.bf16.gmra.mxu1 %v4065_v62  ;;  %v4027_v32 = vpop.xlane.xlu1 %4026 }
 0x5da   : > { %10654 = vmatpush3.bf16.xpose.msra.mxu1 %v4422_v50 }
 0x5dc   : > { %v4023_v30 = vpop.xlane.xlu1 %4022 }
 0x5de   : > { %v11571_v25 = vpop.eup %11570 }
 0x5df   : > { %v11573_v38 = vpop.eup %11572  ;;  %v4057_v7 = vmul.f32 %v11571_v25, %v14029_v55 }
 0x5e0   : > { %v11575_v63 = vpop.eup %11574  ;;  %v4054_v22 = vmul.f32 %v11573_v38, %v14026_v20  ;;  %v4029_v48 = vpop.xlane.xlu1 %4028 }
 0x5e1   : > { %v4056_v54 = vmul.f32 %v11575_v63, %v14022_v31  ;;  %11578 = vrcp.f32 %v4029_v48 }
 0x5e2   : > { %v11577_v14 = vpop.eup %11576  ;;  %11580 = vrcp.f32 %v4023_v30 }
 0x5e3   : > { %v4055_v27 = vmul.f32 %v11577_v14, %v14032_v15  ;;  %v4067_v51 = vpack.c.bf16 %v4057_v7, %v4056_v54  ;;  %11582 = vrcp.f32 %v4027_v32 }
 0x5e4   : > { %v4376_v4 = vpop.permute.xlu1 %4375 }
 0x5e5   : > { %v4066_v40 = vpack.c.bf16 %v4055_v27, %v4054_v22  ;;  %v4416_v16 = vsel %vm2487_vm0, %v4376_v4, 0 }
 0x5e7   : > { %10635 = vmatprep.mubr.bf16.mxu1 %v4066_v40 }
 0x5e8   : > { %10636 = vmatmul.mubr.bf16.gmra.mxu1 %v4067_v51  ;;  %v4320_v42 = vpop.permute.xlu1 %4319 }
 0x5ec   : > { %v4322_v31 = vpop.permute.xlu1 %4321 }
 0x5ee   : > { %v11579_v53 = vpop.eup %11578 }
 0x5ef   : > { %v11581_v49 = vpop.eup %11580  ;;  %v4061_v47 = vmul.f32 %v11579_v53, %v14047_v11 }
 0x5f0   : > { %v10513_v12 = vpop.f32.mrf.mxu1  ;;  %v4324_v21 = vpop.permute.xlu1 %4323  ;;  %v4058_v0 = vmul.f32 %v11581_v49, %v14042_v10 }
 0x5f1   : > { %2944 = vst.msk [vmem:[#allocation3 + $0xe0] sm:$0xff] %vm2487_vm0, %v10513_v12  ;;  %v11583_v46 = vpop.eup %11582 }
 0x5f2   : > { %v2915_v36 = vpop.f32.mrf.mxu1  ;;  %v4060_v61 = vmul.f32 %v11583_v46, %v14035_v24  ;;  %v12231_v46 = vld [vmem:[%s12981_s23 + $0x38] sm:$0xff] }
 0x5f3   : > { %2942 = vst.msk [vmem:[#allocation3 + $0xc0] sm:$0xff] %vm2487_vm0, %v2915_v36  ;;  %v12227_v36 = vld [vmem:[%s12981_s23] sm:$0xff] }
 0x5f4   : > { %v10514_v55 = vpop.f32.mrf.mxu1  ;;  %v4326_v9 = vpop.permute.xlu1 %4325  ;;  %v4069_v6 = vpack.c.bf16 %v4061_v47, %v4060_v61  ;;  %v12232_v47 = vld [vmem:[%s12981_s23 + $0x20] sm:$0xff] }
 0x5f5   : > { %2945 = vst.msk [vmem:[#allocation3 + $0xf0] sm:$0xff] %vm2487_vm0, %v10514_v55 }
 0x5f6   : > { %v2918_v20 = vpop.f32.mrf.mxu1 }
 0x5f7   : > { %2943 = vst.msk [vmem:[#allocation3 + $0xd0] sm:$0xff] %vm2487_vm0, %v2918_v20 }
 0x5f8   : > { %v4328_v52 = vpop.permute.xlu1 %4327 }
 0x5f9   : > { %v4025_v15 = vpop.xlane.xlu0 %4024 }
 0x5fa   : > { %11584 = vrcp.f32 %v4025_v15  ;;  %v12228_v15 = vld [vmem:[%s12981_s23 + $0x18] sm:$0xff] }
 0x5fc   : > { %v4332_v29 = vpop.permute.xlu1 %4331 }
 0x5fd   : > { %v4378_v5 = vpop.permute.xlu0 %4377 }
 0x5fe   : > { %10737 = vmatprep.subr.msk.bf16.mxu1 %vm2487_vm0, %v4378_v5  ;;  %v4419_v23 = vsel %vm2487_vm0, %v4378_v5, 0 }
 0x5ff   : > { %10656 = vmatpush3.bf16.xpose.msra.mxu1 %v4419_v23 }
 0x600   : > { %10738 = vmatprep.subr.msk.bf16.mxu1 %vm2487_vm0, %v4376_v4  ;;  %v4741_v41 = vpop.permute.xlu1 %4740  ;;  %v12226_v4 = vld [vmem:[%s12981_s23 + $0x10] sm:$0xff] }
 0x601   : > { %v4330_v45 = vpop.permute.xlu0 %4329 }
 0x605   : > { %v4334_v19 = vpop.permute.xlu0 %4333 }
 0x607   : > { %v11585_v56 = vpop.eup %11584  ;;  %10658 = vmatpush3.bf16.xpose.msra.mxu1 %v4416_v16 }
 0x608   : > { %v4059_v37 = vmul.f32 %v11585_v56, %v14066_v17 }
 0x609   : > { %v4743_v18 = vpop.permute.xlu0 %4742 }
 0x60a   : > { %10675 = vmatprep.subr.bf16.mxu1 %v4743_v18  ;;  %v4068_v39 = vpack.c.bf16 %v4059_v37, %v4058_v0 }
 0x60c   : > { %10639 = vmatprep.mubr.bf16.mxu1 %v4068_v39  ;;  %v12234_v39 = vld [vmem:[%s12981_s23 + $0x50] sm:$0xff] }
 0x60d   : > { %10640 = vmatmul.mubr.bf16.gmra.mxu1 %v4069_v6  ;;  %v4739_v10 = vpop.permute.xlu0 %4738 }
 0x60e   : > { %10659 = vmatprep.mubr.msk.bf16.mxu1 %vm2487_vm0, %v4320_v42 }
 0x611   : > { %v4737_v24 = vpop.permute.xlu0 %4736 }
 0x615   : > { %10660 = vmatmul.mubr.msk.bf16.vlgmr.msra.gmra.mxu1 %vm2487_vm0, %v4322_v31 }
 0x616   : > { %10676 = vmatpush3.bf16.msra.mxu1 %v4743_v18  ;;  %10663 = vmatprep.mubr.msk.bf16.mxu1 %vm2487_vm0, %v4324_v21  ;;  %v14140_v11 = vpop.f32.mrf.mxu1  ;;  %v12229_v21 = vld [vmem:[%s12981_s23 + $0x8] sm:$0xff] }
 0x617   : > { %10677 = vmatprep.subr.bf16.mxu1 %v4741_v41  ;;  %v12233_v18 = vld [vmem:[%s12981_s23 + $0x28] sm:$0xff] }
 0x618   : > { %v14144_v17 = vpop.f32.mrf.mxu1 }
 0x61a   : > { %10678 = vmatpush3.bf16.msra.mxu1 %v4741_v41  ;;  %v14146_v8 = vpop.f32.mrf.mxu1  ;;  %v12235_v41 = vld [vmem:[%s12981_s23 + $0x58] sm:$0xff] }
 0x61b   : > { %10679 = vmatprep.subr.bf16.mxu1 %v4739_v10 }
 0x61c   : > { %v14149_v58 = vpop.f32.mrf.mxu1 }
 0x61d   : > { %10664 = vmatmul.mubr.msk.bf16.gmra.mxu1 %vm2487_vm0, %v4326_v9  ;;  %v12230_v9 = vld [vmem:[%s12981_s23 + $0x30] sm:$0xff] }
 0x61e   : > { %10680 = vmatpush3.bf16.msra.mxu1 %v4739_v10  ;;  %10667 = vmatprep.mubr.msk.bf16.mxu1 %vm2487_vm0, %v4328_v52  ;;  %v14151_v1 = vpop.f32.mrf.mxu1 }
 0x61f   : > { %10681 = vmatprep.subr.bf16.mxu1 %v4737_v24 }
 0x620   : > { %v14153_v44 = vpop.f32.mrf.mxu1 }
 0x622   : > { %10682 = vmatpush3.bf16.msra.mxu1 %v4737_v24  ;;  %v14155_v59 = vpop.f32.mrf.mxu1 }
 0x624   : > { %v14157_v43 = vpop.f32.mrf.mxu1 }
 0x625   : > { %10668 = vmatmul.mubr.msk.bf16.gmra.mxu1 %vm2487_vm0, %v4330_v45 }
 0x626   : > { %10671 = vmatprep.mubr.msk.bf16.mxu1 %vm2487_vm0, %v4332_v29  ;;  %v14159_v2 = vpop.f32.mrf.mxu1 }
 0x628   : > { %v14161_v26 = vpop.f32.mrf.mxu1 }
 0x62a   : > { %v14163_v28 = vpop.f32.mrf.mxu1 }
 0x62c   : > { %v14165_v35 = vpop.f32.mrf.mxu1 }
 0x62d   : > { %10672 = vmatmul.mubr.msk.bf16.gmra.mxu1 %vm2487_vm0, %v4334_v19 }
 0x631   : > { %v14167_v34 = vpop.f32.mrf.mxu1 }
 0x633   : > { %v14169_v60 = vpop.f32.mrf.mxu1 }
 0x635   : > { %v14171_v57 = vpop.f32.mrf.mxu1 }
 0x637   : > { %v14173_v13 = vpop.f32.mrf.mxu1 }
 0x65f   : > { %v10629_v33 = vpop.f32.mrf.mxu1 }
 0x660   : > { %4217 = vst.msk [vmem:[#allocation3 + $0x28] sm:$0xff] %vm2487_vm0, %v10629_v33  ;;  %v12236_v33 = vld [vmem:[%s12981_s23 + $0x40] sm:$0xff] }
 0x661   : > { %v4152_v3 = vpop.f32.mrf.mxu1 }
 0x662   : > { %4215 = vst.msk [vmem:[#allocation3 + $0x8] sm:$0xff] %vm2487_vm0, %v4152_v3 }
 0x663   : > { %v10630_v62 = vpop.f32.mrf.mxu1 }
 0x664   : > { %4218 = vst.msk [vmem:[#allocation3 + $0x38] sm:$0xff] %vm2487_vm0, %v10630_v62 }
 0x665   : > { %v4155_v50 = vpop.f32.mrf.mxu1 }
 0x666   : > { %4216 = vst.msk [vmem:[#allocation3 + $0x18] sm:$0xff] %vm2487_vm0, %v4155_v50  ;;  %v12237_v50 = vld [vmem:[%s12981_s23 + $0x48] sm:$0xff] }
 0x698   : > { %v10633_v32 = vpop.f32.mrf.mxu1 }
 0x699   : > { %4221 = vst.msk [vmem:[#allocation3 + $0x68] sm:$0xff] %vm2487_vm0, %v10633_v32 }
 0x69a   : > { %v4168_v25 = vpop.f32.mrf.mxu1 }
 0x69b   : > { %4219 = vst.msk [vmem:[#allocation3 + $0x48] sm:$0xff] %vm2487_vm0, %v4168_v25  ;;  %v12238_v25 = vld [vmem:[%s12981_s23 + $0x70] sm:$0xff] }
 0x69c   : > { %v10634_v38 = vpop.f32.mrf.mxu1 }
 0x69d   : > { %4222 = vst.msk [vmem:[#allocation3 + $0x78] sm:$0xff] %vm2487_vm0, %v10634_v38 }
 0x69e   : > { %v4171_v30 = vpop.f32.mrf.mxu1 }
 0x69f   : > { %4220 = vst.msk [vmem:[#allocation3 + $0x58] sm:$0xff] %vm2487_vm0, %v4171_v30 }
 0x6a8   : > { %v10637_v63 = vpop.f32.mrf.mxu1 }
 0x6a9   : > { %4225 = vst.msk [vmem:[#allocation3 + $0xa8] sm:$0xff] %vm2487_vm0, %v10637_v63  ;;  %v12239_v63 = vld [vmem:[%s12981_s23 + $0x60] sm:$0xff] }
 0x6aa   : > { %v4184_v14 = vpop.f32.mrf.mxu1 }
 0x6ab   : > { %4223 = vst.msk [vmem:[#allocation3 + $0x88] sm:$0xff] %vm2487_vm0, %v4184_v14 }
 0x6ac   : > { %v10638_v7 = vpop.f32.mrf.mxu1 }
 0x6ad   : > { %4226 = vst.msk [vmem:[#allocation3 + $0xb8] sm:$0xff] %vm2487_vm0, %v10638_v7  ;;  %v11118_v7 = vld [vmem:[#allocation2 + $0x74] ss:$24 sps:$4 sm:$0xff]  }
 0x6ae   : > { %v4187_v22 = vpop.f32.mrf.mxu1 }
 0x6af   : > { %4224 = vst.msk [vmem:[#allocation3 + $0x98] sm:$0xff] %vm2487_vm0, %v4187_v22  ;;  %v11119_v22 = vld [vmem:[#allocation2 + $0xa4] ss:$24 sps:$4 sm:$0xff]  }
 0x6cd   : > { %v10641_v27 = vpop.f32.mrf.mxu1 }
 0x6ce   : > { %4229 = vst.msk [vmem:[#allocation3 + $0xe8] sm:$0xff] %vm2487_vm0, %v10641_v27 }
 0x6cf   : > { %v4200_v54 = vpop.f32.mrf.mxu1 }
 0x6d0   : > { %4227 = vst.msk [vmem:[#allocation3 + $0xc8] sm:$0xff] %vm2487_vm0, %v4200_v54  ;;  %v12240_v54 = vld [vmem:[%s12981_s23 + $0x78] sm:$0xff] }
 0x6d1   : > { %v10642_v40 = vpop.f32.mrf.mxu1 }
 0x6d2   : > { %4230 = vst.msk [vmem:[#allocation3 + $0xf8] sm:$0xff] %vm2487_vm0, %v10642_v40 }
 0x6d3   : > { %v4203_v48 = vpop.f32.mrf.mxu1 }
 0x6d4   : > { %4228 = vst.msk [vmem:[#allocation3 + $0xd8] sm:$0xff] %vm2487_vm0, %v4203_v48 }
 0x6d5   : > { %v10661_v51 = vpop.f32.mrf.mxu1 }
 0x6d6   : > { %v14192_v12 = vadd.f32 %v12226_v4, %v10661_v51  ;;  %v12241_v51 = vld [vmem:[%s12981_s23 + $0x68] sm:$0xff] }
 0x6d7   : > { %v4473_v42 = vpop.f32.mrf.mxu1 }
 0x6d8   : > { %v14195_v55 = vadd.f32 %v12227_v36, %v4473_v42  ;;  %4540 = vmax.xlane.f32.xlu0 %v14192_v12 }
 0x6d9   : > { %v10662_v20 = vpop.f32.mrf.mxu1 }
 0x6da   : > { %4536 = vmax.xlane.f32.xlu1 %v14195_v55  ;;  %v14200_v5 = vadd.f32 %v12228_v15, %v10662_v20 }
 0x6db   : > { %v4476_v31 = vpop.f32.mrf.mxu1 }
 0x6dc   : > { %v14203_v23 = vadd.f32 %v12229_v21, %v4476_v31 }
 0x6dd   : > { %v10665_v45 = vpop.f32.mrf.mxu1 }
 0x6de   : > { %4538 = vmax.xlane.f32.xlu0 %v14203_v23  ;;  %4542 = vmax.xlane.f32.xlu1 %v14200_v5  ;;  %v14208_v49 = vadd.f32 %v12230_v9, %v10665_v45 }
 0x6df   : > { %v4489_v53 = vpop.f32.mrf.mxu1 }
 0x6e0   : > { %v14215_v0 = vadd.f32 %v12232_v47, %v4489_v53 }
 0x6e1   : > { %v10666_v19 = vpop.f32.mrf.mxu1 }
 0x6e2   : > { %v14211_v16 = vadd.f32 %v12231_v46, %v10666_v19  ;;  %4548 = vmax.xlane.f32.xlu0 %v14208_v49 }
 0x6e3   : > { %v4492_v56 = vpop.f32.mrf.mxu1 }
 0x6e4   : > { %4550 = vmax.xlane.f32.xlu1 %v14211_v16  ;;  %v14219_v61 = vadd.f32 %v12233_v18, %v4492_v56 }
 0x6e5   : > { %v10669_v37 = vpop.f32.mrf.mxu1 }
 0x6e6   : > { %4544 = vmax.xlane.f32.xlu0 %v14215_v0  ;;  %v14223_v6 = vadd.f32 %v12234_v39, %v10669_v37 }
 0x6e7   : > { %v4505_v52 = vpop.f32.mrf.mxu1 }
 0x6e8   : > { %4546 = vmax.xlane.f32.xlu1 %v14219_v61  ;;  %v14231_v3 = vadd.f32 %v12236_v33, %v4505_v52 }
 0x6e9   : > { %v10670_v29 = vpop.f32.mrf.mxu1 }
 0x6ea   : > { %v14227_v10 = vadd.f32 %v12235_v41, %v10670_v29  ;;  %4556 = vmax.xlane.f32.xlu0 %v14223_v6 }
 0x6eb   : > { %v4508_v24 = vpop.f32.mrf.mxu1 }
 0x6ec   : > { %4558 = vmax.xlane.f32.xlu1 %v14227_v10  ;;  %v14235_v32 = vadd.f32 %v12237_v50, %v4508_v24 }
 0x6ed   : > { %v10673_v62 = vpop.f32.mrf.mxu1 }
 0x6ee   : > { %4552 = vmax.xlane.f32.xlu0 %v14231_v3  ;;  %v14239_v38 = vadd.f32 %v12238_v25, %v10673_v62 }
 0x6ef   : > { %v4521_v30 = vpop.f32.mrf.mxu1 }
 0x6f0   : > { %4554 = vmax.xlane.f32.xlu1 %v14235_v32  ;;  %v14244_v14 = vadd.f32 %v12239_v63, %v4521_v30 }
 0x6f1   : > { %v10674_v27 = vpop.f32.mrf.mxu1 }
 0x6f2   : > { %4564 = vmax.xlane.f32.xlu0 %v14239_v38  ;;  %v14250_v40 = vadd.f32 %v12240_v54, %v10674_v27 }
 0x6f3   : > { %v4524_v48 = vpop.f32.mrf.mxu1 }
 0x6f4   : > { %v14254_v4 = vadd.f32 %v12241_v51, %v4524_v48 }
 0x6f6   : > { %4560 = vmax.xlane.f32.xlu0 %v14244_v14 }
 0x701   : > { %4732 = vrot.lane.b32.xlu1 %v11118_v7, %s12647_s12 }
 0x70c   : > { %4734 = vrot.lane.b32.xlu0 %v11119_v22, %s12647_s12 }
 0x725   : > { %4566 = vmax.xlane.f32.xlu1 %v14250_v40 }
 0x729   : > { %4562 = vmax.xlane.f32.xlu1 %v14254_v4 }
 0x761   : > { %v4541_v42 = vpop.xlane.xlu0 %4540 }
 0x762   : > { %v4570_v36 = vsub.f32 %v14192_v12, %v4541_v42  ;;  %v11120_v42 = vld [vmem:[#allocation2 + $0x14] ss:$24 sps:$4 sm:$0xff]  }
 0x763   : > { %v4537_v20 = vpop.xlane.xlu1 %4536 }
 0x764   : > { %v4588_v31 = vmul.f32 1.442695, %v4570_v36  ;;  %v4568_v15 = vsub.f32 %v14195_v55, %v4537_v20  ;;  %v11121_v36 = vld [vmem:[#allocation2 + $0x44] ss:$24 sps:$4 sm:$0xff]  }
 0x766   : > { %11586 = vpow2.f32 %v4588_v31  ;;  %v4584_v21 = vmul.f32 1.442695, %v4568_v15 }
 0x767   : > { %v4543_v45 = vpop.xlane.xlu1 %4542  ;;  %v4539_v53 = vpop.xlane.xlu0 %4538 }
 0x768   : > { %v4571_v9 = vsub.f32 %v14200_v5, %v4543_v45  ;;  %11588 = vpow2.f32 %v4584_v21  ;;  %v4569_v46 = vsub.f32 %v14203_v23, %v4539_v53 }
 0x76a   : > { %v4590_v19 = vmul.f32 1.442695, %v4571_v9  ;;  %v4586_v12 = vmul.f32 1.442695, %v4569_v46 }
 0x76b   : > { %v4549_v56 = vpop.xlane.xlu0 %4548 }
 0x76c   : > { %v4574_v47 = vsub.f32 %v14208_v49, %v4549_v56  ;;  %11590 = vpow2.f32 %v4590_v19 }
 0x76d   : > { %v4551_v37 = vpop.xlane.xlu1 %4550 }
 0x76e   : > { %v4596_v18 = vmul.f32 1.442695, %v4574_v47  ;;  %v4575_v55 = vsub.f32 %v14211_v16, %v4551_v37 }
 0x76f   : > { %v4545_v52 = vpop.xlane.xlu0 %4544 }
 0x770   : > { %11592 = vpow2.f32 %v4596_v18  ;;  %v4572_v39 = vsub.f32 %v14215_v0, %v4545_v52  ;;  %v4598_v33 = vmul.f32 1.442695, %v4575_v55 }
 0x771   : > { %v4547_v29 = vpop.xlane.xlu1 %4546  ;;  %11594 = vpow2.f32 %v4586_v12 }
 0x772   : > { %v4592_v5 = vmul.f32 1.442695, %v4572_v39  ;;  %v4573_v41 = vsub.f32 %v14219_v61, %v4547_v29 }
 0x773   : > { %v14265_v24 = vpop.eup %11586  ;;  %v4557_v23 = vpop.xlane.xlu0 %4556 }
 0x774   : > { %11596 = vpow2.f32 %v4592_v5  ;;  %v4594_v49 = vmul.f32 1.442695, %v4573_v41  ;;  %4620 = vadd.xlane.f32.xlu1 %v14265_v24  ;;  %v4578_v45 = vsub.f32 %v14223_v6, %v4557_v23 }
 0x775   : > { %v14268_v62 = vpop.eup %11588  ;;  %v4559_v16 = vpop.xlane.xlu1 %4558 }
 0x776   : > { %11598 = vpow2.f32 %v4594_v49  ;;  %v4579_v15 = vsub.f32 %v14227_v10, %v4559_v16  ;;  %v4604_v19 = vmul.f32 1.442695, %v4578_v45 }
 0x777   : > { %v4553_v50 = vpop.xlane.xlu0 %4552  ;;  %11600 = vpow2.f32 %v4598_v33 }
 0x778   : > { %4616 = vadd.xlane.f32.xlu1 %v14268_v62  ;;  %v4576_v20 = vsub.f32 %v14231_v3, %v4553_v50  ;;  %v4606_v9 = vmul.f32 1.442695, %v4579_v15 }
 0x779   : > { %v14271_v0 = vpop.eup %11590  ;;  %v4555_v63 = vpop.xlane.xlu1 %4554 }
 0x77a   : > { %v4577_v31 = vsub.f32 %v14235_v32, %v4555_v63  ;;  %v4600_v21 = vmul.f32 1.442695, %v4576_v20 }
 0x77b   : > { %v4565_v25 = vpop.xlane.xlu0 %4564 }
 0x77c   : > { %4622 = vadd.xlane.f32.xlu1 %v14271_v0  ;;  %v4602_v53 = vmul.f32 1.442695, %v4577_v31  ;;  %11602 = vpow2.f32 %v4600_v21  ;;  %v4582_v47 = vsub.f32 %v14239_v38, %v4565_v25 }
 0x77d   : > { %v14274_v61 = vpop.eup %11592  ;;  %v4733_v51 = vpop.permute.xlu1 %4732 }
 0x77e   : > { %4628 = vadd.xlane.f32.xlu0 %v14274_v61  ;;  %v14277_v30 = vpop.eup %11594  ;;  %11604 = vpow2.f32 %v4602_v53  ;;  %v4612_v12 = vmul.f32 1.442695, %v4582_v47 }
 0x77f   : > { %v4561_v7 = vpop.xlane.xlu0 %4560  ;;  %11606 = vpow2.f32 %v4606_v9 }
 0x780   : > { %4618 = vadd.xlane.f32.xlu1 %v14277_v30  ;;  %v4580_v46 = vsub.f32 %v14244_v14, %v4561_v7  ;;  %11608 = vpow2.f32 %v4604_v19 }
 0x781   : > { %v14280_v22 = vpop.eup %11596 }
 0x782   : > { %4624 = vadd.xlane.f32.xlu0 %v14280_v22  ;;  %v4608_v3 = vmul.f32 1.442695, %v4580_v46 }
 0x783   : > { %v14283_v27 = vpop.eup %11598  ;;  %v4735_v54 = vpop.permute.xlu0 %4734 }
 0x784   : > { %4626 = vadd.xlane.f32.xlu1 %v14283_v27  ;;  %10683 = vmatprep.subr.bf16.mxu1 %v4735_v54  ;;  %v14286_v48 = vpop.eup %11600  ;;  %11610 = vpow2.f32 %v4608_v3 }
 0x785   : > { %10684 = vmatpush3.bf16.msra.mxu1 %v4735_v54 }
 0x786   : > { %4630 = vadd.xlane.f32.xlu0 %v14286_v48  ;;  %10685 = vmatprep.subr.bf16.mxu1 %v4733_v51 }
 0x789   : > { %10686 = vmatpush3.bf16.msra.mxu1 %v4733_v51  ;;  %v14299_v52 = vpop.eup %11602 }
 0x78b   : > { %v14302_v14 = vpop.eup %11604 }
 0x78c   : > { %v14305_v38 = vpop.eup %11606 }
 0x795   : > { %4728 = vrot.lane.b32.xlu1 %v11120_v42, %s12647_s12 }
 0x79c   : > { %4730 = vrot.lane.b32.xlu0 %v11121_v36, %s12647_s12 }
 0x7ae   : > { %v4567_v56 = vpop.xlane.xlu1 %4566 }
 0x7af   : > { %v4583_v32 = vsub.f32 %v14250_v40, %v4567_v56  ;;  %v14308_v40 = vpop.eup %11608 }
 0x7b1   : > { %v4614_v18 = vmul.f32 1.442695, %v4583_v32 }
 0x7b2   : > { %v4563_v37 = vpop.xlane.xlu1 %4562 }
 0x7b3   : > { %v4581_v10 = vsub.f32 %v14254_v4, %v4563_v37  ;;  %v14311_v4 = vpop.eup %11610 }
 0x7b5   : > { %v4610_v6 = vmul.f32 1.442695, %v4581_v10 }
 0x7b7   : > { %11612 = vpow2.f32 %v4610_v6 }
 0x7b8   : > { %11614 = vpow2.f32 %v4612_v12 }
 0x7b9   : > { %4632 = vadd.xlane.f32.xlu1 %v14299_v52  ;;  %11616 = vpow2.f32 %v4614_v18 }
 0x7bb   : > { %4634 = vadd.xlane.f32.xlu0 %v14302_v14 }
 0x7bd   : > { %4638 = vadd.xlane.f32.xlu1 %v14305_v38 }
 0x7bf   : > { %4636 = vadd.xlane.f32.xlu0 %v14308_v40 }
 0x7c3   : > { %4640 = vadd.xlane.f32.xlu0 %v14311_v4 }
 0x7c4   : > { %v14314_v55 = vpop.eup %11612 }
 0x7c5   : > { %4642 = vadd.xlane.f32.xlu1 %v14314_v55  ;;  %v14317_v39 = vpop.eup %11614 }
 0x7c6   : > { %v14320_v29 = vpop.eup %11616 }
 0x7c7   : > { %4644 = vadd.xlane.f32.xlu0 %v14317_v39 }
 0x7c9   : > { %4646 = vadd.xlane.f32.xlu1 %v14320_v29 }
 0x7fd   : > { %v4621_v5 = vpop.xlane.xlu1 %4620 }
 0x801   : > { %v4617_v41 = vpop.xlane.xlu1 %4616 }
 0x805   : > { %v4623_v23 = vpop.xlane.xlu1 %4622 }
 0x806   : > { %11618 = vrcp.f32 %v4623_v23 }
 0x807   : > { %v4629_v33 = vpop.xlane.xlu0 %4628  ;;  %11620 = vrcp.f32 %v4617_v41 }
 0x808   : > { %11622 = vrcp.f32 %v4621_v5 }
 0x809   : > { %v4619_v49 = vpop.xlane.xlu1 %4618 }
 0x80a   : > { %11624 = vrcp.f32 %v4619_v49 }
 0x80b   : > { %v4625_v50 = vpop.xlane.xlu0 %4624 }
 0x80c   : > { %11626 = vrcp.f32 %v4625_v50 }
 0x80d   : > { %v4627_v16 = vpop.xlane.xlu1 %4626 }
 0x80e   : > { %11628 = vrcp.f32 %v4627_v16 }
 0x80f   : > { %v4631_v25 = vpop.xlane.xlu0 %4630 }
 0x810   : > { %11630 = vrcp.f32 %v4631_v25 }
 0x811   : > { %11632 = vrcp.f32 %v4629_v33  ;;  %v4729_v51 = vpop.permute.xlu1 %4728 }
 0x813   : > { %v4731_v63 = vpop.permute.xlu0 %4730  ;;  %v11619_v7 = vpop.eup %11618 }
 0x814   : > { %10687 = vmatprep.subr.bf16.mxu1 %v4731_v63  ;;  %v11621_v54 = vpop.eup %11620  ;;  %v4667_v20 = vmul.f32 %v11619_v7, %v14271_v0 }
 0x815   : > { %10688 = vmatpush3.bf16.msra.mxu1 %v4731_v63  ;;  %v11623_v42 = vpop.eup %11622  ;;  %v4664_v31 = vmul.f32 %v11621_v54, %v14268_v62 }
 0x816   : > { %10689 = vmatprep.subr.bf16.mxu1 %v4729_v51  ;;  %v4666_v45 = vmul.f32 %v11623_v42, %v14265_v24 }
 0x817   : > { %v11625_v36 = vpop.eup %11624 }
 0x818   : > { %v4665_v15 = vmul.f32 %v11625_v36, %v14277_v30  ;;  %v4681_v19 = vpack.c.bf16 %v4667_v20, %v4666_v45  ;;  %v11133_v45 = vld [vmem:[#allocation12 + $0x44] ss:$8 sps:$4 sm:$0xff]  }
 0x819   : > { %v11627_v21 = vpop.eup %11626  ;;  %10690 = vmatpush3.bf16.msra.mxu1 %v4729_v51 }
 0x81a   : > { %v4680_v53 = vpack.c.bf16 %v4665_v15, %v4664_v31  ;;  %v4668_v46 = vmul.f32 %v11627_v21, %v14280_v22  ;;  %v11125_v15 = vld [vmem:[#allocation12 + $0x60] ss:$8 sps:$4 sm:$0xff]   ;;  %v11127_v21 = vld [vmem:[#allocation12 + $0x64] ss:$8 sps:$4 sm:$0xff]  }
 0x81b   : > { %v11629_v9 = vpop.eup %11628 }
 0x81c   : > { %10691 = vmatprep.mubr.bf16.mxu1 %v4680_v53  ;;  %v4669_v56 = vmul.f32 %v11629_v9, %v14283_v27  ;;  %v11131_v53 = vld [vmem:[#allocation12 + $0x40] ss:$8 sps:$4 sm:$0xff]   ;;  %v11139_v9 = vld [vmem:[#allocation12 + $0x24] ss:$8 sps:$4 sm:$0xff]  }
 0x81d   : > { %v11631_v47 = vpop.eup %11630  ;;  %10692 = vmatmul.mubr.bf16.vlgmr.msra.gmra.mxu1 %v4681_v19  ;;  %v11137_v19 = vld [vmem:[#allocation12 + $0x20] ss:$8 sps:$4 sm:$0xff]  }
 0x81e   : > { %v11633_v3 = vpop.eup %11632  ;;  %v4682_v0 = vpack.c.bf16 %v4669_v56, %v4668_v46  ;;  %v4671_v62 = vmul.f32 %v11631_v47, %v14286_v48  ;;  %v11142_v46 = vld [vmem:[#allocation12 + $0x14] ss:$8 sps:$4 sm:$0xff]   ;;  %v11140_v56 = vld [vmem:[#allocation12 + $0x10] ss:$8 sps:$4 sm:$0xff]   ;;  %v11145_v47 = vld [vmem:[#allocation12 + $0x4] ss:$8 sps:$4 sm:$0xff]  }
 0x81f   : > { %v4670_v30 = vmul.f32 %v11633_v3, %v14274_v61  ;;  %v11143_v3 = vld [vmem:[#allocation12] ss:$8 sps:$4 sm:$0xff]  }
 0x820   : > { %10695 = vmatprep.mubr.bf16.mxu1 %v4682_v0  ;;  %v11148_v0 = vld [vmem:[#allocation12 + $0xf4] ss:$8 sps:$4 sm:$0xff]  }
 0x821   : > { %v4683_v37 = vpack.c.bf16 %v4671_v62, %v4670_v30  ;;  %v11146_v62 = vld [vmem:[#allocation12 + $0xf0] ss:$8 sps:$4 sm:$0xff]   ;;  %v11151_v30 = vld [vmem:[#allocation12 + $0xe4] ss:$8 sps:$4 sm:$0xff]  }
 0x825   : > { %10696 = vmatmul.mubr.bf16.gmra.mxu1 %v4683_v37  ;;  %v11149_v37 = vld [vmem:[#allocation12 + $0xe0] ss:$8 sps:$4 sm:$0xff]  }
 0x842   : > { %v4633_v24 = vpop.xlane.xlu1 %4632 }
 0x843   : > { %11634 = vrcp.f32 %v4633_v24  ;;  %v11154_v24 = vld [vmem:[#allocation12 + $0xd4] ss:$8 sps:$4 sm:$0xff]  }
 0x844   : > { %v4635_v32 = vpop.xlane.xlu0 %4634 }
 0x845   : > { %11636 = vrcp.f32 %v4635_v32  ;;  %v11152_v32 = vld [vmem:[#allocation12 + $0xd0] ss:$8 sps:$4 sm:$0xff]  }
 0x846   : > { %v4639_v10 = vpop.xlane.xlu1 %4638 }
 0x847   : > { %11638 = vrcp.f32 %v4639_v10  ;;  %v11157_v10 = vld [vmem:[#allocation12 + $0xc4] ss:$8 sps:$4 sm:$0xff]  }
 0x848   : > { %v4637_v22 = vpop.xlane.xlu0 %4636 }
 0x849   : > { %11640 = vrcp.f32 %v4637_v22  ;;  %v11155_v22 = vld [vmem:[#allocation12 + $0xc0] ss:$8 sps:$4 sm:$0xff]  }
 0x84c   : > { %v4641_v27 = vpop.xlane.xlu0 %4640 }
 0x84d   : > { %11642 = vrcp.f32 %v4641_v27  ;;  %v11160_v27 = vld [vmem:[#allocation12 + $0xb4] ss:$8 sps:$4 sm:$0xff]  }
 0x84e   : > { %v4643_v12 = vpop.xlane.xlu1 %4642 }
 0x84f   : > { %11644 = vrcp.f32 %v4643_v12  ;;  %v11158_v12 = vld [vmem:[#allocation12 + $0xb0] ss:$8 sps:$4 sm:$0xff]  }
 0x850   : > { %v11635_v6 = vpop.eup %11634  ;;  %v4645_v18 = vpop.xlane.xlu0 %4644 }
 0x851   : > { %11646 = vrcp.f32 %v4645_v18  ;;  %v4672_v61 = vmul.f32 %v11635_v6, %v14299_v52  ;;  %v11163_v6 = vld [vmem:[#allocation12 + $0xa4] ss:$8 sps:$4 sm:$0xff]   ;;  %v11161_v18 = vld [vmem:[#allocation12 + $0xa0] ss:$8 sps:$4 sm:$0xff]  }
 0x852   : > { %v11637_v48 = vpop.eup %11636  ;;  %v4647_v5 = vpop.xlane.xlu1 %4646 }
 0x853   : > { %11648 = vrcp.f32 %v4647_v5  ;;  %v4673_v41 = vmul.f32 %v11637_v48, %v14302_v14  ;;  %v11166_v48 = vld [vmem:[#allocation12 + $0x94] ss:$8 sps:$4 sm:$0xff]   ;;  %v11164_v5 = vld [vmem:[#allocation12 + $0x90] ss:$8 sps:$4 sm:$0xff]  }
 0x854   : > { %v11639_v23 = vpop.eup %11638 }
 0x855   : > { %v4684_v33 = vpack.c.bf16 %v4673_v41, %v4672_v61  ;;  %v4675_v16 = vmul.f32 %v11639_v23, %v14305_v38  ;;  %v11124_v38 = vld [vmem:[#allocation12 + $0x74] ss:$8 sps:$4 sm:$0xff]   ;;  %v11169_v23 = vld [vmem:[#allocation12 + $0x84] ss:$8 sps:$4 sm:$0xff]  }
 0x856   : > { %v11641_v49 = vpop.eup %11640  ;;  %5181 = vmatprep.subr.bf16.mxu0 %v11124_v38 }
 0x857   : > { %10699 = vmatprep.mubr.bf16.mxu1 %v4684_v33  ;;  %v4674_v50 = vmul.f32 %v11641_v49, %v14308_v40  ;;  %v11122_v40 = vld [vmem:[#allocation12 + $0x70] ss:$8 sps:$4 sm:$0xff]   ;;  %v11167_v49 = vld [vmem:[#allocation12 + $0x80] ss:$8 sps:$4 sm:$0xff]  }
 0x858   : > { %5182 = vmatpush1.bf16.msra.mxu0 %v11122_v40 }
 0x859   : > { %v4685_v25 = vpack.c.bf16 %v4675_v16, %v4674_v50  ;;  %5183 = vmatprep.subr.bf16.mxu0 %v11127_v21 }
 0x85a   : > { %v11643_v63 = vpop.eup %11642 }
 0x85b   : > { %10700 = vmatmul.mubr.bf16.gmra.mxu1 %v4685_v25  ;;  %v4676_v54 = vmul.f32 %v11643_v63, %v14311_v4  ;;  %v11130_v4 = vld [vmem:[#allocation12 + $0x54] ss:$8 sps:$4 sm:$0xff]  }
 0x85c   : > { %v11645_v7 = vpop.eup %11644  ;;  %5184 = vmatpush1.bf16.msra.mxu0 %v11125_v15 }
 0x85d   : > { %v4677_v51 = vmul.f32 %v11645_v7, %v14314_v55  ;;  %v11128_v55 = vld [vmem:[#allocation12 + $0x50] ss:$8 sps:$4 sm:$0xff]   ;;  %5185 = vmatprep.subr.bf16.mxu0 %v11130_v4 }
 0x85e   : > { %v11647_v42 = vpop.eup %11646 }
 0x85f   : > { %v4686_v52 = vpack.c.bf16 %v4677_v51, %v4676_v54  ;;  %v4678_v14 = vmul.f32 %v11647_v42, %v14317_v39  ;;  %v11136_v39 = vld [vmem:[#allocation12 + $0x34] ss:$8 sps:$4 sm:$0xff]  }
 0x860   : > { %v11649_v36 = vpop.eup %11648  ;;  %5186 = vmatpush1.bf16.msra.mxu0 %v11128_v55 }
 0x861   : > { %10703 = vmatprep.mubr.bf16.mxu1 %v4686_v52  ;;  %v4679_v20 = vmul.f32 %v11649_v36, %v14320_v29  ;;  %5187 = vmatprep.subr.bf16.mxu0 %v11133_v45  ;;  %v11134_v29 = vld [vmem:[#allocation12 + $0x30] ss:$8 sps:$4 sm:$0xff]  }
 0x863   : > { %v4687_v31 = vpack.c.bf16 %v4679_v20, %v4678_v14 }
 0x864   : > { %5188 = vmatpush1.bf16.msra.mxu0 %v11131_v53 }
 0x865   : > { %10704 = vmatmul.mubr.bf16.gmra.mxu1 %v4687_v31  ;;  %5189 = vmatprep.subr.bf16.mxu0 %v11136_v39 }
 0x868   : > { %5190 = vmatpush1.bf16.msra.mxu0 %v11134_v29 }
 0x869   : > { %5191 = vmatprep.subr.bf16.mxu0 %v11139_v9 }
 0x86c   : > { %5192 = vmatpush1.bf16.msra.mxu0 %v11137_v19 }
 0x86d   : > { %5193 = vmatprep.subr.bf16.mxu0 %v11142_v46 }
 0x870   : > { %5194 = vmatpush1.bf16.msra.mxu0 %v11140_v56 }
 0x871   : > { %5195 = vmatprep.subr.bf16.mxu0 %v11145_v47 }
 0x874   : > { %5196 = vmatpush1.bf16.msra.mxu0 %v11143_v3 }
 0x875   : > { %5197 = vmatprep.subr.bf16.mxu0 %v11148_v0 }
 0x878   : > { %5198 = vmatpush2.bf16.msra.mxu0 %v11146_v62 }
 0x879   : > { %5199 = vmatprep.subr.bf16.mxu0 %v11151_v30 }
 0x87c   : > { %5200 = vmatpush2.bf16.msra.mxu0 %v11149_v37 }
 0x87d   : > { %5201 = vmatprep.subr.bf16.mxu0 %v11154_v24 }
 0x880   : > { %5202 = vmatpush2.bf16.msra.mxu0 %v11152_v32 }
 0x881   : > { %5203 = vmatprep.subr.bf16.mxu0 %v11157_v10 }
 0x884   : > { %5204 = vmatpush2.bf16.msra.mxu0 %v11155_v22 }
 0x885   : > { %5205 = vmatprep.subr.bf16.mxu0 %v11160_v27 }
 0x888   : > { %5206 = vmatpush2.bf16.msra.mxu0 %v11158_v12 }
 0x889   : > { %5207 = vmatprep.subr.bf16.mxu0 %v11163_v6 }
 0x88c   : > { %5208 = vmatpush2.bf16.msra.mxu0 %v11161_v18 }
 0x88d   : > { %5209 = vmatprep.subr.bf16.mxu0 %v11166_v48 }
 0x890   : > { %5210 = vmatpush2.bf16.msra.mxu0 %v11164_v5 }
 0x891   : > { %5211 = vmatprep.subr.bf16.mxu0 %v11169_v23 }
 0x894   : > { %5212 = vmatpush2.bf16.msra.mxu0 %v11167_v49 }
 0x8dd   : > { %v10693_v61 = vpop.f32.mrf.mxu1 }
 0x8df   : > { %v4786_v41 = vpop.f32.mrf.mxu1 }
 0x8e0   : > { %4865 = vrot.lane.b32.xlu0 %v4786_v41, %s12647_s12 }
 0x8e1   : > { %v10694_v33 = vpop.f32.mrf.mxu1 }
 0x8e3   : > { %v4789_v50 = vpop.f32.mrf.mxu1 }
 0x8e4   : > { %3582 = vrot.lane.b32.xlu0 %v14149_v58, %s12647_s12  ;;  %4867 = vrot.lane.b32.xlu1 %v4789_v50, %s12647_s12 }
 0x8e5   : > { %v10697_v16 = vpop.f32.mrf.mxu1 }
 0x8e7   : > { %v4802_v25 = vpop.f32.mrf.mxu1 }
 0x8e8   : > { %4871 = vrot.lane.b32.xlu0 %v10694_v33, %s12647_s12  ;;  %3580 = vrot.lane.b32.xlu1 %v14144_v17, %s12647_s12 }
 0x8e9   : > { %v10698_v63 = vpop.f32.mrf.mxu1 }
 0x8eb   : > { %v4805_v7 = vpop.f32.mrf.mxu1 }
 0x8ec   : > { %3586 = vrot.lane.b32.xlu0 %v14146_v8, %s12647_s12  ;;  %4869 = vrot.lane.b32.xlu1 %v10693_v61, %s12647_s12 }
 0x8f0   : > { %3584 = vrot.lane.b32.xlu1 %v14140_v11, %s12647_s12  ;;  %4875 = vrot.lane.b32.xlu0 %v4805_v7, %s12647_s12 }
 0x8f4   : > { %4873 = vrot.lane.b32.xlu1 %v4802_v25, %s12647_s12  ;;  %3590 = vrot.lane.b32.xlu0 %v14157_v43, %s12647_s12 }
 0x8f8   : > { %3588 = vrot.lane.b32.xlu1 %v14153_v44, %s12647_s12  ;;  %4879 = vrot.lane.b32.xlu0 %v10698_v63, %s12647_s12 }
 0x8fc   : > { %4877 = vrot.lane.b32.xlu1 %v10697_v16, %s12647_s12  ;;  %3594 = vrot.lane.b32.xlu0 %v14155_v59, %s12647_s12 }
 0x900   : > { %3592 = vrot.lane.b32.xlu1 %v14151_v1, %s12647_s12 }
 0x91b   : > { %v10701_v11 = vpop.f32.mrf.mxu1 }
 0x91d   : > { %v4818_v17 = vpop.f32.mrf.mxu1 }
 0x91e   : > { %4881 = vrot.lane.b32.xlu1 %v4818_v17, %s12647_s12 }
 0x91f   : > { %v10702_v8 = vpop.f32.mrf.mxu1 }
 0x921   : > { %v4821_v58 = vpop.f32.mrf.mxu1 }
 0x922   : > { %3596 = vrot.lane.b32.xlu1 %v14161_v26, %s12647_s12  ;;  %4883 = vrot.lane.b32.xlu0 %v4821_v58, %s12647_s12 }
 0x925   : > { %v10705_v44 = vpop.f32.mrf.mxu1 }
 0x926   : > { %4885 = vrot.lane.b32.xlu1 %v10701_v11, %s12647_s12  ;;  %3598 = vrot.lane.b32.xlu0 %v14165_v35, %s12647_s12 }
 0x927   : > { %v4834_v59 = vpop.f32.mrf.mxu1 }
 0x929   : > { %v10706_v1 = vpop.f32.mrf.mxu1 }
 0x92a   : > { %3600 = vrot.lane.b32.xlu1 %v14159_v2, %s12647_s12  ;;  %4887 = vrot.lane.b32.xlu0 %v10702_v8, %s12647_s12 }
 0x92b   : > { %v4837_v43 = vpop.f32.mrf.mxu1 }
 0x92e   : > { %3602 = vrot.lane.b32.xlu0 %v14163_v28, %s12647_s12  ;;  %4889 = vrot.lane.b32.xlu1 %v4834_v59, %s12647_s12 }
 0x932   : > { %3604 = vrot.lane.b32.xlu1 %v14169_v60, %s12647_s12  ;;  %4891 = vrot.lane.b32.xlu0 %v4837_v43, %s12647_s12 }
 0x936   : > { %4893 = vrot.lane.b32.xlu1 %v10705_v44, %s12647_s12  ;;  %3606 = vrot.lane.b32.xlu0 %v14173_v13, %s12647_s12 }
 0x93a   : > { %3608 = vrot.lane.b32.xlu1 %v14167_v34, %s12647_s12  ;;  %4895 = vrot.lane.b32.xlu0 %v10706_v1, %s12647_s12 }
 0x93e   : > { %3610 = vrot.lane.b32.xlu0 %v14171_v57, %s12647_s12 }
 0x952   : > { %v4866_v2 = vpop.permute.xlu0 %4865 }
 0x953   : > { %4913 = vst.msk [vmem:[#allocation3 + $0x8] sm:$0xff] %vm3628_vm1, %v4866_v2 }
 0x956   : > { %v4868_v26 = vpop.permute.xlu1 %4867  ;;  %v3583_v28 = vpop.permute.xlu0 %3582 }
 0x957   : > { %4914 = vst.msk [vmem:[#allocation3 + $0x18] sm:$0xff] %vm3628_vm1, %v4868_v26  ;;  %3630 = vst.msk [vmem:[#allocation3 + $0x10] sm:$0xff] %vm3628_vm1, %v3583_v28 }
 0x95a   : > { %v3581_v35 = vpop.permute.xlu1 %3580  ;;  %v4872_v60 = vpop.permute.xlu0 %4871  ;;  %v4930_v54 = vld [vmem:[#allocation3 + $0x8] sm:$0xff] }
 0x95b   : > { %3629 = vst.msk [vmem:[#allocation3] sm:$0xff] %vm3628_vm1, %v3581_v35  ;;  %4916 = vst.msk [vmem:[#allocation3 + $0x38] sm:$0xff] %vm3628_vm1, %v4872_v60 }
 0x95e   : > { %v4870_v34 = vpop.permute.xlu1 %4869  ;;  %v3587_v13 = vpop.permute.xlu0 %3586  ;;  %v4932_v57 = vld [vmem:[#allocation3 + $0x18] sm:$0xff]  ;;  %v4931_v14 = vld [vmem:[#allocation3 + $0x10] sm:$0xff] }
 0x95f   : > { %4915 = vst.msk [vmem:[#allocation3 + $0x28] sm:$0xff] %vm3628_vm1, %v4870_v34  ;;  %3632 = vst.msk [vmem:[#allocation3 + $0x30] sm:$0xff] %vm3628_vm1, %v3587_v13  ;;  %v4962_v51 = vpack.c.bf16 %v4932_v57, %v4930_v54 }
 0x961   : > { %5213 = vmatprep.mubr.bf16.mxu0 %v4962_v51 }
 0x962   : > { %v3585_v42 = vpop.permute.xlu1 %3584  ;;  %v4876_v52 = vpop.permute.xlu0 %4875  ;;  %v4929_v36 = vld [vmem:[#allocation3] sm:$0xff]  ;;  %v4936_v15 = vld [vmem:[#allocation3 + $0x38] sm:$0xff] }
 0x963   : > { %3631 = vst.msk [vmem:[#allocation3 + $0x20] sm:$0xff] %vm3628_vm1, %v3585_v42  ;;  %4918 = vst.msk [vmem:[#allocation3 + $0x58] sm:$0xff] %vm3628_vm1, %v4876_v52  ;;  %v4961_v20 = vpack.c.bf16 %v4931_v14, %v4929_v36 }
 0x965   : > { %5214 = vmatmul.mubr.bf16.vlgmr.msra.gmra.mxu0 %v4961_v20 }
 0x966   : > { %v4874_v31 = vpop.permute.xlu1 %4873  ;;  %v3591_v40 = vpop.permute.xlu0 %3590  ;;  %v4934_v38 = vld [vmem:[#allocation3 + $0x28] sm:$0xff]  ;;  %v4935_v53 = vld [vmem:[#allocation3 + $0x30] sm:$0xff] }
 0x967   : > { %4917 = vst.msk [vmem:[#allocation3 + $0x48] sm:$0xff] %vm3628_vm1, %v4874_v31  ;;  %3634 = vst.msk [vmem:[#allocation3 + $0x50] sm:$0xff] %vm3628_vm1, %v3591_v40  ;;  %v4964_v21 = vpack.c.bf16 %v4936_v15, %v4934_v38  ;;  %v5774_v40 = vld [vmem:[#allocation18 + $0x1c0] sm:$0xff]  ;;  %v5775_v15 = vld [vmem:[#allocation18 + $0x1c8] sm:$0xff] }
 0x968   : > { %v5778_v38 = vld [vmem:[#allocation18 + $0x1e0] sm:$0xff] }
 0x969   : > { %5223 = vmatprep.mubr.bf16.mxu0 %v4964_v21  ;;  %v9939_v21 = vcombine.low %v5774_v40, %v5778_v38 }
 0x96a   : > { %v3589_v4 = vpop.permute.xlu1 %3588  ;;  %v4880_v55 = vpop.permute.xlu0 %4879  ;;  %v4933_v45 = vld [vmem:[#allocation3 + $0x20] sm:$0xff]  ;;  %v4940_v46 = vld [vmem:[#allocation3 + $0x58] sm:$0xff] }
 0x96b   : > { %3633 = vst.msk [vmem:[#allocation3 + $0x40] sm:$0xff] %vm3628_vm1, %v3589_v4  ;;  %4920 = vst.msk [vmem:[#allocation3 + $0x78] sm:$0xff] %vm3628_vm1, %v4880_v55  ;;  %v4963_v39 = vpack.c.bf16 %v4935_v53, %v4933_v45  ;;  %v9940_v4 = vcombine.high %v5774_v40, %v5778_v38  ;;  %v5779_v55 = vld [vmem:[#allocation18 + $0x1e8] sm:$0xff]  ;;  %v5766_v45 = vld [vmem:[#allocation18 + $0x180] sm:$0xff] }
 0x96c   : > { %v5770_v53 = vld [vmem:[#allocation18 + $0x1a0] sm:$0xff] }
 0x96d   : > { %5224 = vmatmul.mubr.bf16.gmra.mxu0 %v4963_v39  ;;  %v9941_v39 = vcombine.low %v5775_v15, %v5779_v55  ;;  %6528 = vmatprep.subr.bf16.mxu1 %v9940_v4  ;;  %v12243_v4 = vld [vmem:[%s12973_s8 + $0x8] sm:$0xff] }
 0x96e   : > { %v4878_v29 = vpop.permute.xlu1 %4877  ;;  %v3595_v9 = vpop.permute.xlu0 %3594  ;;  %v4938_v19 = vld [vmem:[#allocation3 + $0x48] sm:$0xff]  ;;  %v4939_v0 = vld [vmem:[#allocation3 + $0x50] sm:$0xff]  ;;  %6529 = vmatpush1.bf16.msra.mxu1 %v9939_v21 }
 0x96f   : > { %4919 = vst.msk [vmem:[#allocation3 + $0x68] sm:$0xff] %vm3628_vm1, %v4878_v29  ;;  %3636 = vst.msk [vmem:[#allocation3 + $0x70] sm:$0xff] %vm3628_vm1, %v3595_v9  ;;  %v4966_v56 = vpack.c.bf16 %v4940_v46, %v4938_v19  ;;  %v9942_v29 = vcombine.high %v5775_v15, %v5779_v55  ;;  %v9932_v9 = vcombine.high %v5766_v45, %v5770_v53  ;;  %v5767_v19 = vld [vmem:[#allocation18 + $0x188] sm:$0xff]  ;;  %v12242_v15 = vld [vmem:[%s12973_s8] sm:$0xff] }
 0x970   : > { %v5771_v46 = vld [vmem:[#allocation18 + $0x1a8] sm:$0xff] }
 0x971   : > { %5233 = vmatprep.mubr.bf16.mxu0 %v4966_v56  ;;  %v5758_v56 = vld [vmem:[#allocation18 + $0x140] sm:$0xff]  ;;  %6641 = vmatprep.subr.bf16.mxu0 %v9942_v29 }
 0x972   : > { %v3593_v47 = vpop.permute.xlu1 %3592  ;;  %v4937_v3 = vld [vmem:[#allocation3 + $0x40] sm:$0xff]  ;;  %v4944_v37 = vld [vmem:[#allocation3 + $0x78] sm:$0xff]  ;;  %6642 = vmatpush1.bf16.msra.mxu0 %v9941_v39  ;;  %6530 = vmatprep.subr.bf16.mxu1 %v9932_v9  ;;  %v12244_v39 = vld [vmem:[%s12973_s8 + $0x10] sm:$0xff] }
 0x973   : > { %3635 = vst.msk [vmem:[#allocation3 + $0x60] sm:$0xff] %vm3628_vm1, %v3593_v47  ;;  %v4965_v62 = vpack.c.bf16 %v4939_v0, %v4937_v3  ;;  %v9934_v47 = vcombine.high %v5767_v19, %v5771_v46  ;;  %v5762_v3 = vld [vmem:[#allocation18 + $0x160] sm:$0xff]  ;;  %v5759_v0 = vld [vmem:[#allocation18 + $0x148] sm:$0xff] }
 0x975   : > { %5234 = vmatmul.mubr.bf16.gmra.mxu0 %v4965_v62  ;;  %v5763_v62 = vld [vmem:[#allocation18 + $0x168] sm:$0xff]  ;;  %6643 = vmatprep.subr.bf16.mxu0 %v9934_v47 }
 0x976   : > { %v4942_v30 = vld [vmem:[#allocation3 + $0x68] sm:$0xff]  ;;  %v4943_v10 = vld [vmem:[#allocation3 + $0x70] sm:$0xff] }
 0x977   : > { %v4968_v24 = vpack.c.bf16 %v4944_v37, %v4942_v30  ;;  %v9931_v30 = vcombine.low %v5766_v45, %v5770_v53  ;;  %v9933_v37 = vcombine.low %v5767_v19, %v5771_v46 }
 0x979   : > { %5243 = vmatprep.mubr.bf16.mxu0 %v4968_v24  ;;  %v9924_v24 = vcombine.high %v5758_v56, %v5762_v3  ;;  %6531 = vmatpush1.bf16.msra.mxu1 %v9931_v30 }
 0x97a   : > { %v4941_v32 = vld [vmem:[#allocation3 + $0x60] sm:$0xff]  ;;  %6644 = vmatpush1.bf16.msra.mxu0 %v9933_v37 }
 0x97b   : > { %v4967_v22 = vpack.c.bf16 %v4943_v10, %v4941_v32  ;;  %v9926_v32 = vcombine.high %v5759_v0, %v5763_v62  ;;  %v5750_v10 = vld [vmem:[#allocation18 + $0x100] sm:$0xff]  ;;  %6532 = vmatprep.subr.bf16.mxu1 %v9924_v24 }
 0x97d   : > { %5244 = vmatmul.mubr.bf16.gmra.mxu0 %v4967_v22  ;;  %v5754_v22 = vld [vmem:[#allocation18 + $0x120] sm:$0xff]  ;;  %6645 = vmatprep.subr.bf16.mxu0 %v9926_v32 }
 0x990   : > { %v4882_v27 = vpop.permute.xlu1 %4881 }
 0x991   : > { %4921 = vst.msk [vmem:[#allocation3 + $0x88] sm:$0xff] %vm3628_vm1, %v4882_v27  ;;  %v5751_v27 = vld [vmem:[#allocation18 + $0x108] sm:$0xff] }
 0x994   : > { %v3597_v12 = vpop.permute.xlu1 %3596  ;;  %v4884_v6 = vpop.permute.xlu0 %4883 }
 0x995   : > { %3637 = vst.msk [vmem:[#allocation3 + $0x80] sm:$0xff] %vm3628_vm1, %v3597_v12  ;;  %4922 = vst.msk [vmem:[#allocation3 + $0x98] sm:$0xff] %vm3628_vm1, %v4884_v6  ;;  %v5755_v12 = vld [vmem:[#allocation18 + $0x128] sm:$0xff]  ;;  %v9923_v6 = vcombine.low %v5758_v56, %v5762_v3  ;;  %v12245_v56 = vld [vmem:[%s12973_s8 + $0x18] sm:$0xff] }
 0x997   : > { %6533 = vmatpush1.bf16.msra.mxu1 %v9923_v6  ;;  %v12246_v6 = vld [vmem:[%s12973_s8 + $0x28] sm:$0xff] }
 0x998   : > { %v4886_v18 = vpop.permute.xlu1 %4885  ;;  %v3599_v48 = vpop.permute.xlu0 %3598  ;;  %v4946_v41 = vld [vmem:[#allocation3 + $0x88] sm:$0xff] }
 0x999   : > { %4923 = vst.msk [vmem:[#allocation3 + $0xa8] sm:$0xff] %vm3628_vm1, %v4886_v18  ;;  %3638 = vst.msk [vmem:[#allocation3 + $0x90] sm:$0xff] %vm3628_vm1, %v3599_v48  ;;  %v9925_v18 = vcombine.low %v5759_v0, %v5763_v62  ;;  %v9916_v48 = vcombine.high %v5750_v10, %v5754_v22 }
 0x99b   : > { %6646 = vmatpush1.bf16.msra.mxu0 %v9925_v18  ;;  %6534 = vmatprep.subr.bf16.mxu1 %v9916_v48 }
 0x99c   : > { %v3601_v5 = vpop.permute.xlu1 %3600  ;;  %v4888_v61 = vpop.permute.xlu0 %4887  ;;  %v4948_v23 = vld [vmem:[#allocation3 + $0x98] sm:$0xff]  ;;  %v4945_v16 = vld [vmem:[#allocation3 + $0x80] sm:$0xff] }
 0x99d   : > { %3639 = vst.msk [vmem:[#allocation3 + $0xa0] sm:$0xff] %vm3628_vm1, %v3601_v5  ;;  %4924 = vst.msk [vmem:[#allocation3 + $0xb8] sm:$0xff] %vm3628_vm1, %v4888_v61  ;;  %v4970_v33 = vpack.c.bf16 %v4948_v23, %v4946_v41  ;;  %v9918_v5 = vcombine.high %v5751_v27, %v5755_v12  ;;  %v5742_v61 = vld [vmem:[#allocation18 + $0xc0] sm:$0xff]  ;;  %v5743_v23 = vld [vmem:[#allocation18 + $0xc8] sm:$0xff] }
 0x99e   : > { %v5746_v41 = vld [vmem:[#allocation18 + $0xe0] sm:$0xff] }
 0x99f   : > { %5253 = vmatprep.mubr.bf16.mxu0 %v4970_v33  ;;  %v5747_v33 = vld [vmem:[#allocation18 + $0xe8] sm:$0xff]  ;;  %6647 = vmatprep.subr.bf16.mxu0 %v9918_v5 }
 0x9a0   : > { %v4890_v49 = vpop.permute.xlu1 %4889  ;;  %v3603_v50 = vpop.permute.xlu0 %3602  ;;  %v4947_v25 = vld [vmem:[#allocation3 + $0x90] sm:$0xff]  ;;  %v4950_v17 = vld [vmem:[#allocation3 + $0xa8] sm:$0xff] }
 0x9a1   : > { %4925 = vst.msk [vmem:[#allocation3 + $0xc8] sm:$0xff] %vm3628_vm1, %v4890_v49  ;;  %3640 = vst.msk [vmem:[#allocation3 + $0xb0] sm:$0xff] %vm3628_vm1, %v3603_v50  ;;  %v4969_v63 = vpack.c.bf16 %v4947_v25, %v4945_v16  ;;  %v9915_v49 = vcombine.low %v5750_v10, %v5754_v22  ;;  %v9917_v50 = vcombine.low %v5751_v27, %v5755_v12 }
 0x9a2   : > { %v9908_v16 = vcombine.high %v5742_v61, %v5746_v41  ;;  %v9910_v25 = vcombine.high %v5743_v23, %v5747_v33 }
 0x9a3   : > { %5254 = vmatmul.mubr.bf16.gmra.mxu0 %v4969_v63  ;;  %v5734_v63 = vld [vmem:[#allocation18 + $0x80] sm:$0xff]  ;;  %6535 = vmatpush1.bf16.msra.mxu1 %v9915_v49  ;;  %v12248_v49 = vld [vmem:[%s12973_s8 + $0x30] sm:$0xff] }
 0x9a4   : > { %v3605_v7 = vpop.permute.xlu1 %3604  ;;  %v4892_v11 = vpop.permute.xlu0 %4891  ;;  %v4952_v8 = vld [vmem:[#allocation3 + $0xb8] sm:$0xff]  ;;  %v4949_v1 = vld [vmem:[#allocation3 + $0xa0] sm:$0xff]  ;;  %6648 = vmatpush1.bf16.msra.mxu0 %v9917_v50  ;;  %6536 = vmatprep.subr.bf16.mxu1 %v9908_v16 }
 0x9a5   : > { %3641 = vst.msk [vmem:[#allocation3 + $0xc0] sm:$0xff] %vm3628_vm1, %v3605_v7  ;;  %4926 = vst.msk [vmem:[#allocation3 + $0xd8] sm:$0xff] %vm3628_vm1, %v4892_v11  ;;  %v4972_v58 = vpack.c.bf16 %v4952_v8, %v4950_v17  ;;  %v5738_v7 = vld [vmem:[#allocation18 + $0xa0] sm:$0xff]  ;;  %v5735_v11 = vld [vmem:[#allocation18 + $0x88] sm:$0xff]  ;;  %v9907_v8 = vcombine.low %v5742_v61, %v5746_v41  ;;  %6649 = vmatprep.subr.bf16.mxu0 %v9910_v25 }
 0x9a6   : > { %v5739_v17 = vld [vmem:[#allocation18 + $0xa8] sm:$0xff]  ;;  %v12247_v41 = vld [vmem:[%s12973_s8 + $0x20] sm:$0xff]  ;;  %v12249_v16 = vld [vmem:[%s12973_s8 + $0x38] sm:$0xff] }
 0x9a7   : > { %5263 = vmatprep.mubr.bf16.mxu0 %v4972_v58  ;;  %v9909_v58 = vcombine.low %v5743_v23, %v5747_v33  ;;  %6537 = vmatpush1.bf16.msra.mxu1 %v9907_v8 }
 0x9a8   : > { %v4894_v44 = vpop.permute.xlu1 %4893  ;;  %v3607_v59 = vpop.permute.xlu0 %3606  ;;  %v4951_v43 = vld [vmem:[#allocation3 + $0xb0] sm:$0xff]  ;;  %v4954_v35 = vld [vmem:[#allocation3 + $0xc8] sm:$0xff] }
 0x9a9   : > { %4927 = vst.msk [vmem:[#allocation3 + $0xe8] sm:$0xff] %vm3628_vm1, %v4894_v44  ;;  %3642 = vst.msk [vmem:[#allocation3 + $0xd0] sm:$0xff] %vm3628_vm1, %v3607_v59  ;;  %v4971_v2 = vpack.c.bf16 %v4951_v43, %v4949_v1  ;;  %v9900_v44 = vcombine.high %v5734_v63, %v5738_v7  ;;  %v9902_v59 = vcombine.high %v5735_v11, %v5739_v17  ;;  %v5726_v1 = vld [vmem:[#allocation18 + $0x40] sm:$0xff]  ;;  %6650 = vmatpush1.bf16.msra.mxu0 %v9909_v58 }
 0x9aa   : > { %v5730_v43 = vld [vmem:[#allocation18 + $0x60] sm:$0xff] }
 0x9ab   : > { %5264 = vmatmul.mubr.bf16.gmra.mxu0 %v4971_v2  ;;  %v5009_v2 = vld [vmem:[#allocation13] sm:$0x3]  ;;  %6538 = vmatprep.subr.bf16.mxu1 %v9900_v44 }
 0x9ac   : > { %v3609_v26 = vpop.permute.xlu1 %3608  ;;  %v4896_v28 = vpop.permute.xlu0 %4895  ;;  %v4956_v60 = vld [vmem:[#allocation3 + $0xd8] sm:$0xff]  ;;  %v4953_v54 = vld [vmem:[#allocation3 + $0xc0] sm:$0xff]  ;;  %6651 = vmatprep.subr.bf16.mxu0 %v9902_v59 }
 0x9ad   : > { %3643 = vst.msk [vmem:[#allocation3 + $0xe0] sm:$0xff] %vm3628_vm1, %v3609_v26  ;;  %4928 = vst.msk [vmem:[#allocation3 + $0xf8] sm:$0xff] %vm3628_vm1, %v4896_v28  ;;  %v4974_v34 = vpack.c.bf16 %v4956_v60, %v4954_v35  ;;  %v5727_v26 = vld [vmem:[#allocation18 + $0x48] sm:$0xff]  ;;  %v9899_v35 = vcombine.low %v5734_v63, %v5738_v7  ;;  %v9901_v60 = vcombine.low %v5735_v11, %v5739_v17 }
 0x9ae   : > { %v5731_v28 = vld [vmem:[#allocation18 + $0x68] sm:$0xff] }
 0x9af   : > { %5273 = vmatprep.mubr.bf16.mxu0 %v4974_v34  ;;  %v9892_v34 = vcombine.high %v5726_v1, %v5730_v43  ;;  %6539 = vmatpush1.bf16.msra.mxu1 %v9899_v35  ;;  %v5719_v35 = vld [vmem:[#allocation18 + $0x8] sm:$0xff] }
 0x9b0   : > { %v3611_v13 = vpop.permute.xlu0 %3610  ;;  %v4955_v57 = vld [vmem:[#allocation3 + $0xd0] sm:$0xff]  ;;  %v4958_v42 = vld [vmem:[#allocation3 + $0xe8] sm:$0xff]  ;;  %6652 = vmatpush1.bf16.msra.mxu0 %v9901_v60 }
 0x9b1   : > { %3644 = vst.msk [vmem:[#allocation3 + $0xf0] sm:$0xff] %vm3628_vm1, %v3611_v13  ;;  %v4973_v51 = vpack.c.bf16 %v4955_v57, %v4953_v54  ;;  %v16571_v13 = vld [vmem:[#allocation35_spill] sm:$0xff]  ;;  %v9894_v57 = vcombine.high %v5727_v26, %v5731_v28  ;;  %6540 = vmatprep.subr.bf16.mxu1 %v9892_v34  ;;  %v12250_v60 = vld [vmem:[%s12973_s8 + $0x48] sm:$0xff] }
 0x9b2   : > { %v14420_v54 = vrot.slane %v5009_v2, %v16571_v13 }
 0x9b3   : > { %5274 = vmatmul.mubr.bf16.gmra.mxu0 %v4973_v51  ;;  %v16572_v51 = vld [vmem:[#allocation34_spill] sm:$0xff]  ;;  %6653 = vmatprep.subr.bf16.mxu0 %v9894_v57 }
 0x9b4   : > { %v4960_v52 = vld [vmem:[#allocation3 + $0xf8] sm:$0xff]  ;;  %v4957_v14 = vld [vmem:[#allocation3 + $0xe0] sm:$0xff] }
 0x9b5   : > { %v4976_v36 = vpack.c.bf16 %v4960_v52, %v4958_v42  ;;  %v14423_v42 = vrot.slane %v5009_v2, %v16572_v51  ;;  %v9891_v52 = vcombine.low %v5726_v1, %v5730_v43 }
 0x9b7   : > { %5283 = vmatprep.mubr.bf16.mxu0 %v4976_v36  ;;  %6541 = vmatpush1.bf16.msra.mxu1 %v9891_v52 }
 0x9b8   : > { %v4959_v20 = vld [vmem:[#allocation3 + $0xf0] sm:$0xff] }
 0x9b9   : > { %v4975_v31 = vpack.c.bf16 %v4959_v20, %v4957_v14  ;;  %v9893_v14 = vcombine.low %v5727_v26, %v5731_v28  ;;  %v5718_v26 = vld [vmem:[#allocation18] sm:$0xff] }
 0x9ba   : > { %v5722_v28 = vld [vmem:[#allocation18 + $0x20] sm:$0xff] }
 0x9bb   : > { %5284 = vmatmul.mubr.bf16.gmra.mxu0 %v4975_v31  ;;  %v9883_v52 = vcombine.low %v5718_v26, %v5722_v28 }
 0x9bc   : > { %6654 = vmatpush1.bf16.msra.mxu0 %v9893_v14  ;;  %v5723_v14 = vld [vmem:[#allocation18 + $0x28] sm:$0xff] }
 0xa25   : > { %v5215_v36 = vpop.f32.mrf.mxu0 }
 0xa26   : > { %v5216_v20 = vadd.f32 %v5215_v36, %v14420_v54  ;;  %v9884_v36 = vcombine.high %v5718_v26, %v5722_v28 }
 0xa27   : > { %v5217_v31 = vpop.f32.mrf.mxu0 }
 0xa28   : > { %v5218_v40 = vadd.f32 %v5217_v31, %v14423_v42  ;;  %v14428_v21 = vadd.f32 %v12242_v15, %v5216_v20  ;;  %6542 = vmatprep.subr.bf16.mxu1 %v9884_v36 }
 0xa29   : > { %v5219_v38 = vpop.f32.mrf.mxu0  ;;  %6543 = vmatpush1.bf16.msra.mxu1 %v9883_v52 }
 0xa2a   : > { %16573 = vst [vmem:[#allocation41_spill] sm:$0xff] %v14428_v21  ;;  %v14431_v55 = vadd.f32 %v12243_v4, %v5218_v40  ;;  %v5220_v45 = vadd.f32 %v5219_v38, %v14420_v54  ;;  %v5392_v12 = vmul.f32 %v14428_v21, %v14428_v21  ;;  %v12251_v38 = vld [vmem:[%s12973_s8 + $0x40] sm:$0xff] }
 0xa2b   : > { %v5221_v53 = vpop.f32.mrf.mxu0 }
 0xa2c   : > { %16574 = vst [vmem:[#allocation38_spill] sm:$0xff] %v14431_v55  ;;  %v14435_v29 = vadd.f32 %v12244_v39, %v5220_v45  ;;  %v5222_v9 = vadd.f32 %v5221_v53, %v14423_v42  ;;  %v5328_v19 = vadd.f32 %v14431_v55, %v14428_v21  ;;  %v5393_v0 = vmul.f32 %v14431_v55, %v14431_v55  ;;  %v12252_v39 = vld [vmem:[%s12973_s8 + $0x50] sm:$0xff] }
 0xa2d   : > { %v5225_v46 = vpop.f32.mrf.mxu0  ;;  %v9885_v45 = vcombine.low %v5719_v35, %v5723_v14  ;;  %v9886_v53 = vcombine.high %v5719_v35, %v5723_v14 }
 0xa2e   : > { %16575 = vst [vmem:[#allocation40_spill] sm:$0xff] %v14435_v29  ;;  %v14441_v47 = vadd.f32 %v12245_v56, %v5222_v9  ;;  %5329 = vadd.xlane.f32.xlu1 %v5328_v19  ;;  %v5394_v37 = vmul.f32 %v14435_v29, %v14435_v29  ;;  %v5226_v32 = vadd.f32 %v5225_v46, %v14420_v54  ;;  %v12253_v19 = vld [vmem:[%s12973_s8 + $0x58] sm:$0xff]  ;;  %v5838_v56 = vld [vmem:[#allocation18 + $0x3c0] sm:$0xff] }
 0xa2f   : > { %v5227_v3 = vpop.f32.mrf.mxu0  ;;  %v5424_v61 = vadd.f32 %v5393_v0, %v5392_v12  ;;  %v5839_v0 = vld [vmem:[#allocation18 + $0x3c8] sm:$0xff]  ;;  %6655 = vmatprep.subr.bf16.mxu0 %v9886_v53  ;;  %v5822_v53 = vld [vmem:[#allocation18 + $0x340] sm:$0xff] }
 0xa30   : > { %16576 = vst [vmem:[#allocation37_spill] sm:$0xff] %v14441_v47  ;;  %v5228_v62 = vadd.f32 %v5227_v3, %v14423_v42  ;;  %v5331_v30 = vadd.f32 %v14441_v47, %v14435_v29  ;;  %v5395_v24 = vmul.f32 %v14441_v47, %v14441_v47  ;;  %v14461_v23 = vadd.f32 %v12247_v41, %v5226_v32  ;;  %v5842_v3 = vld [vmem:[#allocation18 + $0x3e0] sm:$0xff]  ;;  %v5843_v32 = vld [vmem:[#allocation18 + $0x3e8] sm:$0xff] }
 0xa31   : > { %v5229_v10 = vpop.f32.mrf.mxu0  ;;  %6656 = vmatpush1.bf16.msra.mxu0 %v9885_v45  ;;  %v5835_v45 = vld [vmem:[#allocation18 + $0x3a8] sm:$0xff] }
 0xa32   : > { %v5230_v22 = vadd.f32 %v5229_v10, %v14420_v54  ;;  %5332 = vadd.xlane.f32.xlu0 %v5331_v30  ;;  %v5427_v27 = vadd.f32 %v5395_v24, %v5394_v37  ;;  %v14457_v18 = vadd.f32 %v12246_v6, %v5228_v62  ;;  %16578 = vst [vmem:[#allocation43_spill] sm:$0xff] %v14461_v23 }
 0xa33   : > { %v5231_v48 = vpop.f32.mrf.mxu0  ;;  %v5396_v2 = vmul.f32 %v14461_v23, %v14461_v23  ;;  %v10003_v37 = vcombine.low %v5838_v56, %v5842_v3  ;;  %v10004_v24 = vcombine.high %v5838_v56, %v5842_v3 }
 0xa34   : > { %16577 = vst [vmem:[#allocation42_spill] sm:$0xff] %v14457_v18  ;;  %v5232_v5 = vadd.f32 %v5231_v48, %v14423_v42  ;;  %5428 = vadd.xlane.f32.xlu1 %v5427_v27  ;;  %v14464_v50 = vadd.f32 %v12248_v49, %v5230_v22  ;;  %v5334_v7 = vadd.f32 %v14457_v18, %v14461_v23 }
 0xa35   : > { %v5235_v33 = vpop.f32.mrf.mxu0  ;;  %v5397_v58 = vmul.f32 %v14457_v18, %v14457_v18  ;;  %6544 = vmatprep.subr.bf16.mxu1 %v10004_v24  ;;  %v5818_v24 = vld [vmem:[#allocation18 + $0x320] sm:$0xff] }
 0xa36   : > { %16579 = vst [vmem:[#allocation46_spill] sm:$0xff] %v14464_v50  ;;  %v14467_v25 = vadd.f32 %v12249_v16, %v5232_v5  ;;  %5425 = vadd.xlane.f32.xlu0 %v5424_v61  ;;  %v5236_v44 = vadd.f32 %v5235_v33, %v14420_v54  ;;  %v5398_v43 = vmul.f32 %v14464_v50, %v14464_v50 }
 0xa37   : > { %v5237_v63 = vpop.f32.mrf.mxu0  ;;  %v5430_v40 = vadd.f32 %v5397_v58, %v5396_v2  ;;  %v10005_v5 = vcombine.low %v5839_v0, %v5843_v32  ;;  %v10006_v61 = vcombine.high %v5839_v0, %v5843_v32  ;;  %6545 = vmatpush2.bf16.msra.mxu1 %v10003_v37  ;;  %v12255_v58 = vld [vmem:[%s12973_s8 + $0x60] sm:$0xff]  ;;  %v5823_v0 = vld [vmem:[#allocation18 + $0x348] sm:$0xff] }
 0xa38   : > { %16580 = vst [vmem:[#allocation44_spill] sm:$0xff] %v14467_v25  ;;  %v5238_v11 = vadd.f32 %v5237_v63, %v14423_v42  ;;  %v5337_v17 = vadd.f32 %v14467_v25, %v14464_v50  ;;  %v5399_v8 = vmul.f32 %v14467_v25, %v14467_v25  ;;  %v14489_v15 = vadd.f32 %v12251_v38, %v5236_v44  ;;  %v12254_v63 = vld [vmem:[%s12973_s8 + $0x68] sm:$0xff]  ;;  %v5815_v32 = vld [vmem:[#allocation18 + $0x308] sm:$0xff] }
 0xa39   : > { %v5239_v59 = vpop.f32.mrf.mxu0  ;;  %6657 = vmatprep.subr.bf16.mxu0 %v10006_v61  ;;  %v5807_v61 = vld [vmem:[#allocation18 + $0x2c8] sm:$0xff] }
 0xa3a   : > { %v5240_v1 = vadd.f32 %v5239_v59, %v14420_v54  ;;  %5338 = vadd.xlane.f32.xlu1 %v5337_v17  ;;  %5335 = vadd.xlane.f32.xlu0 %v5334_v7  ;;  %v14485_v34 = vadd.f32 %v12250_v60, %v5238_v11  ;;  %v5433_v31 = vadd.f32 %v5399_v8, %v5398_v43  ;;  %v12256_v59 = vld [vmem:[%s12973_s8 + $0x70] sm:$0xff]  ;;  %v12257_v43 = vld [vmem:[%s12973_s8 + $0x78] sm:$0xff] }
 0xa3b   : > { %v5241_v57 = vpop.f32.mrf.mxu0  ;;  %16582 = vst [vmem:[#allocation47_spill] sm:$0xff] %v14489_v15  ;;  %v5400_v48 = vmul.f32 %v14489_v15, %v14489_v15  ;;  %6658 = vmatpush2.bf16.msra.mxu0 %v10005_v5  ;;  %v5810_v5 = vld [vmem:[#allocation18 + $0x2e0] sm:$0xff] }
 0xa3c   : > { %16581 = vst [vmem:[#allocation45_spill] sm:$0xff] %v14485_v34  ;;  %v5242_v20 = vadd.f32 %v5241_v57, %v14423_v42  ;;  %v14492_v9 = vadd.f32 %v12252_v39, %v5240_v1  ;;  %v5340_v30 = vadd.f32 %v14485_v34, %v14489_v15  ;;  %v5401_v12 = vmul.f32 %v14485_v34, %v14485_v34  ;;  %v5826_v39 = vld [vmem:[#allocation18 + $0x360] sm:$0xff] }
 0xa3d   : > { %v5245_v4 = vpop.f32.mrf.mxu0  ;;  %v9988_v3 = vcombine.high %v5822_v53, %v5826_v39 }
 0xa3e   : > { %16583 = vst [vmem:[#allocation39_spill] sm:$0xff] %v14492_v9  ;;  %v14495_v46 = vadd.f32 %v12253_v19, %v5242_v20  ;;  %5434 = vadd.xlane.f32.xlu1 %v5433_v31  ;;  %5431 = vadd.xlane.f32.xlu0 %v5430_v40  ;;  %v5246_v41 = vadd.f32 %v5245_v4, %v14420_v54  ;;  %v5830_v20 = vld [vmem:[#allocation18 + $0x380] sm:$0xff]  ;;  %v5831_v40 = vld [vmem:[#allocation18 + $0x388] sm:$0xff] }
 0xa3f   : > { %v5247_v62 = vpop.f32.mrf.mxu0  ;;  %v5402_v49 = vmul.f32 %v14492_v9, %v14492_v9  ;;  %v5436_v8 = vadd.f32 %v5401_v12, %v5400_v48  ;;  %v5834_v31 = vld [vmem:[#allocation18 + $0x3a0] sm:$0xff]  ;;  %v9997_v19 = vcombine.low %v5831_v40, %v5835_v45  ;;  %v9998_v56 = vcombine.high %v5831_v40, %v5835_v45  ;;  %v5795_v40 = vld [vmem:[#allocation18 + $0x268] sm:$0xff] }
 0xa40   : > { %16584 = vst [vmem:[#allocation36_spill] sm:$0xff] %v14495_v46  ;;  %v5248_v10 = vadd.f32 %v5247_v62, %v14423_v42  ;;  %v5343_v22 = vadd.f32 %v14495_v46, %v14492_v9  ;;  %v5403_v27 = vmul.f32 %v14495_v46, %v14495_v46  ;;  %v14517_v44 = vadd.f32 %v12255_v58, %v5246_v41  ;;  %v5827_v62 = vld [vmem:[#allocation18 + $0x368] sm:$0xff]  ;;  %v5806_v48 = vld [vmem:[#allocation18 + $0x2c0] sm:$0xff] }
 0xa41   : > { %v5249_v6 = vpop.f32.mrf.mxu0  ;;  %v9995_v38 = vcombine.low %v5830_v20, %v5834_v31  ;;  %v9996_v4 = vcombine.high %v5830_v20, %v5834_v31  ;;  %v9990_v37 = vcombine.high %v5823_v0, %v5827_v62  ;;  %6659 = vmatprep.subr.bf16.mxu0 %v9998_v56  ;;  %v5811_v41 = vld [vmem:[#allocation18 + $0x2e8] sm:$0xff] }
 0xa42   : > { %v5250_v33 = vadd.f32 %v5249_v6, %v14420_v54  ;;  %5344 = vadd.xlane.f32.xlu1 %v5343_v22  ;;  %5341 = vadd.xlane.f32.xlu0 %v5340_v30  ;;  %v14513_v7 = vadd.f32 %v12254_v63, %v5248_v10  ;;  %v5439_v17 = vadd.f32 %v5403_v27, %v5402_v49  ;;  %v5814_v30 = vld [vmem:[#allocation18 + $0x300] sm:$0xff]  ;;  %v5819_v10 = vld [vmem:[#allocation18 + $0x328] sm:$0xff] }
 0xa43   : > { %v5251_v16 = vpop.f32.mrf.mxu0  ;;  %16586 = vst [vmem:[#allocation49_spill] sm:$0xff] %v14517_v44  ;;  %v5404_v52 = vmul.f32 %v14517_v44, %v14517_v44  ;;  %6546 = vmatprep.subr.bf16.mxu1 %v9996_v4  ;;  %v9987_v22 = vcombine.low %v5822_v53, %v5826_v39  ;;  %6660 = vmatpush2.bf16.msra.mxu0 %v9997_v19  ;;  %v5803_v58 = vld [vmem:[#allocation18 + $0x2a8] sm:$0xff]  ;;  %v12258_v53 = vld [vmem:[%s12973_s8 + $0x80] sm:$0xff]  ;;  %v12259_v19 = vld [vmem:[%s12973_s8 + $0x88] sm:$0xff] }
 0xa44   : > { %16585 = vst [vmem:[#allocation48_spill] sm:$0xff] %v14513_v7  ;;  %v5252_v11 = vadd.f32 %v5251_v16, %v14423_v42  ;;  %v14520_v1 = vadd.f32 %v12256_v59, %v5250_v33  ;;  %v5346_v28 = vadd.f32 %v14513_v7, %v14517_v44  ;;  %v5405_v60 = vmul.f32 %v14513_v7, %v14513_v7  ;;  %v5791_v31 = vld [vmem:[#allocation18 + $0x248] sm:$0xff] }
 0xa45   : > { %6547 = vmatpush2.bf16.msra.mxu1 %v9995_v38  ;;  %v9989_v27 = vcombine.low %v5823_v0, %v5827_v62  ;;  %v9980_v12 = vcombine.high %v5814_v30, %v5818_v24  ;;  %6661 = vmatprep.subr.bf16.mxu0 %v9990_v37  ;;  %v9982_v6 = vcombine.high %v5815_v32, %v5819_v10  ;;  %v5782_v0 = vld [vmem:[#allocation18 + $0x200] sm:$0xff] }
 0xa46   : > { %16587 = vst [vmem:[#allocation50_spill] sm:$0xff] %v14520_v1  ;;  %v14523_v2 = vadd.f32 %v12257_v43, %v5252_v11  ;;  %5440 = vadd.xlane.f32.xlu1 %v5439_v17  ;;  %5437 = vadd.xlane.f32.xlu0 %v5436_v8  ;;  %v5406_v57 = vmul.f32 %v14520_v1, %v14520_v1  ;;  %v5798_v11 = vld [vmem:[#allocation18 + $0x280] sm:$0xff]  ;;  %v5799_v8 = vld [vmem:[#allocation18 + $0x288] sm:$0xff] }
 0xa47   : > { %v5442_v14 = vadd.f32 %v5405_v60, %v5404_v52  ;;  %6548 = vmatprep.subr.bf16.mxu1 %v9988_v3  ;;  %v9979_v33 = vcombine.low %v5814_v30, %v5818_v24  ;;  %6662 = vmatpush2.bf16.msra.mxu0 %v9989_v27  ;;  %v9981_v49 = vcombine.low %v5815_v32, %v5819_v10  ;;  %v5802_v17 = vld [vmem:[#allocation18 + $0x2a0] sm:$0xff]  ;;  %v5783_v27 = vld [vmem:[#allocation18 + $0x208] sm:$0xff] }
 0xa48   : > { %16588 = vst [vmem:[#allocation51_spill] sm:$0xff] %v14523_v2  ;;  %v5349_v26 = vadd.f32 %v14523_v2, %v14520_v1  ;;  %v5407_v35 = vmul.f32 %v14523_v2, %v14523_v2  ;;  %v9972_v16 = vcombine.high %v5806_v48, %v5810_v5  ;;  %6663 = vmatprep.subr.bf16.mxu0 %v9982_v6  ;;  %v5794_v52 = vld [vmem:[#allocation18 + $0x260] sm:$0xff]  ;;  %v12260_v6 = vld [vmem:[%s12973_s8 + $0x90] sm:$0xff] }
 0xa49   : > { %6549 = vmatpush2.bf16.msra.mxu1 %v9987_v22  ;;  %v9974_v63 = vcombine.high %v5807_v61, %v5811_v41  ;;  %v9971_v59 = vcombine.low %v5806_v48, %v5810_v5  ;;  %v9966_v60 = vcombine.high %v5799_v8, %v5803_v58  ;;  %v9963_v20 = vcombine.low %v5798_v11, %v5802_v17  ;;  %v5786_v62 = vld [vmem:[#allocation18 + $0x220] sm:$0xff] }
 0xa4a   : > { %5350 = vadd.xlane.f32.xlu1 %v5349_v26  ;;  %5347 = vadd.xlane.f32.xlu0 %v5346_v28  ;;  %v5445_v36 = vadd.f32 %v5407_v35, %v5406_v57  ;;  %v9973_v26 = vcombine.low %v5807_v61, %v5811_v41  ;;  %v9964_v28 = vcombine.high %v5798_v11, %v5802_v17  ;;  %v5790_v57 = vld [vmem:[#allocation18 + $0x240] sm:$0xff] }
 0xa4b   : > { %6550 = vmatprep.subr.bf16.mxu1 %v9980_v12  ;;  %6664 = vmatpush2.bf16.msra.mxu0 %v9981_v49  ;;  %v9965_v4 = vcombine.low %v5799_v8, %v5803_v58  ;;  %v9956_v45 = vcombine.high %v5790_v57, %v5794_v52  ;;  %v9958_v37 = vcombine.high %v5791_v31, %v5795_v40  ;;  %v5787_v12 = vld [vmem:[#allocation18 + $0x228] sm:$0xff] }
 0xa4c   : > { %6665 = vmatprep.subr.bf16.mxu0 %v9974_v63  ;;  %v9955_v22 = vcombine.low %v5790_v57, %v5794_v52  ;;  %v9957_v61 = vcombine.low %v5791_v31, %v5795_v40  ;;  %v9948_v41 = vcombine.high %v5782_v0, %v5786_v62  ;;  %v9947_v17 = vcombine.low %v5782_v0, %v5786_v62  ;;  %v12262_v57 = vld [vmem:[%s12973_s8 + $0xa0] sm:$0xff]  ;;  %v12265_v0 = vld [vmem:[%s12973_s8 + $0xb8] sm:$0xff] }
 0xa4d   : > { %6551 = vmatpush2.bf16.msra.mxu1 %v9979_v33  ;;  %v12261_v33 = vld [vmem:[%s12973_s8 + $0x98] sm:$0xff]  ;;  %v9950_v8 = vcombine.high %v5783_v27, %v5787_v12 }
 0xa4e   : > { %5446 = vadd.xlane.f32.xlu1 %v5445_v36  ;;  %5443 = vadd.xlane.f32.xlu0 %v5442_v14 }
 0xa4f   : > { %6552 = vmatprep.subr.bf16.mxu1 %v9972_v16  ;;  %6666 = vmatpush2.bf16.msra.mxu0 %v9973_v26 }
 0xa50   : > { %6667 = vmatprep.subr.bf16.mxu0 %v9966_v60  ;;  %v9949_v60 = vcombine.low %v5783_v27, %v5787_v12 }
 0xa51   : > { %6553 = vmatpush2.bf16.msra.mxu1 %v9971_v59 }
 0xa52   : > { %6554 = vmatprep.subr.bf16.mxu1 %v9964_v28 }
 0xa53   : > { %6668 = vmatpush2.bf16.msra.mxu0 %v9965_v4 }
 0xa54   : > { %6669 = vmatprep.subr.bf16.mxu0 %v9958_v37 }
 0xa55   : > { %6555 = vmatpush2.bf16.msra.mxu1 %v9963_v20 }
 0xa56   : > { %6556 = vmatprep.subr.bf16.mxu1 %v9956_v45 }
 0xa57   : > { %6670 = vmatpush2.bf16.msra.mxu0 %v9957_v61 }
 0xa58   : > { %6671 = vmatprep.subr.bf16.mxu0 %v9950_v8 }
 0xa59   : > { %6557 = vmatpush2.bf16.msra.mxu1 %v9955_v22 }
 0xa5a   : > { %6558 = vmatprep.subr.bf16.mxu1 %v9948_v41  ;;  %v12267_v41 = vld [vmem:[%s12973_s8 + $0xc8] sm:$0xff] }
 0xa5b   : > { %6672 = vmatpush2.bf16.msra.mxu0 %v9949_v60 }
 0xa5d   : > { %6559 = vmatpush2.bf16.msra.mxu1 %v9947_v17 }
 0xa63   : > { %v5255_v43 = vpop.f32.mrf.mxu0 }
 0xa64   : > { %v5256_v35 = vadd.f32 %v5255_v43, %v14420_v54 }
 0xa65   : > { %v5257_v36 = vpop.f32.mrf.mxu0 }
 0xa66   : > { %v5258_v14 = vadd.f32 %v5257_v36, %v14423_v42  ;;  %v14540_v39 = vadd.f32 %v12258_v53, %v5256_v35  ;;  %v12263_v36 = vld [vmem:[%s12973_s8 + $0xa8] sm:$0xff]  ;;  %v12264_v53 = vld [vmem:[%s12973_s8 + $0xb0] sm:$0xff] }
 0xa67   : > { %v5259_v38 = vpop.f32.mrf.mxu0 }
 0xa68   : > { %16589 = vst [vmem:[#allocation52_spill] sm:$0xff] %v14540_v39  ;;  %v14543_v56 = vadd.f32 %v12259_v19, %v5258_v14  ;;  %v5260_v3 = vadd.f32 %v5259_v38, %v14420_v54  ;;  %v5408_v63 = vmul.f32 %v14540_v39, %v14540_v39 }
 0xa69   : > { %v5261_v30 = vpop.f32.mrf.mxu0 }
 0xa6a   : > { %16590 = vst [vmem:[#allocation53_spill] sm:$0xff] %v14543_v56  ;;  %v5262_v24 = vadd.f32 %v5261_v30, %v14423_v42  ;;  %v5352_v32 = vadd.f32 %v14543_v56, %v14540_v39  ;;  %v5409_v10 = vmul.f32 %v14543_v56, %v14543_v56  ;;  %v14552_v48 = vadd.f32 %v12260_v6, %v5260_v3 }
 0xa6b   : > { %v5265_v5 = vpop.f32.mrf.mxu0 }
 0xa6c   : > { %16591 = vst [vmem:[#allocation54_spill] sm:$0xff] %v14552_v48  ;;  %v14555_v49 = vadd.f32 %v12261_v33, %v5262_v24  ;;  %v5266_v16 = vadd.f32 %v5265_v5, %v14420_v54  ;;  %5353 = vadd.xlane.f32.xlu0 %v5352_v32  ;;  %v5448_v43 = vadd.f32 %v5409_v10, %v5408_v63  ;;  %v12266_v5 = vld [vmem:[%s12973_s8 + $0xc0] sm:$0xff] }
 0xa6d   : > { %v5267_v11 = vpop.f32.mrf.mxu0  ;;  %v5410_v35 = vmul.f32 %v14552_v48, %v14552_v48 }
 0xa6e   : > { %16592 = vst [vmem:[#allocation55_spill] sm:$0xff] %v14555_v49  ;;  %v5268_v58 = vadd.f32 %v5267_v11, %v14423_v42  ;;  %v5355_v59 = vadd.f32 %v14555_v49, %v14552_v48  ;;  %v5411_v26 = vmul.f32 %v14555_v49, %v14555_v49  ;;  %v14568_v52 = vadd.f32 %v12262_v57, %v5266_v16 }
 0xa6f   : > { %v5269_v28 = vpop.f32.mrf.mxu0 }
 0xa70   : > { %16593 = vst [vmem:[#allocation56_spill] sm:$0xff] %v14568_v52  ;;  %v14571_v14 = vadd.f32 %v12263_v36, %v5268_v58  ;;  %v5270_v20 = vadd.f32 %v5269_v28, %v14420_v54  ;;  %5356 = vadd.xlane.f32.xlu1 %v5355_v59  ;;  %5449 = vadd.xlane.f32.xlu0 %v5448_v43  ;;  %v12268_v59 = vld [vmem:[%s12973_s8 + $0xd0] sm:$0xff]  ;;  %v12269_v28 = vld [vmem:[%s12973_s8 + $0xd8] sm:$0xff] }
 0xa71   : > { %v5271_v31 = vpop.f32.mrf.mxu0  ;;  %v5451_v38 = vadd.f32 %v5411_v26, %v5410_v35  ;;  %v5412_v37 = vmul.f32 %v14568_v52, %v14568_v52 }
 0xa72   : > { %16594 = vst [vmem:[#allocation57_spill] sm:$0xff] %v14571_v14  ;;  %v5272_v40 = vadd.f32 %v5271_v31, %v14423_v42  ;;  %v5358_v4 = vadd.f32 %v14571_v14, %v14568_v52  ;;  %v5413_v45 = vmul.f32 %v14571_v14, %v14571_v14  ;;  %v14580_v19 = vadd.f32 %v12264_v53, %v5270_v20  ;;  %v12270_v53 = vld [vmem:[%s12973_s8 + $0xe0] sm:$0xff] }
 0xa73   : > { %v5275_v3 = vpop.f32.mrf.mxu0 }
 0xa74   : > { %16595 = vst [vmem:[#allocation58_spill] sm:$0xff] %v14580_v19  ;;  %v14583_v62 = vadd.f32 %v12265_v0, %v5272_v40  ;;  %v5276_v30 = vadd.f32 %v5275_v3, %v14420_v54  ;;  %5452 = vadd.xlane.f32.xlu1 %v5451_v38  ;;  %5359 = vadd.xlane.f32.xlu0 %v5358_v4  ;;  %v12271_v0 = vld [vmem:[%s12973_s8 + $0xe8] sm:$0xff] }
 0xa75   : > { %v5277_v24 = vpop.f32.mrf.mxu0  ;;  %v5454_v22 = vadd.f32 %v5413_v45, %v5412_v37  ;;  %v5414_v6 = vmul.f32 %v14580_v19, %v14580_v19 }
 0xa76   : > { %16596 = vst [vmem:[#allocation59_spill] sm:$0xff] %v14583_v62  ;;  %v5278_v32 = vadd.f32 %v5277_v24, %v14423_v42  ;;  %v5361_v10 = vadd.f32 %v14583_v62, %v14580_v19  ;;  %v5415_v27 = vmul.f32 %v14583_v62, %v14583_v62  ;;  %v14596_v61 = vadd.f32 %v12266_v5, %v5276_v30  ;;  %v14630_v24 = vld [vmem:[#allocation18 + $0x1d0] sm:$0xff] }
 0xa77   : > { %v5279_v12 = vpop.f32.mrf.mxu0 }
 0xa78   : > { %16597 = vst [vmem:[#allocation60_spill] sm:$0xff] %v14596_v61  ;;  %v14599_v33 = vadd.f32 %v12267_v41, %v5278_v32  ;;  %v5280_v16 = vadd.f32 %v5279_v12, %v14420_v54  ;;  %5362 = vadd.xlane.f32.xlu1 %v5361_v10  ;;  %5455 = vadd.xlane.f32.xlu0 %v5454_v22  ;;  %v14632_v32 = vld [vmem:[#allocation18 + $0x1f0] sm:$0xff]  ;;  %v14634_v10 = vld [vmem:[#allocation18 + $0x1d8] sm:$0xff] }
 0xa79   : > { %v5281_v63 = vpop.f32.mrf.mxu0  ;;  %v5457_v17 = vadd.f32 %v5415_v27, %v5414_v6  ;;  %v5416_v57 = vmul.f32 %v14596_v61, %v14596_v61  ;;  %v9944_v12 = vcombine.high %v14630_v24, %v14632_v32  ;;  %v14640_v6 = vld [vmem:[#allocation18 + $0x1f8] sm:$0xff] }
 0xa7a   : > { %16598 = vst [vmem:[#allocation61_spill] sm:$0xff] %v14599_v33  ;;  %v5282_v11 = vadd.f32 %v5281_v63, %v14423_v42  ;;  %v5364_v8 = vadd.f32 %v14599_v33, %v14596_v61  ;;  %v5417_v58 = vmul.f32 %v14599_v33, %v14599_v33  ;;  %v14608_v43 = vadd.f32 %v12268_v59, %v5280_v16  ;;  %v5327_v63 = vld [vmem:[#allocation16] sm:$0x3] }
 0xa7b   : > { %v5285_v26 = vpop.f32.mrf.mxu0  ;;  %6754 = vmatprep.subr.bf16.mxu1 %v9944_v12 }
 0xa7c   : > { %16599 = vst [vmem:[#allocation62_spill] sm:$0xff] %v14608_v43  ;;  %v14611_v35 = vadd.f32 %v12269_v28, %v5282_v11  ;;  %v5286_v60 = vadd.f32 %v5285_v26, %v14420_v54  ;;  %5458 = vadd.xlane.f32.xlu1 %v5457_v17  ;;  %5365 = vadd.xlane.f32.xlu0 %v5364_v8  ;;  %v12272_v17 = vld [vmem:[%s12973_s8 + $0xf0] sm:$0xff] }
 0xa7d   : > { %v5287_v36 = vpop.f32.mrf.mxu0  ;;  %v5460_v40 = vadd.f32 %v5417_v58, %v5416_v57  ;;  %v5418_v45 = vmul.f32 %v14608_v43, %v14608_v43  ;;  %v9946_v11 = vcombine.high %v14634_v10, %v14640_v6  ;;  %v12273_v58 = vld [vmem:[%s12973_s8 + $0xf8] sm:$0xff]  ;;  %s9378_s8 = sshll.u32 %s16248_s6, 4  ;;  %s16345_s8 = int_to_ptr.vmem [resolvable:$true] %s9378_s8 }
 0xa7e   : > { %16600 = vst [vmem:[#allocation63_spill] sm:$0xff] %v14611_v35  ;;  %v5288_v20 = vadd.f32 %v5287_v36, %v14423_v42  ;;  %v5367_v31 = vadd.f32 %v14611_v35, %v14608_v43  ;;  %v5419_v38 = vmul.f32 %v14611_v35, %v14611_v35  ;;  %v14624_v3 = vadd.f32 %v12270_v53, %v5286_v60  ;;  %s12539_s23 = scalar_lea.vmem %s16345_s8, 4096  ;;  %p12546_p8 = scmp.lt.s32.totalorder %s16345_s8, %s12544_s10 }
 0xa7f   : > { %v5289_v4 = vpop.f32.mrf.mxu0  ;;  %6867 = vmatprep.subr.bf16.mxu0 %v9946_v11  ;;  %p12540_p2 = scmp.ne.s32.totalorder %s16345_s8, %s12539_s23  ;;  %p12547_p10 = scmp.lt.s32.totalorder %s12545_s22, %s12539_s23 }
 0xa80   : > { %16601 = vst [vmem:[#allocation64_spill] sm:$0xff] %v14624_v3  ;;  %v14627_v30 = vadd.f32 %v12271_v0, %v5288_v20  ;;  %v5290_v37 = vadd.f32 %v5289_v4, %v14420_v54  ;;  %5368 = vadd.xlane.f32.xlu1 %v5367_v31  ;;  %5461 = vadd.xlane.f32.xlu0 %v5460_v40 }
 0xa81   : > { %v5291_v22 = vpop.f32.mrf.mxu0  ;;  %v5463_v5 = vadd.f32 %v5419_v38, %v5418_v45  ;;  %p12541_p1 = pnand %p12540_p2, %p16709_p5  ;;  %p12548_p3 = por %p12547_p10, %p12546_p8 }
 0xa82   : > { %16602 = vst [vmem:[#allocation65_spill] sm:$0xff] %v14627_v30  ;;  %v5292_v54 = vadd.f32 %v5291_v22, %v14423_v42  ;;  %v5370_v41 = vadd.f32 %v14627_v30, %v14624_v3  ;;  %v5421_v16 = vmul.f32 %v14627_v30, %v14627_v30  ;;  %v14652_v8 = vadd.f32 %v12272_v17, %v5290_v37 }
 0xa83   : > { %v5420_v42 = vmul.f32 %v14624_v3, %v14624_v3  ;;  %p12542_p7 = pneg %p12541_p1 }
 0xa84   : > { %16603 = vst [vmem:[#allocation66_spill] sm:$0xff] %v14652_v8  ;;  %v14655_v59 = vadd.f32 %v12273_v58, %v5292_v54  ;;  %5464 = vadd.xlane.f32.xlu1 %v5463_v5  ;;  %5371 = vadd.xlane.f32.xlu0 %v5370_v41  ;;  %v5422_v57 = vmul.f32 %v14652_v8, %v14652_v8 }
 0xa85   : > { %v5466_v28 = vadd.f32 %v5421_v16, %v5420_v42  ;;  %p12549_p4 = pnand %p12548_p3, %p12542_p7 }
 0xa86   : > { %16604 = vst [vmem:[#allocation67_spill] sm:$0xff] %v14655_v59  ;;  %v5373_v26 = vadd.f32 %v14655_v59, %v14652_v8  ;;  %v5423_v60 = vmul.f32 %v14655_v59, %v14655_v59 }
 0xa88   : > { %5374 = vadd.xlane.f32.xlu1 %v5373_v26  ;;  %5467 = vadd.xlane.f32.xlu0 %v5466_v28  ;;  %v5469_v36 = vadd.f32 %v5423_v60, %v5422_v57 }
 0xa8c   : > { %5470 = vadd.xlane.f32.xlu1 %v5469_v36 }
 0xab7   : > { %v5330_v20 = vpop.xlane.xlu1 %5329 }
 0xab8   : > { %v5376_v40 = vmul.f32 0.00390625, %v5330_v20 }
 0xaba   : > { %v5488_v22 = vmul.f32 %v5376_v40, %v5376_v40 }
 0xabb   : > { %v5333_v31 = vpop.xlane.xlu0 %5332 }
 0xabc   : > { %v5377_v38 = vmul.f32 0.00390625, %v5333_v31 }
 0xabd   : > { %v5429_v4 = vpop.xlane.xlu1 %5428 }
 0xabe   : > { %v5473_v45 = vmul.f32 0.00390625, %v5429_v4  ;;  %v5489_v53 = vmul.f32 %v5377_v38, %v5377_v38 }
 0xabf   : > { %v5426_v0 = vpop.xlane.xlu0 %5425 }
 0xac0   : > { %v5505_v37 = vsub.f32 %v5473_v45, %v5489_v53  ;;  %v5472_v12 = vmul.f32 0.00390625, %v5426_v0 }
 0xac2   : > { %v5553_v54 = vadd.f32 1e-05, %v5505_v37  ;;  %v5504_v5 = vsub.f32 %v5472_v12, %v5488_v22  ;;  %v5326_v12 = vld [vmem:[#allocation15] sm:$0x3] }
 0xac3   : > { %v5339_v41 = vpop.xlane.xlu1 %5338  ;;  %v5336_v16 = vpop.xlane.xlu0 %5335 }
 0xac4   : > { %11650 = vrsqrt.f32 %v5553_v54  ;;  %v5552_v11 = vadd.f32 1e-05, %v5504_v5  ;;  %v14665_v17 = vmul.f32 0.00390625, %v5339_v41  ;;  %v14667_v58 = vmul.f32 0.00390625, %v5336_v16 }
 0xac5   : > { %v5522_v54 = vsub.f32 %v14435_v29, %v5377_v38 }
 0xac6   : > { %11652 = vrsqrt.f32 %v5552_v11  ;;  %v5491_v28 = vmul.f32 %v14665_v17, %v14665_v17  ;;  %v5490_v57 = vmul.f32 %v14667_v58, %v14667_v58 }
 0xac7   : > { %v5435_v42 = vpop.xlane.xlu1 %5434  ;;  %v5432_v26 = vpop.xlane.xlu0 %5431 }
 0xac8   : > { %v5475_v60 = vmul.f32 0.00390625, %v5435_v42  ;;  %v5474_v36 = vmul.f32 0.00390625, %v5432_v26 }
 0xaca   : > { %v5507_v20 = vsub.f32 %v5475_v60, %v5491_v28  ;;  %v5506_v31 = vsub.f32 %v5474_v36, %v5490_v57  ;;  %v5523_v60 = vsub.f32 %v14441_v47, %v5377_v38  ;;  %v14684_v57 = vrot.slane %v5326_v12, %v16571_v13 }
 0xacb   : > { %v5345_v4 = vpop.xlane.xlu1 %5344  ;;  %v5342_v45 = vpop.xlane.xlu0 %5341  ;;  %v5520_v36 = vsub.f32 %v14428_v21, %v5376_v40  ;;  %v5769_v21 = vld [vmem:[#allocation18 + $0x198] sm:$0xff] }
 0xacc   : > { %v5555_v53 = vadd.f32 1e-05, %v5507_v20  ;;  %v5554_v0 = vadd.f32 1e-05, %v5506_v31  ;;  %v14673_v37 = vmul.f32 0.00390625, %v5345_v4  ;;  %v14675_v22 = vmul.f32 0.00390625, %v5342_v45 }
 0xace   : > { %11654 = vrsqrt.f32 %v5555_v53  ;;  %v5493_v16 = vmul.f32 %v14673_v37, %v14673_v37  ;;  %v5492_v42 = vmul.f32 %v14675_v22, %v14675_v22  ;;  %v5521_v53 = vsub.f32 %v14431_v55, %v5376_v40 }
 0xacf   : > { %11656 = vrsqrt.f32 %v5554_v0  ;;  %v5441_v5 = vpop.xlane.xlu1 %5440  ;;  %v5438_v41 = vpop.xlane.xlu0 %5437 }
 0xad0   : > { %v5477_v11 = vmul.f32 0.00390625, %v5441_v5  ;;  %v5476_v26 = vmul.f32 0.00390625, %v5438_v41  ;;  %v14689_v41 = vrot.slane %v5326_v12, %v16572_v51  ;;  %v14702_v12 = vrot.slane %v5327_v63, %v16571_v13 }
 0xad1   : > { %v11651_v28 = vpop.eup %11650 }
 0xad2   : > { %v5586_v20 = vmul.f32 %v11651_v28, %v5522_v54  ;;  %v5509_v31 = vsub.f32 %v5477_v11, %v5493_v16  ;;  %v5508_v4 = vsub.f32 %v5476_v26, %v5492_v42  ;;  %v5587_v27 = vmul.f32 %v11651_v28, %v5523_v60  ;;  %v14695_v16 = vld [vmem:[#allocation18 + $0x190] sm:$0xff] }
 0xad3   : > { %v11653_v45 = vpop.eup %11652  ;;  %v5351_v0 = vpop.xlane.xlu1 %5350  ;;  %v14697_v11 = vld [vmem:[#allocation18 + $0x1b0] sm:$0xff] }
 0xad4   : > { %v5348_v5 = vpop.xlane.xlu0 %5347  ;;  %v5584_v29 = vmul.f32 %v11653_v45, %v5520_v36  ;;  %v5557_v38 = vadd.f32 1e-05, %v5509_v31  ;;  %v5556_v47 = vadd.f32 1e-05, %v5508_v4  ;;  %v14691_v59 = vmul.f32 0.00390625, %v5351_v0 }
 0xad5   : > { %v14693_v8 = vmul.f32 0.00390625, %v5348_v5  ;;  %v5585_v54 = vmul.f32 %v11653_v45, %v5521_v53  ;;  %v5629_v40 = vmul.f32 %v14684_v57, %v5586_v20  ;;  %v5630_v60 = vmul.f32 %v14689_v41, %v5587_v27 }
 0xad6   : > { %v5627_v42 = vmul.f32 %v14684_v57, %v5584_v29  ;;  %11658 = vrsqrt.f32 %v5557_v38  ;;  %v14706_v36 = vrot.slane %v5327_v63, %v16572_v51  ;;  %v5526_v31 = vsub.f32 %v14464_v50, %v14665_v17 }
 0xad7   : > { %11660 = vrsqrt.f32 %v5556_v47  ;;  %v5447_v26 = vpop.xlane.xlu1 %5446  ;;  %v5495_v20 = vmul.f32 %v14691_v59, %v14691_v59  ;;  %v9936_v29 = vcombine.high %v14695_v16, %v14697_v11  ;;  %v5494_v47 = vmul.f32 %v14693_v8, %v14693_v8 }
 0xad8   : > { %v5444_v28 = vpop.xlane.xlu0 %5443  ;;  %v5479_v4 = vmul.f32 0.00390625, %v5447_v26  ;;  %v5628_v53 = vmul.f32 %v14689_v41, %v5585_v54  ;;  %v5670_v27 = vadd.f32 %v14702_v12, %v5627_v42  ;;  %v5527_v63 = vsub.f32 %v14467_v25, %v14665_v17  ;;  %v5773_v42 = vld [vmem:[#allocation18 + $0x1b8] sm:$0xff] }
 0xad9   : > { %v5478_v45 = vmul.f32 0.00390625, %v5444_v28  ;;  %v5524_v0 = vsub.f32 %v14461_v23, %v14667_v58  ;;  %v5672_v38 = vadd.f32 %v14702_v12, %v5629_v40  ;;  %v5525_v50 = vsub.f32 %v14457_v18, %v14667_v58 }
 0xada   : > { %v5511_v5 = vsub.f32 %v5479_v4, %v5495_v20  ;;  %v5671_v28 = vadd.f32 %v14706_v36, %v5628_v53  ;;  %v5673_v54 = vadd.f32 %v14706_v36, %v5630_v60  ;;  %v5764_v53 = vld [vmem:[#allocation18 + $0x170] sm:$0xff] }
 0xadb   : > { %v11655_v26 = vpop.eup %11654  ;;  %v5510_v55 = vsub.f32 %v5478_v45, %v5494_v47  ;;  %v14727_v17 = vpack.c.bf16 %v5672_v38, %v5670_v27  ;;  %v9938_v45 = vcombine.high %v5769_v21, %v5773_v42  ;;  %v5530_v38 = vsub.f32 %v14492_v9, %v14673_v37 }
 0xadc   : > { %v11657_v51 = vpop.eup %11656  ;;  %v5559_v13 = vadd.f32 1e-05, %v5511_v5  ;;  %v5591_v25 = vmul.f32 %v11655_v26, %v5527_v63  ;;  %v5590_v23 = vmul.f32 %v11655_v26, %v5526_v31  ;;  %v14729_v4 = vpack.c.bf16 %v5673_v54, %v5671_v28  ;;  %v14766_v28 = vld [vmem:[#allocation18 + $0x130] sm:$0xff] }
 0xadd   : > { %v5558_v20 = vadd.f32 1e-05, %v5510_v55  ;;  %v5589_v40 = vmul.f32 %v11657_v51, %v5525_v50  ;;  %v5588_v30 = vmul.f32 %v11657_v51, %v5524_v0  ;;  %v14737_v55 = vld [vmem:[#allocation18 + $0x150] sm:$0xff]  ;;  %v5761_v50 = vld [vmem:[#allocation18 + $0x158] sm:$0xff]  ;;  %v16605_v63 = vcombine.low %v14630_v24, %v14632_v32 }
 0xade   : > { %11662 = vrsqrt.f32 %v5559_v13  ;;  %v5634_v58 = vmul.f32 %v14689_v41, %v5591_v25  ;;  %v5633_v47 = vmul.f32 %v14684_v57, %v5590_v23  ;;  %6560 = vmatprep.mubr.bf16.mxu1 %v14729_v4  ;;  %6673 = vmatprep.mubr.bf16.mxu0 %v14729_v4  ;;  %v9935_v23 = vcombine.low %v14695_v16, %v14697_v11  ;;  %v5765_v25 = vld [vmem:[#allocation18 + $0x178] sm:$0xff] }
 0xadf   : > { %11664 = vrsqrt.f32 %v5558_v20  ;;  %v5632_v60 = vmul.f32 %v14689_v41, %v5589_v40  ;;  %v5631_v31 = vmul.f32 %v14684_v57, %v5588_v30  ;;  %6561 = vmatmul.mubr.bf16.vlgmr.msra.gmra.mxu1 %v14727_v17  ;;  %6674 = vmatmul.mubr.bf16.vlgmr.msra.gmra.mxu0 %v14727_v17  ;;  %v16606_v0 = vcombine.low %v14634_v10, %v14640_v6  ;;  %v14764_v6 = vld [vmem:[#allocation18 + $0x110] sm:$0xff]  ;;  %v5753_v40 = vld [vmem:[#allocation18 + $0x118] sm:$0xff] }
 0xae0   : > { %v5677_v13 = vadd.f32 %v14706_v36, %v5634_v58  ;;  %v5676_v51 = vadd.f32 %v14702_v12, %v5633_v47  ;;  %6755 = vmatpush1.bf16.msra.mxu1 %v16605_v63  ;;  %v9937_v5 = vcombine.low %v5769_v21, %v5773_v42  ;;  %v5531_v16 = vsub.f32 %v14495_v46, %v14673_v37  ;;  %v5757_v58 = vld [vmem:[#allocation18 + $0x138] sm:$0xff]  ;;  %v14911_v46 = vld [vmem:[#allocation18 + $0x210] sm:$0xff] }
 0xae1   : > { %v5675_v27 = vadd.f32 %v14706_v36, %v5632_v60  ;;  %v5674_v30 = vadd.f32 %v14702_v12, %v5631_v31  ;;  %6868 = vmatpush1.bf16.msra.mxu0 %v16606_v0  ;;  %6756 = vmatprep.subr.bf16.mxu1 %v9936_v29  ;;  %v9928_v11 = vcombine.high %v14737_v55, %v5764_v53 }
 0xae2   : > { %6869 = vmatprep.subr.bf16.mxu0 %v9938_v45  ;;  %v5528_v24 = vsub.f32 %v14489_v15, %v14675_v22  ;;  %v5529_v32 = vsub.f32 %v14485_v34, %v14675_v22  ;;  %v9930_v21 = vcombine.high %v5761_v50, %v5765_v25  ;;  %v9927_v20 = vcombine.low %v14737_v55, %v5764_v53  ;;  %v5748_v55 = vld [vmem:[#allocation18 + $0xf0] sm:$0xff] }
 0xae3   : > { %v11659_v26 = vpop.eup %11658  ;;  %v14762_v10 = vpack.c.bf16 %v5677_v13, %v5675_v27  ;;  %v14768_v37 = vpack.c.bf16 %v5676_v51, %v5674_v30  ;;  %v9929_v45 = vcombine.low %v5761_v50, %v5765_v25  ;;  %v9920_v13 = vcombine.high %v14764_v6, %v14766_v28  ;;  %v14777_v51 = vld [vmem:[#allocation18 + $0xd0] sm:$0xff]  ;;  %v5745_v50 = vld [vmem:[#allocation18 + $0xd8] sm:$0xff] }
 0xae4   : > { %v11661_v54 = vpop.eup %11660  ;;  %v5595_v29 = vmul.f32 %v11659_v26, %v5531_v16  ;;  %v5594_v42 = vmul.f32 %v11659_v26, %v5530_v38  ;;  %6757 = vmatpush1.bf16.msra.mxu1 %v9935_v23  ;;  %v9922_v30 = vcombine.high %v5753_v40, %v5757_v58  ;;  %v5749_v25 = vld [vmem:[#allocation18 + $0xf8] sm:$0xff]  ;;  %v9919_v0 = vcombine.low %v14764_v6, %v14766_v28 }
 0xae5   : > { %6570 = vmatprep.mubr.bf16.mxu1 %v14762_v10  ;;  %6683 = vmatprep.mubr.bf16.mxu0 %v14762_v10  ;;  %v5593_v22 = vmul.f32 %v11661_v54, %v5529_v32  ;;  %v5592_v47 = vmul.f32 %v11661_v54, %v5528_v24  ;;  %v9921_v16 = vcombine.low %v5753_v40, %v5757_v58 }
 0xae6   : > { %v5638_v60 = vmul.f32 %v14689_v41, %v5595_v29  ;;  %v5637_v31 = vmul.f32 %v14684_v57, %v5594_v42  ;;  %6870 = vmatpush1.bf16.msra.mxu0 %v9937_v5  ;;  %6758 = vmatprep.subr.bf16.mxu1 %v9928_v11  ;;  %v9912_v11 = vcombine.high %v14777_v51, %v5748_v55  ;;  %v5736_v29 = vld [vmem:[#allocation18 + $0x90] sm:$0xff] }
 0xae7   : > { %v5636_v53 = vmul.f32 %v14689_v41, %v5593_v22  ;;  %v5635_v27 = vmul.f32 %v14684_v57, %v5592_v47  ;;  %6871 = vmatprep.subr.bf16.mxu0 %v9930_v21  ;;  %6571 = vmatmul.mubr.bf16.gmra.mxu1 %v14768_v37  ;;  %v5534_v26 = vsub.f32 %v14520_v1, %v14691_v59  ;;  %v5740_v42 = vld [vmem:[#allocation18 + $0xb0] sm:$0xff]  ;;  %v5737_v47 = vld [vmem:[#allocation18 + $0x98] sm:$0xff] }
 0xae8   : > { %6684 = vmatmul.mubr.bf16.gmra.mxu0 %v14768_v37  ;;  %v5681_v23 = vadd.f32 %v14706_v36, %v5638_v60  ;;  %v5680_v63 = vadd.f32 %v14702_v12, %v5637_v31  ;;  %v5535_v24 = vsub.f32 %v14523_v2, %v14691_v59  ;;  %6759 = vmatpush1.bf16.msra.mxu1 %v9927_v20  ;;  %v14885_v2 = vld [vmem:[#allocation18 + $0x270] sm:$0xff] }
 0xae9   : > { %v5679_v5 = vadd.f32 %v14706_v36, %v5636_v53  ;;  %v5678_v38 = vadd.f32 %v14702_v12, %v5635_v27  ;;  %v9914_v32 = vcombine.high %v5745_v50, %v5749_v25  ;;  %v5532_v6 = vsub.f32 %v14517_v44, %v14693_v8  ;;  %6760 = vmatprep.subr.bf16.mxu1 %v9920_v13 }
 0xaea   : > { %6872 = vmatpush1.bf16.msra.mxu0 %v9929_v45  ;;  %v5533_v28 = vsub.f32 %v14513_v7, %v14693_v8  ;;  %v9911_v22 = vcombine.low %v14777_v51, %v5748_v55  ;;  %v5741_v45 = vld [vmem:[#allocation18 + $0xb8] sm:$0xff]  ;;  %v9913_v31 = vcombine.low %v5745_v50, %v5749_v25  ;;  %v9904_v27 = vcombine.high %v5736_v29, %v5740_v42 }
 0xaeb   : > { %v11663_v21 = vpop.eup %11662  ;;  %v14798_v54 = vpack.c.bf16 %v5681_v23, %v5679_v5  ;;  %6873 = vmatprep.subr.bf16.mxu0 %v9922_v30  ;;  %v14800_v58 = vpack.c.bf16 %v5680_v63, %v5678_v38  ;;  %v9906_v55 = vcombine.high %v5737_v47, %v5741_v45  ;;  %v5728_v23 = vld [vmem:[#allocation18 + $0x50] sm:$0xff]  ;;  %v5733_v5 = vld [vmem:[#allocation18 + $0x78] sm:$0xff] }
 0xaec   : > { %v11665_v40 = vpop.eup %11664  ;;  %v5599_v59 = vmul.f32 %v11663_v21, %v5535_v24  ;;  %v5598_v20 = vmul.f32 %v11663_v21, %v5534_v26  ;;  %6761 = vmatpush1.bf16.msra.mxu1 %v9919_v0  ;;  %v5732_v63 = vld [vmem:[#allocation18 + $0x70] sm:$0xff]  ;;  %v5729_v0 = vld [vmem:[#allocation18 + $0x58] sm:$0xff]  ;;  %v9905_v26 = vcombine.low %v5737_v47, %v5741_v45 }
 0xaed   : > { %6580 = vmatprep.mubr.bf16.mxu1 %v14798_v54  ;;  %6693 = vmatprep.mubr.bf16.mxu0 %v14798_v54  ;;  %v5597_v8 = vmul.f32 %v11665_v40, %v5533_v28  ;;  %v5596_v60 = vmul.f32 %v11665_v40, %v5532_v6  ;;  %v9898_v21 = vcombine.high %v5729_v0, %v5733_v5  ;;  %v5720_v6 = vld [vmem:[#allocation18 + $0x10] sm:$0xff] }
 0xaee   : > { %v5642_v13 = vmul.f32 %v14689_v41, %v5599_v59  ;;  %v5641_v53 = vmul.f32 %v14684_v57, %v5598_v20  ;;  %6874 = vmatpush1.bf16.msra.mxu0 %v9921_v16  ;;  %6762 = vmatprep.subr.bf16.mxu1 %v9912_v11  ;;  %v9903_v11 = vcombine.low %v5736_v29, %v5740_v42  ;;  %v5724_v40 = vld [vmem:[#allocation18 + $0x30] sm:$0xff]  ;;  %v5721_v59 = vld [vmem:[#allocation18 + $0x18] sm:$0xff] }
 0xaef   : > { %v5640_v30 = vmul.f32 %v14689_v41, %v5597_v8  ;;  %v5639_v51 = vmul.f32 %v14684_v57, %v5596_v60  ;;  %6875 = vmatprep.subr.bf16.mxu0 %v9914_v32  ;;  %6581 = vmatmul.mubr.bf16.gmra.mxu1 %v14800_v58  ;;  %v9896_v32 = vcombine.high %v5728_v23, %v5732_v63  ;;  %v5725_v20 = vld [vmem:[#allocation18 + $0x38] sm:$0xff]  ;;  %v5840_v60 = vld [vmem:[#allocation18 + $0x3d0] sm:$0xff] }
 0xaf0   : > { %6694 = vmatmul.mubr.bf16.gmra.mxu0 %v14800_v58  ;;  %v5685_v50 = vadd.f32 %v14706_v36, %v5642_v13  ;;  %v5684_v25 = vadd.f32 %v14702_v12, %v5641_v53  ;;  %6763 = vmatpush1.bf16.msra.mxu1 %v9911_v22  ;;  %v9895_v29 = vcombine.low %v5728_v23, %v5732_v63  ;;  %v5841_v13 = vld [vmem:[#allocation18 + $0x3d8] sm:$0xff] }
 0xaf1   : > { %v5683_v38 = vadd.f32 %v14706_v36, %v5640_v30  ;;  %v5682_v16 = vadd.f32 %v14702_v12, %v5639_v51  ;;  %6764 = vmatprep.subr.bf16.mxu1 %v9904_v27  ;;  %v9897_v42 = vcombine.low %v5729_v0, %v5733_v5  ;;  %v9888_v47 = vcombine.high %v5720_v6, %v5724_v40  ;;  %v5845_v53 = vld [vmem:[#allocation18 + $0x3f8] sm:$0xff]  ;;  %v5832_v5 = vld [vmem:[#allocation18 + $0x390] sm:$0xff] }
 0xaf2   : > { %6876 = vmatpush1.bf16.msra.mxu0 %v9913_v31  ;;  %v9890_v45 = vcombine.high %v5721_v59, %v5725_v20  ;;  %v5844_v31 = vld [vmem:[#allocation18 + $0x3f0] sm:$0xff]  ;;  %v9887_v51 = vcombine.low %v5720_v6, %v5724_v40  ;;  %v10010_v0 = vcombine.high %v5841_v13, %v5845_v53  ;;  %v10009_v40 = vcombine.low %v5841_v13, %v5845_v53 }
 0xaf3   : > { %v14815_v24 = vpack.c.bf16 %v5685_v50, %v5683_v38  ;;  %6877 = vmatprep.subr.bf16.mxu0 %v9906_v55  ;;  %v14817_v28 = vpack.c.bf16 %v5684_v25, %v5682_v16  ;;  %v9889_v25 = vcombine.low %v5721_v59, %v5725_v20  ;;  %v10008_v63 = vcombine.high %v5840_v60, %v5844_v31  ;;  %v5836_v16 = vld [vmem:[#allocation18 + $0x3b0] sm:$0xff] }
 0xaf4   : > { %6765 = vmatpush1.bf16.msra.mxu1 %v9903_v11  ;;  %v5833_v11 = vld [vmem:[#allocation18 + $0x398] sm:$0xff]  ;;  %v10007_v6 = vcombine.low %v5840_v60, %v5844_v31  ;;  %v10000_v59 = vcombine.high %v5832_v5, %v5836_v16  ;;  %v9999_v53 = vcombine.low %v5832_v5, %v5836_v16 }
 0xaf5   : > { %6590 = vmatprep.mubr.bf16.mxu1 %v14815_v24  ;;  %6703 = vmatprep.mubr.bf16.mxu0 %v14815_v24  ;;  %v5354_v22 = vpop.xlane.xlu0 %5353  ;;  %v5829_v60 = vld [vmem:[#allocation18 + $0x378] sm:$0xff] }
 0xaf6   : > { %v14821_v8 = vmul.f32 0.00390625, %v5354_v22  ;;  %6878 = vmatpush1.bf16.msra.mxu0 %v9905_v26  ;;  %6766 = vmatprep.subr.bf16.mxu1 %v9896_v32  ;;  %v5837_v26 = vld [vmem:[#allocation18 + $0x3b8] sm:$0xff] }
 0xaf7   : > { %6879 = vmatprep.subr.bf16.mxu0 %v9898_v21  ;;  %6591 = vmatmul.mubr.bf16.gmra.mxu1 %v14817_v28  ;;  %v10002_v20 = vcombine.high %v5833_v11, %v5837_v26  ;;  %v14841_v5 = vld [vmem:[#allocation18 + $0x318] sm:$0xff] }
 0xaf8   : > { %6704 = vmatmul.mubr.bf16.gmra.mxu0 %v14817_v28  ;;  %v5496_v23 = vmul.f32 %v14821_v8, %v14821_v8  ;;  %6767 = vmatpush1.bf16.msra.mxu1 %v9895_v29  ;;  %v14843_v16 = vld [vmem:[#allocation18 + $0x338] sm:$0xff] }
 0xaf9   : > { %v5357_v27 = vpop.xlane.xlu1 %5356  ;;  %v5450_v30 = vpop.xlane.xlu0 %5449  ;;  %6768 = vmatprep.subr.bf16.mxu1 %v9888_v47  ;;  %v5824_v47 = vld [vmem:[#allocation18 + $0x350] sm:$0xff] }
 0xafa   : > { %v14825_v55 = vmul.f32 0.00390625, %v5357_v27  ;;  %v5480_v50 = vmul.f32 0.00390625, %v5450_v30  ;;  %6880 = vmatpush1.bf16.msra.mxu0 %v9897_v42  ;;  %v5828_v30 = vld [vmem:[#allocation18 + $0x370] sm:$0xff] }
 0xafb   : > { %6881 = vmatprep.subr.bf16.mxu0 %v9890_v45 }
 0xafc   : > { %v5512_v38 = vsub.f32 %v5480_v50, %v5496_v23  ;;  %v5497_v27 = vmul.f32 %v14825_v55, %v14825_v55  ;;  %6769 = vmatpush1.bf16.msra.mxu1 %v9887_v51  ;;  %v5825_v23 = vld [vmem:[#allocation18 + $0x358] sm:$0xff]  ;;  %v10001_v50 = vcombine.low %v5833_v11, %v5837_v26 }
 0xafd   : > { %v5453_v32 = vpop.xlane.xlu1 %5452  ;;  %v5360_v21 = vpop.xlane.xlu0 %5359  ;;  %6770 = vmatprep.subr.bf16.mxu1 %v10008_v63  ;;  %v9992_v63 = vcombine.high %v5824_v47, %v5828_v30 }
 0xafe   : > { %v5560_v22 = vadd.f32 1e-05, %v5512_v38  ;;  %v5481_v29 = vmul.f32 0.00390625, %v5453_v32  ;;  %v14831_v42 = vmul.f32 0.00390625, %v5360_v21  ;;  %6882 = vmatpush1.bf16.msra.mxu0 %v9889_v25  ;;  %v14837_v21 = vld [vmem:[#allocation18 + $0x310] sm:$0xff] }
 0xaff   : > { %6883 = vmatprep.subr.bf16.mxu0 %v10010_v0  ;;  %v9994_v0 = vcombine.high %v5825_v23, %v5829_v60 }
 0xb00   : > { %11666 = vrsqrt.f32 %v5560_v22  ;;  %v5513_v45 = vsub.f32 %v5481_v29, %v5497_v27  ;;  %v5498_v51 = vmul.f32 %v14831_v42, %v14831_v42  ;;  %6771 = vmatpush2.bf16.msra.mxu1 %v10007_v6  ;;  %v14839_v27 = vld [vmem:[#allocation18 + $0x330] sm:$0xff]  ;;  %v9991_v29 = vcombine.low %v5824_v47, %v5828_v30 }
 0xb01   : > { %v5363_v31 = vpop.xlane.xlu1 %5362  ;;  %v5456_v13 = vpop.xlane.xlu0 %5455  ;;  %6772 = vmatprep.subr.bf16.mxu1 %v10000_v59  ;;  %v14845_v6 = vld [vmem:[#allocation18 + $0x2d0] sm:$0xff]  ;;  %v9984_v47 = vcombine.high %v14837_v21, %v14839_v27  ;;  %v9986_v30 = vcombine.high %v14841_v5, %v14843_v16 }
 0xb02   : > { %v5561_v38 = vadd.f32 1e-05, %v5513_v45  ;;  %v14833_v32 = vmul.f32 0.00390625, %v5363_v31  ;;  %v5482_v25 = vmul.f32 0.00390625, %v5456_v13  ;;  %6884 = vmatpush2.bf16.msra.mxu0 %v10009_v40  ;;  %v9993_v45 = vcombine.low %v5825_v23, %v5829_v60  ;;  %v14847_v40 = vld [vmem:[#allocation18 + $0x2f0] sm:$0xff] }
 0xb03   : > { %6885 = vmatprep.subr.bf16.mxu0 %v10002_v20  ;;  %v9983_v60 = vcombine.low %v14837_v21, %v14839_v27  ;;  %v14877_v21 = vld [vmem:[#allocation18 + $0x2b8] sm:$0xff] }
 0xb04   : > { %11668 = vrsqrt.f32 %v5561_v38  ;;  %v5514_v22 = vsub.f32 %v5482_v25, %v5498_v51  ;;  %v5499_v20 = vmul.f32 %v14833_v32, %v14833_v32  ;;  %6773 = vmatpush2.bf16.msra.mxu1 %v9999_v53  ;;  %v14853_v38 = vld [vmem:[#allocation18 + $0x2d8] sm:$0xff]  ;;  %v14863_v25 = vld [vmem:[#allocation18 + $0x290] sm:$0xff] }
 0xb05   : > { %v5459_v11 = vpop.xlane.xlu1 %5458  ;;  %v5366_v26 = vpop.xlane.xlu0 %5365  ;;  %v14855_v51 = vld [vmem:[#allocation18 + $0x2f8] sm:$0xff]  ;;  %6774 = vmatprep.subr.bf16.mxu1 %v9992_v63  ;;  %v14865_v53 = vld [vmem:[#allocation18 + $0x2b0] sm:$0xff]  ;;  %v9985_v63 = vcombine.low %v14841_v5, %v14843_v16 }
 0xb06   : > { %v5562_v59 = vadd.f32 1e-05, %v5514_v22  ;;  %v5483_v31 = vmul.f32 0.00390625, %v5459_v11  ;;  %v14851_v13 = vmul.f32 0.00390625, %v5366_v26  ;;  %6886 = vmatpush2.bf16.msra.mxu0 %v10001_v50  ;;  %v9976_v11 = vcombine.high %v14845_v6, %v14847_v40  ;;  %v14883_v16 = vld [vmem:[#allocation18 + $0x250] sm:$0xff] }
 0xb07   : > { %6887 = vmatprep.subr.bf16.mxu0 %v9994_v0  ;;  %v9975_v0 = vcombine.low %v14845_v6, %v14847_v40  ;;  %v9977_v26 = vcombine.low %v14853_v38, %v14855_v51  ;;  %v9978_v6 = vcombine.high %v14853_v38, %v14855_v51  ;;  %v5536_v38 = vsub.f32 %v14540_v39, %v14821_v8 }
 0xb08   : > { %11670 = vrsqrt.f32 %v5562_v59  ;;  %v5515_v23 = vsub.f32 %v5483_v31, %v5499_v20  ;;  %v14875_v59 = vld [vmem:[#allocation18 + $0x298] sm:$0xff]  ;;  %v5500_v31 = vmul.f32 %v14851_v13, %v14851_v13  ;;  %6775 = vmatpush2.bf16.msra.mxu1 %v9991_v29 }
 0xb09   : > { %v5369_v50 = vpop.xlane.xlu1 %5368  ;;  %v5462_v22 = vpop.xlane.xlu0 %5461  ;;  %6776 = vmatprep.subr.bf16.mxu1 %v9984_v47  ;;  %v14899_v47 = vld [vmem:[#allocation18 + $0x278] sm:$0xff] }
 0xb0a   : > { %v5563_v27 = vadd.f32 1e-05, %v5515_v23  ;;  %v14879_v20 = vmul.f32 0.00390625, %v5369_v50  ;;  %v5484_v5 = vmul.f32 0.00390625, %v5462_v22  ;;  %6888 = vmatpush2.bf16.msra.mxu0 %v9993_v45  ;;  %v9968_v23 = vcombine.high %v14863_v25, %v14865_v53  ;;  %v14897_v22 = vld [vmem:[#allocation18 + $0x258] sm:$0xff] }
 0xb0b   : > { %6889 = vmatprep.subr.bf16.mxu0 %v9986_v30  ;;  %v5537_v50 = vsub.f32 %v14543_v56, %v14821_v8  ;;  %v9969_v45 = vcombine.low %v14875_v59, %v14877_v21  ;;  %v14913_v8 = vld [vmem:[#allocation18 + $0x230] sm:$0xff] }
 0xb0c   : > { %11672 = vrsqrt.f32 %v5563_v27  ;;  %v5516_v29 = vsub.f32 %v5484_v5, %v5500_v31  ;;  %v5501_v51 = vmul.f32 %v14879_v20, %v14879_v20  ;;  %v9970_v27 = vcombine.high %v14875_v59, %v14877_v21  ;;  %6777 = vmatpush2.bf16.msra.mxu1 %v9983_v60 }
 0xb0d   : > { %v11667_v30 = vpop.eup %11666  ;;  %v5465_v40 = vpop.xlane.xlu1 %5464  ;;  %6778 = vmatprep.subr.bf16.mxu1 %v9976_v11  ;;  %v9960_v59 = vcombine.high %v14883_v16, %v14885_v2  ;;  %v9961_v21 = vcombine.low %v14897_v22, %v14899_v47  ;;  %v9962_v60 = vcombine.high %v14897_v22, %v14899_v47 }
 0xb0e   : > { %v5372_v1 = vpop.xlane.xlu0 %5371  ;;  %v5564_v5 = vadd.f32 1e-05, %v5516_v29  ;;  %v5485_v56 = vmul.f32 0.00390625, %v5465_v40  ;;  %v5601_v44 = vmul.f32 %v11667_v30, %v5537_v50  ;;  %6890 = vmatpush2.bf16.msra.mxu0 %v9985_v63  ;;  %v5600_v39 = vmul.f32 %v11667_v30, %v5536_v38  ;;  %v14923_v63 = vld [vmem:[#allocation18 + $0x218] sm:$0xff] }
 0xb0f   : > { %v14909_v7 = vmul.f32 0.00390625, %v5372_v1  ;;  %6891 = vmatprep.subr.bf16.mxu0 %v9978_v6  ;;  %v5539_v1 = vsub.f32 %v14555_v49, %v14825_v55  ;;  %v14925_v50 = vld [vmem:[#allocation18 + $0x238] sm:$0xff]  ;;  %v5538_v6 = vsub.f32 %v14552_v48, %v14825_v55 }
 0xb10   : > { %11674 = vrsqrt.f32 %v5564_v5  ;;  %v5517_v40 = vsub.f32 %v5485_v56, %v5501_v51  ;;  %v5644_v31 = vmul.f32 %v14689_v41, %v5601_v44  ;;  %6779 = vmatpush2.bf16.msra.mxu1 %v9975_v0  ;;  %v5643_v55 = vmul.f32 %v14684_v57, %v5600_v39 }
 0xb11   : > { %v11669_v11 = vpop.eup %11668  ;;  %v5375_v29 = vpop.xlane.xlu1 %5374  ;;  %v5502_v30 = vmul.f32 %v14909_v7, %v14909_v7  ;;  %6780 = vmatprep.subr.bf16.mxu1 %v9968_v23  ;;  %v9954_v48 = vcombine.high %v14923_v63, %v14925_v50  ;;  %v5540_v44 = vsub.f32 %v14568_v52, %v14831_v42 }
 0xb12   : > { %v5468_v38 = vpop.xlane.xlu0 %5467  ;;  %v5565_v51 = vadd.f32 1e-05, %v5517_v40  ;;  %v14934_v22 = vmul.f32 0.00390625, %v5375_v29  ;;  %v5603_v5 = vmul.f32 %v11669_v11, %v5539_v1  ;;  %6892 = vmatpush2.bf16.msra.mxu0 %v9977_v26  ;;  %v5602_v49 = vmul.f32 %v11669_v11, %v5538_v6 }
 0xb13   : > { %v5486_v47 = vmul.f32 0.00390625, %v5468_v38  ;;  %6893 = vmatprep.subr.bf16.mxu0 %v9970_v27  ;;  %v5541_v40 = vsub.f32 %v14571_v14, %v14831_v42  ;;  %v5687_v23 = vadd.f32 %v14706_v36, %v5644_v31  ;;  %v16607_v42 = vcombine.low %v14863_v25, %v14865_v53 }
 0xb14   : > { %11676 = vrsqrt.f32 %v5565_v51  ;;  %v5503_v0 = vmul.f32 %v14934_v22, %v14934_v22  ;;  %v5646_v39 = vmul.f32 %v14689_v41, %v5603_v5  ;;  %v5645_v27 = vmul.f32 %v14684_v57, %v5602_v49 }
 0xb15   : > { %v5518_v29 = vsub.f32 %v5486_v47, %v5502_v30  ;;  %v11671_v38 = vpop.eup %11670  ;;  %v5471_v26 = vpop.xlane.xlu1 %5470  ;;  %6781 = vmatpush2.bf16.msra.mxu1 %v16607_v42  ;;  %v5686_v51 = vadd.f32 %v14702_v12, %v5643_v55  ;;  %v5542_v49 = vsub.f32 %v14580_v19, %v14833_v32  ;;  %v5543_v31 = vsub.f32 %v14583_v62, %v14833_v32 }
 0xb16   : > { %v5487_v11 = vmul.f32 0.00390625, %v5471_v26  ;;  %v5605_v6 = vmul.f32 %v11671_v38, %v5541_v40  ;;  %v5604_v56 = vmul.f32 %v11671_v38, %v5540_v44  ;;  %6894 = vmatpush2.bf16.msra.mxu0 %v9969_v45  ;;  %v5689_v30 = vadd.f32 %v14706_v36, %v5646_v39  ;;  %6782 = vmatprep.subr.bf16.mxu1 %v9960_v59 }
 0xb17   : > { %v5566_v1 = vadd.f32 1e-05, %v5518_v29  ;;  %v5688_v47 = vadd.f32 %v14702_v12, %v5645_v27  ;;  %6895 = vmatprep.subr.bf16.mxu0 %v9962_v60  ;;  %v16608_v29 = vcombine.low %v14883_v16, %v14885_v2  ;;  %v9951_v32 = vcombine.low %v14911_v46, %v14913_v8 }
 0xb18   : > { %v5519_v5 = vsub.f32 %v5487_v11, %v5503_v0  ;;  %v14958_v25 = vpack.c.bf16 %v5689_v30, %v5687_v23  ;;  %v5648_v45 = vmul.f32 %v14689_v41, %v5605_v6  ;;  %v5647_v55 = vmul.f32 %v14684_v57, %v5604_v56  ;;  %v11172_v0 = vld [vmem:[#allocation19 + $0x74] ss:$8 sps:$4 sm:$0xff]  }
 0xb19   : > { %11678 = vrsqrt.f32 %v5566_v1  ;;  %v11673_v44 = vpop.eup %11672  ;;  %v14960_v53 = vpack.c.bf16 %v5688_v47, %v5686_v51  ;;  %6783 = vmatpush2.bf16.msra.mxu1 %v16608_v29  ;;  %v5544_v38 = vsub.f32 %v14596_v61, %v14851_v13  ;;  %v9953_v56 = vcombine.low %v14923_v63, %v14925_v50 }
 0xb1a   : > { %v5567_v40 = vadd.f32 1e-05, %v5519_v5  ;;  %v5607_v59 = vmul.f32 %v11673_v44, %v5543_v31  ;;  %v5606_v60 = vmul.f32 %v11673_v44, %v5542_v49  ;;  %6896 = vmatpush2.bf16.msra.mxu0 %v9961_v21  ;;  %6600 = vmatprep.mubr.bf16.mxu1 %v14958_v25  ;;  %v5545_v26 = vsub.f32 %v14599_v33, %v14851_v13  ;;  %v11175_v21 = vld [vmem:[#allocation19 + $0x174] ss:$8 sps:$4 sm:$0xff]  }
 0xb1b   : > { %6713 = vmatprep.mubr.bf16.mxu0 %v14958_v25  ;;  %6601 = vmatmul.mubr.bf16.gmra.mxu1 %v14960_v53  ;;  %v5691_v23 = vadd.f32 %v14706_v36, %v5648_v45  ;;  %v5690_v27 = vadd.f32 %v14702_v12, %v5647_v55  ;;  %v16609_v63 = vcombine.high %v14911_v46, %v14913_v8 }
 0xb1c   : > { %11680 = vrsqrt.f32 %v5567_v40  ;;  %6714 = vmatmul.mubr.bf16.gmra.mxu0 %v14960_v53  ;;  %v5650_v2 = vmul.f32 %v14689_v41, %v5607_v59  ;;  %v5649_v16 = vmul.f32 %v14684_v57, %v5606_v60  ;;  %6897 = vmatprep.subr.bf16.mxu0 %v9954_v48  ;;  %v5546_v6 = vsub.f32 %v14608_v43, %v14879_v20 }
 0xb1d   : > { %v11675_v39 = vpop.eup %11674  ;;  %6784 = vmatprep.subr.bf16.mxu1 %v16609_v63  ;;  %v5547_v42 = vsub.f32 %v14611_v35, %v14879_v20  ;;  %v5548_v31 = vsub.f32 %v14624_v3, %v14909_v7  ;;  %v16610_v20 = vld [vmem:[#allocation65_spill] sm:$0xff] }
 0xb1e   : > { %v5693_v13 = vadd.f32 %v14706_v36, %v5650_v2  ;;  %v5692_v50 = vadd.f32 %v14702_v12, %v5649_v16  ;;  %v5609_v1 = vmul.f32 %v11675_v39, %v5545_v26  ;;  %v5608_v11 = vmul.f32 %v11675_v39, %v5544_v38  ;;  %6785 = vmatpush2.bf16.msra.mxu1 %v9951_v32 }
 0xb1f   : > { %6898 = vmatpush2.bf16.msra.mxu0 %v9953_v56  ;;  %8848 = vmatprep.subr.bf16.mxu1 %v11172_v0  ;;  %v5549_v5 = vsub.f32 %v16610_v20, %v14909_v7  ;;  %v16611_v7 = vld [vmem:[#allocation66_spill] sm:$0xff]  ;;  %v16612_v0 = vld [vmem:[#allocation67_spill] sm:$0xff] }
 0xb20   : > { %v14992_v30 = vpack.c.bf16 %v5693_v13, %v5691_v23  ;;  %v14994_v46 = vpack.c.bf16 %v5692_v50, %v5690_v27  ;;  %8961 = vmatprep.subr.bf16.mxu0 %v11175_v21  ;;  %v5652_v8 = vmul.f32 %v14689_v41, %v5609_v1  ;;  %v5651_v51 = vmul.f32 %v14684_v57, %v5608_v11 }
 0xb21   : > { %v11677_v48 = vpop.eup %11676  ;;  %v5550_v56 = vsub.f32 %v16611_v7, %v14934_v22  ;;  %v5551_v26 = vsub.f32 %v16612_v0, %v14934_v22 }
 0xb22   : > { %6610 = vmatprep.mubr.bf16.mxu1 %v14992_v30  ;;  %6723 = vmatprep.mubr.bf16.mxu0 %v14992_v30  ;;  %v5611_v47 = vmul.f32 %v11677_v48, %v5547_v42  ;;  %v5610_v49 = vmul.f32 %v11677_v48, %v5546_v6  ;;  %v5695_v40 = vadd.f32 %v14706_v36, %v5652_v8  ;;  %v11176_v8 = vld [vmem:[#allocation19 + $0x60] ss:$8 sps:$4 sm:$0xff]  }
 0xb23   : > { %6611 = vmatmul.mubr.bf16.gmra.mxu1 %v14994_v46  ;;  %v5694_v59 = vadd.f32 %v14702_v12, %v5651_v51  ;;  %v11179_v51 = vld [vmem:[#allocation19 + $0x160] ss:$8 sps:$4 sm:$0xff]  }
 0xb24   : > { %6724 = vmatmul.mubr.bf16.gmra.mxu0 %v14994_v46  ;;  %v5654_v44 = vmul.f32 %v14689_v41, %v5611_v47  ;;  %v5653_v45 = vmul.f32 %v14684_v57, %v5610_v49  ;;  %v11184_v47 = vld [vmem:[#allocation19 + $0x54] ss:$8 sps:$4 sm:$0xff]   ;;  %v11182_v49 = vld [vmem:[#allocation19 + $0x50] ss:$8 sps:$4 sm:$0xff]  }
 0xb26   : > { %v11679_v55 = vpop.eup %11678  ;;  %v5697_v60 = vadd.f32 %v14706_v36, %v5654_v44  ;;  %v5696_v29 = vadd.f32 %v14702_v12, %v5653_v45  ;;  %v11191_v44 = vld [vmem:[#allocation19 + $0x140] ss:$8 sps:$4 sm:$0xff]   ;;  %v11196_v45 = vld [vmem:[#allocation19 + $0x34] ss:$8 sps:$4 sm:$0xff]  }
 0xb27   : > { %v5613_v32 = vmul.f32 %v11679_v55, %v5549_v5  ;;  %v5612_v38 = vmul.f32 %v11679_v55, %v5548_v31  ;;  %v11185_v31 = vld [vmem:[#allocation19 + $0x150] ss:$8 sps:$4 sm:$0xff]   ;;  %v11190_v5 = vld [vmem:[#allocation19 + $0x44] ss:$8 sps:$4 sm:$0xff]   ;;  %v11199_v55 = vld [vmem:[#allocation19 + $0x134] ss:$8 sps:$4 sm:$0xff]  }
 0xb28   : > { %v15016_v2 = vpack.c.bf16 %v5697_v60, %v5695_v40  ;;  %v15018_v16 = vpack.c.bf16 %v5696_v29, %v5694_v59  ;;  %v11194_v40 = vld [vmem:[#allocation19 + $0x30] ss:$8 sps:$4 sm:$0xff]   ;;  %v11202_v60 = vld [vmem:[#allocation19 + $0x24] ss:$8 sps:$4 sm:$0xff]   ;;  %v11203_v29 = vld [vmem:[#allocation19 + $0x120] ss:$8 sps:$4 sm:$0xff]  }
 0xb29   : > { %v11681_v21 = vpop.eup %11680  ;;  %v5656_v39 = vmul.f32 %v14689_v41, %v5613_v32  ;;  %v5655_v63 = vmul.f32 %v14684_v57, %v5612_v38  ;;  %v11197_v59 = vld [vmem:[#allocation19 + $0x130] ss:$8 sps:$4 sm:$0xff]   ;;  %v11208_v32 = vld [vmem:[#allocation19 + $0x14] ss:$8 sps:$4 sm:$0xff]  }
 0xb2a   : > { %6620 = vmatprep.mubr.bf16.mxu1 %v15016_v2  ;;  %6733 = vmatprep.mubr.bf16.mxu0 %v15016_v2  ;;  %v5615_v23 = vmul.f32 %v11681_v21, %v5551_v26  ;;  %v5614_v27 = vmul.f32 %v11681_v21, %v5550_v56  ;;  %v11211_v38 = vld [vmem:[#allocation19 + $0x114] ss:$8 sps:$4 sm:$0xff]   ;;  %v11206_v56 = vld [vmem:[#allocation19 + $0x10] ss:$8 sps:$4 sm:$0xff]   ;;  %v11214_v21 = vld [vmem:[#allocation19 + $0x4] ss:$8 sps:$4 sm:$0xff]  }
 0xb2b   : > { %6621 = vmatmul.mubr.bf16.gmra.mxu1 %v15018_v16  ;;  %v5699_v50 = vadd.f32 %v14706_v36, %v5656_v39  ;;  %v5698_v11 = vadd.f32 %v14702_v12, %v5655_v63  ;;  %v11209_v26 = vld [vmem:[#allocation19 + $0x110] ss:$8 sps:$4 sm:$0xff]   ;;  %v11215_v39 = vld [vmem:[#allocation19 + $0x100] ss:$8 sps:$4 sm:$0xff]  }
 0xb2c   : > { %6734 = vmatmul.mubr.bf16.gmra.mxu0 %v15018_v16  ;;  %v5658_v22 = vmul.f32 %v14689_v41, %v5615_v23  ;;  %v5657_v13 = vmul.f32 %v14684_v57, %v5614_v27  ;;  %v11170_v57 = vld [vmem:[#allocation19 + $0x70] ss:$8 sps:$4 sm:$0xff]   ;;  %v11220_v23 = vld [vmem:[#allocation19 + $0xf4] ss:$8 sps:$4 sm:$0xff]  }
 0xb2d   : > { %v11173_v41 = vld [vmem:[#allocation19 + $0x170] ss:$8 sps:$4 sm:$0xff]   ;;  %v11223_v27 = vld [vmem:[#allocation19 + $0x1f4] ss:$8 sps:$4 sm:$0xff]  }
 0xb2e   : > { %v5701_v1 = vadd.f32 %v14706_v36, %v5658_v22  ;;  %v5700_v6 = vadd.f32 %v14702_v12, %v5657_v13  ;;  %v11178_v36 = vld [vmem:[#allocation19 + $0x64] ss:$8 sps:$4 sm:$0xff]   ;;  %v11218_v63 = vld [vmem:[#allocation19 + $0xf0] ss:$8 sps:$4 sm:$0xff]  }
 0xb2f   : > { %v11181_v12 = vld [vmem:[#allocation19 + $0x164] ss:$8 sps:$4 sm:$0xff]   ;;  %v11221_v22 = vld [vmem:[#allocation19 + $0x1f0] ss:$8 sps:$4 sm:$0xff]  }
 0xb30   : > { %v15032_v42 = vpack.c.bf16 %v5701_v1, %v5699_v50  ;;  %v15034_v48 = vpack.c.bf16 %v5700_v6, %v5698_v11  ;;  %v11226_v13 = vld [vmem:[#allocation19 + $0xe4] ss:$8 sps:$4 sm:$0xff]   ;;  %v11227_v50 = vld [vmem:[#allocation19 + $0x1e0] ss:$8 sps:$4 sm:$0xff]   ;;  %v11232_v1 = vld [vmem:[#allocation19 + $0xd4] ss:$8 sps:$4 sm:$0xff]  }
 0xb31   : > { %v11235_v11 = vld [vmem:[#allocation19 + $0x1d4] ss:$8 sps:$4 sm:$0xff]   ;;  %v11230_v6 = vld [vmem:[#allocation19 + $0xd0] ss:$8 sps:$4 sm:$0xff]  }
 0xb32   : > { %6630 = vmatprep.mubr.bf16.mxu1 %v15032_v42  ;;  %6743 = vmatprep.mubr.bf16.mxu0 %v15032_v42 }
 0xb33   : > { %6631 = vmatmul.mubr.bf16.gmra.mxu1 %v15034_v48 }
 0xb34   : > { %6744 = vmatmul.mubr.bf16.gmra.mxu0 %v15034_v48  ;;  %6786 = vmatprep.mubr.bf16.mxu1 %v14729_v4 }
 0xb35   : > { %6899 = vmatprep.mubr.bf16.mxu0 %v14729_v4  ;;  %v11187_v4 = vld [vmem:[#allocation19 + $0x154] ss:$8 sps:$4 sm:$0xff]  }
 0xb3b   : > { %6787 = vmatmul.mubr.bf16.vlgmr.msra.gmra.mxu1 %v14727_v17 }
 0xb3c   : > { %6900 = vmatmul.mubr.bf16.vlgmr.msra.gmra.mxu0 %v14727_v17  ;;  %6796 = vmatprep.mubr.bf16.mxu1 %v14762_v10  ;;  %v11193_v17 = vld [vmem:[#allocation19 + $0x144] ss:$8 sps:$4 sm:$0xff]  }
 0xb3d   : > { %6909 = vmatprep.mubr.bf16.mxu0 %v14762_v10  ;;  %8849 = vmatpush1.bf16.msra.mxu1 %v11170_v57  ;;  %v11188_v10 = vld [vmem:[#allocation19 + $0x40] ss:$8 sps:$4 sm:$0xff]   ;;  %v11233_v57 = vld [vmem:[#allocation19 + $0x1d0] ss:$8 sps:$4 sm:$0xff]  }
 0xb3e   : > { %8962 = vmatpush1.bf16.msra.mxu0 %v11173_v41  ;;  %8850 = vmatprep.subr.bf16.mxu1 %v11178_v36  ;;  %v11238_v41 = vld [vmem:[#allocation19 + $0xc4] ss:$8 sps:$4 sm:$0xff]   ;;  %v11239_v36 = vld [vmem:[#allocation19 + $0x1c0] ss:$8 sps:$4 sm:$0xff]  }
 0xb3f   : > { %8963 = vmatprep.subr.bf16.mxu0 %v11181_v12  ;;  %v11244_v12 = vld [vmem:[#allocation19 + $0xb4] ss:$8 sps:$4 sm:$0xff]  }
 0xb41   : > { %8851 = vmatpush1.bf16.msra.mxu1 %v11176_v8  ;;  %v11247_v8 = vld [vmem:[#allocation19 + $0x1b4] ss:$8 sps:$4 sm:$0xff]  }
 0xb42   : > { %8964 = vmatpush1.bf16.msra.mxu0 %v11179_v51  ;;  %8852 = vmatprep.subr.bf16.mxu1 %v11184_v47  ;;  %v11242_v51 = vld [vmem:[#allocation19 + $0xb0] ss:$8 sps:$4 sm:$0xff]  }
 0xb43   : > { %8965 = vmatprep.subr.bf16.mxu0 %v11187_v4  ;;  %6797 = vmatmul.mubr.bf16.gmra.mxu1 %v14768_v37  ;;  %v11245_v47 = vld [vmem:[#allocation19 + $0x1b0] ss:$8 sps:$4 sm:$0xff]   ;;  %v11250_v4 = vld [vmem:[#allocation19 + $0xa4] ss:$8 sps:$4 sm:$0xff]  }
 0xb44   : > { %6910 = vmatmul.mubr.bf16.gmra.mxu0 %v14768_v37  ;;  %6806 = vmatprep.mubr.bf16.mxu1 %v14798_v54  ;;  %v11205_v37 = vld [vmem:[#allocation19 + $0x124] ss:$8 sps:$4 sm:$0xff]  }
 0xb45   : > { %6919 = vmatprep.mubr.bf16.mxu0 %v14798_v54  ;;  %8853 = vmatpush1.bf16.msra.mxu1 %v11182_v49  ;;  %v11200_v54 = vld [vmem:[#allocation19 + $0x20] ss:$8 sps:$4 sm:$0xff]  }
 0xb46   : > { %8966 = vmatpush1.bf16.msra.mxu0 %v11185_v31  ;;  %8854 = vmatprep.subr.bf16.mxu1 %v11190_v5  ;;  %v11251_v49 = vld [vmem:[#allocation19 + $0x1a0] ss:$8 sps:$4 sm:$0xff]   ;;  %v11256_v31 = vld [vmem:[#allocation19 + $0x94] ss:$8 sps:$4 sm:$0xff]  }
 0xb47   : > { %8967 = vmatprep.subr.bf16.mxu0 %v11193_v17  ;;  %v11259_v5 = vld [vmem:[#allocation19 + $0x194] ss:$8 sps:$4 sm:$0xff]   ;;  %v11254_v17 = vld [vmem:[#allocation19 + $0x90] ss:$8 sps:$4 sm:$0xff]  }
 0xb49   : > { %8855 = vmatpush1.bf16.msra.mxu1 %v11188_v10  ;;  %v11257_v10 = vld [vmem:[#allocation19 + $0x190] ss:$8 sps:$4 sm:$0xff]  }
 0xb4a   : > { %8968 = vmatpush1.bf16.msra.mxu0 %v11191_v44  ;;  %8856 = vmatprep.subr.bf16.mxu1 %v11196_v45  ;;  %v11262_v44 = vld [vmem:[#allocation19 + $0x84] ss:$8 sps:$4 sm:$0xff]   ;;  %v11263_v45 = vld [vmem:[#allocation19 + $0x180] ss:$8 sps:$4 sm:$0xff]  }
 0xb4b   : > { %8969 = vmatprep.subr.bf16.mxu0 %v11199_v55  ;;  %6807 = vmatmul.mubr.bf16.gmra.mxu1 %v14800_v58  ;;  %v11268_v55 = vld [vmem:[#allocation19 + $0x274] ss:$8 sps:$4 sm:$0xff]  }
 0xb4c   : > { %6920 = vmatmul.mubr.bf16.gmra.mxu0 %v14800_v58  ;;  %6816 = vmatprep.mubr.bf16.mxu1 %v14815_v24  ;;  %v11217_v58 = vld [vmem:[#allocation19 + $0x104] ss:$8 sps:$4 sm:$0xff]  }
 0xb4d   : > { %6929 = vmatprep.mubr.bf16.mxu0 %v14815_v24  ;;  %8857 = vmatpush1.bf16.msra.mxu1 %v11194_v40  ;;  %v11212_v24 = vld [vmem:[#allocation19] ss:$8 sps:$4 sm:$0xff]   ;;  %v11271_v40 = vld [vmem:[#allocation19 + $0x374] ss:$8 sps:$4 sm:$0xff]  }
 0xb4e   : > { %8970 = vmatpush1.bf16.msra.mxu0 %v11197_v59  ;;  %8858 = vmatprep.subr.bf16.mxu1 %v11202_v60  ;;  %v5846_v59 = vld [vmem:[%s16402_s11] sm:$0xff]  ;;  %v16613_v60 = vld [vmem:[#allocation35_spill] sm:$0xff] }
 0xb4f   : > { %8971 = vmatprep.subr.bf16.mxu0 %v11205_v37  ;;  %v15076_v37 = vrot.slane %v5846_v59, %v16613_v60 }
 0xb51   : > { %8859 = vmatpush1.bf16.msra.mxu1 %v11200_v54 }
 0xb52   : > { %8972 = vmatpush1.bf16.msra.mxu0 %v11203_v29  ;;  %8860 = vmatprep.subr.bf16.mxu1 %v11208_v32  ;;  %v16616_v32 = vld [vmem:[#allocation34_spill] sm:$0xff] }
 0xb53   : > { %8973 = vmatprep.subr.bf16.mxu0 %v11211_v38  ;;  %6817 = vmatmul.mubr.bf16.gmra.mxu1 %v14817_v28  ;;  %v15083_v38 = vrot.slane %v5846_v59, %v16616_v32 }
 0xb54   : > { %6930 = vmatmul.mubr.bf16.gmra.mxu0 %v14817_v28  ;;  %6826 = vmatprep.mubr.bf16.mxu1 %v14958_v25  ;;  %v11229_v28 = vld [vmem:[#allocation19 + $0x1e4] ss:$8 sps:$4 sm:$0xff]  }
 0xb55   : > { %6939 = vmatprep.mubr.bf16.mxu0 %v14958_v25  ;;  %8861 = vmatpush1.bf16.msra.mxu1 %v11206_v56  ;;  %v11224_v25 = vld [vmem:[#allocation19 + $0xe0] ss:$8 sps:$4 sm:$0xff]  }
 0xb56   : > { %8974 = vmatpush1.bf16.msra.mxu0 %v11209_v26  ;;  %8862 = vmatprep.subr.bf16.mxu1 %v11214_v21 }
 0xb57   : > { %8975 = vmatprep.subr.bf16.mxu0 %v11217_v58 }
 0xb59   : > { %8863 = vmatpush1.bf16.msra.mxu1 %v11212_v24 }
 0xb5a   : > { %8976 = vmatpush1.bf16.msra.mxu0 %v11215_v39  ;;  %8864 = vmatprep.subr.bf16.mxu1 %v11220_v23 }
 0xb5b   : > { %8977 = vmatprep.subr.bf16.mxu0 %v11223_v27  ;;  %6827 = vmatmul.mubr.bf16.gmra.mxu1 %v14960_v53 }
 0xb5c   : > { %6940 = vmatmul.mubr.bf16.gmra.mxu0 %v14960_v53  ;;  %6836 = vmatprep.mubr.bf16.mxu1 %v14992_v30  ;;  %v11241_v53 = vld [vmem:[#allocation19 + $0x1c4] ss:$8 sps:$4 sm:$0xff]  }
 0xb5d   : > { %6949 = vmatprep.mubr.bf16.mxu0 %v14992_v30  ;;  %8865 = vmatpush2.bf16.msra.mxu1 %v11218_v63  ;;  %v11236_v30 = vld [vmem:[#allocation19 + $0xc0] ss:$8 sps:$4 sm:$0xff]  }
 0xb5e   : > { %8978 = vmatpush2.bf16.msra.mxu0 %v11221_v22  ;;  %8866 = vmatprep.subr.bf16.mxu1 %v11226_v13 }
 0xb5f   : > { %8979 = vmatprep.subr.bf16.mxu0 %v11229_v28 }
 0xb61   : > { %8867 = vmatpush2.bf16.msra.mxu1 %v11224_v25 }
 0xb62   : > { %8980 = vmatpush2.bf16.msra.mxu0 %v11227_v50  ;;  %8868 = vmatprep.subr.bf16.mxu1 %v11232_v1 }
 0xb63   : > { %8981 = vmatprep.subr.bf16.mxu0 %v11235_v11  ;;  %6837 = vmatmul.mubr.bf16.gmra.mxu1 %v14994_v46 }
 0xb64   : > { %6950 = vmatmul.mubr.bf16.gmra.mxu0 %v14994_v46  ;;  %6846 = vmatprep.mubr.bf16.mxu1 %v15016_v2  ;;  %v11253_v46 = vld [vmem:[#allocation19 + $0x1a4] ss:$8 sps:$4 sm:$0xff]  }
 0xb65   : > { %6959 = vmatprep.mubr.bf16.mxu0 %v15016_v2  ;;  %8869 = vmatpush2.bf16.msra.mxu1 %v11230_v6  ;;  %v11248_v2 = vld [vmem:[#allocation19 + $0xa0] ss:$8 sps:$4 sm:$0xff]  }
 0xb66   : > { %8982 = vmatpush2.bf16.msra.mxu0 %v11233_v57  ;;  %8870 = vmatprep.subr.bf16.mxu1 %v11238_v41 }
 0xb67   : > { %8983 = vmatprep.subr.bf16.mxu0 %v11241_v53 }
 0xb69   : > { %8871 = vmatpush2.bf16.msra.mxu1 %v11236_v30 }
 0xb6a   : > { %8984 = vmatpush2.bf16.msra.mxu0 %v11239_v36  ;;  %8872 = vmatprep.subr.bf16.mxu1 %v11244_v12 }
 0xb6b   : > { %8985 = vmatprep.subr.bf16.mxu0 %v11247_v8  ;;  %6847 = vmatmul.mubr.bf16.gmra.mxu1 %v15018_v16 }
 0xb6c   : > { %6960 = vmatmul.mubr.bf16.gmra.mxu0 %v15018_v16  ;;  %6856 = vmatprep.mubr.bf16.mxu1 %v15032_v42  ;;  %v11265_v16 = vld [vmem:[#allocation19 + $0x184] ss:$8 sps:$4 sm:$0xff]  }
 0xb6d   : > { %6969 = vmatprep.mubr.bf16.mxu0 %v15032_v42  ;;  %8873 = vmatpush2.bf16.msra.mxu1 %v11242_v51  ;;  %v11260_v42 = vld [vmem:[#allocation19 + $0x80] ss:$8 sps:$4 sm:$0xff]  }
 0xb6e   : > { %8986 = vmatpush2.bf16.msra.mxu0 %v11245_v47  ;;  %8874 = vmatprep.subr.bf16.mxu1 %v11250_v4 }
 0xb6f   : > { %8987 = vmatprep.subr.bf16.mxu0 %v11253_v46 }
 0xb71   : > { %8875 = vmatpush2.bf16.msra.mxu1 %v11248_v2 }
 0xb72   : > { %8988 = vmatpush2.bf16.msra.mxu0 %v11251_v49  ;;  %8876 = vmatprep.subr.bf16.mxu1 %v11256_v31 }
 0xb73   : > { %8989 = vmatprep.subr.bf16.mxu0 %v11259_v5  ;;  %6857 = vmatmul.mubr.bf16.gmra.mxu1 %v15034_v48 }
 0xb74   : > { %6970 = vmatmul.mubr.bf16.gmra.mxu0 %v15034_v48  ;;  %v16614_v48 = vld [vmem:[#allocation33_spill] sm:$0xff] }
 0xb75   : > { %8877 = vmatpush2.bf16.msra.mxu1 %v11254_v17  ;;  %v16615_v54 = vsub.s32 2, %v16614_v48  ;;  %v16617_v56 = vsub.s32 3, %v16614_v48 }
 0xb76   : > { %8990 = vmatpush2.bf16.msra.mxu0 %v11257_v10  ;;  %8878 = vmatprep.subr.bf16.mxu1 %v11262_v44 }
 0xb77   : > { %8991 = vmatprep.subr.bf16.mxu0 %v11265_v16  ;;  %v15080_v29 = vrot.slane %v5846_v59, %v16615_v54  ;;  %v15087_v26 = vrot.slane %v5846_v59, %v16617_v56 }
 0xb79   : > { %8879 = vmatpush2.bf16.msra.mxu1 %v11260_v42 }
 0xb7a   : > { %8992 = vmatpush2.bf16.msra.mxu0 %v11263_v45  ;;  %9074 = vmatprep.subr.bf16.mxu1 %v11268_v55 }
 0xb7b   : > { %9187 = vmatprep.subr.bf16.mxu0 %v11271_v40 }
 0xb9f   : > { %v6562_v21 = vpop.f32.mrf.mxu1  ;;  %v6675_v58 = vpop.f32.mrf.mxu0 }
 0xba0   : > { %v15090_v24 = vadd.f32 %v6562_v21, %v15076_v37  ;;  %v15093_v39 = vadd.f32 %v6675_v58, %v15080_v29 }
 0xba1   : > { %v6564_v23 = vpop.f32.mrf.mxu1  ;;  %v6677_v27 = vpop.f32.mrf.mxu0 }
 0xba2   : > { %v10011_v63 = vmul.f32 -1.702, %v15090_v24  ;;  %v10013_v22 = vmul.f32 -1.702, %v15093_v39  ;;  %v15098_v13 = vadd.f32 %v6564_v23, %v15083_v38  ;;  %v15101_v28 = vadd.f32 %v6677_v27, %v15087_v26 }
 0xba3   : > { %v6566_v25 = vpop.f32.mrf.mxu1  ;;  %v6679_v50 = vpop.f32.mrf.mxu0 }
 0xba4   : > { %v7236_v1 = vmul.f32 1.442695, %v10011_v63  ;;  %v7240_v11 = vmul.f32 1.442695, %v10013_v22  ;;  %v10012_v6 = vmul.f32 -1.702, %v15098_v13  ;;  %v15105_v57 = vadd.f32 %v6566_v25, %v15076_v37 }
 0xba5   : > { %v10014_v41 = vmul.f32 -1.702, %v15101_v28  ;;  %v15109_v53 = vadd.f32 %v6679_v50, %v15080_v29  ;;  %v6568_v30 = vpop.f32.mrf.mxu1  ;;  %v6681_v36 = vpop.f32.mrf.mxu0 }
 0xba6   : > { %11682 = vpow2.f32 %v7236_v1  ;;  %v7238_v12 = vmul.f32 1.442695, %v10012_v6  ;;  %v10019_v8 = vmul.f32 -1.702, %v15105_v57  ;;  %v15113_v51 = vadd.f32 %v6568_v30, %v15083_v38 }
 0xba7   : > { %11684 = vpow2.f32 %v7240_v11  ;;  %v7242_v47 = vmul.f32 1.442695, %v10014_v41  ;;  %v10021_v4 = vmul.f32 -1.702, %v15109_v53  ;;  %v15117_v46 = vadd.f32 %v6681_v36, %v15087_v26  ;;  %v6572_v2 = vpop.f32.mrf.mxu1 }
 0xba8   : > { %v6685_v49 = vpop.f32.mrf.mxu0  ;;  %11686 = vpow2.f32 %v7238_v12  ;;  %v7252_v31 = vmul.f32 1.442695, %v10019_v8  ;;  %v10020_v5 = vmul.f32 -1.702, %v15113_v51  ;;  %v15121_v17 = vadd.f32 %v6572_v2, %v15076_v37 }
 0xba9   : > { %11688 = vpow2.f32 %v7242_v47  ;;  %v7256_v10 = vmul.f32 1.442695, %v10021_v4  ;;  %v10022_v44 = vmul.f32 -1.702, %v15117_v46  ;;  %v15125_v16 = vadd.f32 %v6685_v49, %v15080_v29  ;;  %v6574_v42 = vpop.f32.mrf.mxu1 }
 0xbaa   : > { %v6687_v45 = vpop.f32.mrf.mxu0  ;;  %11690 = vpow2.f32 %v7252_v31  ;;  %v7254_v55 = vmul.f32 1.442695, %v10020_v5  ;;  %v10027_v40 = vmul.f32 -1.702, %v15121_v17  ;;  %v15129_v59 = vadd.f32 %v6574_v42, %v15083_v38 }
 0xbab   : > { %11692 = vpow2.f32 %v7256_v10  ;;  %v7258_v54 = vmul.f32 1.442695, %v10022_v44  ;;  %v10029_v56 = vmul.f32 -1.702, %v15125_v16  ;;  %v15133_v21 = vadd.f32 %v6687_v45, %v15087_v26  ;;  %v6576_v58 = vpop.f32.mrf.mxu1 }
 0xbac   : > { %v6689_v23 = vpop.f32.mrf.mxu0  ;;  %11694 = vpow2.f32 %v7254_v55  ;;  %v7268_v27 = vmul.f32 1.442695, %v10027_v40  ;;  %v10028_v63 = vmul.f32 -1.702, %v15129_v59  ;;  %v15137_v22 = vadd.f32 %v6576_v58, %v15076_v37 }
 0xbad   : > { %11696 = vpow2.f32 %v7258_v54  ;;  %v7272_v25 = vmul.f32 1.442695, %v10029_v56  ;;  %v10030_v50 = vmul.f32 -1.702, %v15133_v21  ;;  %v15141_v1 = vadd.f32 %v6689_v23, %v15080_v29  ;;  %v6578_v11 = vpop.f32.mrf.mxu1 }
 0xbae   : > { %v6691_v6 = vpop.f32.mrf.mxu0  ;;  %11698 = vpow2.f32 %v7268_v27  ;;  %v7270_v41 = vmul.f32 1.442695, %v10028_v63  ;;  %v10035_v30 = vmul.f32 -1.702, %v15137_v22  ;;  %v15145_v36 = vadd.f32 %v6578_v11, %v15083_v38 }
 0xbaf   : > { %11700 = vpow2.f32 %v7272_v25  ;;  %v7274_v12 = vmul.f32 1.442695, %v10030_v50  ;;  %v10037_v8 = vmul.f32 -1.702, %v15141_v1  ;;  %v15149_v47 = vadd.f32 %v6691_v6, %v15087_v26  ;;  %v6582_v4 = vpop.f32.mrf.mxu1 }
 0xbb0   : > { %v6695_v2 = vpop.f32.mrf.mxu0  ;;  %11702 = vpow2.f32 %v7270_v41  ;;  %v7284_v49 = vmul.f32 1.442695, %v10035_v30  ;;  %v10036_v31 = vmul.f32 -1.702, %v15145_v36  ;;  %v15154_v55 = vadd.f32 %v6582_v4, %v15076_v37 }
 0xbb1   : > { %11704 = vpow2.f32 %v7274_v12  ;;  %v7288_v5 = vmul.f32 1.442695, %v10037_v8  ;;  %v10038_v10 = vmul.f32 -1.702, %v15149_v47  ;;  %v6584_v44 = vpop.f32.mrf.mxu1  ;;  %v15157_v56 = vadd.f32 %v6695_v2, %v15080_v29 }
 0xbb2   : > { %v6697_v42 = vpop.f32.mrf.mxu0  ;;  %11706 = vpow2.f32 %v7284_v49  ;;  %v7286_v45 = vmul.f32 1.442695, %v10036_v31  ;;  %v10043_v12 = vmul.f32 -1.702, %v15154_v55  ;;  %v15162_v49 = vadd.f32 %v6584_v44, %v15083_v38 }
 0xbb3   : > { %v11683_v40 = vpop.eup %11682  ;;  %11708 = vpow2.f32 %v7288_v5  ;;  %v7290_v54 = vmul.f32 1.442695, %v10038_v10  ;;  %v6586_v58 = vpop.f32.mrf.mxu1  ;;  %v10045_v2 = vmul.f32 -1.702, %v15157_v56  ;;  %v15165_v10 = vadd.f32 %v6697_v42, %v15087_v26 }
 0xbb4   : > { %v6699_v23 = vpop.f32.mrf.mxu0  ;;  %v11685_v27 = vpop.eup %11684  ;;  %v7492_v63 = vadd.f32 1.0, %v11683_v40  ;;  %11710 = vpow2.f32 %v7286_v45 }
 0xbb5   : > { %v11687_v25 = vpop.eup %11686  ;;  %v7494_v50 = vadd.f32 1.0, %v11685_v27  ;;  %11712 = vpow2.f32 %v7290_v54  ;;  %v6588_v11 = vpop.f32.mrf.mxu1  ;;  %v15167_v44 = vmul.f32 1.442695, %v10045_v2  ;;  %v10046_v7 = vmul.f32 -1.702, %v15165_v10 }
 0xbb6   : > { %v6701_v6 = vpop.f32.mrf.mxu0  ;;  %v11689_v41 = vpop.eup %11688  ;;  %11714 = vrcp.f32 %v7492_v63  ;;  %v7493_v30 = vadd.f32 1.0, %v11687_v25  ;;  %v15178_v2 = vadd.f32 %v6588_v11, %v15083_v38 }
 0xbb7   : > { %v11691_v8 = vpop.eup %11690  ;;  %11716 = vrcp.f32 %v7494_v50  ;;  %v7495_v4 = vadd.f32 1.0, %v11689_v41  ;;  %v6592_v45 = vpop.f32.mrf.mxu1  ;;  %v7300_v50 = vmul.f32 1.442695, %v10043_v12  ;;  %v15175_v12 = vadd.f32 %v6699_v23, %v15080_v29 }
 0xbb8   : > { %v11693_v31 = vpop.eup %11692  ;;  %11718 = vrcp.f32 %v7493_v30  ;;  %v7500_v5 = vadd.f32 1.0, %v11691_v8  ;;  %v6705_v27 = vpop.f32.mrf.mxu0  ;;  %v10044_v30 = vmul.f32 -1.702, %v15162_v49  ;;  %v7306_v19 = vmul.f32 1.442695, %v10046_v7 }
 0xbb9   : > { %v11695_v40 = vpop.eup %11694  ;;  %11720 = vrcp.f32 %v7495_v4  ;;  %v7502_v54 = vadd.f32 1.0, %v11693_v31  ;;  %v15172_v4 = vadd.f32 %v6586_v58, %v15076_v37  ;;  %v6594_v31 = vpop.f32.mrf.mxu1  ;;  %v15184_v58 = vadd.f32 %v6592_v45, %v15076_v37 }
 0xbba   : > { %v11697_v63 = vpop.eup %11696  ;;  %11722 = vrcp.f32 %v7500_v5  ;;  %v7501_v25 = vadd.f32 1.0, %v11695_v40  ;;  %v6707_v40 = vpop.f32.mrf.mxu0  ;;  %v15190_v23 = vadd.f32 %v6594_v31, %v15083_v38  ;;  %v7302_v62 = vmul.f32 1.442695, %v10044_v30 }
 0xbbb   : > { %v11699_v41 = vpop.eup %11698  ;;  %11724 = vrcp.f32 %v7502_v54  ;;  %v7503_v0 = vadd.f32 1.0, %v11697_v63 }
 0xbbc   : > { %v11701_v8 = vpop.eup %11700  ;;  %11726 = vrcp.f32 %v7501_v25  ;;  %v7508_v42 = vadd.f32 1.0, %v11699_v41  ;;  %v15181_v25 = vadd.f32 %v6701_v6, %v15087_v26  ;;  %v15194_v6 = vadd.f32 %v6707_v40, %v15087_v26 }
 0xbbd   : > { %v11703_v20 = vpop.eup %11702  ;;  %11728 = vrcp.f32 %v7503_v0  ;;  %v7510_v5 = vadd.f32 1.0, %v11701_v8  ;;  %v15187_v8 = vadd.f32 %v6705_v27, %v15080_v29  ;;  %v6596_v27 = vpop.f32.mrf.mxu1 }
 0xbbe   : > { %v11705_v54 = vpop.eup %11704  ;;  %11730 = vrcp.f32 %v7508_v42  ;;  %v7509_v63 = vadd.f32 1.0, %v11703_v20  ;;  %v10051_v20 = vmul.f32 -1.702, %v15172_v4  ;;  %v10054_v43 = vmul.f32 -1.702, %v15181_v25 }
 0xbbf   : > { %v11707_v41 = vpop.eup %11706  ;;  %11732 = vrcp.f32 %v7510_v5  ;;  %v7511_v0 = vadd.f32 1.0, %v11705_v54  ;;  %v10053_v5 = vmul.f32 -1.702, %v15175_v12  ;;  %v10052_v54 = vmul.f32 -1.702, %v15178_v2  ;;  %v6598_v34 = vpop.f32.mrf.mxu1 }
 0xbc0   : > { %v11709_v11 = vpop.eup %11708  ;;  %11734 = vrcp.f32 %v7509_v63  ;;  %v7516_v3 = vadd.f32 1.0, %v11707_v41  ;;  %v10059_v63 = vmul.f32 -1.702, %v15184_v58  ;;  %v6709_v41 = vpop.f32.mrf.mxu0  ;;  %v10061_v61 = vmul.f32 -1.702, %v15187_v8 }
 0xbc1   : > { %v11711_v42 = vpop.eup %11710  ;;  %11736 = vrcp.f32 %v7511_v0  ;;  %v7518_v45 = vadd.f32 1.0, %v11709_v11  ;;  %v10060_v0 = vmul.f32 -1.702, %v15190_v23  ;;  %v10062_v14 = vmul.f32 -1.702, %v15194_v6 }
 0xbc2   : > { %v11713_v35 = vpop.eup %11712  ;;  %11738 = vrcp.f32 %v7516_v3  ;;  %v7517_v31 = vadd.f32 1.0, %v11711_v42  ;;  %v7316_v42 = vmul.f32 1.442695, %v10051_v20  ;;  %v7320_v52 = vmul.f32 1.442695, %v10053_v5  ;;  %v6711_v32 = vpop.f32.mrf.mxu0 }
 0xbc3   : > { %v11715_v33 = vpop.eup %11714  ;;  %11740 = vrcp.f32 %v7518_v45  ;;  %v7519_v40 = vadd.f32 1.0, %v11713_v35  ;;  %v15204_v9 = vadd.f32 %v6596_v27, %v15076_v37  ;;  %v7318_v35 = vmul.f32 1.442695, %v10052_v54 }
 0xbc4   : > { %v11717_v11 = vpop.eup %11716  ;;  %11742 = vrcp.f32 %v7517_v31  ;;  %v7322_v15 = vmul.f32 1.442695, %v10054_v43  ;;  %v7332_v18 = vmul.f32 1.442695, %v10059_v63  ;;  %v7336_v7 = vmul.f32 1.442695, %v10061_v61 }
 0xbc5   : > { %v11719_v3 = vpop.eup %11718  ;;  %11744 = vrcp.f32 %v7519_v40  ;;  %v7334_v30 = vmul.f32 1.442695, %v10060_v0  ;;  %v15208_v31 = vadd.f32 %v6709_v41, %v15080_v29  ;;  %v7876_v5 = vmul.f32 %v11715_v33, %v15090_v24 }
 0xbc6   : > { %v11721_v45 = vpop.eup %11720  ;;  %11746 = vpow2.f32 %v7300_v50  ;;  %v7338_v27 = vmul.f32 1.442695, %v10062_v14  ;;  %v15212_v40 = vadd.f32 %v6598_v34, %v15083_v38  ;;  %v10067_v54 = vmul.f32 -1.702, %v15204_v9 }
 0xbc7   : > { %v11723_v60 = vpop.eup %11722  ;;  %11748 = vpow2.f32 %v15167_v44  ;;  %v15217_v61 = vadd.f32 %v6711_v32, %v15087_v26  ;;  %v7877_v63 = vmul.f32 %v11719_v3, %v15098_v13  ;;  %v7879_v34 = vmul.f32 %v11721_v45, %v15101_v28  ;;  %v11269_v28 = vld [vmem:[#allocation19 + $0x370] ss:$8 sps:$4 sm:$0xff]  }
 0xbc8   : > { %v11725_v20 = vpop.eup %11724  ;;  %11750 = vpow2.f32 %v7302_v62  ;;  %v7884_v43 = vmul.f32 %v11723_v60, %v15105_v57  ;;  %v7878_v32 = vmul.f32 %v11717_v11, %v15093_v39  ;;  %v10068_v24 = vmul.f32 -1.702, %v15212_v40  ;;  %v11266_v57 = vld [vmem:[#allocation19 + $0x270] ss:$8 sps:$4 sm:$0xff]  }
 0xbc9   : > { %v11727_v50 = vpop.eup %11726  ;;  %11752 = vpow2.f32 %v7306_v19  ;;  %v7886_v41 = vmul.f32 %v11725_v20, %v15109_v53  ;;  %v10069_v19 = vmul.f32 -1.702, %v15208_v31  ;;  %v7348_v45 = vmul.f32 1.442695, %v10067_v54  ;;  %v11277_v20 = vld [vmem:[#allocation19 + $0x364] ss:$8 sps:$4 sm:$0xff]  }
 0xbca   : > { %v11729_v44 = vpop.eup %11728  ;;  %v7885_v62 = vmul.f32 %v11727_v50, %v15113_v51  ;;  %11754 = vpow2.f32 %v7316_v42  ;;  %v8004_v0 = vpack.c.bf16 %v7884_v43, %v7876_v5  ;;  %v10070_v51 = vmul.f32 -1.702, %v15217_v61  ;;  %v11274_v42 = vld [vmem:[#allocation19 + $0x264] ss:$8 sps:$4 sm:$0xff]   ;;  %v11280_v54 = vld [vmem:[#allocation19 + $0x254] ss:$8 sps:$4 sm:$0xff]  }
 0xbcb   : > { %v11731_v14 = vpop.eup %11730  ;;  %v7887_v33 = vmul.f32 %v11729_v44, %v15117_v46  ;;  %11756 = vpow2.f32 %v7320_v52  ;;  %v8006_v52 = vpack.c.bf16 %v7886_v41, %v7878_v32  ;;  %v7352_v11 = vmul.f32 1.442695, %v10069_v19 }
 0xbcc   : > { %v11733_v60 = vpop.eup %11732  ;;  %11758 = vpow2.f32 %v7318_v35  ;;  %v8005_v13 = vpack.c.bf16 %v7885_v62, %v7877_v63  ;;  %v7350_v5 = vmul.f32 1.442695, %v10068_v24  ;;  %v7354_v44 = vmul.f32 1.442695, %v10070_v51  ;;  %v11283_v62 = vld [vmem:[#allocation19 + $0x354] ss:$8 sps:$4 sm:$0xff]  }
 0xbcd   : > { %v11735_v53 = vpop.eup %11734  ;;  %11760 = vpow2.f32 %v7322_v15  ;;  %v8007_v3 = vpack.c.bf16 %v7887_v33, %v7879_v34  ;;  %v11272_v15 = vld [vmem:[#allocation19 + $0x260] ss:$8 sps:$4 sm:$0xff]   ;;  %v7892_v33 = vmul.f32 %v11731_v14, %v15121_v17  ;;  %v7894_v32 = vmul.f32 %v11733_v60, %v15125_v16  ;;  %v11281_v17 = vld [vmem:[#allocation19 + $0x350] ss:$8 sps:$4 sm:$0xff]   ;;  %v11289_v16 = vld [vmem:[#allocation19 + $0x344] ss:$8 sps:$4 sm:$0xff]  }
 0xbce   : > { %v11737_v46 = vpop.eup %11736  ;;  %11762 = vpow2.f32 %v7332_v18  ;;  %8880 = vmatprep.mubr.bf16.mxu1 %v8005_v13  ;;  %v11275_v18 = vld [vmem:[#allocation19 + $0x360] ss:$8 sps:$4 sm:$0xff]  }
 0xbcf   : > { %v11739_v39 = vpop.eup %11738  ;;  %11764 = vpow2.f32 %v7336_v7  ;;  %8993 = vmatprep.mubr.bf16.mxu0 %v8007_v3  ;;  %8881 = vmatmul.mubr.bf16.vlgmr.msra.gmra.mxu1 %v8004_v0  ;;  %v7893_v7 = vmul.f32 %v11735_v53, %v15129_v59 }
 0xbd0   : > { %v11741_v35 = vpop.eup %11740  ;;  %11766 = vpow2.f32 %v7334_v30  ;;  %8994 = vmatmul.mubr.bf16.vlgmr.msra.gmra.mxu0 %v8006_v52  ;;  %9075 = vmatpush1.bf16.msra.mxu1 %v11266_v57  ;;  %v7900_v43 = vmul.f32 %v11739_v39, %v15137_v22  ;;  %v7895_v22 = vmul.f32 %v11737_v46, %v15133_v21  ;;  %v11286_v21 = vld [vmem:[#allocation19 + $0x244] ss:$8 sps:$4 sm:$0xff]  }
 0xbd1   : > { %v11743_v50 = vpop.eup %11742  ;;  %11768 = vpow2.f32 %v7338_v27  ;;  %9188 = vmatpush1.bf16.msra.mxu0 %v11269_v28  ;;  %9076 = vmatprep.subr.bf16.mxu1 %v11274_v42  ;;  %v7902_v41 = vmul.f32 %v11741_v35, %v15141_v1  ;;  %v11278_v1 = vld [vmem:[#allocation19 + $0x250] ss:$8 sps:$4 sm:$0xff]   ;;  %v11284_v42 = vld [vmem:[#allocation19 + $0x240] ss:$8 sps:$4 sm:$0xff]   ;;  %v11295_v35 = vld [vmem:[#allocation19 + $0x334] ss:$8 sps:$4 sm:$0xff]  }
 0xbd2   : > { %v11745_v63 = vpop.eup %11744  ;;  %v7901_v30 = vmul.f32 %v11743_v50, %v15145_v36  ;;  %11770 = vpow2.f32 %v7348_v45  ;;  %9189 = vmatprep.subr.bf16.mxu0 %v11277_v20  ;;  %v8012_v13 = vpack.c.bf16 %v7900_v43, %v7892_v33  ;;  %v11287_v45 = vld [vmem:[#allocation19 + $0x340] ss:$8 sps:$4 sm:$0xff]   ;;  %v11292_v20 = vld [vmem:[#allocation19 + $0x234] ss:$8 sps:$4 sm:$0xff]  }
 0xbd3   : > { %v11747_v34 = vpop.eup %11746  ;;  %v7903_v27 = vmul.f32 %v11745_v63, %v15149_v47  ;;  %11772 = vpow2.f32 %v7352_v11  ;;  %v8014_v47 = vpack.c.bf16 %v7902_v41, %v7894_v32  ;;  %v11293_v41 = vld [vmem:[#allocation19 + $0x330] ss:$8 sps:$4 sm:$0xff]  }
 0xbd4   : > { %v11749_v19 = vpop.eup %11748  ;;  %v7524_v24 = vadd.f32 1.0, %v11747_v34  ;;  %11774 = vpow2.f32 %v7350_v5  ;;  %v8013_v59 = vpack.c.bf16 %v7901_v30, %v7893_v7  ;;  %9077 = vmatpush1.bf16.msra.mxu1 %v11272_v15  ;;  %v11290_v7 = vld [vmem:[#allocation19 + $0x230] ss:$8 sps:$4 sm:$0xff]  }
 0xbd5   : > { %v11751_v36 = vpop.eup %11750  ;;  %v7526_v57 = vadd.f32 1.0, %v11749_v19  ;;  %11776 = vpow2.f32 %v7354_v44  ;;  %v8015_v53 = vpack.c.bf16 %v7903_v27, %v7895_v22  ;;  %9190 = vmatpush1.bf16.msra.mxu0 %v11275_v18  ;;  %9078 = vmatprep.subr.bf16.mxu1 %v11280_v54  ;;  %v11298_v22 = vld [vmem:[#allocation19 + $0x224] ss:$8 sps:$4 sm:$0xff]  }
 0xbd6   : > { %v11753_v14 = vpop.eup %11752  ;;  %11778 = vrcp.f32 %v7524_v24  ;;  %v7525_v0 = vadd.f32 1.0, %v11751_v36  ;;  %8890 = vmatprep.mubr.bf16.mxu1 %v8013_v59  ;;  %9191 = vmatprep.subr.bf16.mxu0 %v11283_v62  ;;  %v11301_v27 = vld [vmem:[#allocation19 + $0x324] ss:$8 sps:$4 sm:$0xff]  }
 0xbd7   : > { %v11755_v60 = vpop.eup %11754  ;;  %11780 = vrcp.f32 %v7526_v57  ;;  %v7527_v51 = vadd.f32 1.0, %v11753_v14  ;;  %9003 = vmatprep.mubr.bf16.mxu0 %v8015_v53  ;;  %8891 = vmatmul.mubr.bf16.gmra.mxu1 %v8012_v13  ;;  %v11299_v14 = vld [vmem:[#allocation19 + $0x320] ss:$8 sps:$4 sm:$0xff]  }
 0xbd8   : > { %v11757_v3 = vpop.eup %11756  ;;  %11782 = vrcp.f32 %v7525_v0  ;;  %v7532_v28 = vadd.f32 1.0, %v11755_v60  ;;  %9004 = vmatmul.mubr.bf16.gmra.mxu0 %v8014_v47  ;;  %9079 = vmatpush1.bf16.msra.mxu1 %v11278_v1  ;;  %v11304_v60 = vld [vmem:[#allocation19 + $0x214] ss:$8 sps:$4 sm:$0xff]  }
 0xbd9   : > { %v11759_v46 = vpop.eup %11758  ;;  %11784 = vrcp.f32 %v7527_v51  ;;  %v7534_v52 = vadd.f32 1.0, %v11757_v3  ;;  %9192 = vmatpush1.bf16.msra.mxu0 %v11281_v17  ;;  %9080 = vmatprep.subr.bf16.mxu1 %v11286_v21  ;;  %v11296_v21 = vld [vmem:[#allocation19 + $0x220] ss:$8 sps:$4 sm:$0xff]  }
 0xbda   : > { %v11761_v39 = vpop.eup %11760  ;;  %11786 = vrcp.f32 %v7532_v28  ;;  %v7533_v11 = vadd.f32 1.0, %v11759_v46  ;;  %9193 = vmatprep.subr.bf16.mxu0 %v11289_v16 }
 0xbdb   : > { %v11763_v5 = vpop.eup %11762  ;;  %11788 = vrcp.f32 %v7534_v52  ;;  %v7535_v15 = vadd.f32 1.0, %v11761_v39  ;;  %v6602_v50 = vpop.f32.mrf.mxu1 }
 0xbdc   : > { %v6715_v43 = vpop.f32.mrf.mxu0  ;;  %v11765_v44 = vpop.eup %11764  ;;  %11790 = vrcp.f32 %v7533_v11  ;;  %v7540_v18 = vadd.f32 1.0, %v11763_v5  ;;  %v15237_v54 = vadd.f32 %v6602_v50, %v15076_v37  ;;  %9081 = vmatpush1.bf16.msra.mxu1 %v11284_v42 }
 0xbdd   : > { %v15240_v63 = vadd.f32 %v6715_v43, %v15080_v29  ;;  %v11767_v30 = vpop.eup %11766  ;;  %11792 = vrcp.f32 %v7535_v15  ;;  %v7542_v62 = vadd.f32 1.0, %v11765_v44  ;;  %v6604_v34 = vpop.f32.mrf.mxu1  ;;  %9194 = vmatpush1.bf16.msra.mxu0 %v11287_v45  ;;  %9082 = vmatprep.subr.bf16.mxu1 %v11292_v20 }
 0xbde   : > { %v6717_v33 = vpop.f32.mrf.mxu0  ;;  %v11769_v19 = vpop.eup %11768  ;;  %11794 = vrcp.f32 %v7540_v18  ;;  %v7541_v32 = vadd.f32 1.0, %v11767_v30  ;;  %v10075_v24 = vmul.f32 -1.702, %v15237_v54  ;;  %9195 = vmatprep.subr.bf16.mxu0 %v11295_v35  ;;  %v15245_v13 = vadd.f32 %v6604_v34, %v15083_v38  ;;  %v11307_v35 = vld [vmem:[#allocation19 + $0x314] ss:$8 sps:$4 sm:$0xff]  }
 0xbdf   : > { %v10077_v59 = vmul.f32 -1.702, %v15240_v63  ;;  %v11771_v1 = vpop.eup %11770  ;;  %11796 = vrcp.f32 %v7542_v62  ;;  %v7543_v36 = vadd.f32 1.0, %v11769_v19  ;;  %v15248_v57 = vadd.f32 %v6717_v33, %v15087_v26  ;;  %v6606_v53 = vpop.f32.mrf.mxu1  ;;  %v11302_v18 = vld [vmem:[#allocation19 + $0x210] ss:$8 sps:$4 sm:$0xff]  }
 0xbe0   : > { %v6719_v17 = vpop.f32.mrf.mxu0  ;;  %v11773_v47 = vpop.eup %11772  ;;  %11798 = vrcp.f32 %v7541_v32  ;;  %v7548_v0 = vadd.f32 1.0, %v11771_v1  ;;  %v7364_v16 = vmul.f32 1.442695, %v10075_v24  ;;  %9083 = vmatpush1.bf16.msra.mxu1 %v11290_v7  ;;  %v10076_v28 = vmul.f32 -1.702, %v15245_v13 }
 0xbe1   : > { %v11775_v51 = vpop.eup %11774  ;;  %11800 = vrcp.f32 %v7543_v36  ;;  %v7550_v3 = vadd.f32 1.0, %v11773_v47  ;;  %v10078_v42 = vmul.f32 -1.702, %v15248_v57  ;;  %v6608_v46 = vpop.f32.mrf.mxu1  ;;  %9196 = vmatpush1.bf16.msra.mxu0 %v11293_v41  ;;  %9084 = vmatprep.subr.bf16.mxu1 %v11298_v22  ;;  %v15253_v39 = vadd.f32 %v6606_v53, %v15076_v37  ;;  %v11305_v24 = vld [vmem:[#allocation19 + $0x310] ss:$8 sps:$4 sm:$0xff]  }
 0xbe2   : > { %v6721_v52 = vpop.f32.mrf.mxu0  ;;  %v11777_v45 = vpop.eup %11776  ;;  %11802 = vrcp.f32 %v7548_v0  ;;  %v7549_v20 = vadd.f32 1.0, %v11775_v51  ;;  %v15256_v11 = vadd.f32 %v6719_v17, %v15080_v29  ;;  %9197 = vmatprep.subr.bf16.mxu0 %v11301_v27  ;;  %v7368_v50 = vmul.f32 1.442695, %v10077_v59  ;;  %v11310_v59 = vld [vmem:[#allocation19 + $0x204] ss:$8 sps:$4 sm:$0xff]  }
 0xbe3   : > { %v11779_v5 = vpop.eup %11778  ;;  %11804 = vrcp.f32 %v7550_v3  ;;  %v7551_v15 = vadd.f32 1.0, %v11777_v45  ;;  %v6612_v43 = vpop.f32.mrf.mxu1  ;;  %v7366_v41 = vmul.f32 1.442695, %v10076_v28  ;;  %v10083_v30 = vmul.f32 -1.702, %v15253_v39 }
 0xbe4   : > { %v6725_v44 = vpop.f32.mrf.mxu0  ;;  %v15258_v7 = vpop.eup %11780  ;;  %11806 = vrcp.f32 %v7549_v20  ;;  %v10085_v62 = vmul.f32 -1.702, %v15256_v11  ;;  %9085 = vmatpush1.bf16.msra.mxu1 %v11296_v21  ;;  %v7370_v33 = vmul.f32 1.442695, %v10078_v42  ;;  %v15263_v22 = vadd.f32 %v6608_v46, %v15083_v38  ;;  %v11313_v17 = vld [vmem:[#allocation19 + $0x304] ss:$8 sps:$4 sm:$0xff]  }
 0xbe5   : > { %v11783_v34 = vpop.eup %11782  ;;  %11808 = vrcp.f32 %v7551_v15  ;;  %v15266_v27 = vadd.f32 %v6721_v52, %v15087_v26  ;;  %v15268_v19 = vpop.f32.mrf.mxu1  ;;  %9198 = vmatpush1.bf16.msra.mxu0 %v11299_v14  ;;  %9086 = vmatprep.subr.bf16.mxu1 %v11304_v60  ;;  %v15273_v36 = vmul.f32 %v11779_v5, %v15154_v55  ;;  %v7380_v53 = vmul.f32 1.442695, %v10083_v30  ;;  %v11308_v42 = vld [vmem:[#allocation19 + $0x200] ss:$8 sps:$4 sm:$0xff]  }
 0xbe6   : > { %v15270_v32 = vpop.f32.mrf.mxu0  ;;  %v11785_v1 = vpop.eup %11784  ;;  %11810 = vpow2.f32 %v7364_v16  ;;  %9199 = vmatprep.subr.bf16.mxu0 %v11307_v35  ;;  %v7384_v47 = vmul.f32 1.442695, %v10085_v62  ;;  %v10084_v0 = vmul.f32 -1.702, %v15263_v22  ;;  %v7909_v28 = vmul.f32 %v11783_v34, %v15162_v49  ;;  %v11311_v46 = vld [vmem:[#allocation19 + $0x300] ss:$8 sps:$4 sm:$0xff]  }
 0xbe7   : > { %v11787_v21 = vpop.eup %11786  ;;  %11812 = vpow2.f32 %v7368_v50  ;;  %v10086_v51 = vmul.f32 -1.702, %v15266_v27  ;;  %v15277_v3 = vpop.f32.mrf.mxu1  ;;  %v15283_v55 = vadd.f32 %v6612_v43, %v15076_v37  ;;  %v15286_v16 = vadd.f32 %v6725_v44, %v15080_v29  ;;  %v11316_v49 = vld [vmem:[#allocation19 + $0x2f4] ss:$8 sps:$4 sm:$0xff]  }
 0xbe8   : > { %v15279_v14 = vpop.f32.mrf.mxu0  ;;  %v11789_v60 = vpop.eup %11788  ;;  %11814 = vpow2.f32 %v7366_v41  ;;  %9087 = vmatpush1.bf16.msra.mxu1 %v11302_v18  ;;  %v7916_v45 = vmul.f32 %v11787_v21, %v15172_v4  ;;  %v7382_v20 = vmul.f32 1.442695, %v10084_v0  ;;  %v11319_v4 = vld [vmem:[#allocation19 + $0x3f4] ss:$8 sps:$4 sm:$0xff]   ;;  %v7911_v30 = vmul.f32 %v11785_v1, %v15165_v10  ;;  %v11322_v0 = vld [vmem:[#allocation19 + $0x2e4] ss:$8 sps:$4 sm:$0xff]  }
 0xbe9   : > { %v11791_v52 = vpop.eup %11790  ;;  %11816 = vpow2.f32 %v7370_v33  ;;  %v7386_v35 = vmul.f32 1.442695, %v10086_v51  ;;  %v15289_v5 = vpop.f32.mrf.mxu1  ;;  %9200 = vmatpush1.bf16.msra.mxu0 %v11305_v24  ;;  %9088 = vmatprep.subr.bf16.mxu1 %v11310_v59  ;;  %v7918_v43 = vmul.f32 %v11789_v60, %v15175_v12  ;;  %v10091_v18 = vmul.f32 -1.702, %v15283_v55 }
 0xbea   : > { %v15291_v15 = vpop.f32.mrf.mxu0  ;;  %v11793_v50 = vpop.eup %11792  ;;  %v7917_v44 = vmul.f32 %v11791_v52, %v15178_v2  ;;  %11818 = vpow2.f32 %v7380_v53  ;;  %9201 = vmatprep.subr.bf16.mxu0 %v11313_v17  ;;  %v10093_v34 = vmul.f32 -1.702, %v15286_v16  ;;  %v7910_v2 = vmul.f32 %v15258_v7, %v15157_v56  ;;  %v11314_v17 = vld [vmem:[#allocation19 + $0x2f0] ss:$8 sps:$4 sm:$0xff]  }
 0xbeb   : > { %v11795_v41 = vpop.eup %11794  ;;  %v7919_v62 = vmul.f32 %v11793_v50, %v15181_v25  ;;  %11820 = vpow2.f32 %v7384_v47  ;;  %v15299_v33 = vpop.f32.mrf.mxu1  ;;  %v7396_v53 = vmul.f32 1.442695, %v10091_v18  ;;  %v8020_v10 = vpack.c.bf16 %v7916_v45, %v15273_v36  ;;  %v11317_v47 = vld [vmem:[#allocation19 + $0x3f0] ss:$8 sps:$4 sm:$0xff]  }
 0xbec   : > { %v15301_v24 = vpop.f32.mrf.mxu0  ;;  %v11797_v12 = vpop.eup %11796  ;;  %v8021_v59 = vpack.c.bf16 %v7917_v44, %v7909_v28  ;;  %11822 = vpow2.f32 %v7382_v20  ;;  %9089 = vmatpush1.bf16.msra.mxu1 %v11308_v42  ;;  %v7400_v1 = vmul.f32 1.442695, %v10093_v34  ;;  %v8022_v60 = vpack.c.bf16 %v7918_v43, %v7910_v2  ;;  %v11325_v28 = vld [vmem:[#allocation19 + $0x3e4] ss:$8 sps:$4 sm:$0xff]   ;;  %v11323_v44 = vld [vmem:[#allocation19 + $0x3e0] ss:$8 sps:$4 sm:$0xff]  }
 0xbed   : > { %v11799_v21 = vpop.eup %11798  ;;  %v8023_v25 = vpack.c.bf16 %v7919_v62, %v7911_v30  ;;  %11824 = vpow2.f32 %v7386_v35  ;;  %9202 = vmatpush1.bf16.msra.mxu0 %v11311_v46  ;;  %9090 = vmatprep.subr.bf16.mxu1 %v11316_v49  ;;  %v15308_v56 = vadd.f32 %v15268_v19, %v15083_v38  ;;  %v15312_v7 = vadd.f32 %v15270_v32, %v15087_v26  ;;  %v15314_v36 = vpop.f32.mrf.mxu1  ;;  %v11320_v32 = vld [vmem:[#allocation19 + $0x2e0] ss:$8 sps:$4 sm:$0xff]  }
 0xbee   : > { %v11801_v51 = vpop.eup %11800  ;;  %8900 = vmatprep.mubr.bf16.mxu1 %v8021_v59  ;;  %11826 = vpow2.f32 %v7396_v53  ;;  %9203 = vmatprep.subr.bf16.mxu0 %v11319_v4  ;;  %v15316_v46 = vpop.f32.mrf.mxu0  ;;  %v7924_v45 = vmul.f32 %v11795_v41, %v15184_v58  ;;  %v7925_v49 = vmul.f32 %v11799_v21, %v15190_v23  ;;  %v15325_v43 = vadd.f32 %v15277_v3, %v15076_v37  ;;  %v11328_v58 = vld [vmem:[#allocation19 + $0x2d4] ss:$8 sps:$4 sm:$0xff]  }
 0xbef   : > { %v11803_v42 = vpop.eup %11802  ;;  %9013 = vmatprep.mubr.bf16.mxu0 %v8023_v25  ;;  %8901 = vmatmul.mubr.bf16.gmra.mxu1 %v8020_v10  ;;  %11828 = vpow2.f32 %v7400_v1  ;;  %v10092_v19 = vmul.f32 -1.702, %v15308_v56  ;;  %v10094_v20 = vmul.f32 -1.702, %v15312_v7  ;;  %v15329_v34 = vpop.f32.mrf.mxu1  ;;  %v11331_v23 = vld [vmem:[#allocation19 + $0x3d4] ss:$8 sps:$4 sm:$0xff]   ;;  %v7926_v2 = vmul.f32 %v11797_v12, %v15187_v8 }
 0xbf0   : > { %v11805_v52 = vpop.eup %11804  ;;  %9014 = vmatmul.mubr.bf16.gmra.mxu0 %v8022_v60  ;;  %9091 = vmatpush2.bf16.msra.mxu1 %v11314_v17  ;;  %v7932_v50 = vmul.f32 %v11803_v42, %v15204_v9  ;;  %v7927_v3 = vmul.f32 %v11801_v51, %v15194_v6  ;;  %v15336_v53 = vadd.f32 %v15279_v14, %v15080_v29  ;;  %v11326_v8 = vld [vmem:[#allocation19 + $0x2d0] ss:$8 sps:$4 sm:$0xff]   ;;  %v11334_v1 = vld [vmem:[#allocation19 + $0x2c4] ss:$8 sps:$4 sm:$0xff]   ;;  %v10099_v60 = vmul.f32 -1.702, %v15325_v43 }
 0xbf1   : > { %v11807_v35 = vpop.eup %11806  ;;  %9204 = vmatpush2.bf16.msra.mxu0 %v11317_v47  ;;  %9092 = vmatprep.subr.bf16.mxu1 %v11322_v0  ;;  %v7934_v4 = vmul.f32 %v11805_v52, %v15208_v31  ;;  %v7398_v30 = vmul.f32 1.442695, %v10092_v19  ;;  %v7402_v62 = vmul.f32 1.442695, %v10094_v20  ;;  %v15338_v31 = vpop.f32.mrf.mxu0  ;;  %v15342_v10 = vadd.f32 %v15289_v5, %v15083_v38  ;;  %v11329_v14 = vld [vmem:[#allocation19 + $0x3d0] ss:$8 sps:$4 sm:$0xff]  }
 0xbf2   : > { %v11809_v18 = vpop.eup %11808  ;;  %v7933_v41 = vmul.f32 %v11807_v35, %v15212_v40  ;;  %9205 = vmatprep.subr.bf16.mxu0 %v11325_v28  ;;  %v8028_v6 = vpack.c.bf16 %v7932_v50, %v7924_v45  ;;  %v15345_v5 = vpop.f32.mrf.mxu1  ;;  %v11337_v28 = vld [vmem:[#allocation19 + $0x3c4] ss:$8 sps:$4 sm:$0xff]   ;;  %v10101_v45 = vmul.f32 -1.702, %v15336_v53  ;;  %v15350_v19 = vadd.f32 %v15291_v15, %v15087_v26  ;;  %v11332_v50 = vld [vmem:[#allocation19 + $0x2c0] ss:$8 sps:$4 sm:$0xff]  }
 0xbf3   : > { %v11811_v9 = vpop.eup %11810  ;;  %v7935_v59 = vmul.f32 %v11809_v18, %v15217_v61  ;;  %11830 = vpow2.f32 %v7398_v30  ;;  %v8030_v0 = vpack.c.bf16 %v7934_v4, %v7926_v2  ;;  %v15352_v20 = vpop.f32.mrf.mxu0  ;;  %v15360_v15 = vadd.f32 %v15301_v24, %v15080_v29  ;;  %v11340_v4 = vld [vmem:[#allocation19 + $0x2b4] ss:$8 sps:$4 sm:$0xff]   ;;  %v11338_v2 = vld [vmem:[#allocation19 + $0x2b0] ss:$8 sps:$4 sm:$0xff]  }
 0xbf4   : > { %v11813_v40 = vpop.eup %11812  ;;  %v7556_v17 = vadd.f32 1.0, %v11811_v9  ;;  %v8029_v21 = vpack.c.bf16 %v7933_v41, %v7925_v49  ;;  %9093 = vmatpush2.bf16.msra.mxu1 %v11320_v32  ;;  %11832 = vpow2.f32 %v7402_v62  ;;  %v15356_v49 = vadd.f32 %v15299_v33, %v15076_v37  ;;  %v11343_v41 = vld [vmem:[#allocation19 + $0x3b4] ss:$8 sps:$4 sm:$0xff]   ;;  %v6632_v9 = vpop.f32.mrf.mxu1 }
 0xbf5   : > { %v11815_v12 = vpop.eup %11814  ;;  %v7558_v25 = vadd.f32 1.0, %v11813_v40  ;;  %v8031_v61 = vpack.c.bf16 %v7935_v59, %v7927_v3  ;;  %9206 = vmatpush2.bf16.msra.mxu0 %v11323_v44  ;;  %9094 = vmatprep.subr.bf16.mxu1 %v11328_v58  ;;  %v11335_v44 = vld [vmem:[#allocation19 + $0x3c0] ss:$8 sps:$4 sm:$0xff]   ;;  %v10100_v33 = vmul.f32 -1.702, %v15342_v10 }
 0xbf6   : > { %v11817_v47 = vpop.eup %11816  ;;  %11834 = vrcp.f32 %v7556_v17  ;;  %v7557_v51 = vadd.f32 1.0, %v11815_v12  ;;  %8910 = vmatprep.mubr.bf16.mxu1 %v8029_v21  ;;  %9207 = vmatprep.subr.bf16.mxu0 %v11331_v23  ;;  %v7412_v23 = vmul.f32 1.442695, %v10099_v60  ;;  %v7416_v40 = vmul.f32 1.442695, %v10101_v45  ;;  %v6745_v17 = vpop.f32.mrf.mxu0 }
 0xbf7   : > { %v11819_v42 = vpop.eup %11818  ;;  %11836 = vrcp.f32 %v7558_v25  ;;  %v7559_v52 = vadd.f32 1.0, %v11817_v47  ;;  %9023 = vmatprep.mubr.bf16.mxu0 %v8031_v61  ;;  %8911 = vmatmul.mubr.bf16.gmra.mxu1 %v8028_v6  ;;  %v10102_v24 = vmul.f32 -1.702, %v15350_v19  ;;  %v10107_v12 = vmul.f32 -1.702, %v15356_v49 }
 0xbf8   : > { %v11821_v32 = vpop.eup %11820  ;;  %11838 = vrcp.f32 %v7557_v51  ;;  %v7564_v35 = vadd.f32 1.0, %v11819_v42  ;;  %9024 = vmatmul.mubr.bf16.gmra.mxu0 %v8030_v0  ;;  %9095 = vmatpush2.bf16.msra.mxu1 %v11326_v8  ;;  %v15367_v6 = vadd.f32 %v15314_v36, %v15083_v38  ;;  %v11341_v25 = vld [vmem:[#allocation19 + $0x3b0] ss:$8 sps:$4 sm:$0xff]   ;;  %v11346_v47 = vld [vmem:[#allocation19 + $0x2a4] ss:$8 sps:$4 sm:$0xff]   ;;  %v15376_v51 = vadd.f32 %v15329_v34, %v15076_v37  ;;  %v15378_v36 = vpop.f32.mrf.mxu1 }
 0xbf9   : > { %v11823_v58 = vpop.eup %11822  ;;  %11840 = vrcp.f32 %v7559_v52  ;;  %v7566_v18 = vadd.f32 1.0, %v11821_v32  ;;  %9208 = vmatpush2.bf16.msra.mxu0 %v11329_v14  ;;  %9096 = vmatprep.subr.bf16.mxu1 %v11334_v1  ;;  %v10109_v14 = vmul.f32 -1.702, %v15360_v15  ;;  %v15372_v1 = vadd.f32 %v15316_v46, %v15087_v26  ;;  %v11349_v60 = vld [vmem:[#allocation19 + $0x3a4] ss:$8 sps:$4 sm:$0xff]   ;;  %v15384_v46 = vpop.f32.mrf.mxu0 }
 0xbfa   : > { %v11825_v30 = vpop.eup %11824  ;;  %11842 = vrcp.f32 %v7564_v35  ;;  %v7565_v62 = vadd.f32 1.0, %v11823_v58  ;;  %9209 = vmatprep.subr.bf16.mxu0 %v11337_v28  ;;  %v7414_v0 = vmul.f32 1.442695, %v10100_v33  ;;  %v7418_v28 = vmul.f32 1.442695, %v10102_v24 }
 0xbfb   : > { %v11827_v3 = vpop.eup %11826  ;;  %11844 = vrcp.f32 %v7566_v18  ;;  %v7567_v59 = vadd.f32 1.0, %v11825_v30  ;;  %v15382_v42 = vadd.f32 %v15338_v31, %v15080_v29  ;;  %v11344_v52 = vld [vmem:[#allocation19 + $0x2a0] ss:$8 sps:$4 sm:$0xff]   ;;  %v7428_v45 = vmul.f32 1.442695, %v10107_v12 }
 0xbfc   : > { %v11829_v21 = vpop.eup %11828  ;;  %11846 = vrcp.f32 %v7565_v62  ;;  %v7572_v8 = vadd.f32 1.0, %v11827_v3  ;;  %9097 = vmatpush2.bf16.msra.mxu1 %v11332_v50  ;;  %v10108_v32 = vmul.f32 -1.702, %v15367_v6  ;;  %v15389_v34 = vadd.f32 %v15345_v5, %v15083_v38  ;;  %v11347_v35 = vld [vmem:[#allocation19 + $0x3a0] ss:$8 sps:$4 sm:$0xff]   ;;  %v15400_v62 = vpop.f32.mrf.mxu1 }
 0xbfd   : > { %11848 = vrcp.f32 %v7567_v59  ;;  %v7574_v61 = vadd.f32 1.0, %v11829_v21  ;;  %9210 = vmatpush2.bf16.msra.mxu0 %v11335_v44  ;;  %9098 = vmatprep.subr.bf16.mxu1 %v11340_v4  ;;  %v7432_v44 = vmul.f32 1.442695, %v10109_v14  ;;  %v10110_v58 = vmul.f32 -1.702, %v15372_v1  ;;  %v15408_v59 = vpop.f32.mrf.mxu0 }
 0xbfe   : > { %11850 = vrcp.f32 %v7572_v8  ;;  %9211 = vmatprep.subr.bf16.mxu0 %v11343_v41  ;;  %v15394_v31 = vadd.f32 %v15352_v20, %v15087_v26  ;;  %v11352_v18 = vld [vmem:[#allocation19 + $0x294] ss:$8 sps:$4 sm:$0xff]   ;;  %v10115_v5 = vmul.f32 -1.702, %v15376_v51  ;;  %v15398_v30 = vadd.f32 %v6632_v9, %v15076_v37  ;;  %v11353_v8 = vld [vmem:[#allocation19 + $0x390] ss:$8 sps:$4 sm:$0xff]  }
 0xbff   : > { %11852 = vrcp.f32 %v7574_v61  ;;  %v10117_v20 = vmul.f32 -1.702, %v15382_v42  ;;  %v15406_v3 = vadd.f32 %v6745_v17, %v15080_v29  ;;  %v7430_v9 = vmul.f32 1.442695, %v10108_v32  ;;  %v11358_v17 = vld [vmem:[#allocation19 + $0x284] ss:$8 sps:$4 sm:$0xff]  }
 0xc00   : > { %11854 = vpow2.f32 %v7412_v23  ;;  %9099 = vmatpush2.bf16.msra.mxu1 %v11338_v2  ;;  %v11831_v50 = vpop.eup %11830  ;;  %16618 = vst [vmem:[#allocation33_spill] sm:$0xff] %v15394_v31  ;;  %16619 = vst [vmem:[#allocation68_spill] sm:$0xff] %v15398_v30  ;;  %v11355_v23 = vld [vmem:[#allocation19 + $0x394] ss:$8 sps:$4 sm:$0xff]   ;;  %v10116_v21 = vmul.f32 -1.702, %v15389_v34 }
 0xc01   : > { %11856 = vpow2.f32 %v7416_v40  ;;  %9212 = vmatpush2.bf16.msra.mxu0 %v11341_v25  ;;  %9100 = vmatprep.subr.bf16.mxu1 %v11346_v47  ;;  %v11833_v4 = vpop.eup %11832  ;;  %v7573_v41 = vadd.f32 1.0, %v11831_v50  ;;  %16620 = vst [vmem:[#allocation69_spill] sm:$0xff] %v15406_v3  ;;  %v11350_v40 = vld [vmem:[#allocation19 + $0x290] ss:$8 sps:$4 sm:$0xff]   ;;  %v7434_v25 = vmul.f32 1.442695, %v10110_v58  ;;  %v15424_v58 = vpop.f32.mrf.mxu0 }
 0xc02   : > { %11858 = vpow2.f32 %v7414_v0  ;;  %9213 = vmatprep.subr.bf16.mxu0 %v11349_v60  ;;  %v7575_v2 = vadd.f32 1.0, %v11833_v4  ;;  %v10118_v61 = vmul.f32 -1.702, %v15394_v31  ;;  %v7444_v47 = vmul.f32 1.442695, %v10115_v5  ;;  %v15419_v60 = vpop.f32.mrf.mxu1 }
 0xc03   : > { %v15402_v33 = vpop.eup %11834  ;;  %11860 = vpow2.f32 %v7418_v28  ;;  %v10123_v0 = vmul.f32 -1.702, %v15398_v30  ;;  %v11361_v28 = vld [vmem:[#allocation19 + $0x384] ss:$8 sps:$4 sm:$0xff]   ;;  %v7448_v32 = vmul.f32 1.442695, %v10117_v20 }
 0xc04   : > { %v15410_v24 = vpop.eup %11836  ;;  %11862 = vrcp.f32 %v7573_v41  ;;  %9101 = vmatpush2.bf16.msra.mxu1 %v11344_v52  ;;  %v10125_v50 = vmul.f32 -1.702, %v15406_v3  ;;  %v11356_v4 = vld [vmem:[#allocation19 + $0x280] ss:$8 sps:$4 sm:$0xff]   ;;  %v7450_v5 = vmul.f32 1.442695, %v10118_v61 }
 0xc05   : > { %v15413_v12 = vpop.eup %11838  ;;  %11864 = vrcp.f32 %v7575_v2  ;;  %9214 = vmatpush2.bf16.msra.mxu0 %v11347_v35  ;;  %9102 = vmatprep.subr.bf16.mxu1 %v11352_v18  ;;  %v7446_v18 = vmul.f32 1.442695, %v10116_v21  ;;  %v7460_v20 = vmul.f32 1.442695, %v10123_v0  ;;  %v15444_v21 = vpop.f32.mrf.mxu0  ;;  %v5874_v0 = vsub.s32 6, %v16614_v48 }
 0xc06   : > { %v15416_v14 = vpop.eup %11840  ;;  %11866 = vpow2.f32 %v7428_v45  ;;  %9215 = vmatprep.subr.bf16.mxu0 %v11355_v23  ;;  %v15430_v45 = vadd.f32 %v15378_v36, %v15083_v38  ;;  %v11359_v23 = vld [vmem:[#allocation19 + $0x380] ss:$8 sps:$4 sm:$0xff]  }
 0xc07   : > { %v15421_v52 = vpop.eup %11842  ;;  %11868 = vpow2.f32 %v7432_v44  ;;  %v15436_v44 = vadd.f32 %v15384_v46, %v15087_v26  ;;  %v15454_v3 = vpop.f32.mrf.mxu0 }
 0xc08   : > { %v15426_v35 = vpop.eup %11844  ;;  %11870 = vpow2.f32 %v7430_v9  ;;  %16621 = vst [vmem:[#allocation70_spill] sm:$0xff] %v15430_v45  ;;  %9103 = vmatpush2.bf16.msra.mxu1 %v11350_v40  ;;  %v15440_v9 = vpop.f32.mrf.mxu1  ;;  %v7464_v40 = vmul.f32 1.442695, %v10125_v50  ;;  %v10124_v46 = vmul.f32 -1.702, %v15430_v45 }
 0xc09   : > { %v15432_v41 = vpop.eup %11846  ;;  %11872 = vpow2.f32 %v7434_v25  ;;  %16622 = vst [vmem:[#allocation71_spill] sm:$0xff] %v15436_v44  ;;  %9216 = vmatpush2.bf16.msra.mxu0 %v11353_v8  ;;  %9104 = vmatprep.subr.bf16.mxu1 %v11358_v17  ;;  %v10126_v61 = vmul.f32 -1.702, %v15436_v44 }
 0xc0a   : > { %v15438_v2 = vpop.eup %11848  ;;  %11874 = vpow2.f32 %v7444_v47  ;;  %9217 = vmatprep.subr.bf16.mxu0 %v11361_v28  ;;  %v15451_v28 = vpop.f32.mrf.mxu1  ;;  %v7462_v45 = vmul.f32 1.442695, %v10124_v46  ;;  %v12274_v46 = vld [vmem:[%s16402_s11] sm:$0xff] }
 0xc0b   : > { %v15442_v36 = vpop.eup %11850  ;;  %11876 = vpow2.f32 %v7448_v32  ;;  %v7466_v44 = vmul.f32 1.442695, %v10126_v61  ;;  %v15479_v61 = vmul.f32 %v15402_v33, %v15237_v54 }
 0xc0c   : > { %v15446_v25 = vpop.eup %11852  ;;  %11878 = vpow2.f32 %v7446_v18  ;;  %9105 = vmatpush2.bf16.msra.mxu1 %v11356_v4  ;;  %v5878_v18 = vsub.s32 7, %v16614_v48 }
 0xc0d   : > { %v11855_v8 = vpop.eup %11854  ;;  %11880 = vpow2.f32 %v7450_v5  ;;  %9218 = vmatpush2.bf16.msra.mxu0 %v11359_v23  ;;  %v15458_v23 = vadd.f32 %v15400_v62, %v15076_v37  ;;  %v15475_v62 = vrot.slane %v12274_v46, %v5874_v0  ;;  %v15491_v0 = vmul.f32 %v15410_v24, %v15240_v63 }
 0xc0e   : > { %v11857_v17 = vpop.eup %11856  ;;  %v7580_v47 = vadd.f32 1.0, %v11855_v8  ;;  %11882 = vpow2.f32 %v7460_v20 }
 0xc0f   : > { %v11859_v32 = vpop.eup %11858  ;;  %v7582_v50 = vadd.f32 1.0, %v11857_v17  ;;  %11884 = vpow2.f32 %v7464_v40  ;;  %16623 = vst [vmem:[#allocation72_spill] sm:$0xff] %v15458_v23  ;;  %v15464_v40 = vadd.f32 %v15408_v59, %v15080_v29  ;;  %v16626_v29 = vsub.s32 5, %v16614_v48 }
 0xc10   : > { %v11861_v4 = vpop.eup %11860  ;;  %11886 = vrcp.f32 %v7580_v47  ;;  %v7581_v5 = vadd.f32 1.0, %v11859_v32  ;;  %v16625_v47 = vsub.s32 4, %v16614_v48  ;;  %v6792_v32 = vpop.f32.mrf.mxu1  ;;  %v10131_v48 = vmul.f32 -1.702, %v15458_v23 }
 0xc11   : > { %v15460_v20 = vpop.eup %11862  ;;  %11888 = vrcp.f32 %v7582_v50  ;;  %v7583_v8 = vadd.f32 1.0, %v11861_v4  ;;  %16624 = vst [vmem:[#allocation73_spill] sm:$0xff] %v15464_v40  ;;  %v15483_v59 = vrot.slane %v12274_v46, %v16626_v29  ;;  %v15485_v4 = vrot.slane %v12274_v46, %v5878_v18 }
 0xc12   : > { %v15466_v17 = vpop.eup %11864  ;;  %11890 = vrcp.f32 %v7581_v5  ;;  %v15473_v37 = vrot.slane %v12274_v46, %v16625_v47  ;;  %v15487_v5 = vpop.f32.mrf.mxu0  ;;  %v15495_v47 = vmul.f32 %v15413_v12, %v15245_v13  ;;  %v10133_v18 = vmul.f32 -1.702, %v15464_v40 }
 0xc13   : > { %v11867_v50 = vpop.eup %11866  ;;  %11892 = vrcp.f32 %v7583_v8  ;;  %v15501_v29 = vmul.f32 %v15416_v14, %v15248_v57  ;;  %v15505_v13 = vadd.f32 %v15419_v60, %v15083_v38  ;;  %v6794_v24 = vpop.f32.mrf.mxu1 }
 0xc14   : > { %v11869_v30 = vpop.eup %11868  ;;  %v7588_v54 = vadd.f32 1.0, %v11867_v50  ;;  %11894 = vpow2.f32 %v7462_v45  ;;  %v6907_v57 = vpop.f32.mrf.mxu0  ;;  %v15517_v50 = vmul.f32 %v15426_v35, %v15256_v11  ;;  %v15521_v60 = vadd.f32 %v15440_v9, %v15473_v37 }
 0xc15   : > { %v11871_v33 = vpop.eup %11870  ;;  %v7590_v8 = vadd.f32 1.0, %v11869_v30  ;;  %11896 = vpow2.f32 %v7466_v44  ;;  %16627 = vst [vmem:[#allocation74_spill] sm:$0xff] %v15505_v13  ;;  %v15509_v30 = vmul.f32 %v15421_v52, %v15253_v39  ;;  %v15513_v44 = vadd.f32 %v15424_v58, %v15087_v26  ;;  %v6798_v35 = vpop.f32.mrf.mxu1 }
 0xc16   : > { %v11873_v46 = vpop.eup %11872  ;;  %11898 = vrcp.f32 %v7588_v54  ;;  %v7589_v63 = vadd.f32 1.0, %v11871_v33  ;;  %16629 = vst [vmem:[#allocation76_spill] sm:$0xff] %v15521_v60  ;;  %v7476_v54 = vmul.f32 1.442695, %v10131_v48  ;;  %v7480_v33 = vmul.f32 1.442695, %v10133_v18  ;;  %v6911_v48 = vpop.f32.mrf.mxu0 }
 0xc17   : > { %v11875_v12 = vpop.eup %11874  ;;  %11900 = vrcp.f32 %v7590_v8  ;;  %v7591_v45 = vadd.f32 1.0, %v11873_v46  ;;  %16628 = vst [vmem:[#allocation75_spill] sm:$0xff] %v15513_v44  ;;  %v10132_v58 = vmul.f32 -1.702, %v15505_v13  ;;  %v15526_v11 = vadd.f32 %v15444_v21, %v15475_v62 }
 0xc18   : > { %v11877_v14 = vpop.eup %11876  ;;  %11902 = vrcp.f32 %v7589_v63  ;;  %v7596_v38 = vadd.f32 1.0, %v11875_v12  ;;  %v10134_v12 = vmul.f32 -1.702, %v15513_v44 }
 0xc19   : > { %v11879_v39 = vpop.eup %11878  ;;  %11904 = vrcp.f32 %v7591_v45  ;;  %v7598_v52 = vadd.f32 1.0, %v11877_v14  ;;  %16630 = vst [vmem:[#allocation77_spill] sm:$0xff] %v15526_v11  ;;  %v10015_v14 = vmul.f32 -1.702, %v15521_v60  ;;  %v6800_v60 = vpop.f32.mrf.mxu1 }
 0xc1a   : > { %v11881_v8 = vpop.eup %11880  ;;  %11906 = vrcp.f32 %v7596_v38  ;;  %v7597_v26 = vadd.f32 1.0, %v11879_v39  ;;  %v15534_v38 = vadd.f32 %v15451_v28, %v15483_v59  ;;  %v10017_v28 = vmul.f32 -1.702, %v15526_v11 }
 0xc1b   : > { %v11883_v46 = vpop.eup %11882  ;;  %11908 = vrcp.f32 %v7598_v52  ;;  %v7599_v63 = vadd.f32 1.0, %v11881_v8  ;;  %v15540_v52 = vadd.f32 %v15454_v3, %v15485_v4  ;;  %v15543_v8 = vadd.f32 %v6792_v32, %v15473_v37 }
 0xc1c   : > { %v11885_v18 = vpop.eup %11884  ;;  %11910 = vrcp.f32 %v7597_v26  ;;  %v7604_v45 = vadd.f32 1.0, %v11883_v46  ;;  %16631 = vst [vmem:[#allocation78_spill] sm:$0xff] %v15534_v38  ;;  %v7949_v26 = vmul.f32 %v15432_v41, %v15263_v22  ;;  %v7478_v46 = vmul.f32 1.442695, %v10132_v58 }
 0xc1d   : > { %v15536_v21 = vpop.eup %11886  ;;  %11912 = vrcp.f32 %v7599_v63  ;;  %v7606_v39 = vadd.f32 1.0, %v11885_v18  ;;  %16632 = vst [vmem:[#allocation79_spill] sm:$0xff] %v15540_v52  ;;  %16633 = vst [vmem:[#allocation80_spill] sm:$0xff] %v15543_v8  ;;  %v7951_v63 = vmul.f32 %v15438_v2, %v15266_v27  ;;  %v7482_v3 = vmul.f32 1.442695, %v10134_v12  ;;  %v6913_v18 = vpop.f32.mrf.mxu0 }
 0xc1e   : > { %v15545_v9 = vpop.eup %11888  ;;  %11914 = vrcp.f32 %v7604_v45  ;;  %v15556_v32 = vadd.f32 %v15487_v5, %v15475_v62  ;;  %v7244_v22 = vmul.f32 1.442695, %v10015_v14  ;;  %v10016_v41 = vmul.f32 -1.702, %v15534_v38  ;;  %v6802_v14 = vpop.f32.mrf.mxu1 }
 0xc1f   : > { %v15550_v40 = vpop.eup %11890  ;;  %11916 = vrcp.f32 %v7606_v39  ;;  %v15562_v58 = vadd.f32 %v6794_v24, %v15483_v59  ;;  %v10018_v27 = vmul.f32 -1.702, %v15540_v52  ;;  %v10023_v2 = vmul.f32 -1.702, %v15543_v8  ;;  %v6915_v8 = vpop.f32.mrf.mxu0 }
 0xc20   : > { %16634 = vst [vmem:[#allocation81_spill] sm:$0xff] %v15556_v32  ;;  %v15558_v44 = vpop.eup %11892  ;;  %11918 = vpow2.f32 %v7476_v54  ;;  %v15567_v12 = vadd.f32 %v6907_v57, %v15485_v4  ;;  %v7248_v11 = vmul.f32 1.442695, %v10017_v28  ;;  %v15570_v54 = vadd.f32 %v6798_v35, %v15473_v37  ;;  %v6804_v13 = vpop.f32.mrf.mxu1 }
 0xc21   : > { %v11895_v45 = vpop.eup %11894  ;;  %11920 = vpow2.f32 %v7480_v33  ;;  %v10025_v33 = vmul.f32 -1.702, %v15556_v32  ;;  %v15576_v52 = vadd.f32 %v6911_v48, %v15475_v62  ;;  %v7246_v28 = vmul.f32 1.442695, %v10016_v41 }
 0xc22   : > { %v11897_v5 = vpop.eup %11896  ;;  %v7605_v39 = vadd.f32 1.0, %v11895_v45  ;;  %11922 = vpow2.f32 %v7478_v46  ;;  %16635 = vst [vmem:[#allocation82_spill] sm:$0xff] %v15570_v54  ;;  %v8038_v46 = vpack.c.bf16 %v15517_v50, %v15491_v0  ;;  %v10024_v35 = vmul.f32 -1.702, %v15562_v58 }
 0xc23   : > { %v15572_v38 = vpop.eup %11898  ;;  %v7607_v24 = vadd.f32 1.0, %v11897_v5  ;;  %11924 = vpow2.f32 %v7482_v3  ;;  %v7250_v5 = vmul.f32 1.442695, %v10018_v27  ;;  %v7260_v3 = vmul.f32 1.442695, %v10023_v2  ;;  %v6917_v2 = vpop.f32.mrf.mxu0 }
 0xc24   : > { %v15578_v57 = vpop.eup %11900  ;;  %11926 = vrcp.f32 %v7605_v39  ;;  %v10026_v32 = vmul.f32 -1.702, %v15567_v12  ;;  %v10031_v48 = vmul.f32 -1.702, %v15570_v54  ;;  %v8037_v31 = vpack.c.bf16 %v7949_v26, %v15495_v47 }
 0xc25   : > { %v15583_v45 = vpop.eup %11902  ;;  %11928 = vrcp.f32 %v7607_v24  ;;  %v8039_v0 = vpack.c.bf16 %v7951_v63, %v15501_v29  ;;  %v7264_v41 = vmul.f32 1.442695, %v10025_v33  ;;  %v10033_v39 = vmul.f32 -1.702, %v15576_v52  ;;  %v15609_v63 = vpop.f32.mrf.mxu1 }
 0xc26   : > { %v15586_v23 = vpop.eup %11904  ;;  %11930 = vpow2.f32 %v7244_v22  ;;  %v15595_v27 = vadd.f32 %v6800_v60, %v15483_v59  ;;  %v7262_v22 = vmul.f32 1.442695, %v10024_v35  ;;  %8920 = vmatprep.mubr.bf16.mxu1 %v8037_v31  ;;  %v7266_v47 = vmul.f32 1.442695, %v10026_v32 }
 0xc27   : > { %v15591_v50 = vpop.eup %11906  ;;  %11932 = vpow2.f32 %v7248_v11  ;;  %9033 = vmatprep.mubr.bf16.mxu0 %v8039_v0  ;;  %v15602_v29 = vadd.f32 %v6913_v18, %v15485_v4  ;;  %v16636_v11 = vpack.c.bf16 %v15509_v30, %v15479_v61  ;;  %v7276_v26 = vmul.f32 1.442695, %v10031_v48 }
 0xc28   : > { %v15597_v24 = vpop.eup %11908  ;;  %11934 = vpow2.f32 %v7246_v28  ;;  %9034 = vmatmul.mubr.bf16.gmra.mxu0 %v8038_v46  ;;  %v7280_v33 = vmul.f32 1.442695, %v10033_v39  ;;  %v10032_v32 = vmul.f32 -1.702, %v15595_v27  ;;  %v15615_v18 = vadd.f32 %v6802_v14, %v15473_v37  ;;  %v15617_v28 = vpop.f32.mrf.mxu0 }
 0xc29   : > { %v15599_v54 = vpop.eup %11910  ;;  %11936 = vpow2.f32 %v7250_v5  ;;  %8921 = vmatmul.mubr.bf16.gmra.mxu1 %v16636_v11  ;;  %v15623_v30 = vmul.f32 %v15442_v36, %v15283_v55  ;;  %v15627_v46 = vmul.f32 %v15446_v25, %v15286_v16  ;;  %v7957_v35 = vmul.f32 %v15460_v20, %v15308_v56  ;;  %v15643_v20 = vpop.f32.mrf.mxu1 }
 0xc2a   : > { %v15607_v60 = vpop.eup %11912  ;;  %11938 = vpow2.f32 %v7260_v3  ;;  %v7964_v14 = vmul.f32 %v15536_v21, %v15325_v43  ;;  %v15635_v3 = vmul.f32 %v15545_v9, %v15336_v53  ;;  %v10034_v55 = vmul.f32 -1.702, %v15602_v29  ;;  %v15646_v9 = vpop.f32.mrf.mxu0 }
 0xc2b   : > { %v15611_v31 = vpop.eup %11914  ;;  %11940 = vpow2.f32 %v7264_v41  ;;  %v7965_v16 = vmul.f32 %v15550_v40, %v15342_v10  ;;  %v15641_v56 = vadd.f32 %v6915_v8, %v15475_v62  ;;  %v7278_v21 = vmul.f32 1.442695, %v10032_v32 }
 0xc2c   : > { %v15619_v61 = vpop.eup %11916  ;;  %11942 = vpow2.f32 %v7262_v22  ;;  %v10039_v53 = vmul.f32 -1.702, %v15615_v18  ;;  %v7967_v41 = vmul.f32 %v15558_v44, %v15350_v19  ;;  %v15651_v40 = vadd.f32 %v6804_v13, %v15483_v59  ;;  %v15664_v13 = vpop.f32.mrf.mxu1 }
 0xc2d   : > { %v11919_v5 = vpop.eup %11918  ;;  %11944 = vpow2.f32 %v7266_v47  ;;  %v7282_v22 = vmul.f32 1.442695, %v10034_v55  ;;  %v15656_v47 = vadd.f32 %v6917_v2, %v15485_v4  ;;  %v8044_v19 = vpack.c.bf16 %v7964_v14, %v15623_v30  ;;  %v6925_v55 = vpop.f32.mrf.mxu0 }
 0xc2e   : > { %v11921_v36 = vpop.eup %11920  ;;  %v7612_v25 = vadd.f32 1.0, %v11919_v5  ;;  %11946 = vpow2.f32 %v7276_v26  ;;  %v7959_v26 = vmul.f32 %v15466_v17, %v15312_v7  ;;  %v10041_v44 = vmul.f32 -1.702, %v15641_v56 }
 0xc2f   : > { %v11923_v48 = vpop.eup %11922  ;;  %v7614_v43 = vadd.f32 1.0, %v11921_v36  ;;  %11948 = vpow2.f32 %v7280_v33  ;;  %v8046_v32 = vpack.c.bf16 %v15635_v3, %v15627_v46  ;;  %v15670_v2 = vmul.f32 %v15572_v38, %v15356_v49 }
 0xc30   : > { %v11925_v0 = vpop.eup %11924  ;;  %11950 = vrcp.f32 %v7612_v25  ;;  %v7613_v10 = vadd.f32 1.0, %v11923_v48  ;;  %v15672_v5 = vmul.f32 1.442695, %v10039_v53  ;;  %v10040_v30 = vmul.f32 -1.702, %v15651_v40  ;;  %v6814_v53 = vpop.f32.mrf.mxu1 }
 0xc31   : > { %v15653_v8 = vpop.eup %11926  ;;  %11952 = vrcp.f32 %v7614_v43  ;;  %v7615_v39 = vadd.f32 1.0, %v11925_v0  ;;  %v8045_v14 = vpack.c.bf16 %v7965_v16, %v7957_v35  ;;  %v10042_v48 = vmul.f32 -1.702, %v15656_v47 }
 0xc32   : > { %v15658_v11 = vpop.eup %11928  ;;  %11954 = vrcp.f32 %v7613_v10  ;;  %v8047_v46 = vpack.c.bf16 %v7967_v41, %v7959_v26  ;;  %v15678_v49 = vmul.f32 %v15578_v57, %v15360_v15  ;;  %v7296_v43 = vmul.f32 1.442695, %v10041_v44  ;;  %v6927_v41 = vpop.f32.mrf.mxu0 }
 0xc33   : > { %v11931_v33 = vpop.eup %11930  ;;  %11956 = vrcp.f32 %v7615_v39  ;;  %8930 = vmatprep.mubr.bf16.mxu1 %v8045_v14  ;;  %v15682_v35 = vmul.f32 %v15583_v45, %v15367_v6  ;;  %v15686_v0 = vadd.f32 %v15609_v63, %v15473_v37  ;;  %v15690_v57 = vmul.f32 %v15586_v23, %v15372_v1  ;;  %v6818_v44 = vpop.f32.mrf.mxu1 }
 0xc34   : > { %v11933_v7 = vpop.eup %11932  ;;  %v7496_v17 = vadd.f32 1.0, %v11931_v33  ;;  %11958 = vpow2.f32 %v7278_v21  ;;  %9043 = vmatprep.mubr.bf16.mxu0 %v8047_v46  ;;  %8931 = vmatmul.mubr.bf16.gmra.mxu1 %v8044_v19  ;;  %v15694_v6 = vadd.f32 %v15617_v28, %v15475_v62  ;;  %v7294_v63 = vmul.f32 1.442695, %v10040_v30 }
 0xc35   : > { %v11935_v36 = vpop.eup %11934  ;;  %v7498_v25 = vadd.f32 1.0, %v11933_v7  ;;  %11960 = vpow2.f32 %v7282_v22  ;;  %9044 = vmatmul.mubr.bf16.gmra.mxu0 %v8046_v32  ;;  %v7298_v22 = vmul.f32 1.442695, %v10042_v48  ;;  %v15698_v19 = vmul.f32 %v15591_v50, %v15376_v51 }
 0xc36   : > { %v11937_v3 = vpop.eup %11936  ;;  %11962 = vrcp.f32 %v7496_v17  ;;  %v7497_v38 = vadd.f32 1.0, %v11935_v36  ;;  %v15702_v1 = vmul.f32 %v15597_v24, %v15382_v42  ;;  %v10047_v32 = vmul.f32 -1.702, %v15686_v0  ;;  %v6931_v17 = vpop.f32.mrf.mxu0 }
 0xc37   : > { %v11939_v21 = vpop.eup %11938  ;;  %11964 = vrcp.f32 %v7498_v25  ;;  %v7499_v16 = vadd.f32 1.0, %v11937_v3  ;;  %v15707_v7 = vadd.f32 %v15643_v20, %v15483_v59  ;;  %v10049_v50 = vmul.f32 -1.702, %v15694_v6  ;;  %v6820_v3 = vpop.f32.mrf.mxu1 }
 0xc38   : > { %v11941_v15 = vpop.eup %11940  ;;  %11966 = vrcp.f32 %v7497_v38  ;;  %v7504_v10 = vadd.f32 1.0, %v11939_v21  ;;  %v15712_v42 = vadd.f32 %v15646_v9, %v15485_v4  ;;  %v15718_v36 = vadd.f32 %v15664_v13, %v15473_v37  ;;  %v16638_v13 = vld [vmem:[#allocation33_spill] sm:$0xff] }
 0xc39   : > { %v11943_v45 = vpop.eup %11942  ;;  %11968 = vrcp.f32 %v7499_v16  ;;  %v7506_v39 = vadd.f32 1.0, %v11941_v15  ;;  %v15721_v20 = vadd.f32 %v6925_v55, %v15475_v62  ;;  %v8052_v48 = vpack.c.bf16 %v15698_v19, %v15670_v2  ;;  %v6933_v15 = vpop.f32.mrf.mxu0 }
 0xc3a   : > { %v11945_v26 = vpop.eup %11944  ;;  %11970 = vrcp.f32 %v7504_v10  ;;  %v7505_v23 = vadd.f32 1.0, %v11943_v45  ;;  %16637 = vst [vmem:[#allocation83_spill] sm:$0xff] %v15712_v42  ;;  %v8054_v9 = vpack.c.bf16 %v15702_v1, %v15678_v49  ;;  %v7981_v46 = vmul.f32 %v15599_v54, %v15389_v34 }
 0xc3b   : > { %v11947_v28 = vpop.eup %11946  ;;  %11972 = vrcp.f32 %v7506_v39  ;;  %v7507_v33 = vadd.f32 1.0, %v11945_v26  ;;  %v7983_v21 = vmul.f32 %v15607_v60, %v16638_v13  ;;  %v7308_v55 = vmul.f32 1.442695, %v10047_v32  ;;  %v16643_v13 = vld [vmem:[#allocation68_spill] sm:$0xff] }
 0xc3c   : > { %v11949_v30 = vpop.eup %11948  ;;  %11974 = vrcp.f32 %v7505_v23  ;;  %v7512_v51 = vadd.f32 1.0, %v11947_v28  ;;  %v10048_v16 = vmul.f32 -1.702, %v15707_v7  ;;  %v7312_v2 = vmul.f32 1.442695, %v10049_v50  ;;  %v6935_v28 = vpop.f32.mrf.mxu0 }
 0xc3d   : > { %v15714_v24 = vpop.eup %11950  ;;  %11976 = vrcp.f32 %v7507_v33  ;;  %v7514_v14 = vadd.f32 1.0, %v11949_v30  ;;  %v10050_v49 = vmul.f32 -1.702, %v15712_v42  ;;  %v15741_v34 = vadd.f32 %v6814_v53, %v15483_v59  ;;  %v6822_v53 = vpop.f32.mrf.mxu1 }
 0xc3e   : > { %v15723_v25 = vpop.eup %11952  ;;  %11978 = vrcp.f32 %v7512_v51  ;;  %v10055_v45 = vmul.f32 -1.702, %v15718_v36  ;;  %v10057_v60 = vmul.f32 -1.702, %v15721_v20  ;;  %v15746_v39 = vadd.f32 %v6927_v41, %v15485_v4 }
 0xc3f   : > { %v15731_v38 = vpop.eup %11954  ;;  %11980 = vrcp.f32 %v7514_v14  ;;  %v15752_v1 = vadd.f32 %v6931_v17, %v15475_v62  ;;  %v8053_v33 = vpack.c.bf16 %v7981_v46, %v15682_v35  ;;  %v8055_v41 = vpack.c.bf16 %v7983_v21, %v15690_v57  ;;  %v6824_v46 = vpop.f32.mrf.mxu1 }
 0xc40   : > { %v15736_v10 = vpop.eup %11956  ;;  %11982 = vpow2.f32 %v15672_v5  ;;  %v15749_v5 = vadd.f32 %v6818_v44, %v15473_v37  ;;  %v10056_v44 = vmul.f32 -1.702, %v15741_v34  ;;  %v15762_v30 = vadd.f32 %v6820_v3, %v15483_v59 }
 0xc41   : > { %v11959_v54 = vpop.eup %11958  ;;  %11984 = vpow2.f32 %v7296_v43  ;;  %16640 = vst [vmem:[#allocation84_spill] sm:$0xff] %v15752_v1  ;;  %v7314_v51 = vmul.f32 1.442695, %v10050_v49  ;;  %v15768_v50 = vadd.f32 %v6933_v15, %v15485_v4  ;;  %8940 = vmatprep.mubr.bf16.mxu1 %v8053_v33  ;;  %9053 = vmatprep.mubr.bf16.mxu0 %v8055_v41  ;;  %v7324_v57 = vmul.f32 1.442695, %v10055_v45  ;;  %v6937_v49 = vpop.f32.mrf.mxu0  ;;  %v16646_v33 = vld [vmem:[#allocation71_spill] sm:$0xff] }
 0xc42   : > { %v11961_v26 = vpop.eup %11960  ;;  %v7513_v19 = vadd.f32 1.0, %v11959_v54  ;;  %11986 = vpow2.f32 %v7294_v63  ;;  %16639 = vst [vmem:[#allocation33_spill] sm:$0xff] %v15749_v5  ;;  %v7310_v63 = vmul.f32 1.442695, %v10048_v16  ;;  %16641 = vst [vmem:[#allocation85_spill] sm:$0xff] %v15762_v30  ;;  %8941 = vmatmul.mubr.bf16.gmra.mxu1 %v8052_v48  ;;  %9054 = vmatmul.mubr.bf16.gmra.mxu0 %v8054_v9  ;;  %v15777_v21 = vmul.f32 %v15611_v31, %v16643_v13 }
 0xc43   : > { %v15754_v23 = vpop.eup %11962  ;;  %v7515_v43 = vadd.f32 1.0, %v11961_v26  ;;  %11988 = vpow2.f32 %v7298_v22  ;;  %v10058_v22 = vmul.f32 -1.702, %v15746_v39  ;;  %16642 = vst [vmem:[#allocation86_spill] sm:$0xff] %v15768_v50  ;;  %v10063_v14 = vmul.f32 -1.702, %v15749_v5 }
 0xc44   : > { %v15758_v32 = vpop.eup %11964  ;;  %11990 = vrcp.f32 %v7513_v19  ;;  %v7328_v16 = vmul.f32 1.442695, %v10057_v60  ;;  %v10065_v15 = vmul.f32 -1.702, %v15752_v1  ;;  %v7326_v48 = vmul.f32 1.442695, %v10056_v44  ;;  %v6828_v44 = vpop.f32.mrf.mxu1 }
 0xc45   : > { %v15764_v17 = vpop.eup %11966  ;;  %11992 = vrcp.f32 %v7515_v43  ;;  %v10064_v9 = vmul.f32 -1.702, %v15762_v30  ;;  %v16645_v19 = vld [vmem:[#allocation70_spill] sm:$0xff]  ;;  %v10066_v60 = vmul.f32 -1.702, %v15768_v50  ;;  %v7991_v41 = vmul.f32 %v15658_v11, %v16646_v33  ;;  %v16652_v30 = vld [vmem:[#allocation73_spill] sm:$0xff] }
 0xc46   : > { %v15770_v35 = vpop.eup %11968  ;;  %11994 = vpow2.f32 %v7308_v55  ;;  %v16644_v55 = vld [vmem:[#allocation69_spill] sm:$0xff]  ;;  %v7989_v31 = vmul.f32 %v15653_v8, %v16645_v19  ;;  %v15802_v8 = vadd.f32 %v6935_v28, %v15475_v62  ;;  %v16649_v11 = vld [vmem:[#allocation74_spill] sm:$0xff]  ;;  %v16651_v28 = vld [vmem:[#allocation75_spill] sm:$0xff]  ;;  %v7998_v5 = vmul.f32 %v15723_v25, %v16652_v30 }
 0xc47   : > { %v15773_v3 = vpop.eup %11970  ;;  %11996 = vpow2.f32 %v7312_v2  ;;  %v15784_v45 = vmul.f32 %v15619_v61, %v16644_v55  ;;  %v7330_v2 = vmul.f32 1.442695, %v10058_v22  ;;  %v7340_v61 = vmul.f32 1.442695, %v10063_v14  ;;  %v6941_v22 = vpop.f32.mrf.mxu0 }
 0xc48   : > { %v15780_v54 = vpop.eup %11972  ;;  %11998 = vpow2.f32 %v7310_v63  ;;  %v15797_v63 = vadd.f32 %v6822_v53, %v15473_v37  ;;  %v7344_v55 = vmul.f32 1.442695, %v10065_v15  ;;  %16647 = vst [vmem:[#allocation68_spill] sm:$0xff] %v15802_v8  ;;  %v7342_v53 = vmul.f32 1.442695, %v10064_v9 }
 0xc49   : > { %v15787_v26 = vpop.eup %11974  ;;  %12000 = vpow2.f32 %v7314_v51  ;;  %v15805_v51 = vadd.f32 %v6824_v46, %v15483_v59  ;;  %v15812_v14 = vadd.f32 %v6937_v49, %v15485_v4  ;;  %v7999_v1 = vmul.f32 %v15736_v10, %v16651_v28 }
 0xc4a   : > { %v15792_v43 = vpop.eup %11976  ;;  %12002 = vpow2.f32 %v7324_v57  ;;  %v7997_v57 = vmul.f32 %v15731_v38, %v16649_v11  ;;  %v7346_v46 = vmul.f32 1.442695, %v10066_v60  ;;  %v10071_v38 = vmul.f32 -1.702, %v15797_v63 }
 0xc4b   : > { %v15799_v13 = vpop.eup %11978  ;;  %12004 = vpow2.f32 %v7328_v16  ;;  %16648 = vst [vmem:[#allocation69_spill] sm:$0xff] %v15805_v51  ;;  %v16650_v16 = vld [vmem:[#allocation72_spill] sm:$0xff]  ;;  %v10073_v11 = vmul.f32 -1.702, %v15802_v8  ;;  %v10074_v60 = vmul.f32 -1.702, %v15812_v14 }
 0xc4c   : > { %v15807_v19 = vpop.eup %11980  ;;  %12006 = vpow2.f32 %v7326_v48  ;;  %v7996_v15 = vmul.f32 %v15714_v24, %v16650_v16  ;;  %v6830_v48 = vpop.f32.mrf.mxu1  ;;  %v10072_v24 = vmul.f32 -1.702, %v15805_v51  ;;  %v8061_v28 = vpack.c.bf16 %v7997_v57, %v7989_v31 }
 0xc4d   : > { %v11983_v33 = vpop.eup %11982  ;;  %12008 = vpow2.f32 %v7330_v2  ;;  %v6943_v16 = vpop.f32.mrf.mxu0 }
 0xc4e   : > { %v11985_v50 = vpop.eup %11984  ;;  %v7520_v42 = vadd.f32 1.0, %v11983_v33  ;;  %12010 = vpow2.f32 %v7340_v61  ;;  %v8060_v30 = vpack.c.bf16 %v7996_v15, %v15777_v21  ;;  %v8063_v33 = vpack.c.bf16 %v7999_v1, %v7991_v41  ;;  %v6832_v51 = vpop.f32.mrf.mxu1  ;;  %8950 = vmatprep.mubr.bf16.mxu1 %v8061_v28 }
 0xc4f   : > { %v11987_v49 = vpop.eup %11986  ;;  %v7522_v9 = vadd.f32 1.0, %v11985_v50  ;;  %12012 = vpow2.f32 %v7344_v55  ;;  %v8062_v55 = vpack.c.bf16 %v7998_v5, %v15784_v45  ;;  %v6945_v31 = vpop.f32.mrf.mxu0  ;;  %v15834_v1 = vmul.f32 1.442695, %v10072_v24 }
 0xc50   : > { %v11989_v10 = vpop.eup %11988  ;;  %12014 = vrcp.f32 %v7520_v42  ;;  %v7521_v2 = vadd.f32 1.0, %v11987_v49  ;;  %v15830_v42 = vmul.f32 1.442695, %v10071_v38  ;;  %v15832_v49 = vmul.f32 1.442695, %v10073_v11  ;;  %9063 = vmatprep.mubr.bf16.mxu0 %v8063_v33  ;;  %8951 = vmatmul.mubr.bf16.gmra.mxu1 %v8060_v30  ;;  %v16654_v11 = vld [vmem:[#allocation76_spill] sm:$0xff]  ;;  %v6834_v24 = vpop.f32.mrf.mxu1 }
 0xc51   : > { %v15824_v25 = vpop.eup %11990  ;;  %12016 = vrcp.f32 %v7522_v9  ;;  %v7523_v61 = vadd.f32 1.0, %v11989_v10  ;;  %v15837_v41 = vadd.f32 %v6828_v44, %v15473_v37  ;;  %9064 = vmatmul.mubr.bf16.gmra.mxu0 %v8062_v55  ;;  %v15839_v15 = vmul.f32 1.442695, %v10074_v60  ;;  %v6947_v28 = vpop.f32.mrf.mxu0 }
 0xc52   : > { %v15827_v50 = vpop.eup %11992  ;;  %12018 = vrcp.f32 %v7521_v2  ;;  %v15842_v38 = vadd.f32 %v6941_v22, %v15475_v62  ;;  %v15846_v10 = vmul.f32 %v15754_v23, %v16654_v11  ;;  %v15853_v60 = vadd.f32 %v6830_v48, %v15483_v59  ;;  %v16656_v23 = vld [vmem:[#allocation78_spill] sm:$0xff]  ;;  %v6838_v11 = vpop.f32.mrf.mxu1 }
 0xc53   : > { %v11995_v8 = vpop.eup %11994  ;;  %12020 = vrcp.f32 %v7523_v61  ;;  %v15856_v22 = vadd.f32 %v6943_v16, %v15485_v4  ;;  %v7881_v61 = vmul.f32 %v15764_v17, %v16656_v23  ;;  %v10079_v33 = vmul.f32 -1.702, %v15837_v41  ;;  %v16659_v23 = vld [vmem:[#allocation81_spill] sm:$0xff] }
 0xc54   : > { %v11997_v21 = vpop.eup %11996  ;;  %v7528_v57 = vadd.f32 1.0, %v11995_v8  ;;  %12022 = vpow2.f32 %v7342_v53  ;;  %16653 = vst [vmem:[#allocation70_spill] sm:$0xff] %v15842_v38  ;;  %v16655_v8 = vld [vmem:[#allocation77_spill] sm:$0xff]  ;;  %v10081_v48 = vmul.f32 -1.702, %v15842_v38  ;;  %v7889_v16 = vmul.f32 %v15787_v26, %v15562_v58 }
 0xc55   : > { %v11999_v5 = vpop.eup %11998  ;;  %v7530_v45 = vadd.f32 1.0, %v11997_v21  ;;  %12024 = vpow2.f32 %v7346_v46  ;;  %v15850_v53 = vmul.f32 %v15758_v32, %v16655_v8  ;;  %v16657_v21 = vld [vmem:[#allocation79_spill] sm:$0xff]  ;;  %v15873_v58 = vadd.f32 %v6832_v51, %v15473_v37  ;;  %v6840_v51 = vpop.f32.mrf.mxu1 }
 0xc56   : > { %v12001_v9 = vpop.eup %12000  ;;  %12026 = vrcp.f32 %v7528_v57  ;;  %v7529_v44 = vadd.f32 1.0, %v11999_v5  ;;  %v7883_v57 = vmul.f32 %v15770_v35, %v16657_v21  ;;  %v7890_v35 = vmul.f32 %v15780_v54, %v16659_v23 }
 0xc57   : > { %v12003_v2 = vpop.eup %12002  ;;  %12028 = vrcp.f32 %v7530_v45  ;;  %v7531_v46 = vadd.f32 1.0, %v12001_v9  ;;  %v7891_v9 = vmul.f32 %v15792_v43, %v15567_v12  ;;  %v15876_v12 = vadd.f32 %v6945_v31, %v15475_v62 }
 0xc58   : > { %v12005_v30 = vpop.eup %12004  ;;  %12030 = vrcp.f32 %v7529_v44  ;;  %v7536_v32 = vadd.f32 1.0, %v12003_v2  ;;  %v16658_v44 = vld [vmem:[#allocation80_spill] sm:$0xff]  ;;  %v15884_v54 = vadd.f32 %v6947_v28, %v15485_v4  ;;  %v7372_v28 = vmul.f32 1.442695, %v10079_v33 }
 0xc59   : > { %v12007_v55 = vpop.eup %12006  ;;  %12032 = vrcp.f32 %v7531_v46  ;;  %v7538_v5 = vadd.f32 1.0, %v12005_v30  ;;  %v7888_v2 = vmul.f32 %v15773_v3, %v16658_v44  ;;  %v6951_v30 = vpop.f32.mrf.mxu0  ;;  %v15881_v3 = vadd.f32 %v6834_v24, %v15483_v59 }
 0xc5a   : > { %v12009_v45 = vpop.eup %12008  ;;  %12034 = vrcp.f32 %v7536_v32  ;;  %v7537_v17 = vadd.f32 1.0, %v12007_v55  ;;  %v10080_v55 = vmul.f32 -1.702, %v15853_v60  ;;  %v10082_v24 = vmul.f32 -1.702, %v15856_v22 }
 0xc5b   : > { %v12011_v8 = vpop.eup %12010  ;;  %12036 = vrcp.f32 %v7538_v5  ;;  %v7539_v46 = vadd.f32 1.0, %v12009_v45  ;;  %v8009_v5 = vpack.c.bf16 %v7889_v16, %v7881_v61  ;;  %v8011_v45 = vpack.c.bf16 %v7891_v9, %v7883_v57  ;;  %v6953_v44 = vpop.f32.mrf.mxu0 }
 0xc5c   : > { %v12013_v21 = vpop.eup %12012  ;;  %12038 = vrcp.f32 %v7537_v17  ;;  %v7544_v38 = vadd.f32 1.0, %v12011_v8  ;;  %v8008_v17 = vpack.c.bf16 %v7888_v2, %v15846_v10  ;;  %v8010_v8 = vpack.c.bf16 %v7890_v35, %v15850_v53 }
 0xc5d   : > { %v15878_v26 = vpop.eup %12014  ;;  %12040 = vrcp.f32 %v7539_v46  ;;  %v7546_v43 = vadd.f32 1.0, %v12013_v21  ;;  %v7376_v46 = vmul.f32 1.442695, %v10081_v48  ;;  %9106 = vmatprep.mubr.bf16.mxu1 %v8009_v5  ;;  %9219 = vmatprep.mubr.bf16.mxu0 %v8011_v45  ;;  %v10089_v10 = vmul.f32 -1.702, %v15876_v12  ;;  %v6842_v48 = vpop.f32.mrf.mxu1  ;;  %v16662_v45 = vld [vmem:[#allocation82_spill] sm:$0xff] }
 0xc5e   : > { %v15886_v32 = vpop.eup %12016  ;;  %12042 = vrcp.f32 %v7544_v38  ;;  %v10087_v38 = vmul.f32 -1.702, %v15873_v58  ;;  %v10088_v53 = vmul.f32 -1.702, %v15881_v3  ;;  %v10090_v57 = vmul.f32 -1.702, %v15884_v54  ;;  %9107 = vmatmul.mubr.bf16.vlgmr.msra.gmra.mxu1 %v8008_v17  ;;  %9220 = vmatmul.mubr.bf16.vlgmr.msra.gmra.mxu0 %v8010_v8 }
 0xc5f   : > { %v12019_v31 = vpop.eup %12018  ;;  %12044 = vrcp.f32 %v7546_v43  ;;  %v15900_v33 = vadd.f32 %v6838_v11, %v15473_v37  ;;  %v7378_v35 = vmul.f32 1.442695, %v10082_v24  ;;  %v15906_v21 = vadd.f32 %v6951_v30, %v15475_v62  ;;  %v6955_v43 = vpop.f32.mrf.mxu0 }
 0xc60   : > { %v12021_v23 = vpop.eup %12020  ;;  %12046 = vpow2.f32 %v15830_v42  ;;  %v7374_v42 = vmul.f32 1.442695, %v10080_v55  ;;  %v15916_v11 = vmul.f32 %v15807_v19, %v15576_v52  ;;  %v7388_v55 = vmul.f32 1.442695, %v10087_v38  ;;  %v6844_v19 = vpop.f32.mrf.mxu1 }
 0xc61   : > { %v12023_v61 = vpop.eup %12022  ;;  %12048 = vpow2.f32 %v15832_v49  ;;  %16660 = vst [vmem:[#allocation71_spill] sm:$0xff] %v15900_v33  ;;  %16661 = vst [vmem:[#allocation74_spill] sm:$0xff] %v15906_v21  ;;  %v7390_v8 = vmul.f32 1.442695, %v10088_v53  ;;  %v7394_v30 = vmul.f32 1.442695, %v10090_v57  ;;  %v15934_v53 = vadd.f32 %v6953_v44, %v15485_v4  ;;  %v6957_v57 = vpop.f32.mrf.mxu0 }
 0xc62   : > { %v12025_v16 = vpop.eup %12024  ;;  %v7545_v9 = vadd.f32 1.0, %v12023_v61  ;;  %12050 = vpow2.f32 %v15834_v1  ;;  %v15912_v1 = vmul.f32 %v15799_v13, %v16662_v45  ;;  %v7897_v61 = vmul.f32 %v15824_v25, %v15595_v27 }
 0xc63   : > { %v15902_v2 = vpop.eup %12026  ;;  %v7547_v49 = vadd.f32 1.0, %v12025_v16  ;;  %12052 = vpow2.f32 %v15839_v15  ;;  %v7392_v15 = vmul.f32 1.442695, %v10089_v10  ;;  %v7899_v13 = vmul.f32 %v15827_v50, %v15602_v29  ;;  %16663 = vst [vmem:[#allocation72_spill] sm:$0xff] %v15934_v53 }
 0xc64   : > { %v15908_v5 = vpop.eup %12028  ;;  %12054 = vrcp.f32 %v7545_v9  ;;  %v10095_v52 = vmul.f32 -1.702, %v15900_v33  ;;  %v10097_v38 = vmul.f32 -1.702, %v15906_v21  ;;  %v15931_v10 = vadd.f32 %v6840_v51, %v15483_v59 }
 0xc65   : > { %v15918_v17 = vpop.eup %12030  ;;  %12056 = vrcp.f32 %v7547_v49  ;;  %v7905_v29 = vmul.f32 %v12019_v31, %v15651_v40  ;;  %v15940_v25 = vadd.f32 %v6842_v48, %v15473_v37  ;;  %v15943_v50 = vadd.f32 %v6955_v43, %v15475_v62  ;;  %v6848_v48 = vpop.f32.mrf.mxu1 }
 0xc66   : > { %v15920_v24 = vpop.eup %12032  ;;  %12058 = vpow2.f32 %v7372_v28  ;;  %v7904_v51 = vmul.f32 %v15878_v26, %v15615_v18  ;;  %v7907_v44 = vmul.f32 %v12021_v23, %v15656_v47  ;;  %v7906_v40 = vmul.f32 %v15886_v32, %v15641_v56  ;;  %v6961_v32 = vpop.f32.mrf.mxu0 }
 0xc67   : > { %v15927_v16 = vpop.eup %12034  ;;  %12060 = vpow2.f32 %v7376_v46  ;;  %v15951_v46 = vadd.f32 %v6844_v19, %v15483_v59  ;;  %v7404_v31 = vmul.f32 1.442695, %v10095_v52  ;;  %v7408_v18 = vmul.f32 1.442695, %v10097_v38  ;;  %v6850_v21 = vpop.f32.mrf.mxu1 }
 0xc68   : > { %v15936_v27 = vpop.eup %12036  ;;  %12062 = vpow2.f32 %v7374_v42  ;;  %v15958_v42 = vadd.f32 %v6957_v57, %v15485_v4  ;;  %v10096_v47 = vmul.f32 -1.702, %v15931_v10  ;;  %v10098_v26 = vmul.f32 -1.702, %v15934_v53 }
 0xc69   : > { %v15945_v28 = vpop.eup %12038  ;;  %12064 = vpow2.f32 %v7378_v35  ;;  %v10103_v35 = vmul.f32 -1.702, %v15940_v25  ;;  %v10105_v56 = vmul.f32 -1.702, %v15943_v50  ;;  %v8017_v43 = vpack.c.bf16 %v7905_v29, %v7897_v61 }
 0xc6a   : > { %v15953_v9 = vpop.eup %12040  ;;  %12066 = vpow2.f32 %v7388_v55  ;;  %v8016_v55 = vpack.c.bf16 %v7904_v51, %v15912_v1  ;;  %v8019_v52 = vpack.c.bf16 %v7907_v44, %v7899_v13  ;;  %v8018_v38 = vpack.c.bf16 %v7906_v40, %v15916_v11  ;;  %v6963_v51 = vpop.f32.mrf.mxu0 }
 0xc6b   : > { %v15960_v49 = vpop.eup %12042  ;;  %12068 = vpow2.f32 %v7392_v15  ;;  %v10104_v15 = vmul.f32 -1.702, %v15951_v46  ;;  %9116 = vmatprep.mubr.bf16.mxu1 %v8017_v43  ;;  %v15973_v61 = vadd.f32 %v6848_v48, %v15473_v37  ;;  %v15976_v1 = vadd.f32 %v6961_v32, %v15475_v62 }
 0xc6c   : > { %v15964_v23 = vpop.eup %12044  ;;  %12070 = vpow2.f32 %v7390_v8  ;;  %v10106_v8 = vmul.f32 -1.702, %v15958_v42  ;;  %9229 = vmatprep.mubr.bf16.mxu0 %v8019_v52  ;;  %9117 = vmatmul.mubr.bf16.gmra.mxu1 %v8016_v55  ;;  %v7406_v13 = vmul.f32 1.442695, %v10096_v47  ;;  %v7410_v29 = vmul.f32 1.442695, %v10098_v26  ;;  %v6852_v47 = vpop.f32.mrf.mxu1 }
 0xc6d   : > { %v12047_v45 = vpop.eup %12046  ;;  %12072 = vpow2.f32 %v7394_v30  ;;  %9230 = vmatmul.mubr.bf16.gmra.mxu0 %v8018_v38  ;;  %v15982_v48 = vmul.f32 1.442695, %v10105_v56  ;;  %v15986_v32 = vmul.f32 1.442695, %v10104_v15  ;;  %v15996_v56 = vadd.f32 %v6963_v51, %v15485_v4  ;;  %v16664_v51 = vld [vmem:[#allocation83_spill] sm:$0xff] }
 0xc6e   : > { %v12049_v19 = vpop.eup %12048  ;;  %v7552_v57 = vadd.f32 1.0, %v12047_v45  ;;  %12074 = vpow2.f32 %v7404_v31  ;;  %v15980_v31 = vmul.f32 1.442695, %v10103_v35  ;;  %v15988_v43 = vmul.f32 1.442695, %v10106_v8  ;;  %v6965_v8 = vpop.f32.mrf.mxu0 }
 0xc6f   : > { %v12051_v53 = vpop.eup %12050  ;;  %v7554_v33 = vadd.f32 1.0, %v12049_v19  ;;  %12076 = vpow2.f32 %v7408_v18  ;;  %v10113_v35 = vmul.f32 -1.702, %v15976_v1  ;;  %v7912_v55 = vmul.f32 %v15902_v2, %v15686_v0  ;;  %v6854_v2 = vpop.f32.mrf.mxu1 }
 0xc70   : > { %v12053_v30 = vpop.eup %12052  ;;  %12078 = vrcp.f32 %v7552_v57  ;;  %v7553_v11 = vadd.f32 1.0, %v12051_v53  ;;  %v15991_v53 = vadd.f32 %v6850_v21, %v15483_v59  ;;  %v7914_v15 = vmul.f32 %v15908_v5, %v15694_v6 }
 0xc71   : > { %v15978_v44 = vpop.eup %12054  ;;  %12080 = vrcp.f32 %v7554_v33  ;;  %v7555_v40 = vadd.f32 1.0, %v12053_v30  ;;  %v10111_v33 = vmul.f32 -1.702, %v15973_v61  ;;  %v7921_v19 = vmul.f32 %v15945_v28, %v15741_v34 }
 0xc72   : > { %v15984_v18 = vpop.eup %12056  ;;  %12082 = vrcp.f32 %v7553_v11  ;;  %v16005_v57 = vadd.f32 %v6852_v47, %v15473_v37  ;;  %v7920_v11 = vmul.f32 %v15927_v16, %v15718_v36  ;;  %v7923_v0 = vmul.f32 %v15953_v9, %v15746_v39 }
 0xc73   : > { %v12059_v26 = vpop.eup %12058  ;;  %12084 = vrcp.f32 %v7555_v40  ;;  %v7913_v34 = vmul.f32 %v15918_v17, %v15707_v7  ;;  %v7922_v28 = vmul.f32 %v15936_v27, %v15721_v20  ;;  %v7915_v40 = vmul.f32 %v15920_v24, %v16664_v51 }
 0xc74   : > { %v12061_v45 = vpop.eup %12060  ;;  %v7560_v52 = vadd.f32 1.0, %v12059_v26  ;;  %12086 = vpow2.f32 %v7406_v13  ;;  %v16018_v39 = vadd.f32 %v6965_v8, %v15475_v62  ;;  %v16021_v47 = vadd.f32 %v6854_v2, %v15483_v59  ;;  %v6967_v26 = vpop.f32.mrf.mxu0 }
 0xc75   : > { %v12063_v21 = vpop.eup %12062  ;;  %v7562_v38 = vadd.f32 1.0, %v12061_v45  ;;  %12088 = vpow2.f32 %v7410_v29  ;;  %v8025_v7 = vpack.c.bf16 %v7921_v19, %v7913_v34  ;;  %v8024_v20 = vpack.c.bf16 %v7920_v11, %v7912_v55 }
 0xc76   : > { %v12065_v30 = vpop.eup %12064  ;;  %12090 = vrcp.f32 %v7560_v52  ;;  %v7561_v6 = vadd.f32 1.0, %v12063_v21  ;;  %v8027_v45 = vpack.c.bf16 %v7923_v0, %v7915_v40  ;;  %v8026_v24 = vpack.c.bf16 %v7922_v28, %v7914_v15 }
 0xc77   : > { %v12067_v5 = vpop.eup %12066  ;;  %12092 = vrcp.f32 %v7562_v38  ;;  %v7563_v13 = vadd.f32 1.0, %v12065_v30  ;;  %v10112_v38 = vmul.f32 -1.702, %v15991_v53  ;;  %9126 = vmatprep.mubr.bf16.mxu1 %v8025_v7  ;;  %v7440_v2 = vmul.f32 1.442695, %v10113_v35  ;;  %v6971_v35 = vpop.f32.mrf.mxu0 }
 0xc78   : > { %v12069_v29 = vpop.eup %12068  ;;  %12094 = vrcp.f32 %v7561_v6  ;;  %v7568_v36 = vadd.f32 1.0, %v12067_v5  ;;  %v7436_v6 = vmul.f32 1.442695, %v10111_v33  ;;  %v6858_v5 = vpop.f32.mrf.mxu1  ;;  %9239 = vmatprep.mubr.bf16.mxu0 %v8027_v45  ;;  %9127 = vmatmul.mubr.bf16.gmra.mxu1 %v8024_v20  ;;  %v10114_v11 = vmul.f32 -1.702, %v15996_v56 }
 0xc79   : > { %v12071_v16 = vpop.eup %12070  ;;  %12096 = vrcp.f32 %v7563_v13  ;;  %v7570_v9 = vadd.f32 1.0, %v12069_v29  ;;  %v10119_v15 = vmul.f32 -1.702, %v16005_v57  ;;  %9240 = vmatmul.mubr.bf16.gmra.mxu0 %v8026_v24  ;;  %v10121_v34 = vmul.f32 -1.702, %v16018_v39  ;;  %v16665_v29 = vld [vmem:[#allocation33_spill] sm:$0xff] }
 0xc7a   : > { %v12073_v17 = vpop.eup %12072  ;;  %12098 = vrcp.f32 %v7568_v36  ;;  %v7569_v27 = vadd.f32 1.0, %v12071_v16  ;;  %v10120_v28 = vmul.f32 -1.702, %v16021_v47  ;;  %v16029_v33 = vadd.f32 %v6967_v26, %v15485_v4 }
 0xc7b   : > { %v12075_v52 = vpop.eup %12074  ;;  %12100 = vrcp.f32 %v7570_v9  ;;  %v7571_v21 = vadd.f32 1.0, %v12073_v17  ;;  %v7928_v51 = vmul.f32 %v15960_v49, %v16665_v29  ;;  %v16035_v36 = vadd.f32 %v6858_v5, %v15473_v37  ;;  %v16666_v9 = vld [vmem:[#allocation85_spill] sm:$0xff]  ;;  %v16667_v17 = vld [vmem:[#allocation68_spill] sm:$0xff] }
 0xc7c   : > { %v12077_v8 = vpop.eup %12076  ;;  %12102 = vrcp.f32 %v7569_v27  ;;  %v7576_v30 = vadd.f32 1.0, %v12075_v52  ;;  %v7929_v7 = vmul.f32 %v15978_v44, %v16666_v9  ;;  %v16668_v27 = vld [vmem:[#allocation69_spill] sm:$0xff]  ;;  %v16669_v52 = vld [vmem:[#allocation86_spill] sm:$0xff]  ;;  %v16047_v24 = vadd.f32 %v6971_v35, %v15475_v62 }
 0xc7d   : > { %v12079_v55 = vpop.eup %12078  ;;  %12104 = vrcp.f32 %v7571_v21  ;;  %v7578_v19 = vadd.f32 1.0, %v12077_v8  ;;  %v7931_v49 = vmul.f32 %v15984_v18, %v16669_v52  ;;  %v16670_v8 = vld [vmem:[#allocation84_spill] sm:$0xff]  ;;  %v10122_v35 = vmul.f32 -1.702, %v16029_v33 }
 0xc7e   : > { %v12081_v0 = vpop.eup %12080  ;;  %12106 = vrcp.f32 %v7576_v30  ;;  %v7936_v40 = vmul.f32 %v12079_v55, %v15797_v63  ;;  %v7930_v44 = vmul.f32 %v15964_v23, %v16670_v8  ;;  %v7442_v23 = vmul.f32 1.442695, %v10114_v11 }
 0xc7f   : > { %v12083_v13 = vpop.eup %12082  ;;  %12108 = vrcp.f32 %v7578_v19  ;;  %v7938_v20 = vmul.f32 %v12081_v0, %v16667_v17  ;;  %v10127_v29 = vmul.f32 -1.702, %v16035_v36 }
 0xc80   : > { %v12085_v16 = vpop.eup %12084  ;;  %v7937_v26 = vmul.f32 %v12083_v13, %v16668_v27  ;;  %12110 = vpow2.f32 %v15980_v31  ;;  %v8032_v55 = vpack.c.bf16 %v7936_v40, %v7928_v51  ;;  %v6973_v51 = vpop.f32.mrf.mxu0  ;;  %v7452_v40 = vmul.f32 1.442695, %v10119_v15 }
 0xc81   : > { %v12087_v45 = vpop.eup %12086  ;;  %v7939_v63 = vmul.f32 %v12085_v16, %v15812_v14  ;;  %12112 = vpow2.f32 %v15982_v48  ;;  %v8034_v0 = vpack.c.bf16 %v7938_v20, %v7930_v44  ;;  %v7438_v48 = vmul.f32 1.442695, %v10112_v38  ;;  %v6860_v16 = vpop.f32.mrf.mxu1 }
 0xc82   : > { %v12089_v21 = vpop.eup %12088  ;;  %v7577_v30 = vadd.f32 1.0, %v12087_v45  ;;  %12114 = vpow2.f32 %v15986_v32  ;;  %v8033_v5 = vpack.c.bf16 %v7937_v26, %v7929_v7  ;;  %v10129_v32 = vmul.f32 -1.702, %v16047_v24 }
 0xc83   : > { %v12091_v31 = vpop.eup %12090  ;;  %v7579_v19 = vadd.f32 1.0, %v12089_v21  ;;  %12116 = vpow2.f32 %v15988_v43  ;;  %v8035_v18 = vpack.c.bf16 %v7939_v63, %v7931_v49  ;;  %v7456_v38 = vmul.f32 1.442695, %v10121_v34  ;;  %v6862_v52 = vpop.f32.mrf.mxu1 }
 0xc84   : > { %v12093_v14 = vpop.eup %12092  ;;  %12118 = vrcp.f32 %v7577_v30  ;;  %9136 = vmatprep.mubr.bf16.mxu1 %v8033_v5  ;;  %v7454_v7 = vmul.f32 1.442695, %v10120_v28  ;;  %v7458_v20 = vmul.f32 1.442695, %v10122_v35  ;;  %v16057_v11 = vadd.f32 %v6860_v16, %v15483_v59  ;;  %v6975_v63 = vpop.f32.mrf.mxu0  ;;  %v16671_v5 = vld [vmem:[#allocation70_spill] sm:$0xff] }
 0xc85   : > { %v12095_v13 = vpop.eup %12094  ;;  %12120 = vrcp.f32 %v7579_v19  ;;  %9249 = vmatprep.mubr.bf16.mxu0 %v8035_v18  ;;  %9137 = vmatmul.mubr.bf16.gmra.mxu1 %v8032_v55  ;;  %v16060_v27 = vadd.f32 %v6973_v51, %v15485_v4  ;;  %v7472_v15 = vmul.f32 1.442695, %v10129_v32  ;;  %v7944_v8 = vmul.f32 %v12091_v31, %v15837_v41 }
 0xc86   : > { %v12097_v43 = vpop.eup %12096  ;;  %12122 = vpow2.f32 %v7436_v6  ;;  %9250 = vmatmul.mubr.bf16.gmra.mxu0 %v8034_v0  ;;  %v7468_v6 = vmul.f32 1.442695, %v10127_v29  ;;  %v7946_v55 = vmul.f32 %v12093_v14, %v16671_v5  ;;  %v6864_v0 = vpop.f32.mrf.mxu1 }
 0xc87   : > { %v12099_v9 = vpop.eup %12098  ;;  %12124 = vpow2.f32 %v7440_v2  ;;  %v7945_v2 = vmul.f32 %v12095_v13, %v15853_v60  ;;  %v7947_v44 = vmul.f32 %v12097_v43, %v15856_v22  ;;  %v10128_v60 = vmul.f32 -1.702, %v16057_v11 }
 0xc88   : > { %v12101_v17 = vpop.eup %12100  ;;  %12126 = vpow2.f32 %v7438_v48  ;;  %v7952_v45 = vmul.f32 %v12099_v9, %v15873_v58  ;;  %v10130_v18 = vmul.f32 -1.702, %v16060_v27 }
 0xc89   : > { %v12103_v26 = vpop.eup %12102  ;;  %12128 = vpow2.f32 %v7442_v23  ;;  %v7954_v34 = vmul.f32 %v12101_v17, %v15876_v12  ;;  %v7470_v32 = vmul.f32 1.442695, %v10128_v60 }
 0xc8a   : > { %v12105_v49 = vpop.eup %12104  ;;  %v7953_v28 = vmul.f32 %v12103_v26, %v15881_v3  ;;  %12130 = vpow2.f32 %v7452_v40  ;;  %v8040_v19 = vpack.c.bf16 %v7952_v45, %v7944_v8  ;;  %v7474_v40 = vmul.f32 1.442695, %v10130_v18  ;;  %v8196_v26 = vld [vmem:[%s16404_s13] sm:$0x3]  ;;  %v16673_v18 = vld [vmem:[#allocation34_spill] sm:$0xff] }
 0xc8b   : > { %v16066_v21 = vpop.eup %12106  ;;  %v7955_v58 = vmul.f32 %v12105_v49, %v15884_v54  ;;  %12132 = vpow2.f32 %v7456_v38  ;;  %v8042_v22 = vpack.c.bf16 %v7954_v34, %v7946_v55  ;;  %v6977_v54 = vpop.f32.mrf.mxu0 }
 0xc8c   : > { %v16071_v30 = vpop.eup %12108  ;;  %12134 = vpow2.f32 %v7454_v7  ;;  %v8041_v12 = vpack.c.bf16 %v7953_v28, %v7945_v2  ;;  %v16099_v28 = vadd.f32 %v6975_v63, %v15475_v62  ;;  %v16113_v62 = vadd.f32 %v6977_v54, %v15485_v4 }
 0xc8d   : > { %v12111_v3 = vpop.eup %12110  ;;  %12136 = vpow2.f32 %v7458_v20  ;;  %v8043_v41 = vpack.c.bf16 %v7955_v58, %v7947_v44  ;;  %v16089_v20 = vadd.f32 %v6862_v52, %v15473_v37  ;;  %v16102_v37 = vadd.f32 %v6864_v0, %v15483_v59  ;;  %v16672_v58 = vld [vmem:[#allocation35_spill] sm:$0xff] }
 0xc8e   : > { %v12113_v31 = vpop.eup %12112  ;;  %v7584_v48 = vadd.f32 1.0, %v12111_v3  ;;  %12138 = vpow2.f32 %v7468_v6  ;;  %9146 = vmatprep.mubr.bf16.mxu1 %v8041_v12  ;;  %v16107_v5 = vrot.slane %v8196_v26, %v16672_v58  ;;  %v16116_v0 = vrot.slane %v8196_v26, %v16673_v18 }
 0xc8f   : > { %v12115_v35 = vpop.eup %12114  ;;  %v7586_v13 = vadd.f32 1.0, %v12113_v31  ;;  %12140 = vpow2.f32 %v7472_v15  ;;  %9259 = vmatprep.mubr.bf16.mxu0 %v8043_v41  ;;  %9147 = vmatmul.mubr.bf16.gmra.mxu1 %v8040_v19  ;;  %v16076_v14 = vpop.f32.mrf.mxu1  ;;  %v10135_v3 = vmul.f32 -1.702, %v16089_v20  ;;  %v10138_v26 = vmul.f32 -1.702, %v16113_v62 }
 0xc90   : > { %v12117_v23 = vpop.eup %12116  ;;  %12142 = vrcp.f32 %v7584_v48  ;;  %v7585_v29 = vadd.f32 1.0, %v12115_v35  ;;  %9260 = vmatmul.mubr.bf16.gmra.mxu0 %v8042_v22  ;;  %v16078_v16 = vpop.f32.mrf.mxu0  ;;  %v10137_v35 = vmul.f32 -1.702, %v16099_v28 }
 0xc91   : > { %v16080_v51 = vpop.eup %12118  ;;  %12144 = vrcp.f32 %v7586_v13  ;;  %v7587_v43 = vadd.f32 1.0, %v12117_v23  ;;  %v16082_v9 = vpop.f32.mrf.mxu1  ;;  %v10136_v13 = vmul.f32 -1.702, %v16102_v37 }
 0xc92   : > { %v16084_v38 = vpop.eup %12120  ;;  %12146 = vrcp.f32 %v7585_v29  ;;  %v16086_v7 = vpop.f32.mrf.mxu0 }
 0xc93   : > { %v12123_v17 = vpop.eup %12122  ;;  %12148 = vrcp.f32 %v7587_v43  ;;  %v16094_v45 = vpop.f32.mrf.mxu1 }
 0xc94   : > { %v12125_v6 = vpop.eup %12124  ;;  %v7592_v15 = vadd.f32 1.0, %v12123_v17  ;;  %12150 = vpow2.f32 %v7470_v32  ;;  %v16096_v49 = vpop.f32.mrf.mxu0 }
 0xc95   : > { %v12127_v2 = vpop.eup %12126  ;;  %v7594_v34 = vadd.f32 1.0, %v12125_v6  ;;  %12152 = vpow2.f32 %v7474_v40  ;;  %v16104_v52 = vpop.f32.mrf.mxu1 }
 0xc96   : > { %v12129_v8 = vpop.eup %12128  ;;  %12154 = vrcp.f32 %v7592_v15  ;;  %v7593_v44 = vadd.f32 1.0, %v12127_v2  ;;  %v16109_v55 = vpop.f32.mrf.mxu0  ;;  %v7484_v2 = vmul.f32 1.442695, %v10135_v3 }
 0xc97   : > { %v12131_v60 = vpop.eup %12130  ;;  %12156 = vrcp.f32 %v7594_v34  ;;  %v7595_v12 = vadd.f32 1.0, %v12129_v8  ;;  %v8892_v59 = vpop.f32.mrf.mxu1 }
 0xc98   : > { %v12133_v63 = vpop.eup %12132  ;;  %12158 = vrcp.f32 %v7593_v44  ;;  %v7600_v19 = vadd.f32 1.0, %v12131_v60  ;;  %v8893_v41 = vadd.f32 %v8892_v59, %v16107_v5  ;;  %v9005_v31 = vpop.f32.mrf.mxu0  ;;  %v7488_v60 = vmul.f32 1.442695, %v10137_v35 }
 0xc99   : > { %v12135_v22 = vpop.eup %12134  ;;  %12160 = vrcp.f32 %v7595_v12  ;;  %v7602_v48 = vadd.f32 1.0, %v12133_v63  ;;  %v8894_v23 = vpop.f32.mrf.mxu1  ;;  %v7486_v63 = vmul.f32 1.442695, %v10136_v13 }
 0xc9a   : > { %v12137_v4 = vpop.eup %12136  ;;  %12162 = vrcp.f32 %v7600_v19  ;;  %v7601_v54 = vadd.f32 1.0, %v12135_v22  ;;  %v16121_v29 = vadd.f32 %v9005_v31, %v8893_v41  ;;  %v8895_v32 = vadd.f32 %v8894_v23, %v16116_v0  ;;  %v9007_v43 = vpop.f32.mrf.mxu0 }
 0xc9b   : > { %v12139_v40 = vpop.eup %12138  ;;  %12164 = vrcp.f32 %v7602_v48  ;;  %v7603_v17 = vadd.f32 1.0, %v12137_v4  ;;  %v8896_v6 = vpop.f32.mrf.mxu1  ;;  %v7961_v31 = vmul.f32 %v16080_v51, %v15931_v10  ;;  %v7490_v22 = vmul.f32 1.442695, %v10138_v26  ;;  %v16676_v51 = vld [vmem:[#allocation74_spill] sm:$0xff] }
 0xc9c   : > { %v12141_v15 = vpop.eup %12140  ;;  %12166 = vrcp.f32 %v7601_v54  ;;  %v16125_v34 = vadd.f32 %v9007_v43, %v8895_v32  ;;  %v8897_v8 = vadd.f32 %v8896_v6, %v16107_v5  ;;  %v9009_v44 = vpop.f32.mrf.mxu0  ;;  %v16674_v32 = vld [vmem:[#allocation71_spill] sm:$0xff]  ;;  %v7962_v26 = vmul.f32 %v16071_v30, %v16676_v51 }
 0xc9d   : > { %v12143_v58 = vpop.eup %12142  ;;  %12168 = vrcp.f32 %v7603_v17  ;;  %v8898_v12 = vpop.f32.mrf.mxu1  ;;  %v7960_v43 = vmul.f32 %v16066_v21, %v16674_v32  ;;  %v16675_v17 = vld [vmem:[#allocation72_spill] sm:$0xff] }
 0xc9e   : > { %v12145_v59 = vpop.eup %12144  ;;  %v16128_v19 = vadd.f32 %v9009_v44, %v8897_v8  ;;  %v8899_v18 = vadd.f32 %v8898_v12, %v16116_v0  ;;  %v7968_v3 = vmul.f32 %v12143_v58, %v15940_v25  ;;  %v9011_v48 = vpop.f32.mrf.mxu0  ;;  %12170 = vpow2.f32 %v7484_v2 }
 0xc9f   : > { %v12147_v41 = vpop.eup %12146  ;;  %v7970_v4 = vmul.f32 %v12145_v59, %v15943_v50  ;;  %v7963_v6 = vmul.f32 %v16084_v38, %v16675_v17  ;;  %12172 = vpow2.f32 %v7488_v60  ;;  %v7608_v12 = vadd.f32 1.0, %v12139_v40 }
 0xca0   : > { %v12149_v23 = vpop.eup %12148  ;;  %v7969_v35 = vmul.f32 %v12147_v41, %v15951_v46  ;;  %v16136_v54 = vadd.f32 %v9011_v48, %v8899_v18  ;;  %12174 = vpow2.f32 %v7486_v63  ;;  %v8048_v2 = vpack.c.bf16 %v7968_v3, %v7960_v43 }
 0xca1   : > { %v12151_v13 = vpop.eup %12150  ;;  %v7971_v10 = vmul.f32 %v12149_v23, %v15958_v42  ;;  %12176 = vpow2.f32 %v7490_v22  ;;  %v8050_v58 = vpack.c.bf16 %v7970_v4, %v7962_v26  ;;  %v7610_v63 = vadd.f32 1.0, %v12141_v15 }
 0xca2   : > { %v12153_v25 = vpop.eup %12152  ;;  %v8049_v50 = vpack.c.bf16 %v7969_v35, %v7961_v31  ;;  %v7609_v22 = vadd.f32 1.0, %v12151_v13  ;;  %12178 = vrcp.f32 %v7608_v12 }
 0xca3   : > { %v12155_v46 = vpop.eup %12154  ;;  %v8051_v8 = vpack.c.bf16 %v7971_v10, %v7963_v6  ;;  %v7611_v35 = vadd.f32 1.0, %v12153_v25  ;;  %12180 = vrcp.f32 %v7610_v63 }
 0xca4   : > { %v12157_v44 = vpop.eup %12156  ;;  %9156 = vmatprep.mubr.bf16.mxu1 %v8049_v50  ;;  %v7976_v48 = vmul.f32 %v12155_v46, %v15973_v61  ;;  %12182 = vrcp.f32 %v7609_v22 }
 0xca5   : > { %v12159_v21 = vpop.eup %12158  ;;  %9269 = vmatprep.mubr.bf16.mxu0 %v8051_v8  ;;  %9157 = vmatmul.mubr.bf16.gmra.mxu1 %v8048_v2  ;;  %v7978_v40 = vmul.f32 %v12157_v44, %v15976_v1  ;;  %12184 = vrcp.f32 %v7611_v35 }
 0xca6   : > { %v12161_v38 = vpop.eup %12160  ;;  %9270 = vmatmul.mubr.bf16.gmra.mxu0 %v8050_v58  ;;  %v7977_v41 = vmul.f32 %v12159_v21, %v15991_v53 }
 0xca7   : > { %v12163_v42 = vpop.eup %12162  ;;  %v7979_v23 = vmul.f32 %v12161_v38, %v15996_v56 }
 0xca8   : > { %v12165_v60 = vpop.eup %12164  ;;  %v7984_v30 = vmul.f32 %v12163_v42, %v16005_v57 }
 0xca9   : > { %v12167_v59 = vpop.eup %12166  ;;  %v7986_v31 = vmul.f32 %v12165_v60, %v16018_v39 }
 0xcaa   : > { %v12169_v18 = vpop.eup %12168  ;;  %v7985_v3 = vmul.f32 %v12167_v59, %v16021_v47  ;;  %v8056_v32 = vpack.c.bf16 %v7984_v30, %v7976_v48 }
 0xcab   : > { %v7987_v4 = vmul.f32 %v12169_v18, %v16029_v33  ;;  %v12171_v15 = vpop.eup %12170  ;;  %v8058_v39 = vpack.c.bf16 %v7986_v31, %v7978_v40 }
 0xcac   : > { %v8057_v57 = vpack.c.bf16 %v7985_v3, %v7977_v41  ;;  %v12173_v43 = vpop.eup %12172  ;;  %v7616_v47 = vadd.f32 1.0, %v12171_v15 }
 0xcad   : > { %v8059_v53 = vpack.c.bf16 %v7987_v4, %v7979_v23  ;;  %v12175_v13 = vpop.eup %12174  ;;  %v7618_v61 = vadd.f32 1.0, %v12173_v43 }
 0xcae   : > { %9166 = vmatprep.mubr.bf16.mxu1 %v8057_v57  ;;  %v12177_v33 = vpop.eup %12176  ;;  %12186 = vrcp.f32 %v7616_v47  ;;  %v7617_v1 = vadd.f32 1.0, %v12175_v13 }
 0xcaf   : > { %9279 = vmatprep.mubr.bf16.mxu0 %v8059_v53  ;;  %9167 = vmatmul.mubr.bf16.gmra.mxu1 %v8056_v32  ;;  %v8902_v56 = vpop.f32.mrf.mxu1  ;;  %12188 = vrcp.f32 %v7618_v61  ;;  %v7619_v10 = vadd.f32 1.0, %v12177_v33  ;;  %v12179_v63 = vpop.eup %12178 }
 0xcb0   : > { %9280 = vmatmul.mubr.bf16.gmra.mxu0 %v8058_v39  ;;  %v8903_v17 = vadd.f32 %v8902_v56, %v16107_v5  ;;  %v9015_v6 = vpop.f32.mrf.mxu0  ;;  %12190 = vrcp.f32 %v7617_v1  ;;  %v12181_v41 = vpop.eup %12180 }
 0xcb1   : > { %v8904_v25 = vpop.f32.mrf.mxu1  ;;  %12192 = vrcp.f32 %v7619_v10  ;;  %v12183_v48 = vpop.eup %12182  ;;  %v7992_v10 = vmul.f32 %v12179_v63, %v16035_v36 }
 0xcb2   : > { %v16154_v51 = vadd.f32 %v9015_v6, %v8903_v17  ;;  %v8905_v26 = vadd.f32 %v8904_v25, %v16116_v0  ;;  %v9017_v50 = vpop.f32.mrf.mxu0  ;;  %v12185_v4 = vpop.eup %12184  ;;  %v7993_v33 = vmul.f32 %v12183_v48, %v16057_v11 }
 0xcb3   : > { %v8906_v46 = vpop.f32.mrf.mxu1  ;;  %v7995_v25 = vmul.f32 %v12185_v4, %v16060_v27 }
 0xcb4   : > { %v16157_v2 = vadd.f32 %v9017_v50, %v8905_v26  ;;  %v8907_v8 = vadd.f32 %v8906_v46, %v16107_v5  ;;  %v9019_v44 = vpop.f32.mrf.mxu0  ;;  %v7994_v50 = vmul.f32 %v12181_v41, %v16047_v24 }
 0xcb5   : > { %v8908_v58 = vpop.f32.mrf.mxu1 }
 0xcb6   : > { %v16160_v21 = vadd.f32 %v9019_v44, %v8907_v8  ;;  %v8909_v38 = vadd.f32 %v8908_v58, %v16116_v0  ;;  %v9021_v42 = vpop.f32.mrf.mxu0 }
 0xcb7   : > { %v8912_v60 = vpop.f32.mrf.mxu1 }
 0xcb8   : > { %v16163_v12 = vadd.f32 %v9021_v42, %v8909_v38  ;;  %v8913_v59 = vadd.f32 %v8912_v60, %v16107_v5  ;;  %v9025_v30 = vpop.f32.mrf.mxu0 }
 0xcb9   : > { %v8914_v18 = vpop.f32.mrf.mxu1 }
 0xcba   : > { %v16166_v31 = vadd.f32 %v9025_v30, %v8913_v59  ;;  %v8915_v3 = vadd.f32 %v8914_v18, %v16116_v0  ;;  %v9027_v22 = vpop.f32.mrf.mxu0 }
 0xcbb   : > { %v8916_v23 = vpop.f32.mrf.mxu1  ;;  %v12187_v15 = vpop.eup %12186 }
 0xcbc   : > { %v16169_v35 = vadd.f32 %v9027_v22, %v8915_v3  ;;  %v8917_v40 = vadd.f32 %v8916_v23, %v16107_v5  ;;  %v9029_v57 = vpop.f32.mrf.mxu0  ;;  %v12189_v53 = vpop.eup %12188  ;;  %v8000_v13 = vmul.f32 %v12187_v15, %v16089_v20 }
 0xcbd   : > { %v8918_v32 = vpop.f32.mrf.mxu1  ;;  %v12191_v47 = vpop.eup %12190  ;;  %v8002_v1 = vmul.f32 %v12189_v53, %v16099_v28 }
 0xcbe   : > { %v16172_v43 = vadd.f32 %v9029_v57, %v8917_v40  ;;  %v8919_v39 = vadd.f32 %v8918_v32, %v16116_v0  ;;  %v9031_v61 = vpop.f32.mrf.mxu0  ;;  %v12193_v56 = vpop.eup %12192  ;;  %v8001_v17 = vmul.f32 %v12191_v47, %v16102_v37  ;;  %v8064_v20 = vpack.c.bf16 %v8000_v13, %v7992_v10 }
 0xcbf   : > { %v8003_v26 = vmul.f32 %v12193_v56, %v16113_v62  ;;  %v8066_v44 = vpack.c.bf16 %v8002_v1, %v7994_v50 }
 0xcc0   : > { %v16179_v6 = vadd.f32 %v9031_v61, %v8919_v39  ;;  %v8065_v46 = vpack.c.bf16 %v8001_v17, %v7993_v33 }
 0xcc1   : > { %v8067_v8 = vpack.c.bf16 %v8003_v26, %v7995_v25 }
 0xcc2   : > { %9176 = vmatprep.mubr.bf16.mxu1 %v8065_v46 }
 0xcc3   : > { %9289 = vmatprep.mubr.bf16.mxu0 %v8067_v8  ;;  %9177 = vmatmul.mubr.bf16.gmra.mxu1 %v8064_v20 }
 0xcc4   : > { %9290 = vmatmul.mubr.bf16.gmra.mxu0 %v8066_v44 }
 0xce8   : > { %v9035_v28 = vpop.f32.mrf.mxu0 }
 0xce9   : > { %v8922_v11 = vpop.f32.mrf.mxu1 }
 0xcea   : > { %v8923_v37 = vadd.f32 %v8922_v11, %v16107_v5  ;;  %v9037_v36 = vpop.f32.mrf.mxu0 }
 0xceb   : > { %v8924_v58 = vpop.f32.mrf.mxu1 }
 0xcec   : > { %v16186_v38 = vadd.f32 %v9035_v28, %v8923_v37  ;;  %v8925_v27 = vadd.f32 %v8924_v58, %v16116_v0  ;;  %v9039_v24 = vpop.f32.mrf.mxu0 }
 0xced   : > { %v8926_v62 = vpop.f32.mrf.mxu1 }
 0xcee   : > { %v16189_v42 = vadd.f32 %v9037_v36, %v8925_v27  ;;  %v8927_v60 = vadd.f32 %v8926_v62, %v16107_v5  ;;  %v9041_v18 = vpop.f32.mrf.mxu0 }
 0xcef   : > { %v8928_v59 = vpop.f32.mrf.mxu1 }
 0xcf0   : > { %v16192_v30 = vadd.f32 %v9039_v24, %v8927_v60  ;;  %v8929_v63 = vadd.f32 %v8928_v59, %v16116_v0 }
 0xcf2   : > { %v16195_v41 = vadd.f32 %v9041_v18, %v8929_v63 }
 0xcf4   : > { %v8932_v3 = vpop.f32.mrf.mxu1 }
 0xcf5   : > { %v8933_v22 = vadd.f32 %v8932_v3, %v16107_v5  ;;  %v9045_v48 = vpop.f32.mrf.mxu0 }
 0xcf6   : > { %v8934_v23 = vpop.f32.mrf.mxu1 }
 0xcf7   : > { %v16198_v4 = vadd.f32 %v9045_v48, %v8933_v22  ;;  %v8935_v40 = vadd.f32 %v8934_v23, %v16116_v0  ;;  %v9047_v57 = vpop.f32.mrf.mxu0 }
 0xcf8   : > { %v8936_v15 = vpop.f32.mrf.mxu1 }
 0xcf9   : > { %v16201_v32 = vadd.f32 %v9047_v57, %v8935_v40  ;;  %v8937_v53 = vadd.f32 %v8936_v15, %v16107_v5  ;;  %v9049_v39 = vpop.f32.mrf.mxu0 }
 0xcfa   : > { %v8938_v47 = vpop.f32.mrf.mxu1 }
 0xcfb   : > { %v16204_v13 = vadd.f32 %v9049_v39, %v8937_v53  ;;  %v8939_v61 = vadd.f32 %v8938_v47, %v16116_v0  ;;  %v9051_v56 = vpop.f32.mrf.mxu0  ;;  %v8883_v47 = vadd.f32 %v16076_v14, %v16107_v5 }
 0xcfd   : > { %v16207_v33 = vadd.f32 %v9051_v56, %v8939_v61  ;;  %v8885_v56 = vadd.f32 %v16082_v9, %v16116_v0 }
 0xd02   : > { %v8942_v1 = vpop.f32.mrf.mxu1  ;;  %v9055_v17 = vpop.f32.mrf.mxu0 }
 0xd03   : > { %v8943_v10 = vadd.f32 %v8942_v1, %v16107_v5  ;;  %v8996_v1 = vadd.f32 %v16078_v16, %v8883_v47 }
 0xd04   : > { %v8944_v25 = vpop.f32.mrf.mxu1  ;;  %v9057_v26 = vpop.f32.mrf.mxu0 }
 0xd05   : > { %v16210_v50 = vadd.f32 %v9055_v17, %v8943_v10  ;;  %v8945_v46 = vadd.f32 %v8944_v25, %v16116_v0  ;;  %v8887_v17 = vadd.f32 %v16094_v45, %v16107_v5  ;;  %v16677_v45 = vld [vmem:[#allocation41_spill] sm:$0xff] }
 0xd06   : > { %v8946_v20 = vpop.f32.mrf.mxu1  ;;  %v9059_v8 = vpop.f32.mrf.mxu0 }
 0xd07   : > { %v16213_v44 = vadd.f32 %v9057_v26, %v8945_v46  ;;  %v8947_v11 = vadd.f32 %v8946_v20, %v16107_v5  ;;  %v8998_v26 = vadd.f32 %v16086_v7, %v8885_v56  ;;  %v8889_v46 = vadd.f32 %v16104_v52, %v16116_v0  ;;  %v16678_v7 = vld [vmem:[#allocation38_spill] sm:$0xff] }
 0xd08   : > { %v8948_v28 = vpop.f32.mrf.mxu1  ;;  %v9061_v36 = vpop.f32.mrf.mxu0 }
 0xd09   : > { %v16216_v37 = vadd.f32 %v9059_v8, %v8947_v11  ;;  %v8949_v58 = vadd.f32 %v8948_v28, %v16116_v0  ;;  %v9000_v11 = vadd.f32 %v16096_v49, %v8887_v17 }
 0xd0b   : > { %v16219_v27 = vadd.f32 %v9061_v36, %v8949_v58  ;;  %v9002_v36 = vadd.f32 %v16109_v55, %v8889_v46  ;;  %v16679_v55 = vld [vmem:[#allocation40_spill] sm:$0xff] }
 0xd10   : > { %v8952_v62 = vpop.f32.mrf.mxu1 }
 0xd11   : > { %v8953_v24 = vadd.f32 %v8952_v62, %v16107_v5  ;;  %v9065_v60 = vpop.f32.mrf.mxu0 }
 0xd12   : > { %v8954_v59 = vpop.f32.mrf.mxu1 }
 0xd13   : > { %v16222_v63 = vadd.f32 %v9065_v60, %v8953_v24  ;;  %v8955_v18 = vadd.f32 %v8954_v59, %v16116_v0  ;;  %v9067_v3 = vpop.f32.mrf.mxu0 }
 0xd14   : > { %v8956_v22 = vpop.f32.mrf.mxu1 }
 0xd15   : > { %v16225_v48 = vadd.f32 %v9067_v3, %v8955_v18  ;;  %v8957_v23 = vadd.f32 %v8956_v22, %v16107_v5  ;;  %v9069_v40 = vpop.f32.mrf.mxu0  ;;  %v16680_v22 = vld [vmem:[#allocation37_spill] sm:$0xff] }
 0xd16   : > { %v8958_v57 = vpop.f32.mrf.mxu1 }
 0xd17   : > { %v16228_v15 = vadd.f32 %v9069_v40, %v8957_v23  ;;  %v8959_v53 = vadd.f32 %v8958_v57, %v16116_v0  ;;  %v9071_v39 = vpop.f32.mrf.mxu0 }
 0xd19   : > { %v16233_v61 = vadd.f32 %v9071_v39, %v8959_v53 }
 0xd1e   : > { %v9108_v10 = vpop.f32.mrf.mxu1  ;;  %v9221_v25 = vpop.f32.mrf.mxu0 }
 0xd1f   : > { %v9109_v20 = vadd.f32 %v9108_v10, %v8996_v1  ;;  %v16681_v10 = vld [vmem:[#allocation43_spill] sm:$0xff] }
 0xd20   : > { %v9110_v14 = vpop.f32.mrf.mxu1  ;;  %v9223_v8 = vpop.f32.mrf.mxu0 }
 0xd21   : > { %v9222_v28 = vadd.f32 %v9221_v25, %v9109_v20  ;;  %v9111_v9 = vadd.f32 %v9110_v14, %v8998_v26 }
 0xd22   : > { %v9112_v58 = vpop.f32.mrf.mxu1  ;;  %v9225_v16 = vpop.f32.mrf.mxu0 }
 0xd23   : > { %v9300_v5 = vadd.f32 %v9222_v28, %v16677_v45  ;;  %v9224_v62 = vadd.f32 %v9223_v8, %v9111_v9  ;;  %v9113_v24 = vadd.f32 %v9112_v58, %v9000_v11  ;;  %v16682_v8 = vld [vmem:[#allocation42_spill] sm:$0xff] }
 0xd24   : > { %v9114_v60 = vpop.f32.mrf.mxu1  ;;  %v9227_v59 = vpop.f32.mrf.mxu0 }
 0xd25   : > { %9332 = vst [vmem:[%s16248_s6] sm:$0xff] %v9300_v5  ;;  %v9301_v49 = vadd.f32 %v9224_v62, %v16678_v7  ;;  %v9226_v52 = vadd.f32 %v9225_v16, %v9113_v24  ;;  %v9115_v0 = vadd.f32 %v9114_v60, %v9002_v36  ;;  %v16684_v36 = vld [vmem:[#allocation44_spill] sm:$0xff] }
 0xd27   : > { %9333 = vst [vmem:[%s16248_s6 + $0x8] sm:$0xff] %v9301_v49  ;;  %v9302_v18 = vadd.f32 %v9226_v52, %v16679_v55  ;;  %v9228_v3 = vadd.f32 %v9227_v59, %v9115_v0  ;;  %v16685_v52 = vld [vmem:[#allocation47_spill] sm:$0xff] }
 0xd29   : > { %9334 = vst [vmem:[%s16248_s6 + $0x10] sm:$0xff] %v9302_v18  ;;  %v9303_v23 = vadd.f32 %v9228_v3, %v16680_v22  ;;  %v16686_v22 = vld [vmem:[#allocation45_spill] sm:$0xff] }
 0xd2b   : > { %9335 = vst [vmem:[%s16248_s6 + $0x18] sm:$0xff] %v9303_v23 }
 0xd2c   : > { %v9118_v40 = vpop.f32.mrf.mxu1 }
 0xd2d   : > { %v9119_v57 = vadd.f32 %v9118_v40, %v16121_v29  ;;  %v9231_v53 = vpop.f32.mrf.mxu0 }
 0xd2e   : > { %v9120_v39 = vpop.f32.mrf.mxu1 }
 0xd2f   : > { %v9232_v47 = vadd.f32 %v9231_v53, %v9119_v57  ;;  %v9121_v56 = vadd.f32 %v9120_v39, %v16125_v34  ;;  %v9233_v1 = vpop.f32.mrf.mxu0  ;;  %v16683_v34 = vld [vmem:[#allocation46_spill] sm:$0xff] }
 0xd30   : > { %v9122_v17 = vpop.f32.mrf.mxu1 }
 0xd31   : > { %v9304_v25 = vadd.f32 %v9232_v47, %v16681_v10  ;;  %v9234_v26 = vadd.f32 %v9233_v1, %v9121_v56  ;;  %v9123_v46 = vadd.f32 %v9122_v17, %v16128_v19  ;;  %v9235_v20 = vpop.f32.mrf.mxu0 }
 0xd32   : > { %v9124_v14 = vpop.f32.mrf.mxu1 }
 0xd33   : > { %9336 = vst [vmem:[%s16248_s6 + $0x20] sm:$0xff] %v9304_v25  ;;  %v9305_v29 = vadd.f32 %v9234_v26, %v16682_v8  ;;  %v9236_v11 = vadd.f32 %v9235_v20, %v9123_v46  ;;  %v9125_v28 = vadd.f32 %v9124_v14, %v16136_v54  ;;  %v9237_v9 = vpop.f32.mrf.mxu0  ;;  %v16689_v20 = vld [vmem:[#allocation49_spill] sm:$0xff] }
 0xd35   : > { %9337 = vst [vmem:[%s16248_s6 + $0x28] sm:$0xff] %v9305_v29  ;;  %v9306_v58 = vadd.f32 %v9236_v11, %v16683_v34  ;;  %v9238_v16 = vadd.f32 %v9237_v9, %v9125_v28  ;;  %v16690_v28 = vld [vmem:[#allocation48_spill] sm:$0xff] }
 0xd37   : > { %9338 = vst [vmem:[%s16248_s6 + $0x30] sm:$0xff] %v9306_v58  ;;  %v9307_v45 = vadd.f32 %v9238_v16, %v16684_v36 }
 0xd38   : > { %v9128_v5 = vpop.f32.mrf.mxu1 }
 0xd39   : > { %9339 = vst [vmem:[%s16248_s6 + $0x38] sm:$0xff] %v9307_v45  ;;  %v9129_v19 = vadd.f32 %v9128_v5, %v16154_v51  ;;  %v9241_v62 = vpop.f32.mrf.mxu0 }
 0xd3a   : > { %v9130_v24 = vpop.f32.mrf.mxu1 }
 0xd3b   : > { %v9242_v60 = vadd.f32 %v9241_v62, %v9129_v19  ;;  %v9131_v7 = vadd.f32 %v9130_v24, %v16157_v2  ;;  %v9243_v54 = vpop.f32.mrf.mxu0  ;;  %v16687_v2 = vld [vmem:[#allocation39_spill] sm:$0xff] }
 0xd3c   : > { %v9132_v49 = vpop.f32.mrf.mxu1  ;;  %v16692_v19 = vld [vmem:[#allocation51_spill] sm:$0xff] }
 0xd3d   : > { %v9308_v0 = vadd.f32 %v9242_v60, %v16685_v52  ;;  %v9244_v59 = vadd.f32 %v9243_v54, %v9131_v7  ;;  %v9133_v55 = vadd.f32 %v9132_v49, %v16160_v21  ;;  %v9245_v18 = vpop.f32.mrf.mxu0  ;;  %v16688_v21 = vld [vmem:[#allocation36_spill] sm:$0xff] }
 0xd3e   : > { %v9134_v3 = vpop.f32.mrf.mxu1  ;;  %v16693_v52 = vld [vmem:[#allocation52_spill] sm:$0xff] }
 0xd3f   : > { %9340 = vst [vmem:[%s16248_s6 + $0x40] sm:$0xff] %v9308_v0  ;;  %v9309_v23 = vadd.f32 %v9244_v59, %v16686_v22  ;;  %v9246_v51 = vadd.f32 %v9245_v18, %v9133_v55  ;;  %v9135_v40 = vadd.f32 %v9134_v3, %v16163_v12  ;;  %v9247_v57 = vpop.f32.mrf.mxu0 }
 0xd41   : > { %9341 = vst [vmem:[%s16248_s6 + $0x48] sm:$0xff] %v9309_v23  ;;  %v9310_v53 = vadd.f32 %v9246_v51, %v16687_v2  ;;  %v9248_v39 = vadd.f32 %v9247_v57, %v9135_v40 }
 0xd43   : > { %9342 = vst [vmem:[%s16248_s6 + $0x50] sm:$0xff] %v9310_v53  ;;  %v9311_v17 = vadd.f32 %v9248_v39, %v16688_v21  ;;  %v16696_v53 = vld [vmem:[#allocation55_spill] sm:$0xff] }
 0xd45   : > { %v9138_v47 = vpop.f32.mrf.mxu1  ;;  %9343 = vst [vmem:[%s16248_s6 + $0x58] sm:$0xff] %v9311_v17 }
 0xd46   : > { %v9139_v56 = vadd.f32 %v9138_v47, %v16166_v31  ;;  %v9251_v1 = vpop.f32.mrf.mxu0 }
 0xd47   : > { %v9140_v10 = vpop.f32.mrf.mxu1 }
 0xd48   : > { %v9252_v25 = vadd.f32 %v9251_v1, %v9139_v56  ;;  %v9141_v26 = vadd.f32 %v9140_v10, %v16169_v35  ;;  %v9253_v46 = vpop.f32.mrf.mxu0  ;;  %v16691_v35 = vld [vmem:[#allocation50_spill] sm:$0xff] }
 0xd49   : > { %v9142_v12 = vpop.f32.mrf.mxu1 }
 0xd4a   : > { %v9312_v14 = vadd.f32 %v9252_v25, %v16689_v20  ;;  %v9254_v8 = vadd.f32 %v9253_v46, %v9141_v26  ;;  %v9143_v29 = vadd.f32 %v9142_v12, %v16172_v43  ;;  %v9255_v11 = vpop.f32.mrf.mxu0  ;;  %v16697_v25 = vld [vmem:[#allocation56_spill] sm:$0xff] }
 0xd4b   : > { %v9144_v31 = vpop.f32.mrf.mxu1 }
 0xd4c   : > { %9344 = vst [vmem:[%s16248_s6 + $0x60] sm:$0xff] %v9312_v14  ;;  %v9313_v9 = vadd.f32 %v9254_v8, %v16690_v28  ;;  %v9256_v34 = vadd.f32 %v9255_v11, %v9143_v29  ;;  %v9145_v58 = vadd.f32 %v9144_v31, %v16179_v6  ;;  %v9257_v16 = vpop.f32.mrf.mxu0  ;;  %v16698_v8 = vld [vmem:[#allocation57_spill] sm:$0xff] }
 0xd4e   : > { %9345 = vst [vmem:[%s16248_s6 + $0x68] sm:$0xff] %v9313_v9  ;;  %v9314_v36 = vadd.f32 %v9256_v34, %v16691_v35  ;;  %v9258_v45 = vadd.f32 %v9257_v16, %v9145_v58  ;;  %v16700_v58 = vld [vmem:[#allocation59_spill] sm:$0xff] }
 0xd4f   : > { %v9148_v5 = vpop.f32.mrf.mxu1 }
 0xd50   : > { %9346 = vst [vmem:[%s16248_s6 + $0x70] sm:$0xff] %v9314_v36  ;;  %v9315_v62 = vadd.f32 %v9258_v45, %v16692_v19  ;;  %v9149_v43 = vadd.f32 %v9148_v5, %v16186_v38  ;;  %v9261_v24 = vpop.f32.mrf.mxu0  ;;  %v16694_v38 = vld [vmem:[#allocation53_spill] sm:$0xff] }
 0xd51   : > { %v9150_v60 = vpop.f32.mrf.mxu1 }
 0xd52   : > { %9347 = vst [vmem:[%s16248_s6 + $0x78] sm:$0xff] %v9315_v62  ;;  %v9262_v7 = vadd.f32 %v9261_v24, %v9149_v43  ;;  %v9151_v54 = vadd.f32 %v9150_v60, %v16189_v42  ;;  %v9263_v6 = vpop.f32.mrf.mxu0  ;;  %v16695_v42 = vld [vmem:[#allocation54_spill] sm:$0xff]  ;;  %v16701_v62 = vld [vmem:[#allocation60_spill] sm:$0xff] }
 0xd53   : > { %v9152_v49 = vpop.f32.mrf.mxu1 }
 0xd54   : > { %v9316_v0 = vadd.f32 %v9262_v7, %v16693_v52  ;;  %v9264_v59 = vadd.f32 %v9263_v6, %v9151_v54  ;;  %v9153_v55 = vadd.f32 %v9152_v49, %v16192_v30  ;;  %v9265_v18 = vpop.f32.mrf.mxu0 }
 0xd55   : > { %v9154_v3 = vpop.f32.mrf.mxu1 }
 0xd56   : > { %9348 = vst [vmem:[%s16248_s6 + $0x80] sm:$0xff] %v9316_v0  ;;  %v9317_v22 = vadd.f32 %v9264_v59, %v16694_v38  ;;  %v9266_v23 = vadd.f32 %v9265_v18, %v9153_v55  ;;  %v9155_v51 = vadd.f32 %v9154_v3, %v16195_v41  ;;  %v9267_v40 = vpop.f32.mrf.mxu0  ;;  %v16704_v18 = vld [vmem:[#allocation63_spill] sm:$0xff] }
 0xd58   : > { %9349 = vst [vmem:[%s16248_s6 + $0x88] sm:$0xff] %v9317_v22  ;;  %v9318_v57 = vadd.f32 %v9266_v23, %v16695_v42  ;;  %v9268_v2 = vadd.f32 %v9267_v40, %v9155_v51 }
 0xd5a   : > { %9350 = vst [vmem:[%s16248_s6 + $0x90] sm:$0xff] %v9318_v57  ;;  %v9319_v39 = vadd.f32 %v9268_v2, %v16696_v53  ;;  %v16705_v57 = vld [vmem:[#allocation64_spill] sm:$0xff] }
 0xd5c   : > { %9351 = vst [vmem:[%s16248_s6 + $0x98] sm:$0xff] %v9319_v39 }
 0xd65   : > { %v9158_v47 = vpop.f32.mrf.mxu1 }
 0xd66   : > { %v9159_v30 = vadd.f32 %v9158_v47, %v16198_v4  ;;  %v9271_v56 = vpop.f32.mrf.mxu0 }
 0xd67   : > { %v9160_v1 = vpop.f32.mrf.mxu1 }
 0xd68   : > { %v9272_v21 = vadd.f32 %v9271_v56, %v9159_v30  ;;  %v9161_v17 = vadd.f32 %v9160_v1, %v16201_v32  ;;  %v9273_v41 = vpop.f32.mrf.mxu0  ;;  %v16699_v32 = vld [vmem:[#allocation58_spill] sm:$0xff] }
 0xd69   : > { %v9162_v10 = vpop.f32.mrf.mxu1 }
 0xd6a   : > { %v9320_v26 = vadd.f32 %v9272_v21, %v16697_v25  ;;  %v9274_v46 = vadd.f32 %v9273_v41, %v9161_v17  ;;  %v9163_v12 = vadd.f32 %v9162_v10, %v16204_v13  ;;  %v9275_v20 = vpop.f32.mrf.mxu0  ;;  %v16707_v17 = vld [vmem:[#allocation66_spill] sm:$0xff] }
 0xd6b   : > { %v9164_v14 = vpop.f32.mrf.mxu1 }
 0xd6c   : > { %9352 = vst [vmem:[%s16248_s6 + $0xa0] sm:$0xff] %v9320_v26  ;;  %v9321_v4 = vadd.f32 %v9274_v46, %v16698_v8  ;;  %v9276_v29 = vadd.f32 %v9275_v20, %v9163_v12  ;;  %v9165_v11 = vadd.f32 %v9164_v14, %v16207_v33  ;;  %v9277_v31 = vpop.f32.mrf.mxu0 }
 0xd6e   : > { %9353 = vst [vmem:[%s16248_s6 + $0xa8] sm:$0xff] %v9321_v4  ;;  %v9322_v28 = vadd.f32 %v9276_v29, %v16699_v32  ;;  %v9278_v9 = vadd.f32 %v9277_v31, %v9165_v11 }
 0xd6f   : > { %v9168_v34 = vpop.f32.mrf.mxu1 }
 0xd70   : > { %9354 = vst [vmem:[%s16248_s6 + $0xb0] sm:$0xff] %v9322_v28  ;;  %v9323_v16 = vadd.f32 %v9278_v9, %v16700_v58  ;;  %v9169_v13 = vadd.f32 %v9168_v34, %v16210_v50  ;;  %v9281_v35 = vpop.f32.mrf.mxu0  ;;  %v16702_v50 = vld [vmem:[#allocation61_spill] sm:$0xff] }
 0xd71   : > { %v9170_v36 = vpop.f32.mrf.mxu1 }
 0xd72   : > { %9355 = vst [vmem:[%s16248_s6 + $0xb8] sm:$0xff] %v9323_v16  ;;  %v9282_v45 = vadd.f32 %v9281_v35, %v9169_v13  ;;  %v9171_v5 = vadd.f32 %v9170_v36, %v16213_v44  ;;  %v9283_v33 = vpop.f32.mrf.mxu0  ;;  %v16703_v44 = vld [vmem:[#allocation62_spill] sm:$0xff] }
 0xd73   : > { %v9172_v19 = vpop.f32.mrf.mxu1 }
 0xd74   : > { %v9324_v43 = vadd.f32 %v9282_v45, %v16701_v62  ;;  %v9284_v24 = vadd.f32 %v9283_v33, %v9171_v5  ;;  %v9173_v60 = vadd.f32 %v9172_v19, %v16216_v37  ;;  %v9285_v7 = vpop.f32.mrf.mxu0 }
 0xd75   : > { %v9174_v54 = vpop.f32.mrf.mxu1 }
 0xd76   : > { %9356 = vst [vmem:[%s16248_s6 + $0xc0] sm:$0xff] %v9324_v43  ;;  %v9325_v6 = vadd.f32 %v9284_v24, %v16702_v50  ;;  %v9286_v49 = vadd.f32 %v9285_v7, %v9173_v60  ;;  %v9175_v52 = vadd.f32 %v9174_v54, %v16219_v27  ;;  %v9287_v0 = vpop.f32.mrf.mxu0 }
 0xd78   : > { %9357 = vst [vmem:[%s16248_s6 + $0xc8] sm:$0xff] %v9325_v6  ;;  %v9326_v59 = vadd.f32 %v9286_v49, %v16703_v44  ;;  %v9288_v55 = vadd.f32 %v9287_v0, %v9175_v52 }
 0xd7a   : > { %9358 = vst [vmem:[%s16248_s6 + $0xd0] sm:$0xff] %v9326_v59  ;;  %v9327_v3 = vadd.f32 %v9288_v55, %v16704_v18 }
 0xd7c   : > { %9359 = vst [vmem:[%s16248_s6 + $0xd8] sm:$0xff] %v9327_v3 }
 0xd83   : > { %v9178_v38 = vpop.f32.mrf.mxu1 }
 0xd84   : > { %v9179_v37 = vadd.f32 %v9178_v38, %v16222_v63  ;;  %v9291_v22 = vpop.f32.mrf.mxu0  ;;  %v16706_v63 = vld [vmem:[#allocation65_spill] sm:$0xff] }
 0xd85   : > { %v9180_v23 = vpop.f32.mrf.mxu1 }
 0xd86   : > { %v9292_v51 = vadd.f32 %v9291_v22, %v9179_v37  ;;  %v9181_v27 = vadd.f32 %v9180_v23, %v16225_v48  ;;  %v9293_v40 = vpop.f32.mrf.mxu0 }
 0xd87   : > { %v9182_v42 = vpop.f32.mrf.mxu1 }
 0xd88   : > { %v9328_v2 = vadd.f32 %v9292_v51, %v16705_v57  ;;  %v9294_v53 = vadd.f32 %v9293_v40, %v9181_v27  ;;  %v9183_v39 = vadd.f32 %v9182_v42, %v16228_v15  ;;  %v9295_v47 = vpop.f32.mrf.mxu0  ;;  %v16708_v15 = vld [vmem:[#allocation67_spill] sm:$0xff] }
 0xd89   : > { %v9184_v30 = vpop.f32.mrf.mxu1 }
 0xd8a   : > { %9360 = vst [vmem:[%s16248_s6 + $0xe0] sm:$0xff] %v9328_v2  ;;  %v9329_v56 = vadd.f32 %v9294_v53, %v16706_v63  ;;  %v9296_v1 = vadd.f32 %v9295_v47, %v9183_v39  ;;  %v9185_v21 = vadd.f32 %v9184_v30, %v16233_v61  ;;  %v9297_v48 = vpop.f32.mrf.mxu0 }
 0xd8c   : > { %9361 = vst [vmem:[%s16248_s6 + $0xe8] sm:$0xff] %v9329_v56  ;;  %v9330_v41 = vadd.f32 %v9296_v1, %v16707_v17  ;;  %v9298_v10 = vadd.f32 %v9297_v48, %v9185_v21 }
 0xd8e   : > { %9362 = vst [vmem:[%s16248_s6 + $0xf0] sm:$0xff] %v9330_v41  ;;  %v9331_v61 = vadd.f32 %v9298_v10, %v16708_v15 }
 0xd90   : > { %9363 = vst [vmem:[%s16248_s6 + $0xf8] sm:$0xff] %v9331_v61 }
 0xd91   : > { %12552 = shalt.err (!%p12549_p4)
}
 0xd92   : > { %s12553_s17 = scalar_lea.hbm %s16343_s20, 4096  ;;  %s12557_s7 = scalar_lea.hbm %s16405_s14, 8192 }
 0xd93   : > { %p12554_p13 = scmp.ne.s32.totalorder %s16343_s20, %s12553_s17  ;;  %p12558_p9 = scmp.lt.s32.totalorder %s16343_s20, %s16405_s14 }
 0xd94   : > { %p12559_p11 = scmp.lt.s32.totalorder %s12557_s7, %s12553_s17 }
 0xd95   : > { %p12555_p0 = pnand %p12554_p13, %p16709_p5 }
 0xd96   : > { %p12560_p12 = por %p12559_p11, %p12558_p9 }
 0xd97   : > { %p12556_p6 = pneg %p12555_p0 }
 0xd99   : > { %p12561_p2 = pnand %p12560_p12, %p12556_p6 }
 0xd9b   : > { %12564 = shalt.err (!%p12561_p2)
}
 0xd9c   : > { %s12649_s26 = smov 256   ;;  %s12650_s21 = smov 16  }
 0xd9d   : > { %10775 = dma.vmem_to_hbm [thread:$0]  (%p16709_p5), %s16345_s8, 4096, %s16343_s20, %s9365_s19, %s12649_s26, %s12649_s26, %s12650_s21  }
 0xd9e PF: > { %s9393_s6 = sand.u32 1, %s12615_s29   ;;  %p16710_p1 = scmp.ne.s32.totalorder %s16527_s18, 0 }
 0xd9f   : > { %p16711_p7 = scmp.ge.s32.totalorder %s12627_s16, 2  ;;  %s9394_s25 = scalar_lea.sflag [#allocation6], %s9393_s6 }
 0xda1   : > { %p10810_p8 = pnand %p16711_p7, %p16710_p1 }
 0xda3   : > { %p10811_p10 = pneg %p10810_p8 }
 0xda5   : > { %12610 = dma.done.wait (%p10811_p10), %s9394_s25, 4096  }
 0xda6   : > { %12612 = vsyncadd (%p10811_p10), %s9394_s25, 4294963200  ;;  %s16712_s16 = sld [smem:[#allocation31_spill]]  ;;  %s16715_s29 = smov %s12619_s30 }
 0xda7   : > { %s16713_s0 = sld [smem:[#allocation30_spill]] }
 0xda8   : > { %s16714_s15 = sld [smem:[#allocation32_spill]] }
 0xdac   : > { %p34_p3 = scmp.ge.s32.totalorder %s16712_s16, 4  }
 0xdad   : > { %s16716_s30 = smov %s16713_s0 }
 0xdae   :  { %36 = sbr.rel (!%p34_p3) target bundleno = 21 (0x15), region = 166 }
 0xdb3   :  { %9399 = vsyncpa [#allocation5], 1 }
 0xdb4   :  { %9401 = vsyncpa [#allocation5 + $0x1], 1 }
 0xdb5   :  { %9402 = vsyncpa [#allocation8], 1 }
 0xdb6   :  { %9404 = vsyncpa [#allocation8 + $0x1], 1 }
 0xdb7   :  { %9405 = vsyncpa [#allocation11], 1 }
 0xdb8   :  { %9406 = vsyncpa [#allocation14], 1 }
 0xdb9   :  { %9407 = vsyncpa [#allocation17], 1 }
 0xdba   :  { %9408 = vsyncpa [#allocation20], 1 }
 0xdbb   :  { %9409 = vsyncpa [#allocation6], 1 }
 0xdbc   :  { %9411 = vsyncpa [#allocation6 + $0x1], 1 }

</bundles_post_ra>
